<compile_context>
chip_gen: v5e
topology: v5e:2x2
jax: 0.10.0
libtpu: 0.0.40
codegen_flags: <defaults>
</compile_context>

<pallas_src>
import functools

import numpy as np
import jax
import jax.numpy as jnp
from jax.experimental import pallas as pl
from jax.experimental.pallas import tpu as pltpu


# ----------------------------------------------------------------------------
# The fused kernel: whole HEF_block forward for one batch element.
# ----------------------------------------------------------------------------
def hef_fused_kernel(
    # per-batch data blocks
    l_ref, g_ref, f_ref,
    # X_f path
    updim_w_ref, updim_sb_ref, pool_ref, wlg_w_ref, wlg_sb_ref,
    norm1_gb_ref, w3_w_ref, w3_sb_ref,
    # attention branch "l"
    norml_gb_ref, mkl_ref, mvl_ref, sal_a_ref, sal_m_ref, cal1_ref, cal2_ref,
    # attention branch "g"
    normg_gb_ref, mkg_ref, mvg_ref, sag_a_ref, sag_m_ref, cag1_ref, cag2_ref,
    # shared MEA per-head block-ones matrix (segmented row sums via matmul)
    ones_ref,
    # fuse + SIRMLP
    norm3_gb_ref, convs_w_ref, convs_sb_ref, conv1_w_ref, bn1_sb_ref,
    mask9_ref, conv2_w_ref, conv3_w_ref, conv3_sb_ref,
    # output
    o_ref,
    *, H, W, eps):
  HW = H * W
  f32 = jnp.float32
  bf16 = jnp.bfloat16

  def mm(a, w_ref):
    # bf16 MXU matmul with f32 accumulation (weights are stored in bf16).
    return jnp.dot(a.astype(bf16), w_ref[...], preferred_element_type=f32)

  def scale_bias(y, sb_ref):
    sb = sb_ref[...]                      # (2, C): row 0 scale, row 1 bias
    return y * sb[0:1, :] + sb[1:2, :]

  def layer_norm(x, gb_ref):
    gb = gb_ref[...]                      # (2, C): row 0 gamma, row 1 beta
    mu = jnp.mean(x, axis=-1, keepdims=True)
    xc = x - mu
    var = jnp.mean(xc * xc, axis=-1, keepdims=True)
    return (xc * jax.lax.rsqrt(var + eps)) * gb[0:1, :] + gb[1:2, :]

  def gelu(x):
    # TODO(synk): nn.GELU() is exact erf-GELU; tanh approximation is used here.
    return jax.nn.gelu(x, approximate=True)

  xl = l_ref[0]          # (HW, ch_1) f32
  xg = g_ref[0]          # (HW, ch_2) f32
  fmap = f_ref[0]        # (4*HW, ch_int//2) f32

  # ------- X_f path: Updim(1x1+BN+ReLU) -> AvgPool(2,2) -> cat -> norm1 -> W3 -> GELU
  wf = jnp.maximum(scale_bias(mm(fmap, updim_w_ref), updim_sb_ref), 0.0)     # (4HW, ci)
  # TODO(synk): avgpool as a dense (HW, 4HW) operator is fine at 8x8 but O(HW^2);
  # switch to a reshape/roll-based pool before scaling the spatial size.
  wf = jnp.dot(pool_ref[...], wf.astype(bf16), preferred_element_type=f32)   # (HW, ci)
  shortcut = wf
  # W_l and W_g fused into one block-diagonal matmul (lane width 2*ci).
  wlg = scale_bias(mm(jnp.concatenate([xl, xg], axis=-1), wlg_w_ref), wlg_sb_ref)
  x_f = jnp.concatenate([wf, wlg], axis=-1)                                  # (HW, 3ci)
  x_f = gelu(scale_bias(mm(layer_norm(x_f, norm1_gb_ref), w3_w_ref), w3_sb_ref))

  # ------- attention branch (norm module reused twice, exactly as in the reference)
  def attn_branch(x, norm_gb, mk_ref, mv_ref, sa_a_ref, sa_m_ref, ca1_ref, ca2_ref):
    xn = layer_norm(x, norm_gb)                                  # jump0
    # TODO(synk): MultiHeadExternalAttention source not provided; standard external
    # attention (softmax over tokens, per-head L1 renorm over memory, no shortcut).
    attn = mm(xn, mk_ref)                                        # (HW, heads*S), block-diag Mk
    attn = attn - jnp.max(attn, axis=0, keepdims=True)
    attn = jnp.exp(attn)
    attn = attn / jnp.sum(attn, axis=0, keepdims=True)           # softmax over tokens
    denom = jnp.dot(attn, ones_ref[...], preferred_element_type=f32)  # per-head row sums
    attn = attn / (denom + 1e-9)                                 # double normalization
    x1 = xn * mm(attn, mv_ref)                                   # jump0 * MEA(x)
    xn2 = layer_norm(x1, norm_gb)                                # jump1
    # SpatialAttention(k=7): channel mean/max -> 7x7 conv (precomputed operator) -> sigmoid
    avg = jnp.mean(xn2, axis=-1, keepdims=True)                  # (HW, 1)
    mx = jnp.max(xn2, axis=-1, keepdims=True)                    # (HW, 1)
    conv = (jnp.dot(sa_a_ref[...], avg.astype(bf16), preferred_element_type=f32)
            + jnp.dot(sa_m_ref[...], mx.astype(bf16), preferred_element_type=f32))
    x2 = xn2 * jax.nn.sigmoid(conv)                              # jump1 * SA -> jump2
    # ChannelAttention(ratio=16): spatial avg/max pool -> fc1/ReLU/fc2 -> sigmoid
    def ca_mlp(v):
      return mm(jnp.maximum(mm(v, ca1_ref), 0.0), ca2_ref)
    att = jax.nn.sigmoid(ca_mlp(jnp.mean(x2, axis=0, keepdims=True))
                         + ca_mlp(jnp.max(x2, axis=0, keepdims=True)))   # (1, C)
    return x2 * att                                              # jump2 * CA

  l_out = attn_branch(xl, norml_gb_ref, mkl_ref, mvl_ref, sal_a_ref, sal_m_ref,
                      cal1_ref, cal2_ref)
  g_out = attn_branch(xg, normg_gb_ref, mkg_ref, mvg_ref, sag_a_ref, sag_m_ref,
                      cag1_ref, cag2_ref)

  # ------- fuse -> norm3 -> SIRMLP -> + shortcut   (DropPath(0.0) == identity)
  fuse = layer_norm(jnp.concatenate([g_out, l_out, x_f], axis=-1), norm3_gb_ref)
  xs = scale_bias(mm(fuse, convs_w_ref), convs_sb_ref)           # conv_s: (HW, ci)

  # 3x3 conv: 9 shifted+masked taps concatenated on lanes -> one K=9*ci matmul.
  # (Shifts are static rolls along the flattened-HW axis; masks kill row/col wrap.
  #  pltpu.roll can replace jnp.roll for XLU offload at production sizes.)
  taps = []
  for t in range(9):
    dy, dx = t // 3 - 1, t % 3 - 1
    off = dy * W + dx
    shifted = xs if off == 0 else jnp.roll(xs, -off, axis=0)
    taps.append(shifted * mask9_ref[t])                          # (HW, ci)
  out = mm(jnp.concatenate(taps, axis=-1), conv1_w_ref)          # (HW, ci)
  out = scale_bias(gelu(out) + xs, bn1_sb_ref)                   # GELU, +residual, bn1
  out = gelu(mm(out, conv2_w_ref))                               # conv2 -> GELU
  out = scale_bias(mm(out, conv3_w_ref), conv3_sb_ref)           # conv3 (+BN)

  o_ref[0] = (shortcut + out).astype(o_ref.dtype)


# ----------------------------------------------------------------------------
# Wrapper: layout conversion + single pallas_call
# ----------------------------------------------------------------------------
WEIGHT_KEYS = (
    "updim_w", "updim_sb", "pool_op", "wlg_w", "wlg_sb",
    "norm1_gb", "w3_w", "w3_sb",
    "norm_l_gb", "mea_l_mk", "mea_l_mv", "sa_l_opa", "sa_l_opm", "ca_l_w1", "ca_l_w2",
    "norm_g_gb", "mea_g_mk", "mea_g_mv", "sa_g_opa", "sa_g_opm", "ca_g_w1", "ca_g_w2",
    "mea_ones",
    "norm3_gb", "conv_s_w", "conv_s_sb", "conv1_w", "bn1_sb", "mask9",
    "conv2_w", "conv3_w", "conv3_sb",
)


def hef_block_forward(p, l, g, f):
  B, c1, Hh, Ww = l.shape
  c2 = g.shape[1]
  cf = f.shape[1]
  HW = Hh * Ww
  ch_out = p["conv3_w"].shape[1]

  def to_nlc(x):
    b, c, h, w = x.shape
    return jnp.transpose(x, (0, 2, 3, 1)).reshape(b, h * w, c)

  l3, g3, f3 = to_nlc(l), to_nlc(g), to_nlc(f)
  weights = [p[k] for k in WEIGHT_KEYS]

  def wspec(arr):
    if arr.ndim == 2:
      return pl.BlockSpec(arr.shape, lambda b: (0, 0))
    return pl.BlockSpec(arr.shape, lambda b: (0, 0, 0))

  out3 = pl.pallas_call(
      functools.partial(hef_fused_kernel, H=Hh, W=Ww, eps=1e-6),
      out_shape=jax.ShapeDtypeStruct((B, HW, ch_out), jnp.float32),
      grid=(B,),
      in_specs=[
          pl.BlockSpec((1, HW, c1), lambda b: (b, 0, 0)),
          pl.BlockSpec((1, HW, c2), lambda b: (b, 0, 0)),
          pl.BlockSpec((1, 4 * HW, cf), lambda b: (b, 0, 0)),
      ] + [wspec(w) for w in weights],
      out_specs=pl.BlockSpec((1, HW, ch_out), lambda b: (b, 0, 0)),
      compiler_params=pltpu.CompilerParams(dimension_semantics=("parallel",)),
  )(l3, g3, f3, *weights)

  return out3.reshape(B, Hh, Ww, ch_out).transpose(0, 3, 1, 2)


# ----------------------------------------------------------------------------
# Glue: constant operator construction + parameter init
# ----------------------------------------------------------------------------
def conv_op_matrix(w_kk, H, W):
  """Dense operator for a single-channel KxK 'same' cross-correlation on HxW."""
  kh, kw = w_kk.shape
  ph, pw = kh // 2, kw // 2
  m = np.zeros((H * W, H * W), np.float32)
  for i in range(H):
    for j in range(W):
      for dy in range(kh):
        for dx in range(kw):
          i2, j2 = i + dy - ph, j + dx - pw
          if 0 <= i2 < H and 0 <= j2 < W:
            m[i * W + j, i2 * W + j2] += float(w_kk[dy, dx])
  return m


def avgpool2_matrix(H, W):
  m = np.zeros((H * W, 4 * H * W), np.float32)
  for i in range(H):
    for j in range(W):
      for a in range(2):
        for b in range(2):
          m[i * W + j, (2 * i + a) * (2 * W) + (2 * j + b)] = 0.25
  return m


def shift_masks_3x3(H, W):
  m = np.zeros((9, H * W, 1), np.float32)
  for dy in range(3):
    for dx in range(3):
      t = dy * 3 + dx
      for i in range(H):
        for j in range(W):
          if 0 <= i + dy - 1 < H and 0 <= j + dx - 1 < W:
            m[t, i * W + j, 0] = 1.0
  return m


def make_params(key, ch_1, ch_2, ch_int, ch_out, H, W, heads=4, mem_s=16):
  keys = iter(jax.random.split(key, 128))

  def nrm(shape, scale=0.1):
    return np.asarray(jax.random.normal(next(keys), shape), np.float32) * np.float32(scale)

  def bn_fold(cout, conv_bias=None, eps=1e-5):
    # inference-mode BatchNorm folded to (2, C) stacked [scale; bias]
    gamma = 1.0 + nrm((cout,), 0.05)
    beta = nrm((cout,), 0.05)
    mean = nrm((cout,), 0.05)
    var = 1.0 + np.abs(nrm((cout,), 0.05))
    scale = gamma / np.sqrt(var + eps)
    cb = conv_bias if conv_bias is not None else np.zeros((cout,), np.float32)
    bias = (cb - mean) * scale + beta
    return np.stack([scale, bias]).astype(np.float32)

  def ln(c):
    return np.stack([1.0 + nrm((c,), 0.05), nrm((c,), 0.05)]).astype(np.float32)

  bf = lambda a: jnp.asarray(a, jnp.bfloat16)
  f32 = lambda a: jnp.asarray(a, jnp.float32)

  p = {}
  # W_l / W_g 1x1 convs (+BN) fused into one block-diagonal matmul
  w_l, w_g = nrm((ch_1, ch_int)), nrm((ch_2, ch_int))
  wlg = np.zeros((ch_1 + ch_2, 2 * ch_int), np.float32)
  wlg[:ch_1, :ch_int] = w_l
  wlg[ch_1:, ch_int:] = w_g
  p["wlg_w"] = bf(wlg)
  p["wlg_sb"] = f32(np.concatenate([bn_fold(ch_int, nrm((ch_int,), 0.05)),
                                    bn_fold(ch_int, nrm((ch_int,), 0.05))], axis=1))

  # Updim (1x1 + BN + ReLU), AvgPool2d(2,2) as an operator matmul
  p["updim_w"] = bf(nrm((ch_int // 2, ch_int)))
  p["updim_sb"] = f32(bn_fold(ch_int, nrm((ch_int,), 0.05)))
  p["pool_op"] = bf(avgpool2_matrix(H, W))

  p["norm1_gb"] = f32(ln(3 * ch_int))
  p["w3_w"] = bf(nrm((3 * ch_int, ch_int)))
  p["w3_sb"] = f32(bn_fold(ch_int, nrm((ch_int,), 0.05)))

  d = ch_2 // heads
  cm = max(ch_2 // 16, 1)
  for s in ("l", "g"):
    p[f"norm_{s}_gb"] = f32(ln(ch_2))
    mk, mv = nrm((heads, d, mem_s)), nrm((heads, mem_s, d))
    mk_bd = np.zeros((ch_2, heads * mem_s), np.float32)
    mv_bd = np.zeros((heads * mem_s, ch_2), np.float32)
    for h in range(heads):
      mk_bd[h * d:(h + 1) * d, h * mem_s:(h + 1) * mem_s] = mk[h]
      mv_bd[h * mem_s:(h + 1) * mem_s, h * d:(h + 1) * d] = mv[h]
    p[f"mea_{s}_mk"] = bf(mk_bd)
    p[f"mea_{s}_mv"] = bf(mv_bd)
    w7 = nrm((2, 7, 7))                      # Conv2d(2, 1, 7, padding=3, bias=False)
    p[f"sa_{s}_opa"] = bf(conv_op_matrix(w7[0], H, W))
    p[f"sa_{s}_opm"] = bf(conv_op_matrix(w7[1], H, W))
    p[f"ca_{s}_w1"] = bf(nrm((ch_2, cm)))    # Conv2d(C, C//16, 1, bias=False)
    p[f"ca_{s}_w2"] = bf(nrm((cm, ch_2)))    # Conv2d(C//16, C, 1, bias=False)

  ones_blk = np.zeros((heads * mem_s, heads * mem_s), np.float32)
  for h in range(heads):
    ones_blk[h * mem_s:(h + 1) * mem_s, h * mem_s:(h + 1) * mem_s] = 1.0
  p["mea_ones"] = f32(ones_blk)

  cin3 = ch_1 + ch_2 + ch_int
  p["norm3_gb"] = f32(ln(cin3))
  p["conv_s_w"] = bf(nrm((cin3, ch_int)))
  p["conv_s_sb"] = f32(bn_fold(ch_int, nrm((ch_int,), 0.05)))
  p["conv1_w"] = bf(nrm((9 * ch_int, ch_int)))   # 3x3 conv taps, bias=False
  p["bn1_sb"] = f32(bn_fold(ch_int))
  # TODO(synk): conv2 of SIRMLP assumed to have no BN (Conv helper source not given).
  p["conv2_w"] = bf(nrm((ch_int, 4 * ch_int)))
  p["conv3_w"] = bf(nrm((4 * ch_int, ch_out)))
  p["conv3_sb"] = f32(bn_fold(ch_out))
  p["mask9"] = f32(shift_masks_3x3(H, W))
  return p


# ----------------------------------------------------------------------------
if __name__ == "__main__":
  B, H, W = 2, 8, 8
  ch_1 = ch_2 = ch_int = ch_out = 32

  key = jax.random.PRNGKey(0)
  kp, kl, kg, kf = jax.random.split(key, 4)
  params = make_params(kp, ch_1, ch_2, ch_int, ch_out, H, W)

  l = jax.random.normal(kl, (B, ch_1, H, W), dtype=jnp.float32)
  g = jax.random.normal(kg, (B, ch_2, H, W), dtype=jnp.float32)
  f = jax.random.normal(kf, (B, ch_int // 2, 2 * H, 2 * W), dtype=jnp.float32)

  # TODO(synk): only the `f is not None` branch of HEF_block.forward is implemented.
  out = jax.jit(hef_block_forward)(params, l, g, f)
  out = jax.block_until_ready(out)
  assert out.shape == (B, ch_out, H, W), out.shape
  assert bool(jnp.all(jnp.isfinite(out)))
  print("KERNEL_OK")
</pallas_src>

<mosaic_0001>
module attributes {stable_mosaic.version = 11 : i64} {
  func.func @hef_fused_kernel(%arg0: i32, %arg1: memref<1x64x32xf32, #tpu.memory_space<vmem>>, %arg2: memref<1x64x32xf32, #tpu.memory_space<vmem>>, %arg3: memref<1x256x16xf32, #tpu.memory_space<vmem>>, %arg4: memref<16x32xbf16, #tpu.memory_space<vmem>>, %arg5: memref<2x32xf32, #tpu.memory_space<vmem>>, %arg6: memref<64x256xbf16, #tpu.memory_space<vmem>>, %arg7: memref<64x64xbf16, #tpu.memory_space<vmem>>, %arg8: memref<2x64xf32, #tpu.memory_space<vmem>>, %arg9: memref<2x96xf32, #tpu.memory_space<vmem>>, %arg10: memref<96x32xbf16, #tpu.memory_space<vmem>>, %arg11: memref<2x32xf32, #tpu.memory_space<vmem>>, %arg12: memref<2x32xf32, #tpu.memory_space<vmem>>, %arg13: memref<32x64xbf16, #tpu.memory_space<vmem>>, %arg14: memref<64x32xbf16, #tpu.memory_space<vmem>>, %arg15: memref<64x64xbf16, #tpu.memory_space<vmem>>, %arg16: memref<64x64xbf16, #tpu.memory_space<vmem>>, %arg17: memref<32x2xbf16, #tpu.memory_space<vmem>>, %arg18: memref<2x32xbf16, #tpu.memory_space<vmem>>, %arg19: memref<2x32xf32, #tpu.memory_space<vmem>>, %arg20: memref<32x64xbf16, #tpu.memory_space<vmem>>, %arg21: memref<64x32xbf16, #tpu.memory_space<vmem>>, %arg22: memref<64x64xbf16, #tpu.memory_space<vmem>>, %arg23: memref<64x64xbf16, #tpu.memory_space<vmem>>, %arg24: memref<32x2xbf16, #tpu.memory_space<vmem>>, %arg25: memref<2x32xbf16, #tpu.memory_space<vmem>>, %arg26: memref<64x64xf32, #tpu.memory_space<vmem>>, %arg27: memref<2x96xf32, #tpu.memory_space<vmem>>, %arg28: memref<96x32xbf16, #tpu.memory_space<vmem>>, %arg29: memref<2x32xf32, #tpu.memory_space<vmem>>, %arg30: memref<288x32xbf16, #tpu.memory_space<vmem>>, %arg31: memref<2x32xf32, #tpu.memory_space<vmem>>, %arg32: memref<9x64x1xf32, #tpu.memory_space<vmem>>, %arg33: memref<32x128xbf16, #tpu.memory_space<vmem>>, %arg34: memref<128x32xbf16, #tpu.memory_space<vmem>>, %arg35: memref<2x32xf32, #tpu.memory_space<vmem>>, %arg36: memref<1x64x32xf32, #tpu.memory_space<vmem>>) attributes {dimension_semantics = [#tpu.dimension_semantics<parallel>], iteration_bounds = array<i64: 2>, scalar_prefetch = 0 : i64, scratch_operands = 0 : i64, tpu.core_type = #tpu.core_type<tc>, window_params = [{transform_indices = @transform_0, window_bounds = array<i64: 1, 64, 32>}, {transform_indices = @transform_1, window_bounds = array<i64: 1, 64, 32>}, {transform_indices = @transform_2, window_bounds = array<i64: 1, 256, 16>}, {pipeline_mode = #tpu.pipeline_mode<synchronous>, transform_indices = @transform_3, window_bounds = array<i64: 16, 32>}, {pipeline_mode = #tpu.pipeline_mode<synchronous>, transform_indices = @transform_4, window_bounds = array<i64: 2, 32>}, {pipeline_mode = #tpu.pipeline_mode<synchronous>, transform_indices = @transform_5, window_bounds = array<i64: 64, 256>}, {pipeline_mode = #tpu.pipeline_mode<synchronous>, transform_indices = @transform_6, window_bounds = array<i64: 64, 64>}, {pipeline_mode = #tpu.pipeline_mode<synchronous>, transform_indices = @transform_7, window_bounds = array<i64: 2, 64>}, {pipeline_mode = #tpu.pipeline_mode<synchronous>, transform_indices = @transform_8, window_bounds = array<i64: 2, 96>}, {pipeline_mode = #tpu.pipeline_mode<synchronous>, transform_indices = @transform_9, window_bounds = array<i64: 96, 32>}, {pipeline_mode = #tpu.pipeline_mode<synchronous>, transform_indices = @transform_10, window_bounds = array<i64: 2, 32>}, {pipeline_mode = #tpu.pipeline_mode<synchronous>, transform_indices = @transform_11, window_bounds = array<i64: 2, 32>}, {pipeline_mode = #tpu.pipeline_mode<synchronous>, transform_indices = @transform_12, window_bounds = array<i64: 32, 64>}, {pipeline_mode = #tpu.pipeline_mode<synchronous>, transform_indices = @transform_13, window_bounds = array<i64: 64, 32>}, {pipeline_mode = #tpu.pipeline_mode<synchronous>, transform_indices = @transform_14, window_bounds = array<i64: 64, 64>}, {pipeline_mode = #tpu.pipeline_mode<synchronous>, transform_indices = @transform_15, window_bounds = array<i64: 64, 64>}, {pipeline_mode = #tpu.pipeline_mode<synchronous>, transform_indices = @transform_16, window_bounds = array<i64: 32, 2>}, {pipeline_mode = #tpu.pipeline_mode<synchronous>, transform_indices = @transform_17, window_bounds = array<i64: 2, 32>}, {pipeline_mode = #tpu.pipeline_mode<synchronous>, transform_indices = @transform_18, window_bounds = array<i64: 2, 32>}, {pipeline_mode = #tpu.pipeline_mode<synchronous>, transform_indices = @transform_19, window_bounds = array<i64: 32, 64>}, {pipeline_mode = #tpu.pipeline_mode<synchronous>, transform_indices = @transform_20, window_bounds = array<i64: 64, 32>}, {pipeline_mode = #tpu.pipeline_mode<synchronous>, transform_indices = @transform_21, window_bounds = array<i64: 64, 64>}, {pipeline_mode = #tpu.pipeline_mode<synchronous>, transform_indices = @transform_22, window_bounds = array<i64: 64, 64>}, {pipeline_mode = #tpu.pipeline_mode<synchronous>, transform_indices = @transform_23, window_bounds = array<i64: 32, 2>}, {pipeline_mode = #tpu.pipeline_mode<synchronous>, transform_indices = @transform_24, window_bounds = array<i64: 2, 32>}, {pipeline_mode = #tpu.pipeline_mode<synchronous>, transform_indices = @transform_25, window_bounds = array<i64: 64, 64>}, {pipeline_mode = #tpu.pipeline_mode<synchronous>, transform_indices = @transform_26, window_bounds = array<i64: 2, 96>}, {pipeline_mode = #tpu.pipeline_mode<synchronous>, transform_indices = @transform_27, window_bounds = array<i64: 96, 32>}, {pipeline_mode = #tpu.pipeline_mode<synchronous>, transform_indices = @transform_28, window_bounds = array<i64: 2, 32>}, {pipeline_mode = #tpu.pipeline_mode<synchronous>, transform_indices = @transform_29, window_bounds = array<i64: 288, 32>}, {pipeline_mode = #tpu.pipeline_mode<synchronous>, transform_indices = @transform_30, window_bounds = array<i64: 2, 32>}, {pipeline_mode = #tpu.pipeline_mode<synchronous>, transform_indices = @transform_31, window_bounds = array<i64: 9, 64, 1>}, {pipeline_mode = #tpu.pipeline_mode<synchronous>, transform_indices = @transform_32, window_bounds = array<i64: 32, 128>}, {pipeline_mode = #tpu.pipeline_mode<synchronous>, transform_indices = @transform_33, window_bounds = array<i64: 128, 32>}, {pipeline_mode = #tpu.pipeline_mode<synchronous>, transform_indices = @transform_34, window_bounds = array<i64: 2, 32>}, {transform_indices = @transform_35, window_bounds = array<i64: 1, 64, 32>}]} {
    %c0 = arith.constant 0 : index
    %c0_0 = arith.constant 0 : index
    %c0_1 = arith.constant 0 : index
    %0 = vector.load %arg1[%c0, %c0_0, %c0_1] : memref<1x64x32xf32, #tpu.memory_space<vmem>>, vector<1x64x32xf32>
    %1 = vector.shape_cast %0 : vector<1x64x32xf32> to vector<64x32xf32>
    %c0_2 = arith.constant 0 : index
    %c0_3 = arith.constant 0 : index
    %c0_4 = arith.constant 0 : index
    %2 = vector.load %arg2[%c0_2, %c0_3, %c0_4] : memref<1x64x32xf32, #tpu.memory_space<vmem>>, vector<1x64x32xf32>
    %3 = vector.shape_cast %2 : vector<1x64x32xf32> to vector<64x32xf32>
    %c0_5 = arith.constant 0 : index
    %c0_6 = arith.constant 0 : index
    %c0_7 = arith.constant 0 : index
    %4 = vector.load %arg3[%c0_5, %c0_6, %c0_7] : memref<1x256x16xf32, #tpu.memory_space<vmem>>, vector<1x256x16xf32>
    %5 = vector.shape_cast %4 : vector<1x256x16xf32> to vector<256x16xf32>
    %6 = arith.truncf %5 : vector<256x16xf32> to vector<256x16xbf16>
    %c0_8 = arith.constant 0 : index
    %c0_9 = arith.constant 0 : index
    %7 = vector.load %arg4[%c0_8, %c0_9] : memref<16x32xbf16, #tpu.memory_space<vmem>>, vector<16x32xbf16>
    %cst = arith.constant dense<0.000000e+00> : vector<256x32xf32>
    %8 = tpu.matmul %6, %7, %cst {dimension_numbers = #tpu.dot_dimension_numbers<[1], [0], [0], [1], [0, 0, 1, 1], [], []>} : vector<256x16xbf16>, vector<16x32xbf16>, vector<256x32xf32> -> vector<256x32xf32>
    %c0_10 = arith.constant 0 : index
    %c0_11 = arith.constant 0 : index
    %9 = vector.load %arg5[%c0_10, %c0_11] : memref<2x32xf32, #tpu.memory_space<vmem>>, vector<2x32xf32>
    %10 = vector.extract_strided_slice %9 {offsets = [0, 0], sizes = [1, 32], strides = [1, 1]} : vector<2x32xf32> to vector<1x32xf32>
    %11 = vector.broadcast %10 : vector<1x32xf32> to vector<256x32xf32>
    %12 = arith.mulf %8, %11 : vector<256x32xf32>
    %13 = vector.extract_strided_slice %9 {offsets = [1, 0], sizes = [1, 32], strides = [1, 1]} : vector<2x32xf32> to vector<1x32xf32>
    %14 = vector.broadcast %13 : vector<1x32xf32> to vector<256x32xf32>
    %15 = arith.addf %12, %14 : vector<256x32xf32>
    %cst_12 = arith.constant 0.000000e+00 : f32
    %16 = vector.broadcast %cst_12 : f32 to vector<256x32xf32>
    %17 = arith.maximumf %15, %16 : vector<256x32xf32>
    %c0_13 = arith.constant 0 : index
    %c0_14 = arith.constant 0 : index
    %18 = vector.load %arg6[%c0_13, %c0_14] : memref<64x256xbf16, #tpu.memory_space<vmem>>, vector<64x256xbf16>
    %19 = arith.truncf %17 : vector<256x32xf32> to vector<256x32xbf16>
    %cst_15 = arith.constant dense<0.000000e+00> : vector<64x32xf32>
    %20 = tpu.matmul %18, %19, %cst_15 {dimension_numbers = #tpu.dot_dimension_numbers<[1], [0], [0], [1], [0, 0, 1, 1], [], []>} : vector<64x256xbf16>, vector<256x32xbf16>, vector<64x32xf32> -> vector<64x32xf32>
    %21 = tpu.concatenate %1, %3 in 1 : vector<64x32xf32>, vector<64x32xf32> -> vector<64x64xf32>
    %22 = arith.truncf %21 : vector<64x64xf32> to vector<64x64xbf16>
    %c0_16 = arith.constant 0 : index
    %c0_17 = arith.constant 0 : index
    %23 = vector.load %arg7[%c0_16, %c0_17] : memref<64x64xbf16, #tpu.memory_space<vmem>>, vector<64x64xbf16>
    %cst_18 = arith.constant dense<0.000000e+00> : vector<64x64xf32>
    %24 = tpu.matmul %22, %23, %cst_18 {dimension_numbers = #tpu.dot_dimension_numbers<[1], [0], [0], [1], [0, 0, 1, 1], [], []>} : vector<64x64xbf16>, vector<64x64xbf16>, vector<64x64xf32> -> vector<64x64xf32>
    %c0_19 = arith.constant 0 : index
    %c0_20 = arith.constant 0 : index
    %25 = vector.load %arg8[%c0_19, %c0_20] : memref<2x64xf32, #tpu.memory_space<vmem>>, vector<2x64xf32>
    %26 = vector.extract_strided_slice %25 {offsets = [0, 0], sizes = [1, 64], strides = [1, 1]} : vector<2x64xf32> to vector<1x64xf32>
    %27 = vector.broadcast %26 : vector<1x64xf32> to vector<64x64xf32>
    %28 = arith.mulf %24, %27 : vector<64x64xf32>
    %29 = vector.extract_strided_slice %25 {offsets = [1, 0], sizes = [1, 64], strides = [1, 1]} : vector<2x64xf32> to vector<1x64xf32>
    %30 = vector.broadcast %29 : vector<1x64xf32> to vector<64x64xf32>
    %31 = arith.addf %28, %30 : vector<64x64xf32>
    %32 = tpu.concatenate %20, %31 in 1 : vector<64x32xf32>, vector<64x64xf32> -> vector<64x96xf32>
    %c0_21 = arith.constant 0 : index
    %c0_22 = arith.constant 0 : index
    %33 = vector.load %arg9[%c0_21, %c0_22] : memref<2x96xf32, #tpu.memory_space<vmem>>, vector<2x96xf32>
    %cst_23 = arith.constant dense<0.000000e+00> : vector<64xf32>
    %34 = vector.multi_reduction <add>, %32, %cst_23 [1] : vector<64x96xf32> to vector<64xf32>
    %35 = vector.shape_cast %34 : vector<64xf32> to vector<64x1xf32>
    %cst_24 = arith.constant 9.600000e+01 : f32
    %36 = vector.broadcast %cst_24 : f32 to vector<64x1xf32>
    %37 = arith.divf %35, %36 : vector<64x1xf32>
    %38 = vector.broadcast %37 : vector<64x1xf32> to vector<64x96xf32>
    %39 = arith.subf %32, %38 : vector<64x96xf32>
    %40 = arith.mulf %39, %39 : vector<64x96xf32>
    %cst_25 = arith.constant dense<0.000000e+00> : vector<64xf32>
    %41 = vector.multi_reduction <add>, %40, %cst_25 [1] : vector<64x96xf32> to vector<64xf32>
    %42 = vector.shape_cast %41 : vector<64xf32> to vector<64x1xf32>
    %cst_26 = arith.constant 9.600000e+01 : f32
    %43 = vector.broadcast %cst_26 : f32 to vector<64x1xf32>
    %44 = arith.divf %42, %43 : vector<64x1xf32>
    %cst_27 = arith.constant 9.99999997E-7 : f32
    %45 = vector.broadcast %cst_27 : f32 to vector<64x1xf32>
    %46 = arith.addf %44, %45 : vector<64x1xf32>
    %47 = math.rsqrt %46 : vector<64x1xf32>
    %48 = vector.broadcast %47 : vector<64x1xf32> to vector<64x96xf32>
    %49 = arith.mulf %39, %48 : vector<64x96xf32>
    %50 = vector.extract_strided_slice %33 {offsets = [0, 0], sizes = [1, 96], strides = [1, 1]} : vector<2x96xf32> to vector<1x96xf32>
    %51 = vector.broadcast %50 : vector<1x96xf32> to vector<64x96xf32>
    %52 = arith.mulf %49, %51 : vector<64x96xf32>
    %53 = vector.extract_strided_slice %33 {offsets = [1, 0], sizes = [1, 96], strides = [1, 1]} : vector<2x96xf32> to vector<1x96xf32>
    %54 = vector.broadcast %53 : vector<1x96xf32> to vector<64x96xf32>
    %55 = arith.addf %52, %54 : vector<64x96xf32>
    %56 = arith.truncf %55 : vector<64x96xf32> to vector<64x96xbf16>
    %c0_28 = arith.constant 0 : index
    %c0_29 = arith.constant 0 : index
    %57 = vector.load %arg10[%c0_28, %c0_29] : memref<96x32xbf16, #tpu.memory_space<vmem>>, vector<96x32xbf16>
    %cst_30 = arith.constant dense<0.000000e+00> : vector<64x32xf32>
    %58 = tpu.matmul %56, %57, %cst_30 {dimension_numbers = #tpu.dot_dimension_numbers<[1], [0], [0], [1], [0, 0, 1, 1], [], []>} : vector<64x96xbf16>, vector<96x32xbf16>, vector<64x32xf32> -> vector<64x32xf32>
    %c0_31 = arith.constant 0 : index
    %c0_32 = arith.constant 0 : index
    %59 = vector.load %arg11[%c0_31, %c0_32] : memref<2x32xf32, #tpu.memory_space<vmem>>, vector<2x32xf32>
    %60 = vector.extract_strided_slice %59 {offsets = [0, 0], sizes = [1, 32], strides = [1, 1]} : vector<2x32xf32> to vector<1x32xf32>
    %61 = vector.broadcast %60 : vector<1x32xf32> to vector<64x32xf32>
    %62 = arith.mulf %58, %61 : vector<64x32xf32>
    %63 = vector.extract_strided_slice %59 {offsets = [1, 0], sizes = [1, 32], strides = [1, 1]} : vector<2x32xf32> to vector<1x32xf32>
    %64 = vector.broadcast %63 : vector<1x32xf32> to vector<64x32xf32>
    %65 = arith.addf %62, %64 : vector<64x32xf32>
    %66 = arith.mulf %65, %65 : vector<64x32xf32>
    %67 = arith.mulf %65, %66 : vector<64x32xf32>
    %cst_33 = arith.constant 4.471500e-02 : f32
    %68 = vector.broadcast %cst_33 : f32 to vector<64x32xf32>
    %69 = arith.mulf %68, %67 : vector<64x32xf32>
    %70 = arith.addf %65, %69 : vector<64x32xf32>
    %cst_34 = arith.constant 0.797884583 : f32
    %71 = vector.broadcast %cst_34 : f32 to vector<64x32xf32>
    %72 = arith.mulf %71, %70 : vector<64x32xf32>
    %73 = math.tanh %72 : vector<64x32xf32>
    %cst_35 = arith.constant 1.000000e+00 : f32
    %74 = vector.broadcast %cst_35 : f32 to vector<64x32xf32>
    %75 = arith.addf %74, %73 : vector<64x32xf32>
    %cst_36 = arith.constant 5.000000e-01 : f32
    %76 = vector.broadcast %cst_36 : f32 to vector<64x32xf32>
    %77 = arith.mulf %76, %75 : vector<64x32xf32>
    %78 = arith.mulf %65, %77 : vector<64x32xf32>
    %c0_37 = arith.constant 0 : index
    %c0_38 = arith.constant 0 : index
    %79 = vector.load %arg12[%c0_37, %c0_38] : memref<2x32xf32, #tpu.memory_space<vmem>>, vector<2x32xf32>
    %cst_39 = arith.constant dense<0.000000e+00> : vector<64xf32>
    %80 = vector.multi_reduction <add>, %1, %cst_39 [1] : vector<64x32xf32> to vector<64xf32>
    %81 = vector.shape_cast %80 : vector<64xf32> to vector<64x1xf32>
    %cst_40 = arith.constant 3.200000e+01 : f32
    %82 = vector.broadcast %cst_40 : f32 to vector<64x1xf32>
    %83 = arith.divf %81, %82 : vector<64x1xf32>
    %84 = vector.broadcast %83 : vector<64x1xf32> to vector<64x32xf32>
    %85 = arith.subf %1, %84 : vector<64x32xf32>
    %86 = arith.mulf %85, %85 : vector<64x32xf32>
    %cst_41 = arith.constant dense<0.000000e+00> : vector<64xf32>
    %87 = vector.multi_reduction <add>, %86, %cst_41 [1] : vector<64x32xf32> to vector<64xf32>
    %88 = vector.shape_cast %87 : vector<64xf32> to vector<64x1xf32>
    %cst_42 = arith.constant 3.200000e+01 : f32
    %89 = vector.broadcast %cst_42 : f32 to vector<64x1xf32>
    %90 = arith.divf %88, %89 : vector<64x1xf32>
    %cst_43 = arith.constant 9.99999997E-7 : f32
    %91 = vector.broadcast %cst_43 : f32 to vector<64x1xf32>
    %92 = arith.addf %90, %91 : vector<64x1xf32>
    %93 = math.rsqrt %92 : vector<64x1xf32>
    %94 = vector.broadcast %93 : vector<64x1xf32> to vector<64x32xf32>
    %95 = arith.mulf %85, %94 : vector<64x32xf32>
    %96 = vector.extract_strided_slice %79 {offsets = [0, 0], sizes = [1, 32], strides = [1, 1]} : vector<2x32xf32> to vector<1x32xf32>
    %97 = vector.broadcast %96 : vector<1x32xf32> to vector<64x32xf32>
    %98 = arith.mulf %95, %97 : vector<64x32xf32>
    %99 = vector.extract_strided_slice %79 {offsets = [1, 0], sizes = [1, 32], strides = [1, 1]} : vector<2x32xf32> to vector<1x32xf32>
    %100 = vector.broadcast %99 : vector<1x32xf32> to vector<64x32xf32>
    %101 = arith.addf %98, %100 : vector<64x32xf32>
    %102 = arith.truncf %101 : vector<64x32xf32> to vector<64x32xbf16>
    %c0_44 = arith.constant 0 : index
    %c0_45 = arith.constant 0 : index
    %103 = vector.load %arg13[%c0_44, %c0_45] : memref<32x64xbf16, #tpu.memory_space<vmem>>, vector<32x64xbf16>
    %cst_46 = arith.constant dense<0.000000e+00> : vector<64x64xf32>
    %104 = tpu.matmul %102, %103, %cst_46 {dimension_numbers = #tpu.dot_dimension_numbers<[1], [0], [0], [1], [0, 0, 1, 1], [], []>} : vector<64x32xbf16>, vector<32x64xbf16>, vector<64x64xf32> -> vector<64x64xf32>
    %cst_47 = arith.constant dense<0xFF800000> : vector<64xf32>
    %105 = vector.multi_reduction <maximumf>, %104, %cst_47 [0] : vector<64x64xf32> to vector<64xf32>
    %106 = vector.shape_cast %105 : vector<64xf32> to vector<1x64xf32>
    %107 = vector.broadcast %106 : vector<1x64xf32> to vector<64x64xf32>
    %108 = arith.subf %104, %107 : vector<64x64xf32>
    %109 = math.exp %108 : vector<64x64xf32>
    %cst_48 = arith.constant dense<0.000000e+00> : vector<64xf32>
    %110 = vector.multi_reduction <add>, %109, %cst_48 [0] : vector<64x64xf32> to vector<64xf32>
    %111 = vector.shape_cast %110 : vector<64xf32> to vector<1x64xf32>
    %112 = vector.broadcast %111 : vector<1x64xf32> to vector<64x64xf32>
    %113 = arith.divf %109, %112 : vector<64x64xf32>
    %c0_49 = arith.constant 0 : index
    %c0_50 = arith.constant 0 : index
    %114 = vector.load %arg26[%c0_49, %c0_50] : memref<64x64xf32, #tpu.memory_space<vmem>>, vector<64x64xf32>
    %cst_51 = arith.constant dense<0.000000e+00> : vector<64x64xf32>
    %115 = tpu.matmul %113, %114, %cst_51 {dimension_numbers = #tpu.dot_dimension_numbers<[1], [0], [0], [1], [0, 0, 1, 1], [], []>} : vector<64x64xf32>, vector<64x64xf32>, vector<64x64xf32> -> vector<64x64xf32>
    %cst_52 = arith.constant 9.99999971E-10 : f32
    %116 = vector.broadcast %cst_52 : f32 to vector<64x64xf32>
    %117 = arith.addf %115, %116 : vector<64x64xf32>
    %118 = arith.divf %113, %117 : vector<64x64xf32>
    %119 = arith.truncf %118 : vector<64x64xf32> to vector<64x64xbf16>
    %c0_53 = arith.constant 0 : index
    %c0_54 = arith.constant 0 : index
    %120 = vector.load %arg14[%c0_53, %c0_54] : memref<64x32xbf16, #tpu.memory_space<vmem>>, vector<64x32xbf16>
    %cst_55 = arith.constant dense<0.000000e+00> : vector<64x32xf32>
    %121 = tpu.matmul %119, %120, %cst_55 {dimension_numbers = #tpu.dot_dimension_numbers<[1], [0], [0], [1], [0, 0, 1, 1], [], []>} : vector<64x64xbf16>, vector<64x32xbf16>, vector<64x32xf32> -> vector<64x32xf32>
    %122 = arith.mulf %101, %121 : vector<64x32xf32>
    %c0_56 = arith.constant 0 : index
    %c0_57 = arith.constant 0 : index
    %123 = vector.load %arg12[%c0_56, %c0_57] : memref<2x32xf32, #tpu.memory_space<vmem>>, vector<2x32xf32>
    %cst_58 = arith.constant dense<0.000000e+00> : vector<64xf32>
    %124 = vector.multi_reduction <add>, %122, %cst_58 [1] : vector<64x32xf32> to vector<64xf32>
    %125 = vector.shape_cast %124 : vector<64xf32> to vector<64x1xf32>
    %cst_59 = arith.constant 3.200000e+01 : f32
    %126 = vector.broadcast %cst_59 : f32 to vector<64x1xf32>
    %127 = arith.divf %125, %126 : vector<64x1xf32>
    %128 = vector.broadcast %127 : vector<64x1xf32> to vector<64x32xf32>
    %129 = arith.subf %122, %128 : vector<64x32xf32>
    %130 = arith.mulf %129, %129 : vector<64x32xf32>
    %cst_60 = arith.constant dense<0.000000e+00> : vector<64xf32>
    %131 = vector.multi_reduction <add>, %130, %cst_60 [1] : vector<64x32xf32> to vector<64xf32>
    %132 = vector.shape_cast %131 : vector<64xf32> to vector<64x1xf32>
    %cst_61 = arith.constant 3.200000e+01 : f32
    %133 = vector.broadcast %cst_61 : f32 to vector<64x1xf32>
    %134 = arith.divf %132, %133 : vector<64x1xf32>
    %cst_62 = arith.constant 9.99999997E-7 : f32
    %135 = vector.broadcast %cst_62 : f32 to vector<64x1xf32>
    %136 = arith.addf %134, %135 : vector<64x1xf32>
    %137 = math.rsqrt %136 : vector<64x1xf32>
    %138 = vector.broadcast %137 : vector<64x1xf32> to vector<64x32xf32>
    %139 = arith.mulf %129, %138 : vector<64x32xf32>
    %140 = vector.extract_strided_slice %123 {offsets = [0, 0], sizes = [1, 32], strides = [1, 1]} : vector<2x32xf32> to vector<1x32xf32>
    %141 = vector.broadcast %140 : vector<1x32xf32> to vector<64x32xf32>
    %142 = arith.mulf %139, %141 : vector<64x32xf32>
    %143 = vector.extract_strided_slice %123 {offsets = [1, 0], sizes = [1, 32], strides = [1, 1]} : vector<2x32xf32> to vector<1x32xf32>
    %144 = vector.broadcast %143 : vector<1x32xf32> to vector<64x32xf32>
    %145 = arith.addf %142, %144 : vector<64x32xf32>
    %cst_63 = arith.constant dense<0.000000e+00> : vector<64xf32>
    %146 = vector.multi_reduction <add>, %145, %cst_63 [1] : vector<64x32xf32> to vector<64xf32>
    %147 = vector.shape_cast %146 : vector<64xf32> to vector<64x1xf32>
    %cst_64 = arith.constant 3.200000e+01 : f32
    %148 = vector.broadcast %cst_64 : f32 to vector<64x1xf32>
    %149 = arith.divf %147, %148 : vector<64x1xf32>
    %cst_65 = arith.constant dense<0xFF800000> : vector<64xf32>
    %150 = vector.multi_reduction <maximumf>, %145, %cst_65 [1] : vector<64x32xf32> to vector<64xf32>
    %151 = vector.shape_cast %150 : vector<64xf32> to vector<64x1xf32>
    %c0_66 = arith.constant 0 : index
    %c0_67 = arith.constant 0 : index
    %152 = vector.load %arg15[%c0_66, %c0_67] : memref<64x64xbf16, #tpu.memory_space<vmem>>, vector<64x64xbf16>
    %153 = arith.truncf %149 : vector<64x1xf32> to vector<64x1xbf16>
    %cst_68 = arith.constant dense<0.000000e+00> : vector<64x1xf32>
    %154 = tpu.matmul %152, %153, %cst_68 {dimension_numbers = #tpu.dot_dimension_numbers<[1], [0], [0], [1], [0, 0, 1, 1], [], []>} : vector<64x64xbf16>, vector<64x1xbf16>, vector<64x1xf32> -> vector<64x1xf32>
    %c0_69 = arith.constant 0 : index
    %c0_70 = arith.constant 0 : index
    %155 = vector.load %arg16[%c0_69, %c0_70] : memref<64x64xbf16, #tpu.memory_space<vmem>>, vector<64x64xbf16>
    %156 = arith.truncf %151 : vector<64x1xf32> to vector<64x1xbf16>
    %cst_71 = arith.constant dense<0.000000e+00> : vector<64x1xf32>
    %157 = tpu.matmul %155, %156, %cst_71 {dimension_numbers = #tpu.dot_dimension_numbers<[1], [0], [0], [1], [0, 0, 1, 1], [], []>} : vector<64x64xbf16>, vector<64x1xbf16>, vector<64x1xf32> -> vector<64x1xf32>
    %158 = arith.addf %154, %157 : vector<64x1xf32>
    %159 = arith.negf %158 : vector<64x1xf32>
    %160 = math.exp %159 : vector<64x1xf32>
    %cst_72 = arith.constant 1.000000e+00 : f32
    %161 = vector.broadcast %cst_72 : f32 to vector<64x1xf32>
    %162 = arith.addf %161, %160 : vector<64x1xf32>
    %163 = arith.divf %161, %162 : vector<64x1xf32>
    %164 = vector.broadcast %163 : vector<64x1xf32> to vector<64x32xf32>
    %165 = arith.mulf %145, %164 : vector<64x32xf32>
    %cst_73 = arith.constant dense<0.000000e+00> : vector<32xf32>
    %166 = vector.multi_reduction <add>, %165, %cst_73 [0] : vector<64x32xf32> to vector<32xf32>
    %167 = vector.shape_cast %166 : vector<32xf32> to vector<1x32xf32>
    %cst_74 = arith.constant 6.400000e+01 : f32
    %168 = vector.broadcast %cst_74 : f32 to vector<1x32xf32>
    %169 = arith.divf %167, %168 : vector<1x32xf32>
    %170 = arith.truncf %169 : vector<1x32xf32> to vector<1x32xbf16>
    %c0_75 = arith.constant 0 : index
    %c0_76 = arith.constant 0 : index
    %171 = vector.load %arg17[%c0_75, %c0_76] : memref<32x2xbf16, #tpu.memory_space<vmem>>, vector<32x2xbf16>
    %cst_77 = arith.constant dense<0.000000e+00> : vector<1x2xf32>
    %172 = tpu.matmul %170, %171, %cst_77 {dimension_numbers = #tpu.dot_dimension_numbers<[1], [0], [0], [1], [0, 0, 1, 1], [], []>} : vector<1x32xbf16>, vector<32x2xbf16>, vector<1x2xf32> -> vector<1x2xf32>
    %cst_78 = arith.constant 0.000000e+00 : f32
    %173 = vector.broadcast %cst_78 : f32 to vector<1x2xf32>
    %174 = arith.maximumf %172, %173 : vector<1x2xf32>
    %175 = arith.truncf %174 : vector<1x2xf32> to vector<1x2xbf16>
    %c0_79 = arith.constant 0 : index
    %c0_80 = arith.constant 0 : index
    %176 = vector.load %arg18[%c0_79, %c0_80] : memref<2x32xbf16, #tpu.memory_space<vmem>>, vector<2x32xbf16>
    %cst_81 = arith.constant dense<0.000000e+00> : vector<1x32xf32>
    %177 = tpu.matmul %175, %176, %cst_81 {dimension_numbers = #tpu.dot_dimension_numbers<[1], [0], [0], [1], [0, 0, 1, 1], [], []>} : vector<1x2xbf16>, vector<2x32xbf16>, vector<1x32xf32> -> vector<1x32xf32>
    %cst_82 = arith.constant dense<0xFF800000> : vector<32xf32>
    %178 = vector.multi_reduction <maximumf>, %165, %cst_82 [0] : vector<64x32xf32> to vector<32xf32>
    %179 = vector.shape_cast %178 : vector<32xf32> to vector<1x32xf32>
    %180 = arith.truncf %179 : vector<1x32xf32> to vector<1x32xbf16>
    %c0_83 = arith.constant 0 : index
    %c0_84 = arith.constant 0 : index
    %181 = vector.load %arg17[%c0_83, %c0_84] : memref<32x2xbf16, #tpu.memory_space<vmem>>, vector<32x2xbf16>
    %cst_85 = arith.constant dense<0.000000e+00> : vector<1x2xf32>
    %182 = tpu.matmul %180, %181, %cst_85 {dimension_numbers = #tpu.dot_dimension_numbers<[1], [0], [0], [1], [0, 0, 1, 1], [], []>} : vector<1x32xbf16>, vector<32x2xbf16>, vector<1x2xf32> -> vector<1x2xf32>
    %cst_86 = arith.constant 0.000000e+00 : f32
    %183 = vector.broadcast %cst_86 : f32 to vector<1x2xf32>
    %184 = arith.maximumf %182, %183 : vector<1x2xf32>
    %185 = arith.truncf %184 : vector<1x2xf32> to vector<1x2xbf16>
    %c0_87 = arith.constant 0 : index
    %c0_88 = arith.constant 0 : index
    %186 = vector.load %arg18[%c0_87, %c0_88] : memref<2x32xbf16, #tpu.memory_space<vmem>>, vector<2x32xbf16>
    %cst_89 = arith.constant dense<0.000000e+00> : vector<1x32xf32>
    %187 = tpu.matmul %185, %186, %cst_89 {dimension_numbers = #tpu.dot_dimension_numbers<[1], [0], [0], [1], [0, 0, 1, 1], [], []>} : vector<1x2xbf16>, vector<2x32xbf16>, vector<1x32xf32> -> vector<1x32xf32>
    %188 = arith.addf %177, %187 : vector<1x32xf32>
    %189 = arith.negf %188 : vector<1x32xf32>
    %190 = math.exp %189 : vector<1x32xf32>
    %cst_90 = arith.constant 1.000000e+00 : f32
    %191 = vector.broadcast %cst_90 : f32 to vector<1x32xf32>
    %192 = arith.addf %191, %190 : vector<1x32xf32>
    %193 = arith.divf %191, %192 : vector<1x32xf32>
    %194 = vector.broadcast %193 : vector<1x32xf32> to vector<64x32xf32>
    %195 = arith.mulf %165, %194 : vector<64x32xf32>
    %c0_91 = arith.constant 0 : index
    %c0_92 = arith.constant 0 : index
    %196 = vector.load %arg19[%c0_91, %c0_92] : memref<2x32xf32, #tpu.memory_space<vmem>>, vector<2x32xf32>
    %cst_93 = arith.constant dense<0.000000e+00> : vector<64xf32>
    %197 = vector.multi_reduction <add>, %3, %cst_93 [1] : vector<64x32xf32> to vector<64xf32>
    %198 = vector.shape_cast %197 : vector<64xf32> to vector<64x1xf32>
    %cst_94 = arith.constant 3.200000e+01 : f32
    %199 = vector.broadcast %cst_94 : f32 to vector<64x1xf32>
    %200 = arith.divf %198, %199 : vector<64x1xf32>
    %201 = vector.broadcast %200 : vector<64x1xf32> to vector<64x32xf32>
    %202 = arith.subf %3, %201 : vector<64x32xf32>
    %203 = arith.mulf %202, %202 : vector<64x32xf32>
    %cst_95 = arith.constant dense<0.000000e+00> : vector<64xf32>
    %204 = vector.multi_reduction <add>, %203, %cst_95 [1] : vector<64x32xf32> to vector<64xf32>
    %205 = vector.shape_cast %204 : vector<64xf32> to vector<64x1xf32>
    %cst_96 = arith.constant 3.200000e+01 : f32
    %206 = vector.broadcast %cst_96 : f32 to vector<64x1xf32>
    %207 = arith.divf %205, %206 : vector<64x1xf32>
    %cst_97 = arith.constant 9.99999997E-7 : f32
    %208 = vector.broadcast %cst_97 : f32 to vector<64x1xf32>
    %209 = arith.addf %207, %208 : vector<64x1xf32>
    %210 = math.rsqrt %209 : vector<64x1xf32>
    %211 = vector.broadcast %210 : vector<64x1xf32> to vector<64x32xf32>
    %212 = arith.mulf %202, %211 : vector<64x32xf32>
    %213 = vector.extract_strided_slice %196 {offsets = [0, 0], sizes = [1, 32], strides = [1, 1]} : vector<2x32xf32> to vector<1x32xf32>
    %214 = vector.broadcast %213 : vector<1x32xf32> to vector<64x32xf32>
    %215 = arith.mulf %212, %214 : vector<64x32xf32>
    %216 = vector.extract_strided_slice %196 {offsets = [1, 0], sizes = [1, 32], strides = [1, 1]} : vector<2x32xf32> to vector<1x32xf32>
    %217 = vector.broadcast %216 : vector<1x32xf32> to vector<64x32xf32>
    %218 = arith.addf %215, %217 : vector<64x32xf32>
    %219 = arith.truncf %218 : vector<64x32xf32> to vector<64x32xbf16>
    %c0_98 = arith.constant 0 : index
    %c0_99 = arith.constant 0 : index
    %220 = vector.load %arg20[%c0_98, %c0_99] : memref<32x64xbf16, #tpu.memory_space<vmem>>, vector<32x64xbf16>
    %cst_100 = arith.constant dense<0.000000e+00> : vector<64x64xf32>
    %221 = tpu.matmul %219, %220, %cst_100 {dimension_numbers = #tpu.dot_dimension_numbers<[1], [0], [0], [1], [0, 0, 1, 1], [], []>} : vector<64x32xbf16>, vector<32x64xbf16>, vector<64x64xf32> -> vector<64x64xf32>
    %cst_101 = arith.constant dense<0xFF800000> : vector<64xf32>
    %222 = vector.multi_reduction <maximumf>, %221, %cst_101 [0] : vector<64x64xf32> to vector<64xf32>
    %223 = vector.shape_cast %222 : vector<64xf32> to vector<1x64xf32>
    %224 = vector.broadcast %223 : vector<1x64xf32> to vector<64x64xf32>
    %225 = arith.subf %221, %224 : vector<64x64xf32>
    %226 = math.exp %225 : vector<64x64xf32>
    %cst_102 = arith.constant dense<0.000000e+00> : vector<64xf32>
    %227 = vector.multi_reduction <add>, %226, %cst_102 [0] : vector<64x64xf32> to vector<64xf32>
    %228 = vector.shape_cast %227 : vector<64xf32> to vector<1x64xf32>
    %229 = vector.broadcast %228 : vector<1x64xf32> to vector<64x64xf32>
    %230 = arith.divf %226, %229 : vector<64x64xf32>
    %c0_103 = arith.constant 0 : index
    %c0_104 = arith.constant 0 : index
    %231 = vector.load %arg26[%c0_103, %c0_104] : memref<64x64xf32, #tpu.memory_space<vmem>>, vector<64x64xf32>
    %cst_105 = arith.constant dense<0.000000e+00> : vector<64x64xf32>
    %232 = tpu.matmul %230, %231, %cst_105 {dimension_numbers = #tpu.dot_dimension_numbers<[1], [0], [0], [1], [0, 0, 1, 1], [], []>} : vector<64x64xf32>, vector<64x64xf32>, vector<64x64xf32> -> vector<64x64xf32>
    %cst_106 = arith.constant 9.99999971E-10 : f32
    %233 = vector.broadcast %cst_106 : f32 to vector<64x64xf32>
    %234 = arith.addf %232, %233 : vector<64x64xf32>
    %235 = arith.divf %230, %234 : vector<64x64xf32>
    %236 = arith.truncf %235 : vector<64x64xf32> to vector<64x64xbf16>
    %c0_107 = arith.constant 0 : index
    %c0_108 = arith.constant 0 : index
    %237 = vector.load %arg21[%c0_107, %c0_108] : memref<64x32xbf16, #tpu.memory_space<vmem>>, vector<64x32xbf16>
    %cst_109 = arith.constant dense<0.000000e+00> : vector<64x32xf32>
    %238 = tpu.matmul %236, %237, %cst_109 {dimension_numbers = #tpu.dot_dimension_numbers<[1], [0], [0], [1], [0, 0, 1, 1], [], []>} : vector<64x64xbf16>, vector<64x32xbf16>, vector<64x32xf32> -> vector<64x32xf32>
    %239 = arith.mulf %218, %238 : vector<64x32xf32>
    %c0_110 = arith.constant 0 : index
    %c0_111 = arith.constant 0 : index
    %240 = vector.load %arg19[%c0_110, %c0_111] : memref<2x32xf32, #tpu.memory_space<vmem>>, vector<2x32xf32>
    %cst_112 = arith.constant dense<0.000000e+00> : vector<64xf32>
    %241 = vector.multi_reduction <add>, %239, %cst_112 [1] : vector<64x32xf32> to vector<64xf32>
    %242 = vector.shape_cast %241 : vector<64xf32> to vector<64x1xf32>
    %cst_113 = arith.constant 3.200000e+01 : f32
    %243 = vector.broadcast %cst_113 : f32 to vector<64x1xf32>
    %244 = arith.divf %242, %243 : vector<64x1xf32>
    %245 = vector.broadcast %244 : vector<64x1xf32> to vector<64x32xf32>
    %246 = arith.subf %239, %245 : vector<64x32xf32>
    %247 = arith.mulf %246, %246 : vector<64x32xf32>
    %cst_114 = arith.constant dense<0.000000e+00> : vector<64xf32>
    %248 = vector.multi_reduction <add>, %247, %cst_114 [1] : vector<64x32xf32> to vector<64xf32>
    %249 = vector.shape_cast %248 : vector<64xf32> to vector<64x1xf32>
    %cst_115 = arith.constant 3.200000e+01 : f32
    %250 = vector.broadcast %cst_115 : f32 to vector<64x1xf32>
    %251 = arith.divf %249, %250 : vector<64x1xf32>
    %cst_116 = arith.constant 9.99999997E-7 : f32
    %252 = vector.broadcast %cst_116 : f32 to vector<64x1xf32>
    %253 = arith.addf %251, %252 : vector<64x1xf32>
    %254 = math.rsqrt %253 : vector<64x1xf32>
    %255 = vector.broadcast %254 : vector<64x1xf32> to vector<64x32xf32>
    %256 = arith.mulf %246, %255 : vector<64x32xf32>
    %257 = vector.extract_strided_slice %240 {offsets = [0, 0], sizes = [1, 32], strides = [1, 1]} : vector<2x32xf32> to vector<1x32xf32>
    %258 = vector.broadcast %257 : vector<1x32xf32> to vector<64x32xf32>
    %259 = arith.mulf %256, %258 : vector<64x32xf32>
    %260 = vector.extract_strided_slice %240 {offsets = [1, 0], sizes = [1, 32], strides = [1, 1]} : vector<2x32xf32> to vector<1x32xf32>
    %261 = vector.broadcast %260 : vector<1x32xf32> to vector<64x32xf32>
    %262 = arith.addf %259, %261 : vector<64x32xf32>
    %cst_117 = arith.constant dense<0.000000e+00> : vector<64xf32>
    %263 = vector.multi_reduction <add>, %262, %cst_117 [1] : vector<64x32xf32> to vector<64xf32>
    %264 = vector.shape_cast %263 : vector<64xf32> to vector<64x1xf32>
    %cst_118 = arith.constant 3.200000e+01 : f32
    %265 = vector.broadcast %cst_118 : f32 to vector<64x1xf32>
    %266 = arith.divf %264, %265 : vector<64x1xf32>
    %cst_119 = arith.constant dense<0xFF800000> : vector<64xf32>
    %267 = vector.multi_reduction <maximumf>, %262, %cst_119 [1] : vector<64x32xf32> to vector<64xf32>
    %268 = vector.shape_cast %267 : vector<64xf32> to vector<64x1xf32>
    %c0_120 = arith.constant 0 : index
    %c0_121 = arith.constant 0 : index
    %269 = vector.load %arg22[%c0_120, %c0_121] : memref<64x64xbf16, #tpu.memory_space<vmem>>, vector<64x64xbf16>
    %270 = arith.truncf %266 : vector<64x1xf32> to vector<64x1xbf16>
    %cst_122 = arith.constant dense<0.000000e+00> : vector<64x1xf32>
    %271 = tpu.matmul %269, %270, %cst_122 {dimension_numbers = #tpu.dot_dimension_numbers<[1], [0], [0], [1], [0, 0, 1, 1], [], []>} : vector<64x64xbf16>, vector<64x1xbf16>, vector<64x1xf32> -> vector<64x1xf32>
    %c0_123 = arith.constant 0 : index
    %c0_124 = arith.constant 0 : index
    %272 = vector.load %arg23[%c0_123, %c0_124] : memref<64x64xbf16, #tpu.memory_space<vmem>>, vector<64x64xbf16>
    %273 = arith.truncf %268 : vector<64x1xf32> to vector<64x1xbf16>
    %cst_125 = arith.constant dense<0.000000e+00> : vector<64x1xf32>
    %274 = tpu.matmul %272, %273, %cst_125 {dimension_numbers = #tpu.dot_dimension_numbers<[1], [0], [0], [1], [0, 0, 1, 1], [], []>} : vector<64x64xbf16>, vector<64x1xbf16>, vector<64x1xf32> -> vector<64x1xf32>
    %275 = arith.addf %271, %274 : vector<64x1xf32>
    %276 = arith.negf %275 : vector<64x1xf32>
    %277 = math.exp %276 : vector<64x1xf32>
    %cst_126 = arith.constant 1.000000e+00 : f32
    %278 = vector.broadcast %cst_126 : f32 to vector<64x1xf32>
    %279 = arith.addf %278, %277 : vector<64x1xf32>
    %280 = arith.divf %278, %279 : vector<64x1xf32>
    %281 = vector.broadcast %280 : vector<64x1xf32> to vector<64x32xf32>
    %282 = arith.mulf %262, %281 : vector<64x32xf32>
    %cst_127 = arith.constant dense<0.000000e+00> : vector<32xf32>
    %283 = vector.multi_reduction <add>, %282, %cst_127 [0] : vector<64x32xf32> to vector<32xf32>
    %284 = vector.shape_cast %283 : vector<32xf32> to vector<1x32xf32>
    %cst_128 = arith.constant 6.400000e+01 : f32
    %285 = vector.broadcast %cst_128 : f32 to vector<1x32xf32>
    %286 = arith.divf %284, %285 : vector<1x32xf32>
    %287 = arith.truncf %286 : vector<1x32xf32> to vector<1x32xbf16>
    %c0_129 = arith.constant 0 : index
    %c0_130 = arith.constant 0 : index
    %288 = vector.load %arg24[%c0_129, %c0_130] : memref<32x2xbf16, #tpu.memory_space<vmem>>, vector<32x2xbf16>
    %cst_131 = arith.constant dense<0.000000e+00> : vector<1x2xf32>
    %289 = tpu.matmul %287, %288, %cst_131 {dimension_numbers = #tpu.dot_dimension_numbers<[1], [0], [0], [1], [0, 0, 1, 1], [], []>} : vector<1x32xbf16>, vector<32x2xbf16>, vector<1x2xf32> -> vector<1x2xf32>
    %cst_132 = arith.constant 0.000000e+00 : f32
    %290 = vector.broadcast %cst_132 : f32 to vector<1x2xf32>
    %291 = arith.maximumf %289, %290 : vector<1x2xf32>
    %292 = arith.truncf %291 : vector<1x2xf32> to vector<1x2xbf16>
    %c0_133 = arith.constant 0 : index
    %c0_134 = arith.constant 0 : index
    %293 = vector.load %arg25[%c0_133, %c0_134] : memref<2x32xbf16, #tpu.memory_space<vmem>>, vector<2x32xbf16>
    %cst_135 = arith.constant dense<0.000000e+00> : vector<1x32xf32>
    %294 = tpu.matmul %292, %293, %cst_135 {dimension_numbers = #tpu.dot_dimension_numbers<[1], [0], [0], [1], [0, 0, 1, 1], [], []>} : vector<1x2xbf16>, vector<2x32xbf16>, vector<1x32xf32> -> vector<1x32xf32>
    %cst_136 = arith.constant dense<0xFF800000> : vector<32xf32>
    %295 = vector.multi_reduction <maximumf>, %282, %cst_136 [0] : vector<64x32xf32> to vector<32xf32>
    %296 = vector.shape_cast %295 : vector<32xf32> to vector<1x32xf32>
    %297 = arith.truncf %296 : vector<1x32xf32> to vector<1x32xbf16>
    %c0_137 = arith.constant 0 : index
    %c0_138 = arith.constant 0 : index
    %298 = vector.load %arg24[%c0_137, %c0_138] : memref<32x2xbf16, #tpu.memory_space<vmem>>, vector<32x2xbf16>
    %cst_139 = arith.constant dense<0.000000e+00> : vector<1x2xf32>
    %299 = tpu.matmul %297, %298, %cst_139 {dimension_numbers = #tpu.dot_dimension_numbers<[1], [0], [0], [1], [0, 0, 1, 1], [], []>} : vector<1x32xbf16>, vector<32x2xbf16>, vector<1x2xf32> -> vector<1x2xf32>
    %cst_140 = arith.constant 0.000000e+00 : f32
    %300 = vector.broadcast %cst_140 : f32 to vector<1x2xf32>
    %301 = arith.maximumf %299, %300 : vector<1x2xf32>
    %302 = arith.truncf %301 : vector<1x2xf32> to vector<1x2xbf16>
    %c0_141 = arith.constant 0 : index
    %c0_142 = arith.constant 0 : index
    %303 = vector.load %arg25[%c0_141, %c0_142] : memref<2x32xbf16, #tpu.memory_space<vmem>>, vector<2x32xbf16>
    %cst_143 = arith.constant dense<0.000000e+00> : vector<1x32xf32>
    %304 = tpu.matmul %302, %303, %cst_143 {dimension_numbers = #tpu.dot_dimension_numbers<[1], [0], [0], [1], [0, 0, 1, 1], [], []>} : vector<1x2xbf16>, vector<2x32xbf16>, vector<1x32xf32> -> vector<1x32xf32>
    %305 = arith.addf %294, %304 : vector<1x32xf32>
    %306 = arith.negf %305 : vector<1x32xf32>
    %307 = math.exp %306 : vector<1x32xf32>
    %cst_144 = arith.constant 1.000000e+00 : f32
    %308 = vector.broadcast %cst_144 : f32 to vector<1x32xf32>
    %309 = arith.addf %308, %307 : vector<1x32xf32>
    %310 = arith.divf %308, %309 : vector<1x32xf32>
    %311 = vector.broadcast %310 : vector<1x32xf32> to vector<64x32xf32>
    %312 = arith.mulf %282, %311 : vector<64x32xf32>
    %313 = tpu.concatenate %312, %195, %78 in 1 : vector<64x32xf32>, vector<64x32xf32>, vector<64x32xf32> -> vector<64x96xf32>
    %c0_145 = arith.constant 0 : index
    %c0_146 = arith.constant 0 : index
    %314 = vector.load %arg27[%c0_145, %c0_146] : memref<2x96xf32, #tpu.memory_space<vmem>>, vector<2x96xf32>
    %cst_147 = arith.constant dense<0.000000e+00> : vector<64xf32>
    %315 = vector.multi_reduction <add>, %313, %cst_147 [1] : vector<64x96xf32> to vector<64xf32>
    %316 = vector.shape_cast %315 : vector<64xf32> to vector<64x1xf32>
    %cst_148 = arith.constant 9.600000e+01 : f32
    %317 = vector.broadcast %cst_148 : f32 to vector<64x1xf32>
    %318 = arith.divf %316, %317 : vector<64x1xf32>
    %319 = vector.broadcast %318 : vector<64x1xf32> to vector<64x96xf32>
    %320 = arith.subf %313, %319 : vector<64x96xf32>
    %321 = arith.mulf %320, %320 : vector<64x96xf32>
    %cst_149 = arith.constant dense<0.000000e+00> : vector<64xf32>
    %322 = vector.multi_reduction <add>, %321, %cst_149 [1] : vector<64x96xf32> to vector<64xf32>
    %323 = vector.shape_cast %322 : vector<64xf32> to vector<64x1xf32>
    %cst_150 = arith.constant 9.600000e+01 : f32
    %324 = vector.broadcast %cst_150 : f32 to vector<64x1xf32>
    %325 = arith.divf %323, %324 : vector<64x1xf32>
    %cst_151 = arith.constant 9.99999997E-7 : f32
    %326 = vector.broadcast %cst_151 : f32 to vector<64x1xf32>
    %327 = arith.addf %325, %326 : vector<64x1xf32>
    %328 = math.rsqrt %327 : vector<64x1xf32>
    %329 = vector.broadcast %328 : vector<64x1xf32> to vector<64x96xf32>
    %330 = arith.mulf %320, %329 : vector<64x96xf32>
    %331 = vector.extract_strided_slice %314 {offsets = [0, 0], sizes = [1, 96], strides = [1, 1]} : vector<2x96xf32> to vector<1x96xf32>
    %332 = vector.broadcast %331 : vector<1x96xf32> to vector<64x96xf32>
    %333 = arith.mulf %330, %332 : vector<64x96xf32>
    %334 = vector.extract_strided_slice %314 {offsets = [1, 0], sizes = [1, 96], strides = [1, 1]} : vector<2x96xf32> to vector<1x96xf32>
    %335 = vector.broadcast %334 : vector<1x96xf32> to vector<64x96xf32>
    %336 = arith.addf %333, %335 : vector<64x96xf32>
    %337 = arith.truncf %336 : vector<64x96xf32> to vector<64x96xbf16>
    %c0_152 = arith.constant 0 : index
    %c0_153 = arith.constant 0 : index
    %338 = vector.load %arg28[%c0_152, %c0_153] : memref<96x32xbf16, #tpu.memory_space<vmem>>, vector<96x32xbf16>
    %cst_154 = arith.constant dense<0.000000e+00> : vector<64x32xf32>
    %339 = tpu.matmul %337, %338, %cst_154 {dimension_numbers = #tpu.dot_dimension_numbers<[1], [0], [0], [1], [0, 0, 1, 1], [], []>} : vector<64x96xbf16>, vector<96x32xbf16>, vector<64x32xf32> -> vector<64x32xf32>
    %c0_155 = arith.constant 0 : index
    %c0_156 = arith.constant 0 : index
    %340 = vector.load %arg29[%c0_155, %c0_156] : memref<2x32xf32, #tpu.memory_space<vmem>>, vector<2x32xf32>
    %341 = vector.extract_strided_slice %340 {offsets = [0, 0], sizes = [1, 32], strides = [1, 1]} : vector<2x32xf32> to vector<1x32xf32>
    %342 = vector.broadcast %341 : vector<1x32xf32> to vector<64x32xf32>
    %343 = arith.mulf %339, %342 : vector<64x32xf32>
    %344 = vector.extract_strided_slice %340 {offsets = [1, 0], sizes = [1, 32], strides = [1, 1]} : vector<2x32xf32> to vector<1x32xf32>
    %345 = vector.broadcast %344 : vector<1x32xf32> to vector<64x32xf32>
    %346 = arith.addf %343, %345 : vector<64x32xf32>
    %347 = vector.extract_strided_slice %346 {offsets = [55, 0], sizes = [9, 32], strides = [1, 1]} : vector<64x32xf32> to vector<9x32xf32>
    %348 = vector.extract_strided_slice %346 {offsets = [0, 0], sizes = [55, 32], strides = [1, 1]} : vector<64x32xf32> to vector<55x32xf32>
    %349 = tpu.concatenate %347, %348 in 0 : vector<9x32xf32>, vector<55x32xf32> -> vector<64x32xf32>
    %c0_157 = arith.constant 0 : index
    %c0_158 = arith.constant 0 : index
    %c0_159 = arith.constant 0 : index
    %350 = vector.load %arg32[%c0_157, %c0_158, %c0_159] : memref<9x64x1xf32, #tpu.memory_space<vmem>>, vector<1x64x1xf32>
    %351 = vector.shape_cast %350 : vector<1x64x1xf32> to vector<64x1xf32>
    %352 = vector.broadcast %351 : vector<64x1xf32> to vector<64x32xf32>
    %353 = arith.mulf %349, %352 : vector<64x32xf32>
    %354 = vector.extract_strided_slice %346 {offsets = [56, 0], sizes = [8, 32], strides = [1, 1]} : vector<64x32xf32> to vector<8x32xf32>
    %355 = vector.extract_strided_slice %346 {offsets = [0, 0], sizes = [56, 32], strides = [1, 1]} : vector<64x32xf32> to vector<56x32xf32>
    %356 = tpu.concatenate %354, %355 in 0 : vector<8x32xf32>, vector<56x32xf32> -> vector<64x32xf32>
    %c1 = arith.constant 1 : index
    %c0_160 = arith.constant 0 : index
    %c0_161 = arith.constant 0 : index
    %357 = vector.load %arg32[%c1, %c0_160, %c0_161] : memref<9x64x1xf32, #tpu.memory_space<vmem>>, vector<1x64x1xf32>
    %358 = vector.shape_cast %357 : vector<1x64x1xf32> to vector<64x1xf32>
    %359 = vector.broadcast %358 : vector<64x1xf32> to vector<64x32xf32>
    %360 = arith.mulf %356, %359 : vector<64x32xf32>
    %361 = vector.extract_strided_slice %346 {offsets = [57, 0], sizes = [7, 32], strides = [1, 1]} : vector<64x32xf32> to vector<7x32xf32>
    %362 = vector.extract_strided_slice %346 {offsets = [0, 0], sizes = [57, 32], strides = [1, 1]} : vector<64x32xf32> to vector<57x32xf32>
    %363 = tpu.concatenate %361, %362 in 0 : vector<7x32xf32>, vector<57x32xf32> -> vector<64x32xf32>
    %c2 = arith.constant 2 : index
    %c0_162 = arith.constant 0 : index
    %c0_163 = arith.constant 0 : index
    %364 = vector.load %arg32[%c2, %c0_162, %c0_163] : memref<9x64x1xf32, #tpu.memory_space<vmem>>, vector<1x64x1xf32>
    %365 = vector.shape_cast %364 : vector<1x64x1xf32> to vector<64x1xf32>
    %366 = vector.broadcast %365 : vector<64x1xf32> to vector<64x32xf32>
    %367 = arith.mulf %363, %366 : vector<64x32xf32>
    %368 = vector.extract_strided_slice %346 {offsets = [63, 0], sizes = [1, 32], strides = [1, 1]} : vector<64x32xf32> to vector<1x32xf32>
    %369 = vector.extract_strided_slice %346 {offsets = [0, 0], sizes = [63, 32], strides = [1, 1]} : vector<64x32xf32> to vector<63x32xf32>
    %370 = tpu.concatenate %368, %369 in 0 : vector<1x32xf32>, vector<63x32xf32> -> vector<64x32xf32>
    %c3 = arith.constant 3 : index
    %c0_164 = arith.constant 0 : index
    %c0_165 = arith.constant 0 : index
    %371 = vector.load %arg32[%c3, %c0_164, %c0_165] : memref<9x64x1xf32, #tpu.memory_space<vmem>>, vector<1x64x1xf32>
    %372 = vector.shape_cast %371 : vector<1x64x1xf32> to vector<64x1xf32>
    %373 = vector.broadcast %372 : vector<64x1xf32> to vector<64x32xf32>
    %374 = arith.mulf %370, %373 : vector<64x32xf32>
    %c4 = arith.constant 4 : index
    %c0_166 = arith.constant 0 : index
    %c0_167 = arith.constant 0 : index
    %375 = vector.load %arg32[%c4, %c0_166, %c0_167] : memref<9x64x1xf32, #tpu.memory_space<vmem>>, vector<1x64x1xf32>
    %376 = vector.shape_cast %375 : vector<1x64x1xf32> to vector<64x1xf32>
    %377 = vector.broadcast %376 : vector<64x1xf32> to vector<64x32xf32>
    %378 = arith.mulf %346, %377 : vector<64x32xf32>
    %379 = vector.extract_strided_slice %346 {offsets = [1, 0], sizes = [63, 32], strides = [1, 1]} : vector<64x32xf32> to vector<63x32xf32>
    %380 = vector.extract_strided_slice %346 {offsets = [0, 0], sizes = [1, 32], strides = [1, 1]} : vector<64x32xf32> to vector<1x32xf32>
    %381 = tpu.concatenate %379, %380 in 0 : vector<63x32xf32>, vector<1x32xf32> -> vector<64x32xf32>
    %c5 = arith.constant 5 : index
    %c0_168 = arith.constant 0 : index
    %c0_169 = arith.constant 0 : index
    %382 = vector.load %arg32[%c5, %c0_168, %c0_169] : memref<9x64x1xf32, #tpu.memory_space<vmem>>, vector<1x64x1xf32>
    %383 = vector.shape_cast %382 : vector<1x64x1xf32> to vector<64x1xf32>
    %384 = vector.broadcast %383 : vector<64x1xf32> to vector<64x32xf32>
    %385 = arith.mulf %381, %384 : vector<64x32xf32>
    %386 = vector.extract_strided_slice %346 {offsets = [7, 0], sizes = [57, 32], strides = [1, 1]} : vector<64x32xf32> to vector<57x32xf32>
    %387 = vector.extract_strided_slice %346 {offsets = [0, 0], sizes = [7, 32], strides = [1, 1]} : vector<64x32xf32> to vector<7x32xf32>
    %388 = tpu.concatenate %386, %387 in 0 : vector<57x32xf32>, vector<7x32xf32> -> vector<64x32xf32>
    %c6 = arith.constant 6 : index
    %c0_170 = arith.constant 0 : index
    %c0_171 = arith.constant 0 : index
    %389 = vector.load %arg32[%c6, %c0_170, %c0_171] : memref<9x64x1xf32, #tpu.memory_space<vmem>>, vector<1x64x1xf32>
    %390 = vector.shape_cast %389 : vector<1x64x1xf32> to vector<64x1xf32>
    %391 = vector.broadcast %390 : vector<64x1xf32> to vector<64x32xf32>
    %392 = arith.mulf %388, %391 : vector<64x32xf32>
    %393 = vector.extract_strided_slice %346 {offsets = [8, 0], sizes = [56, 32], strides = [1, 1]} : vector<64x32xf32> to vector<56x32xf32>
    %394 = vector.extract_strided_slice %346 {offsets = [0, 0], sizes = [8, 32], strides = [1, 1]} : vector<64x32xf32> to vector<8x32xf32>
    %395 = tpu.concatenate %393, %394 in 0 : vector<56x32xf32>, vector<8x32xf32> -> vector<64x32xf32>
    %c7 = arith.constant 7 : index
    %c0_172 = arith.constant 0 : index
    %c0_173 = arith.constant 0 : index
    %396 = vector.load %arg32[%c7, %c0_172, %c0_173] : memref<9x64x1xf32, #tpu.memory_space<vmem>>, vector<1x64x1xf32>
    %397 = vector.shape_cast %396 : vector<1x64x1xf32> to vector<64x1xf32>
    %398 = vector.broadcast %397 : vector<64x1xf32> to vector<64x32xf32>
    %399 = arith.mulf %395, %398 : vector<64x32xf32>
    %400 = vector.extract_strided_slice %346 {offsets = [9, 0], sizes = [55, 32], strides = [1, 1]} : vector<64x32xf32> to vector<55x32xf32>
    %401 = vector.extract_strided_slice %346 {offsets = [0, 0], sizes = [9, 32], strides = [1, 1]} : vector<64x32xf32> to vector<9x32xf32>
    %402 = tpu.concatenate %400, %401 in 0 : vector<55x32xf32>, vector<9x32xf32> -> vector<64x32xf32>
    %c8 = arith.constant 8 : index
    %c0_174 = arith.constant 0 : index
    %c0_175 = arith.constant 0 : index
    %403 = vector.load %arg32[%c8, %c0_174, %c0_175] : memref<9x64x1xf32, #tpu.memory_space<vmem>>, vector<1x64x1xf32>
    %404 = vector.shape_cast %403 : vector<1x64x1xf32> to vector<64x1xf32>
    %405 = vector.broadcast %404 : vector<64x1xf32> to vector<64x32xf32>
    %406 = arith.mulf %402, %405 : vector<64x32xf32>
    %407 = tpu.concatenate %353, %360, %367, %374, %378, %385, %392, %399, %406 in 1 : vector<64x32xf32>, vector<64x32xf32>, vector<64x32xf32>, vector<64x32xf32>, vector<64x32xf32>, vector<64x32xf32>, vector<64x32xf32>, vector<64x32xf32>, vector<64x32xf32> -> vector<64x288xf32>
    %408 = arith.truncf %407 : vector<64x288xf32> to vector<64x288xbf16>
    %c0_176 = arith.constant 0 : index
    %c0_177 = arith.constant 0 : index
    %409 = vector.load %arg30[%c0_176, %c0_177] : memref<288x32xbf16, #tpu.memory_space<vmem>>, vector<288x32xbf16>
    %cst_178 = arith.constant dense<0.000000e+00> : vector<64x32xf32>
    %410 = tpu.matmul %408, %409, %cst_178 {dimension_numbers = #tpu.dot_dimension_numbers<[1], [0], [0], [1], [0, 0, 1, 1], [], []>} : vector<64x288xbf16>, vector<288x32xbf16>, vector<64x32xf32> -> vector<64x32xf32>
    %411 = arith.mulf %410, %410 : vector<64x32xf32>
    %412 = arith.mulf %410, %411 : vector<64x32xf32>
    %cst_179 = arith.constant 4.471500e-02 : f32
    %413 = vector.broadcast %cst_179 : f32 to vector<64x32xf32>
    %414 = arith.mulf %413, %412 : vector<64x32xf32>
    %415 = arith.addf %410, %414 : vector<64x32xf32>
    %cst_180 = arith.constant 0.797884583 : f32
    %416 = vector.broadcast %cst_180 : f32 to vector<64x32xf32>
    %417 = arith.mulf %416, %415 : vector<64x32xf32>
    %418 = math.tanh %417 : vector<64x32xf32>
    %cst_181 = arith.constant 1.000000e+00 : f32
    %419 = vector.broadcast %cst_181 : f32 to vector<64x32xf32>
    %420 = arith.addf %419, %418 : vector<64x32xf32>
    %cst_182 = arith.constant 5.000000e-01 : f32
    %421 = vector.broadcast %cst_182 : f32 to vector<64x32xf32>
    %422 = arith.mulf %421, %420 : vector<64x32xf32>
    %423 = arith.mulf %410, %422 : vector<64x32xf32>
    %424 = arith.addf %423, %346 : vector<64x32xf32>
    %c0_183 = arith.constant 0 : index
    %c0_184 = arith.constant 0 : index
    %425 = vector.load %arg31[%c0_183, %c0_184] : memref<2x32xf32, #tpu.memory_space<vmem>>, vector<2x32xf32>
    %426 = vector.extract_strided_slice %425 {offsets = [0, 0], sizes = [1, 32], strides = [1, 1]} : vector<2x32xf32> to vector<1x32xf32>
    %427 = vector.broadcast %426 : vector<1x32xf32> to vector<64x32xf32>
    %428 = arith.mulf %424, %427 : vector<64x32xf32>
    %429 = vector.extract_strided_slice %425 {offsets = [1, 0], sizes = [1, 32], strides = [1, 1]} : vector<2x32xf32> to vector<1x32xf32>
    %430 = vector.broadcast %429 : vector<1x32xf32> to vector<64x32xf32>
    %431 = arith.addf %428, %430 : vector<64x32xf32>
    %432 = arith.truncf %431 : vector<64x32xf32> to vector<64x32xbf16>
    %c0_185 = arith.constant 0 : index
    %c0_186 = arith.constant 0 : index
    %433 = vector.load %arg33[%c0_185, %c0_186] : memref<32x128xbf16, #tpu.memory_space<vmem>>, vector<32x128xbf16>
    %cst_187 = arith.constant dense<0.000000e+00> : vector<64x128xf32>
    %434 = tpu.matmul %432, %433, %cst_187 {dimension_numbers = #tpu.dot_dimension_numbers<[1], [0], [0], [1], [0, 0, 1, 1], [], []>} : vector<64x32xbf16>, vector<32x128xbf16>, vector<64x128xf32> -> vector<64x128xf32>
    %435 = arith.mulf %434, %434 : vector<64x128xf32>
    %436 = arith.mulf %434, %435 : vector<64x128xf32>
    %cst_188 = arith.constant 4.471500e-02 : f32
    %437 = vector.broadcast %cst_188 : f32 to vector<64x128xf32>
    %438 = arith.mulf %437, %436 : vector<64x128xf32>
    %439 = arith.addf %434, %438 : vector<64x128xf32>
    %cst_189 = arith.constant 0.797884583 : f32
    %440 = vector.broadcast %cst_189 : f32 to vector<64x128xf32>
    %441 = arith.mulf %440, %439 : vector<64x128xf32>
    %442 = math.tanh %441 : vector<64x128xf32>
    %cst_190 = arith.constant 1.000000e+00 : f32
    %443 = vector.broadcast %cst_190 : f32 to vector<64x128xf32>
    %444 = arith.addf %443, %442 : vector<64x128xf32>
    %cst_191 = arith.constant 5.000000e-01 : f32
    %445 = vector.broadcast %cst_191 : f32 to vector<64x128xf32>
    %446 = arith.mulf %445, %444 : vector<64x128xf32>
    %447 = arith.mulf %434, %446 : vector<64x128xf32>
    %448 = arith.truncf %447 : vector<64x128xf32> to vector<64x128xbf16>
    %c0_192 = arith.constant 0 : index
    %c0_193 = arith.constant 0 : index
    %449 = vector.load %arg34[%c0_192, %c0_193] : memref<128x32xbf16, #tpu.memory_space<vmem>>, vector<128x32xbf16>
    %cst_194 = arith.constant dense<0.000000e+00> : vector<64x32xf32>
    %450 = tpu.matmul %448, %449, %cst_194 {dimension_numbers = #tpu.dot_dimension_numbers<[1], [0], [0], [1], [0, 0, 1, 1], [], []>} : vector<64x128xbf16>, vector<128x32xbf16>, vector<64x32xf32> -> vector<64x32xf32>
    %c0_195 = arith.constant 0 : index
    %c0_196 = arith.constant 0 : index
    %451 = vector.load %arg35[%c0_195, %c0_196] : memref<2x32xf32, #tpu.memory_space<vmem>>, vector<2x32xf32>
    %452 = vector.extract_strided_slice %451 {offsets = [0, 0], sizes = [1, 32], strides = [1, 1]} : vector<2x32xf32> to vector<1x32xf32>
    %453 = vector.broadcast %452 : vector<1x32xf32> to vector<64x32xf32>
    %454 = arith.mulf %450, %453 : vector<64x32xf32>
    %455 = vector.extract_strided_slice %451 {offsets = [1, 0], sizes = [1, 32], strides = [1, 1]} : vector<2x32xf32> to vector<1x32xf32>
    %456 = vector.broadcast %455 : vector<1x32xf32> to vector<64x32xf32>
    %457 = arith.addf %454, %456 : vector<64x32xf32>
    %458 = arith.addf %20, %457 : vector<64x32xf32>
    %c0_197 = arith.constant 0 : index
    %c0_198 = arith.constant 0 : index
    %c0_199 = arith.constant 0 : index
    %459 = vector.load %arg36[%c0_197, %c0_198, %c0_199] : memref<1x64x32xf32, #tpu.memory_space<vmem>>, vector<1x64x32xf32>
    %460 = vector.shape_cast %459 : vector<1x64x32xf32> to vector<64x32xf32>
    %461 = vector.shape_cast %458 : vector<64x32xf32> to vector<1x64x32xf32>
    tpu.vector_store %arg36[%c0_197, %c0_198, %c0_199], %461 {strides = array<i32>} : memref<1x64x32xf32, #tpu.memory_space<vmem>>, vector<1x64x32xf32>,
    return
  }
  func.func @transform_0(%arg0: i32) -> (i32, i32, i32) {
    %c0_i32 = arith.constant 0 : i32
    %c0_i32_0 = arith.constant 0 : i32
    %c0_i32_1 = arith.constant 0 : i32
    return %arg0, %c0_i32, %c0_i32_0 : i32, i32, i32
  }
  func.func @transform_1(%arg0: i32) -> (i32, i32, i32) {
    %c0_i32 = arith.constant 0 : i32
    %c0_i32_0 = arith.constant 0 : i32
    %c0_i32_1 = arith.constant 0 : i32
    return %arg0, %c0_i32, %c0_i32_0 : i32, i32, i32
  }
  func.func @transform_2(%arg0: i32) -> (i32, i32, i32) {
    %c0_i32 = arith.constant 0 : i32
    %c0_i32_0 = arith.constant 0 : i32
    %c0_i32_1 = arith.constant 0 : i32
    return %arg0, %c0_i32, %c0_i32_0 : i32, i32, i32
  }
  func.func @transform_3(%arg0: i32) -> (i32, i32) {
    %c0_i32 = arith.constant 0 : i32
    %c0_i32_0 = arith.constant 0 : i32
    %c0_i32_1 = arith.constant 0 : i32
    return %c0_i32, %c0_i32_0 : i32, i32
  }
  func.func @transform_4(%arg0: i32) -> (i32, i32) {
    %c0_i32 = arith.constant 0 : i32
    %c0_i32_0 = arith.constant 0 : i32
    %c0_i32_1 = arith.constant 0 : i32
    return %c0_i32, %c0_i32_0 : i32, i32
  }
  func.func @transform_5(%arg0: i32) -> (i32, i32) {
    %c0_i32 = arith.constant 0 : i32
    %c0_i32_0 = arith.constant 0 : i32
    %c0_i32_1 = arith.constant 0 : i32
    return %c0_i32, %c0_i32_0 : i32, i32
  }
  func.func @transform_6(%arg0: i32) -> (i32, i32) {
    %c0_i32 = arith.constant 0 : i32
    %c0_i32_0 = arith.constant 0 : i32
    %c0_i32_1 = arith.constant 0 : i32
    return %c0_i32, %c0_i32_0 : i32, i32
  }
  func.func @transform_7(%arg0: i32) -> (i32, i32) {
    %c0_i32 = arith.constant 0 : i32
    %c0_i32_0 = arith.constant 0 : i32
    %c0_i32_1 = arith.constant 0 : i32
    return %c0_i32, %c0_i32_0 : i32, i32
  }
  func.func @transform_8(%arg0: i32) -> (i32, i32) {
    %c0_i32 = arith.constant 0 : i32
    %c0_i32_0 = arith.constant 0 : i32
    %c0_i32_1 = arith.constant 0 : i32
    return %c0_i32, %c0_i32_0 : i32, i32
  }
  func.func @transform_9(%arg0: i32) -> (i32, i32) {
    %c0_i32 = arith.constant 0 : i32
    %c0_i32_0 = arith.constant 0 : i32
    %c0_i32_1 = arith.constant 0 : i32
    return %c0_i32, %c0_i32_0 : i32, i32
  }
  func.func @transform_10(%arg0: i32) -> (i32, i32) {
    %c0_i32 = arith.constant 0 : i32
    %c0_i32_0 = arith.constant 0 : i32
    %c0_i32_1 = arith.constant 0 : i32
    return %c0_i32, %c0_i32_0 : i32, i32
  }
  func.func @transform_11(%arg0: i32) -> (i32, i32) {
    %c0_i32 = arith.constant 0 : i32
    %c0_i32_0 = arith.constant 0 : i32
    %c0_i32_1 = arith.constant 0 : i32
    return %c0_i32, %c0_i32_0 : i32, i32
  }
  func.func @transform_12(%arg0: i32) -> (i32, i32) {
    %c0_i32 = arith.constant 0 : i32
    %c0_i32_0 = arith.constant 0 : i32
    %c0_i32_1 = arith.constant 0 : i32
    return %c0_i32, %c0_i32_0 : i32, i32
  }
  func.func @transform_13(%arg0: i32) -> (i32, i32) {
    %c0_i32 = arith.constant 0 : i32
    %c0_i32_0 = arith.constant 0 : i32
    %c0_i32_1 = arith.constant 0 : i32
    return %c0_i32, %c0_i32_0 : i32, i32
  }
  func.func @transform_14(%arg0: i32) -> (i32, i32) {
    %c0_i32 = arith.constant 0 : i32
    %c0_i32_0 = arith.constant 0 : i32
    %c0_i32_1 = arith.constant 0 : i32
    return %c0_i32, %c0_i32_0 : i32, i32
  }
  func.func @transform_15(%arg0: i32) -> (i32, i32) {
    %c0_i32 = arith.constant 0 : i32
    %c0_i32_0 = arith.constant 0 : i32
    %c0_i32_1 = arith.constant 0 : i32
    return %c0_i32, %c0_i32_0 : i32, i32
  }
  func.func @transform_16(%arg0: i32) -> (i32, i32) {
    %c0_i32 = arith.constant 0 : i32
    %c0_i32_0 = arith.constant 0 : i32
    %c0_i32_1 = arith.constant 0 : i32
    return %c0_i32, %c0_i32_0 : i32, i32
  }
  func.func @transform_17(%arg0: i32) -> (i32, i32) {
    %c0_i32 = arith.constant 0 : i32
    %c0_i32_0 = arith.constant 0 : i32
    %c0_i32_1 = arith.constant 0 : i32
    return %c0_i32, %c0_i32_0 : i32, i32
  }
  func.func @transform_18(%arg0: i32) -> (i32, i32) {
    %c0_i32 = arith.constant 0 : i32
    %c0_i32_0 = arith.constant 0 : i32
    %c0_i32_1 = arith.constant 0 : i32
    return %c0_i32, %c0_i32_0 : i32, i32
  }
  func.func @transform_19(%arg0: i32) -> (i32, i32) {
    %c0_i32 = arith.constant 0 : i32
    %c0_i32_0 = arith.constant 0 : i32
    %c0_i32_1 = arith.constant 0 : i32
    return %c0_i32, %c0_i32_0 : i32, i32
  }
  func.func @transform_20(%arg0: i32) -> (i32, i32) {
    %c0_i32 = arith.constant 0 : i32
    %c0_i32_0 = arith.constant 0 : i32
    %c0_i32_1 = arith.constant 0 : i32
    return %c0_i32, %c0_i32_0 : i32, i32
  }
  func.func @transform_21(%arg0: i32) -> (i32, i32) {
    %c0_i32 = arith.constant 0 : i32
    %c0_i32_0 = arith.constant 0 : i32
    %c0_i32_1 = arith.constant 0 : i32
    return %c0_i32, %c0_i32_0 : i32, i32
  }
  func.func @transform_22(%arg0: i32) -> (i32, i32) {
    %c0_i32 = arith.constant 0 : i32
    %c0_i32_0 = arith.constant 0 : i32
    %c0_i32_1 = arith.constant 0 : i32
    return %c0_i32, %c0_i32_0 : i32, i32
  }
  func.func @transform_23(%arg0: i32) -> (i32, i32) {
    %c0_i32 = arith.constant 0 : i32
    %c0_i32_0 = arith.constant 0 : i32
    %c0_i32_1 = arith.constant 0 : i32
    return %c0_i32, %c0_i32_0 : i32, i32
  }
  func.func @transform_24(%arg0: i32) -> (i32, i32) {
    %c0_i32 = arith.constant 0 : i32
    %c0_i32_0 = arith.constant 0 : i32
    %c0_i32_1 = arith.constant 0 : i32
    return %c0_i32, %c0_i32_0 : i32, i32
  }
  func.func @transform_25(%arg0: i32) -> (i32, i32) {
    %c0_i32 = arith.constant 0 : i32
    %c0_i32_0 = arith.constant 0 : i32
    %c0_i32_1 = arith.constant 0 : i32
    return %c0_i32, %c0_i32_0 : i32, i32
  }
  func.func @transform_26(%arg0: i32) -> (i32, i32) {
    %c0_i32 = arith.constant 0 : i32
    %c0_i32_0 = arith.constant 0 : i32
    %c0_i32_1 = arith.constant 0 : i32
    return %c0_i32, %c0_i32_0 : i32, i32
  }
  func.func @transform_27(%arg0: i32) -> (i32, i32) {
    %c0_i32 = arith.constant 0 : i32
    %c0_i32_0 = arith.constant 0 : i32
    %c0_i32_1 = arith.constant 0 : i32
    return %c0_i32, %c0_i32_0 : i32, i32
  }
  func.func @transform_28(%arg0: i32) -> (i32, i32) {
    %c0_i32 = arith.constant 0 : i32
    %c0_i32_0 = arith.constant 0 : i32
    %c0_i32_1 = arith.constant 0 : i32
    return %c0_i32, %c0_i32_0 : i32, i32
  }
  func.func @transform_29(%arg0: i32) -> (i32, i32) {
    %c0_i32 = arith.constant 0 : i32
    %c0_i32_0 = arith.constant 0 : i32
    %c0_i32_1 = arith.constant 0 : i32
    return %c0_i32, %c0_i32_0 : i32, i32
  }
  func.func @transform_30(%arg0: i32) -> (i32, i32) {
    %c0_i32 = arith.constant 0 : i32
    %c0_i32_0 = arith.constant 0 : i32
    %c0_i32_1 = arith.constant 0 : i32
    return %c0_i32, %c0_i32_0 : i32, i32
  }
  func.func @transform_31(%arg0: i32) -> (i32, i32, i32) {
    %c0_i32 = arith.constant 0 : i32
    %c0_i32_0 = arith.constant 0 : i32
    %c0_i32_1 = arith.constant 0 : i32
    %c0_i32_2 = arith.constant 0 : i32
    return %c0_i32, %c0_i32_0, %c0_i32_1 : i32, i32, i32
  }
  func.func @transform_32(%arg0: i32) -> (i32, i32) {
    %c0_i32 = arith.constant 0 : i32
    %c0_i32_0 = arith.constant 0 : i32
    %c0_i32_1 = arith.constant 0 : i32
    return %c0_i32, %c0_i32_0 : i32, i32
  }
  func.func @transform_33(%arg0: i32) -> (i32, i32) {
    %c0_i32 = arith.constant 0 : i32
    %c0_i32_0 = arith.constant 0 : i32
    %c0_i32_1 = arith.constant 0 : i32
    return %c0_i32, %c0_i32_0 : i32, i32
  }
  func.func @transform_34(%arg0: i32) -> (i32, i32) {
    %c0_i32 = arith.constant 0 : i32
    %c0_i32_0 = arith.constant 0 : i32
    %c0_i32_1 = arith.constant 0 : i32
    return %c0_i32, %c0_i32_0 : i32, i32
  }
  func.func @transform_35(%arg0: i32) -> (i32, i32, i32) {
    %c0_i32 = arith.constant 0 : i32
    %c0_i32_0 = arith.constant 0 : i32
    %c0_i32_1 = arith.constant 0 : i32
    return %arg0, %c0_i32, %c0_i32_0 : i32, i32, i32
  }
}

</mosaic_0001>

<bundles_post_ra>
// kernel: hef_block_forward.1
= control target key start
LH: loop header
LB: loop body
LE: loop exit
PB: predicated region body
PF: predicated region fallthrough
CT: control target
= control target key end

     0   :  { %s8045_s6 = smov 1   ;;  %s8046_s10 = smov 2   ;;  %s10921_s0 = inlined_call_operand.smem [shape: u32[36], index: -1, kind: input, shape index: {}] }
   0x1   :  { %s8097_s5 = sld [smem:[%s10921_s0]]   ;;  %s8047_s14 = smov 3  }
   0x2   :  { %s8102_s9 = sld [smem:[%s10921_s0 + %s8045_s6]]   ;;  %s8048_s18 = smov 4  }
   0x3   :  { %s8107_s13 = sld [smem:[%s10921_s0 + %s8046_s10]]   ;;  %s8049_s22 = smov 5  }
   0x4   :  { %s8112_s17 = sld [smem:[%s10921_s0 + %s8047_s14]]   ;;  %s8050_s26 = smov 6  }
   0x5   :  { %s8117_s21 = sld [smem:[%s10921_s0 + %s8048_s18]]   ;;  %s8051_s30 = smov 7  }
   0x6   :  { %s8122_s25 = sld [smem:[%s10921_s0 + %s8049_s22]]   ;;  %s8052_s4 = smov 8  }
   0x7   :  { %10962 = sst [smem:[#allocation5_spill]] %s8097_s5  ;;  %s8053_s10 = smov 9  }
   0x8   :  { %10963 = sst [smem:[#allocation6_spill]] %s8102_s9  ;;  %s8054_s15 = smov 10  }
   0x9   :  { %s8127_s29 = sld [smem:[%s10921_s0 + %s8050_s26]]   ;;  %s8055_s20 = smov 11  }
   0xa   :  { %10964 = sst [smem:[#allocation7_spill]] %s8112_s17  ;;  %s8056_s26 = smov 12  }
   0xb   :  { %s8132_s3 = sld [smem:[%s10921_s0 + %s8051_s30]]   ;;  %s8057_s1 = smov 13  }
   0xc   :  { %s8137_s8 = sld [smem:[%s10921_s0 + %s8052_s4]]   ;;  %s8058_s7 = smov 14  }
   0xd   :  { %s8142_s14 = sld [smem:[%s10921_s0 + %s8053_s10]]   ;;  %s8060_s22 = smov 16  }
   0xe   :  { %s8147_s19 = sld [smem:[%s10921_s0 + %s8054_s15]]   ;;  %s8059_s15 = smov 15  }
   0xf   :  { %s8152_s24 = sld [smem:[%s10921_s0 + %s8055_s20]]   ;;  %s8061_s28 = smov 17  }
  0x10   :  { %s8157_s30 = sld [smem:[%s10921_s0 + %s8056_s26]]  }
  0x11   :  { %10965 = sst [smem:[#allocation8_spill]] %s8132_s3 }
  0x12   :  { %10966 = sst [smem:[#allocation9_spill]] %s8137_s8 }
  0x13   :  { %s8162_s6 = sld [smem:[%s10921_s0 + %s8057_s1]]  }
  0x14   :  { %10967 = sst [smem:[#allocation10_spill]] %s8147_s19 }
  0x15   :  { %s8167_s12 = sld [smem:[%s10921_s0 + %s8058_s7]]   ;;  %s8062_s7 = smov 18  }
  0x16   :  { %s8172_s20 = sld [smem:[%s10921_s0 + %s8059_s15]]   ;;  %s8063_s15 = smov 19  }
  0x17   :  { %s8177_s27 = sld [smem:[%s10921_s0 + %s8060_s22]]   ;;  %s8064_s22 = smov 20  }
  0x18   :  { %s8182_s4 = sld [smem:[%s10921_s0 + %s8061_s28]]   ;;  %s8065_s28 = smov 21  }
  0x19   :  { %10968 = sst [smem:[#allocation11_spill]] %s8162_s6 }
  0x1a   :  { %s8187_s19 = sld [smem:[%s10921_s0 + %s8062_s7]]   ;;  %s8066_s7 = smov 22  }
  0x1b   :  { %10969 = sst [smem:[#allocation12_spill]] %s8167_s12 }
  0x1c   :  { %10970 = sst [smem:[#allocation13_spill]] %s8172_s20 }
  0x1d   :  { %10971 = sst [smem:[#allocation14_spill]] %s8177_s27 }
  0x1e   :  { %10972 = sst [smem:[#allocation15_spill]] %s8182_s4 }
  0x1f   :  { %s8192_s20 = sld [smem:[%s10921_s0 + %s8063_s15]]   ;;  %s8067_s15 = smov 23  }
  0x20   :  { %10973 = sst [smem:[#allocation16_spill]] %s8187_s19 }
  0x21   :  { %s8197_s27 = sld [smem:[%s10921_s0 + %s8064_s22]]   ;;  %s8068_s22 = smov 24  }
  0x22   :  { %s8202_s4 = sld [smem:[%s10921_s0 + %s8065_s28]]   ;;  %s8069_s28 = smov 25  }
  0x23   :  { %s8207_s19 = sld [smem:[%s10921_s0 + %s8066_s7]]   ;;  %s8070_s7 = smov 26  }
  0x25   :  { %10974 = sst [smem:[#allocation17_spill]] %s8192_s20 }
  0x26   :  { %s8212_s20 = sld [smem:[%s10921_s0 + %s8067_s15]]   ;;  %s8071_s15 = smov 27  }
  0x27   :  { %10975 = sst [smem:[#allocation18_spill]] %s8197_s27 }
  0x28   :  { %10976 = sst [smem:[#allocation19_spill]] %s8202_s4 }
  0x29   :  { %10977 = sst [smem:[#allocation20_spill]] %s8207_s19 }
  0x2a   :  { %s8217_s27 = sld [smem:[%s10921_s0 + %s8068_s22]]   ;;  %s8072_s22 = smov 28  }
  0x2b   :  { %s8222_s4 = sld [smem:[%s10921_s0 + %s8069_s28]]   ;;  %s8073_s28 = smov 29  }
  0x2c   :  { %10978 = sst [smem:[#allocation21_spill]] %s8212_s20 }
  0x2d   :  { %s8227_s19 = sld [smem:[%s10921_s0 + %s8070_s7]]   ;;  %s8074_s7 = smov 30  }
  0x2e   :  { %s8232_s20 = sld [smem:[%s10921_s0 + %s8071_s15]]   ;;  %s8075_s15 = smov 31  }
  0x2f   :  { %s8242_s12 = sld [smem:[%s10921_s0 + %s8073_s28]]   ;;  %s8077_s28 = smov 33  }
  0x30   :  { %10979 = sst [smem:[#allocation22_spill]] %s8217_s27 }
  0x31   :  { %10980 = sst [smem:[#allocation23_spill]] %s8222_s4 }
  0x32   :  { %s8237_s27 = sld [smem:[%s10921_s0 + %s8072_s22]]   ;;  %s8076_s22 = smov 32  }
  0x33   :  { %10981 = sst [smem:[#allocation24_spill]] %s8227_s19 }
  0x34   :  { %10982 = sst [smem:[#allocation25_spill]] %s8232_s20 }
  0x35   :  { %10984 = sst [smem:[#allocation27_spill]] %s8242_s12 }
  0x36   :  { %s8247_s19 = sld [smem:[%s10921_s0 + %s8074_s7]]   ;;  %s8078_s7 = smov 34  }
  0x37   :  { %s8252_s20 = sld [smem:[%s10921_s0 + %s8075_s15]]   ;;  %s8079_s15 = smov 35  }
  0x38   :  { %10983 = sst [smem:[#allocation26_spill]] %s8237_s27 }
  0x39   :  { %s8257_s27 = sld [smem:[%s10921_s0 + %s8076_s22]]  }
  0x3a   :  { %s8262_s12 = sld [smem:[%s10921_s0 + %s8077_s28]]  }
  0x3c   :  { %10985 = sst [smem:[#allocation28_spill]] %s8247_s19 }
  0x3d   :  { %10986 = sst [smem:[#allocation29_spill]] %s8252_s20 }
  0x3e   :  { %s8267_s19 = sld [smem:[%s10921_s0 + %s8078_s7]]  }
  0x3f   :  { %s8272_s20 = sld [smem:[%s10921_s0 + %s8079_s15]]  }
  0x40   :  { %76 = vsyncpa [#allocation3], 0 }
  0x41   :  { %78 = vsyncpa [#allocation3 + $0x1], 0  ;;  %s8274_s22 = smov 0   ;;  %s8276_s23 = smov 0  }
  0x42   :  { %s8278_s26 = smov 0   ;;  %s8280_s28 = smov 0  }
  0x43 LB: > { %s10987_s6 = sld [smem:[#allocation11_spill]]  ;;  %s8295_s0 = sadd.s32 4294967295, %s8043_s28   ;;  %s8035_s23 = sphi %s8276_s23, %s11068_s23   ;;  %s8031_s22 = sphi %s8274_s22, %s11067_s22   ;;  %s8043_s28 = sphi %s8280_s28, %s11070_s28   ;;  %s8039_s26 = sphi %s8278_s26, %s11069_s26  }
  0x44   : > { %s10988_s4 = sld [smem:[#allocation23_spill]]  ;;  %s6822_s1 = sadd.s32 4294967294, %s8043_s28  }
  0x45   : > { %s8299_s2 = sadd.s32 1, %s8043_s28   ;;  %s841_s7 = sadd.s32 1, %s8039_s26 }
  0x46   : > { %s838_s10 = ssub.s32 %s8043_s28, %s8299_s2  ;;  %p851_p0 = scmp.ne.s32.totalorder %s8039_s26, %s8035_s23 }
  0x47   : > { %p839_p1 = scmp.eq.s32.totalorder %s838_s10, 0  ;;  %p852_p2 = scmp.eq.s32.totalorder %s8295_s0, 1 }
  0x48   : > { %p857_p3 = scmp.ne.s32.totalorder %s8035_s23, %s8031_s22  ;;  %p858_p4 = scmp.eq.s32.totalorder %s6822_s1, 1 }
  0x49   : > { %s8310_s11 = scalar_select %p839_p1, %s8039_s26, %s841_s7  }
  0x4a   : > { %p8312_p5 = por %p852_p2, %p851_p0  ;;  %p8316_p6 = por %p858_p4, %p857_p3 }
  0x4b   : > { %10989 = sst [smem:[#allocation30_spill]] %s8310_s11  ;;  %p6825_p7 = scmp.ge.s32.totalorder %s8043_s28, 1 }
  0x4c   : > { %p996_p8 = scmp.lt.s32.totalorder %s8043_s28, 3 }
  0x4e   : > { %p997_p9 = pnand %p6825_p7, %p996_p8 }
  0x50   : > { %1000 = sbr.rel (%p997_p9) target bundleno = 5196 (0x144c), region = 160 }
  0x55   : > { %s10992_s17 = sld [smem:[#allocation7_spill]]  ;;  %p1094_p10 = scmp.lt.s32.totalorder %s8295_s0, 1  ;;  %vm1573_vm0 = vcmask 261120   ;;  %vm1182_vm1 = vcmask 130048   ;;  %v8081_v40 = vmov 32.0   ;;  %vm1618_vm3 = vcmask 523264  }
  0x56   : > { %s10993_s5 = sld [smem:[#allocation5_spill]]  ;;  %7675 = vrcp.f32 %v8081_v40  ;;  %v1320_v62 = vld [vmem:[%s8117_s21] sm:$0x3] }
  0x57   : > { %s10994_s9 = sld [smem:[#allocation6_spill]] }
  0x58   : > { %s1095_s18 = scalar_select %p1094_p10, %s8295_s0, 1 }
  0x59   : > { %s10999_s3 = sld [smem:[#allocation8_spill]] }
  0x5a   : > { %s7352_s1 = sshll.u32 %s1095_s18, 6  ;;  %s7354_s7 = sshll.u32 %s1095_s18, 8 }
  0x5b   : > { %v7355_v0 = vld [vmem:[%s10992_s17] sm:$0xff]  ;;  %s8329_s11 = scalar_lea.vmem %s8107_s13, %s7354_s7  ;;  %s10943_s18 = smov 32  }
  0x5c   : > { %1238 = vmatpush.bf16.msra.mxu0 %v7355_v0  ;;  %s8326_s10 = scalar_lea.vmem %s10993_s5, %s7352_s1  ;;  %v1126_v2 = vld [vmem:[%s8329_s11] sm:$0xff]  ;;  %v1127_v3 = vld [vmem:[%s8329_s11 + $0x8] sm:$0xff]  ;;  %v1128_v13 = vld [vmem:[%s8329_s11 + $0x10] sm:$0xff]  ;;  %v7676_v44 = vpop.eup %7675  ;;  %s11009_s8 = sld [smem:[#allocation9_spill]] }
  0x5d   : > { %v8332_v1 = vld [vmem:[%s8326_s10 + $0x8] sm:$0xff]  ;;  %s8337_s17 = scalar_lea.vmem %s10994_s9, %s7352_s1  ;;  %v1158_v5 = vpack.c.bf16 %v1127_v3, %v1126_v2  ;;  %v8345_v8 = vld [vmem:[%s8326_s10 + $0x10] sm:$0xff]  ;;  %v8351_v11 = vld [vmem:[%s8326_s10 + $0x18] sm:$0xff]  ;;  %v2132_v45 = vmul.f32 32.0, %v7676_v44  ;;  %vm2136_vm2 = vweird.f32 %v7676_v44  ;;  %v8417_v3 = vperm.slane %v1320_v62, 0  ;;  %s11017_s1 = sld [smem:[#allocation13_spill]] }
  0x5e   : > { %v2110_v4 = vsel %vm1573_vm0, %v8332_v1, 0.0  ;;  %v1118_v6 = vld [vmem:[%s8337_s17] sm:$0xff]  ;;  %v1119_v7 = vld [vmem:[%s8337_s17 + $0x8] sm:$0xff]  ;;  %v2113_v10 = vsel %vm1573_vm0, %v8345_v8, 0.0  ;;  %v2116_v12 = vsel %vm1573_vm0, %v8351_v11, 0.0  ;;  %v1129_v14 = vld [vmem:[%s8329_s11 + $0x18] sm:$0xff] }
  0x5f   : > { %2111 = vadd.xlane.f32.xlu1 %v2110_v4  ;;  %6837 = vmatmul.msk.bf16.vlgmr.msra.gmra.mxu0 %vm1182_vm1, %v1158_v5  ;;  %v7532_v9 = vpack.i.bf16 %v1119_v7, %v1118_v6  ;;  %v1159_v15 = vpack.c.bf16 %v1129_v14, %v1128_v13  ;;  %v1130_v16 = vld [vmem:[%s8329_s11 + $0x20] sm:$0xff]  ;;  %v1131_v17 = vld [vmem:[%s8329_s11 + $0x28] sm:$0xff]  ;;  %v1120_v19 = vld [vmem:[%s8337_s17 + $0x10] sm:$0xff]  ;;  %v2133_v48 = vsub.f32 1.0, %v2132_v45  ;;  %s11018_s7 = sld [smem:[#allocation14_spill]] }
  0x60   : > { %2114 = vadd.xlane.f32.xlu2 %v2113_v10  ;;  %v1160_v18 = vpack.c.bf16 %v1131_v17, %v1130_v16  ;;  %v1121_v20 = vld [vmem:[%s8337_s17 + $0x18] sm:$0xff]  ;;  %v1122_v21 = vld [vmem:[%s8337_s17 + $0x20] sm:$0xff]  ;;  %v1123_v23 = vld [vmem:[%s8337_s17 + $0x28] sm:$0xff]  ;;  %v8426_v10 = vperm.slane %v1320_v62, 1  ;;  %s11040_s5 = sld [smem:[#allocation25_spill]] }
  0x61   : > { %7533 = vrot.lane.b32.xlu0 %v7532_v9, %s10943_s18  ;;  %v7537_v22 = vpack.i.bf16 %v1121_v20, %v1120_v19  ;;  %v7542_v24 = vpack.i.bf16 %v1123_v23, %v1122_v21  ;;  %v1132_v25 = vld [vmem:[%s8329_s11 + $0x30] sm:$0xff]  ;;  %v1133_v26 = vld [vmem:[%s8329_s11 + $0x38] sm:$0xff]  ;;  %v8370_v28 = vld [vmem:[%s8326_s10] sm:$0xff]  ;;  %v2134_v49 = vmul.f32 %v7676_v44, %v2133_v48 }
  0x62   : > { %v1161_v27 = vpack.c.bf16 %v1133_v26, %v1132_v25  ;;  %v2107_v29 = vsel %vm1573_vm0, %v8370_v28, 0.0  ;;  %v1134_v30 = vld [vmem:[%s8329_s11 + $0x40] sm:$0xff]  ;;  %v1135_v31 = vld [vmem:[%s8329_s11 + $0x48] sm:$0xff]  ;;  %v1136_v33 = vld [vmem:[%s8329_s11 + $0x50] sm:$0xff] }
  0x63   : > { %v1162_v32 = vpack.c.bf16 %v1135_v31, %v1134_v30  ;;  %v1137_v34 = vld [vmem:[%s8329_s11 + $0x58] sm:$0xff]  ;;  %v8381_v36 = vld [vmem:[%s8326_s10 + $0x28] sm:$0xff]  ;;  %v8384_v37 = vld [vmem:[%s8326_s10 + $0x20] sm:$0xff]  ;;  %v2135_v53 = vadd.f32 %v7676_v44, %v2134_v49 }
  0x64   : > { %v1163_v35 = vpack.c.bf16 %v1137_v34, %v1136_v33  ;;  %v2122_v38 = vsel %vm1573_vm0, %v8381_v36, 0.0  ;;  %v2119_v39 = vsel %vm1573_vm0, %v8384_v37, 0.0  ;;  %v1138_v41 = vld [vmem:[%s8329_s11 + $0x60] sm:$0xff]  ;;  %v1139_v42 = vld [vmem:[%s8329_s11 + $0x68] sm:$0xff]  ;;  %v8395_v46 = vld [vmem:[%s8326_s10 + $0x30] sm:$0xff] }
  0x65   : > { %v1164_v43 = vpack.c.bf16 %v1139_v42, %v1138_v41  ;;  %v2125_v47 = vsel %vm1573_vm0, %v8395_v46, 0.0  ;;  %v1140_v50 = vld [vmem:[%s8329_s11 + $0x70] sm:$0xff]  ;;  %v1141_v51 = vld [vmem:[%s8329_s11 + $0x78] sm:$0xff]  ;;  %v8402_v54 = vsel %vm2136_vm2, %v7676_v44, %v2135_v53  ;;  %v1142_v60 = vld [vmem:[%s8329_s11 + $0x80] sm:$0xff] }
  0x66   : > { %v1165_v52 = vpack.c.bf16 %v1141_v51, %v1140_v50  ;;  %v1143_v61 = vld [vmem:[%s8329_s11 + $0x88] sm:$0xff]  ;;  %v8415_v0 = vld [vmem:[%s8326_s10 + $0x38] sm:$0xff]  ;;  %v1124_v4 = vld [vmem:[%s8337_s17 + $0x30] sm:$0xff]  ;;  %s11020_s10 = sld [smem:[#allocation16_spill]] }
  0x67   : > { %v1166_v63 = vpack.c.bf16 %v1143_v61, %v1142_v60  ;;  %v1125_v5 = vld [vmem:[%s8337_s17 + $0x38] sm:$0xff]  ;;  %v2128_v6 = vsel %vm1573_vm0, %v8415_v0, 0.0  ;;  %v1144_v16 = vld [vmem:[%s8329_s11 + $0x90] sm:$0xff]  ;;  %v1147_v30 = vld [vmem:[%s8329_s11 + $0xa8] sm:$0xff] }
  0x68   : > { %2117 = vadd.xlane.f32.xlu2 %v2116_v12  ;;  %v7547_v7 = vpack.i.bf16 %v1125_v5, %v1124_v4  ;;  %v1145_v17 = vld [vmem:[%s8329_s11 + $0x98] sm:$0xff]  ;;  %v1148_v50 = vld [vmem:[%s8329_s11 + $0xb0] sm:$0xff] }
  0x69   : > { %v1167_v20 = vpack.c.bf16 %v1145_v17, %v1144_v16  ;;  %v1149_v51 = vld [vmem:[%s8329_s11 + $0xb8] sm:$0xff] }
  0x6f   : > { %6838 = vmatmul.msk.bf16.gmra.mxu0 %vm1182_vm1, %v1159_v15 }
  0x78   : > { %7538 = vrot.lane.b32.xlu1 %v7537_v22, %s10943_s18 }
  0x7f   : > { %6839 = vmatmul.msk.bf16.gmra.mxu0 %vm1182_vm1, %v1160_v18 }
  0x80   : > { %7543 = vrot.lane.b32.xlu2 %v7542_v24, %s10943_s18 }
  0x8b   : > { %2108 = vadd.xlane.f32.xlu0 %v2107_v29  ;;  %v1146_v29 = vld [vmem:[%s8329_s11 + $0xa0] sm:$0xff] }
  0x8c   : > { %v1168_v34 = vpack.c.bf16 %v1147_v30, %v1146_v29 }
  0x8f   : > { %6840 = vmatmul.msk.bf16.gmra.mxu0 %vm1182_vm1, %v1161_v27 }
  0x9f   : > { %6841 = vmatmul.msk.bf16.gmra.mxu0 %vm1182_vm1, %v1162_v32  ;;  %7548 = vrot.lane.b32.xlu0 %v7547_v7, %s10943_s18 }
  0xa2   : > { %2120 = vadd.xlane.f32.xlu1 %v2119_v39 }
  0xa9   : > { %2123 = vadd.xlane.f32.xlu2 %v2122_v38 }
  0xaf   : > { %6842 = vmatmul.msk.bf16.gmra.mxu0 %vm1182_vm1, %v1163_v35 }
  0xb1   : > { %2126 = vadd.xlane.f32.xlu2 %v2125_v47 }
  0xbf   : > { %6843 = vmatmul.msk.bf16.gmra.mxu0 %vm1182_vm1, %v1164_v43 }
  0xcf   : > { %6844 = vmatmul.msk.bf16.gmra.mxu0 %vm1182_vm1, %v1165_v52 }
  0xd2   : > { %v2112_v55 = vpop.xlane.xlu1 %2111 }
  0xd3   : > { %v2139_v56 = vmul.f32 %v8402_v54, %v2112_v55  ;;  %v8442_v31 = vpop.permute.xlu0 %7533  ;;  %v2115_v48 = vpop.xlane.xlu2 %2114 }
  0xd4   : > { %v2140_v60 = vmul.f32 %v8402_v54, %v2115_v48 }
  0xd5   : > { %v8406_v57 = vsub.f32 %v8332_v1, %v2139_v56  ;;  %v1169_v56 = vpack.c.bf16 %v1149_v51, %v1148_v50 }
  0xd7   : > { %v2155_v58 = vmul.f32 %v8406_v57, %v8406_v57 }
  0xd9   : > { %v2165_v59 = vsel %vm1573_vm0, %v2155_v58, 0.0 }
  0xda   : > { %2166 = vadd.xlane.f32.xlu1 %v2165_v59 }
  0xdb   : > { %v2118_v62 = vpop.xlane.xlu2 %2117 }
  0xdc   : > { %v1240_v2 = vpop.f32.mrf.mxu0 }
  0xdd   : > { %v1322_v9 = vmul.f32 %v8417_v3, %v1240_v2  ;;  %v8467_v2 = vsub.f32 %v8345_v8, %v2140_v60 }
  0xdf   : > { %6845 = vmatmul.msk.bf16.gmra.mxu0 %vm1182_vm1, %v1166_v63  ;;  %v1355_v13 = vadd.f32 %v8426_v10, %v1322_v9  ;;  %v2141_v63 = vmul.f32 %v8402_v54, %v2118_v62  ;;  %v1156_v62 = vld [vmem:[%s8329_s11 + $0xf0] sm:$0xff] }
  0xe1   : > { %v1387_v18 = vmax.f32 %v1355_v13, 0.0  ;;  %v8470_v5 = vsub.f32 %v8351_v11, %v2141_v63  ;;  %v1157_v63 = vld [vmem:[%s8329_s11 + $0xf8] sm:$0xff] }
  0xe2   : > { %2129 = vadd.xlane.f32.xlu1 %v2128_v6 }
  0xe3   : > { %v2157_v13 = vmul.f32 %v8470_v5, %v8470_v5 }
  0xe4   : > { %v1242_v12 = vpop.f32.mrf.mxu0 }
  0xe5   : > { %v1323_v14 = vmul.f32 %v8417_v3, %v1242_v12  ;;  %v2156_v12 = vmul.f32 %v8467_v2, %v8467_v2 }
  0xe7   : > { %v1356_v15 = vadd.f32 %v8426_v10, %v1323_v14  ;;  %v1150_v14 = vld [vmem:[%s8329_s11 + $0xc0] sm:$0xff]  ;;  %v2168_v17 = vsel %vm1573_vm0, %v2156_v12, 0.0 }
  0xe8   : > { %2169 = vadd.xlane.f32.xlu2 %v2168_v17 }
  0xe9   : > { %v1388_v19 = vmax.f32 %v1356_v15, 0.0  ;;  %v1151_v15 = vld [vmem:[%s8329_s11 + $0xc8] sm:$0xff] }
  0xeb   : > { %v8433_v21 = vpack.c.bf16 %v1388_v19, %v1387_v18  ;;  %v8482_v18 = vpop.permute.xlu2 %7543  ;;  %v2171_v19 = vsel %vm1573_vm0, %v2157_v13, 0.0  ;;  %v7366_v13 = vld [vmem:[%s8127_s29 + $0x10] sm:$0xff] }
  0xec   : > { %v1245_v22 = vpop.f32.mrf.mxu0  ;;  %2172 = vadd.xlane.f32.xlu1 %v2171_v19 }
  0xed   : > { %v1324_v23 = vmul.f32 %v8417_v3, %v1245_v22 }
  0xef   : > { %6846 = vmatmul.msk.bf16.gmra.mxu0 %vm1182_vm1, %v1167_v20  ;;  %v1357_v25 = vadd.f32 %v8426_v10, %v1324_v23  ;;  %v8485_v20 = vpop.permute.xlu1 %7538  ;;  %v1170_v23 = vpack.c.bf16 %v1151_v15, %v1150_v14 }
  0xf1   : > { %v1389_v32 = vmax.f32 %v1357_v25, 0.0 }
  0xf4   : > { %v1247_v24 = vpop.f32.mrf.mxu0 }
  0xf5   : > { %v1325_v26 = vmul.f32 %v8417_v3, %v1247_v24 }
  0xf7   : > { %v1358_v27 = vadd.f32 %v8426_v10, %v1325_v26 }
  0xf9   : > { %v1390_v33 = vmax.f32 %v1358_v27, 0.0 }
  0xfb   : > { %v8444_v35 = vpack.c.bf16 %v1390_v33, %v1389_v32 }
  0xfc   : > { %v1250_v38 = vpop.f32.mrf.mxu0 }
  0xfd   : > { %v1326_v39 = vmul.f32 %v8417_v3, %v1250_v38 }
  0xfe   : > { %v2109_v40 = vpop.xlane.xlu0 %2108 }
  0xff   : > { %6847 = vmatmul.msk.bf16.gmra.mxu0 %vm1182_vm1, %v1168_v34  ;;  %v2138_v41 = vmul.f32 %v8402_v54, %v2109_v40  ;;  %v1359_v43 = vadd.f32 %v8426_v10, %v1326_v39  ;;  %v1152_v39 = vld [vmem:[%s8329_s11 + $0xd0] sm:$0xff]  ;;  %v1153_v40 = vld [vmem:[%s8329_s11 + $0xd8] sm:$0xff] }
 0x101   : > { %v8452_v45 = vsub.f32 %v8370_v28, %v2138_v41  ;;  %v1391_v52 = vmax.f32 %v1359_v43, 0.0 }
 0x103   : > { %v2154_v49 = vmul.f32 %v8452_v45, %v8452_v45 }
 0x104   : > { %v1252_v42 = vpop.f32.mrf.mxu0 }
 0x105   : > { %v1327_v44 = vmul.f32 %v8417_v3, %v1252_v42  ;;  %v2162_v53 = vsel %vm1573_vm0, %v2154_v49, 0.0 }
 0x106   : > { %2163 = vadd.xlane.f32.xlu0 %v2162_v53  ;;  %v1155_v53 = vld [vmem:[%s8329_s11 + $0xe8] sm:$0xff] }
 0x107   : > { %v1360_v47 = vadd.f32 %v8426_v10, %v1327_v44  ;;  %v1171_v44 = vpack.c.bf16 %v1153_v40, %v1152_v39  ;;  %v7536_v39 = vunpack.i.h.bf16 %v8442_v31  ;;  %v7535_v40 = vunpack.i.l.bf16 %v8442_v31 }
 0x109   : > { %v1392_v55 = vmax.f32 %v1360_v47, 0.0 }
 0x10b   : > { %v8460_v58 = vpack.c.bf16 %v1392_v55, %v1391_v52  ;;  %v1154_v52 = vld [vmem:[%s8329_s11 + $0xe0] sm:$0xff]  ;;  %s11016_s11 = sld [smem:[#allocation12_spill]] }
 0x10c   : > { %v1255_v59 = vpop.f32.mrf.mxu0 }
 0x10d   : > { %v1328_v61 = vmul.f32 %v8417_v3, %v1255_v59 }
 0x10f   : > { %6848 = vmatmul.msk.bf16.gmra.mxu0 %vm1182_vm1, %v1169_v56  ;;  %v1361_v6 = vadd.f32 %v8426_v10, %v1328_v61  ;;  %v1172_v56 = vpack.c.bf16 %v1155_v53, %v1154_v52 }
 0x111   : > { %v1393_v16 = vmax.f32 %v1361_v6, 0.0 }
 0x114   : > { %v1257_v4 = vpop.f32.mrf.mxu0 }
 0x115   : > { %v1329_v7 = vmul.f32 %v8417_v3, %v1257_v4  ;;  %v2121_v29 = vpop.xlane.xlu1 %2120  ;;  %v1173_v4 = vpack.c.bf16 %v1157_v63, %v1156_v62 }
 0x116   : > { %v2142_v32 = vmul.f32 %v8402_v54, %v2121_v29 }
 0x117   : > { %v1362_v9 = vadd.f32 %v8426_v10, %v1329_v7 }
 0x118   : > { %v8498_v34 = vsub.f32 %v8384_v37, %v2142_v32 }
 0x119   : > { %v1394_v22 = vmax.f32 %v1362_v9, 0.0  ;;  %v7367_v9 = vld [vmem:[%s8127_s29 + $0x18] sm:$0xff] }
 0x11a   : > { %v2158_v41 = vmul.f32 %v8498_v34, %v8498_v34  ;;  %1635 = vmatpush.bf16.msra.mxu3 %v7367_v9 }
 0x11b   : > { %v8487_v24 = vpack.c.bf16 %v1394_v22, %v1393_v16 }
 0x11c   : > { %v8489_v25 = vpop.f32.mrf.mxu0  ;;  %v2124_v26 = vpop.xlane.xlu2 %2123  ;;  %v2174_v43 = vsel %vm1573_vm0, %v2158_v41, 0.0 }
 0x11d   : > { %v2143_v27 = vmul.f32 %v8402_v54, %v2124_v26  ;;  %2175 = vadd.xlane.f32.xlu2 %v2174_v43  ;;  %v7365_v26 = vld [vmem:[%s8127_s29 + $0x8] sm:$0xff] }
 0x11e   : > { %1636 = vmatpush.bf16.msra.mxu3 %v7366_v13 }
 0x11f   : > { %6849 = vmatmul.msk.bf16.gmra.mxu0 %vm1182_vm1, %v1170_v23  ;;  %v8495_v33 = vsub.f32 %v8381_v36, %v2143_v27 }
 0x121   : > { %v2159_v38 = vmul.f32 %v8495_v33, %v8495_v33 }
 0x122   : > { %1637 = vmatpush.bf16.msra.mxu3 %v7365_v26  ;;  %v6855_v26 = vld [vmem:[%s8122_s25] sm:$0xf] }
 0x123   : > { %v2177_v42 = vsel %vm1573_vm0, %v2159_v38, 0.0 }
 0x124   : > { %v1262_v30 = vpop.f32.mrf.mxu0  ;;  %2178 = vadd.xlane.f32.xlu1 %v2177_v42  ;;  %v2127_v49 = vpop.xlane.xlu2 %2126 }
 0x125   : > { %v2144_v50 = vmul.f32 %v8402_v54, %v2127_v49  ;;  %v1331_v49 = vmul.f32 %v8417_v3, %v1262_v30  ;;  %v1330_v30 = vmul.f32 %v8417_v3, %v8489_v25 }
 0x127   : > { %v8511_v51 = vsub.f32 %v8395_v46, %v2144_v50  ;;  %v7364_v50 = vld [vmem:[%s8127_s29] sm:$0xff]  ;;  %v1364_v63 = vadd.f32 %v8426_v10, %v1331_v49 }
 0x128   : > { %1638 = vmatpush.bf16.msra.mxu3 %v7364_v50 }
 0x129   : > { %v2160_v55 = vmul.f32 %v8511_v51, %v8511_v51 }
 0x12b   : > { %v2180_v59 = vsel %vm1573_vm0, %v2160_v55, 0.0 }
 0x12c   : > { %v1265_v47 = vpop.f32.mrf.mxu0  ;;  %2181 = vadd.xlane.f32.xlu2 %v2180_v59  ;;  %v1575_v59 = vsel %vm1573_vm0, %v8332_v1, %v7536_v39 }
 0x12d   : > { %v1332_v41 = vmul.f32 %v8417_v3, %v1265_v47  ;;  %v1574_v47 = vsel %vm1573_vm0, %v8370_v28, %v7535_v40  ;;  %v1363_v28 = vadd.f32 %v8426_v10, %v1330_v30 }
 0x12e   : > { %v1582_v62 = vpack.c.bf16 %v1575_v59, %v1574_v47  ;;  %v7375_v47 = vld [vmem:[%s8157_s30 + $0x8] sm:$0xff] }
 0x12f   : > { %6850 = vmatmul.msk.bf16.gmra.mxu0 %vm1182_vm1, %v1171_v44  ;;  %v1395_v13 = vmax.f32 %v1363_v28, 0.0 }
 0x130   : > { %6901 = vmatmul.msk.bf16.vlgmr.msra.gmra.mxu3 %vm1618_vm3, %v1582_v62 }
 0x134   : > { %v1267_v48 = vpop.f32.mrf.mxu0 }
 0x135   : > { %v1333_v27 = vmul.f32 %v8417_v3, %v1267_v48 }
 0x137   : > { %v1366_v52 = vadd.f32 %v8426_v10, %v1333_v27  ;;  %v7357_v27 = vld [vmem:[%s8122_s25 + $0x4] sm:$0xf0] }
 0x13c   : > { %v1270_v60 = vpop.f32.mrf.mxu0 }
 0x13d   : > { %v1334_v17 = vmul.f32 %v8417_v3, %v1270_v60  ;;  %v1365_v60 = vadd.f32 %v8426_v10, %v1332_v41 }
 0x13f   : > { %6851 = vmatmul.msk.bf16.gmra.mxu0 %vm1182_vm1, %v1172_v56  ;;  %v1367_v42 = vadd.f32 %v8426_v10, %v1334_v17  ;;  %v1397_v9 = vmax.f32 %v1365_v60, 0.0  ;;  %v7540_v17 = vunpack.i.l.bf16 %v8485_v20 }
 0x144   : > { %v1272_v61 = vpop.f32.mrf.mxu0 }
 0x145   : > { %v1335_v14 = vmul.f32 %v8417_v3, %v1272_v61  ;;  %v1399_v61 = vmax.f32 %v1367_v42, 0.0  ;;  %v6863_v42 = vld [vmem:[%s8122_s25 + $0x10] sm:$0xf] }
 0x147   : > { %v1368_v29 = vadd.f32 %v8426_v10, %v1335_v14 }
 0x149   : > { %v1400_v56 = vmax.f32 %v1368_v29, 0.0  ;;  %v7549_v29 = vpop.permute.xlu0 %7548 }
 0x14a   : > { %v7550_v50 = vunpack.i.l.bf16 %v7549_v29 }
 0x14c   : > { %v1275_v6 = vpop.f32.mrf.mxu0  ;;  %v1580_v60 = vsel %vm1573_vm0, %v8395_v46, %v7550_v50 }
 0x14d   : > { %v8521_v7 = vpop.xlane.xlu1 %2166  ;;  %v1336_v12 = vmul.f32 %v8417_v3, %v1275_v6  ;;  %v1398_v6 = vmax.f32 %v1366_v52, 0.0 }
 0x14f   : > { %6852 = vmatmul.msk.bf16.gmra.mxu0 %vm1182_vm1, %v1173_v4  ;;  %v1369_v23 = vadd.f32 %v8426_v10, %v1336_v12  ;;  %v1433_v4 = vpack.c.bf16 %v1400_v56, %v1399_v61  ;;  %v1432_v1 = vpack.c.bf16 %v1398_v6, %v1397_v9  ;;  %v1396_v12 = vmax.f32 %v1364_v63, 0.0  ;;  %v6871_v63 = vld [vmem:[%s8122_s25 + $0x20] sm:$0xf] }
 0x151   : > { %v1401_v44 = vmax.f32 %v1369_v23, 0.0  ;;  %v1431_v14 = vpack.c.bf16 %v1396_v12, %v1395_v13 }
 0x154   : > { %v1277_v15 = vpop.f32.mrf.mxu0 }
 0x155   : > { %v2130_v16 = vpop.xlane.xlu1 %2129  ;;  %v1337_v19 = vmul.f32 %v8417_v3, %v1277_v15 }
 0x156   : > { %v2145_v22 = vmul.f32 %v8402_v54, %v2130_v16  ;;  %v7541_v16 = vunpack.i.h.bf16 %v8485_v20  ;;  %v6856_v20 = vor.u32 %v7357_v27, %v6855_v26 }
 0x157   : > { %v1370_v38 = vadd.f32 %v8426_v10, %v1337_v19 }
 0x158   : > { %v8536_v32 = vsub.f32 %v8415_v0, %v2145_v22  ;;  %v1576_v22 = vsel %vm1573_vm0, %v8345_v8, %v7540_v17  ;;  %v1577_v23 = vsel %vm1573_vm0, %v8351_v11, %v7541_v16  ;;  %v7546_v8 = vunpack.i.h.bf16 %v8482_v18 }
 0x159   : > { %v1402_v48 = vmax.f32 %v1370_v38, 0.0  ;;  %v7545_v11 = vunpack.i.l.bf16 %v8482_v18 }
 0x15a   : > { %v2161_v43 = vmul.f32 %v8536_v32, %v8536_v32 }
 0x15b   : > { %v1434_v55 = vpack.c.bf16 %v1402_v48, %v1401_v44  ;;  %v1578_v41 = vsel %vm1573_vm0, %v8384_v37, %v7545_v11  ;;  %v7551_v37 = vunpack.i.h.bf16 %v7549_v29  ;;  %v2170_v52 = vpop.xlane.xlu2 %2169 }
 0x15c   : > { %v2183_v53 = vsel %vm1573_vm0, %v2161_v43, 0.0  ;;  %v8549_v31 = vpop.f32.mrf.mxu0  ;;  %v7359_v43 = vld [vmem:[%s8122_s25 + $0x14] sm:$0xf0]  ;;  %v2188_v56 = vmul.f32 %v2170_v52, %v8402_v54 }
 0x15d   : > { %2184 = vadd.xlane.f32.xlu1 %v2183_v53  ;;  %1483 = vmatpush.bf16.msra.mxu1 %v1434_v55  ;;  %v6864_v18 = vor.u32 %v7359_v43, %v6863_v42  ;;  %v1581_v61 = vsel %vm1573_vm0, %v8415_v0, %v7551_v37 }
 0x15e   : > { %v1585_v28 = vpack.c.bf16 %v1581_v61, %v1580_v60  ;;  %v8609_v9 = vadd.f32 1e-06, %v2188_v56 }
 0x15f   : > { %v2173_v53 = vpop.xlane.xlu1 %2172 }
 0x160   : > { %v2189_v30 = vmul.f32 %v2173_v53, %v8402_v54  ;;  %v2106_v53 = vld [vmem:[%s8152_s24] sm:$0x3]  ;;  %vm2228_vm10 = vweird.f32 %v8609_v9 }
 0x161   : > { %1484 = vmatpush.bf16.msra.mxu1 %v1433_v4  ;;  %v7361_v4 = vld [vmem:[%s8122_s25 + $0x24] sm:$0xf0]  ;;  %v8651_v60 = vperm.slane %v2106_v53, 0 }
 0x162   : > { %v6872_v12 = vor.u32 %v7361_v4, %v6871_v63  ;;  %v8613_v13 = vadd.f32 1e-06, %v2189_v30  ;;  %v8656_v63 = vperm.slane %v2106_v53, 1 }
 0x164   : > { %v8561_v25 = vpop.f32.mrf.mxu0  ;;  %vm2238_vm12 = vweird.f32 %v8613_v13 }
 0x165   : > { %1485 = vmatpush.bf16.msra.mxu1 %v1432_v1  ;;  %v7374_v1 = vld [vmem:[%s8157_s30] sm:$0xff] }
 0x169   : > { %1486 = vmatpush.bf16.msra.mxu1 %v1431_v14 }
 0x16c   : > { %v8563_v15 = vpop.f32.mrf.mxu0 }
 0x16d   : > { %1487 = vmatpush.bf16.msra.mxu1 %v8487_v24  ;;  %v1583_v24 = vpack.c.bf16 %v1577_v23, %v1576_v22 }
 0x16f   : > { %6902 = vmatmul.msk.bf16.gmra.mxu3 %vm1618_vm3, %v1583_v24 }
 0x171   : > { %1488 = vmatpush.bf16.msra.mxu1 %v8460_v58 }
 0x174   : > { %v8569_v19 = vpop.f32.mrf.mxu0 }
 0x175   : > { %1489 = vmatpush.bf16.msra.mxu1 %v8444_v35  ;;  %v2187_v35 = vmul.f32 %v8521_v7, %v8402_v54 }
 0x177   : > { %v2195_v48 = vadd.f32 1e-06, %v2187_v35 }
 0x179   : > { %1490 = vmatpush.bf16.msra.mxu1 %v8433_v21  ;;  %v2164_v38 = vpop.xlane.xlu0 %2163  ;;  %v1579_v21 = vsel %vm1573_vm0, %v8381_v36, %v7546_v8  ;;  %7677 = vrsqrt.f32 %v2195_v48  ;;  %vm2218_vm4 = vweird.f32 %v2195_v48 }
 0x17a   : > { %v2186_v40 = vmul.f32 %v2164_v38, %v8402_v54  ;;  %v1584_v44 = vpack.c.bf16 %v1579_v21, %v1578_v41  ;;  %v6879_v41 = vld [vmem:[%s8122_s25 + $0x30] sm:$0xf]  ;;  %v7363_v21 = vld [vmem:[%s8122_s25 + $0x34] sm:$0xf0] }
 0x17c   : > { %v8580_v58 = vpop.f32.mrf.mxu0  ;;  %1491 = vmatmul.bf16.vlgmr.msra.gmra.mxu1 %v6856_v20  ;;  %v2194_v49 = vadd.f32 1e-06, %v2186_v40 }
 0x17d   : > { %2346 = vmatpush.bf16.msrb.mxu1 %v7375_v47 }
 0x17e   : > { %7679 = vrsqrt.f32 %v2194_v49  ;;  %vm2208_vm6 = vweird.f32 %v2194_v49 }
 0x17f   : > { %6903 = vmatmul.msk.bf16.gmra.mxu3 %vm1618_vm3, %v1584_v44  ;;  %v7678_v36 = vpop.eup %7677  ;;  %7681 = vrsqrt.f32 %v8609_v9 }
 0x180   : > { %v2213_v62 = vmul.f32 %v7678_v36, %v2195_v48  ;;  %7683 = vrsqrt.f32 %v8613_v13  ;;  %vm2219_vm5 = vweird.f32 %v7678_v36  ;;  %v6880_v48 = vor.u32 %v7363_v21, %v6879_v41 }
 0x181   : > { %2347 = vmatpush.bf16.msrb.mxu1 %v7374_v1  ;;  %vm8627_vm8 = vmor %vm2218_vm4, %vm2219_vm5 }
 0x182   : > { %v2214_v14 = vmul.f32 %v7678_v36, %v2213_v62 }
 0x184   : > { %v8586_v39 = vpop.f32.mrf.mxu0  ;;  %v7680_v55 = vpop.eup %7679  ;;  %v2215_v0 = vmul.f32 0.5, %v2214_v14 }
 0x185   : > { %v2203_v6 = vmul.f32 %v7680_v55, %v2194_v49  ;;  %v8619_v23 = vpop.eup %7681  ;;  %vm2209_vm7 = vweird.f32 %v7680_v55 }
 0x186   : > { %v2216_v26 = vsub.f32 1.5, %v2215_v0  ;;  %v8621_v29 = vpop.eup %7683  ;;  %v2223_v42 = vmul.f32 %v8619_v23, %v8609_v9  ;;  %vm2210_vm9 = vmor %vm2208_vm6, %vm2209_vm7  ;;  %vm2229_vm11 = vweird.f32 %v8619_v23 }
 0x187   : > { %v2204_v16 = vmul.f32 %v7680_v55, %v2203_v6  ;;  %v2233_v43 = vmul.f32 %v8621_v29, %v8613_v13  ;;  %vm2239_vm13 = vweird.f32 %v8621_v29  ;;  %vm2230_vm14 = vmor %vm2228_vm10, %vm2229_vm11 }
 0x188   : > { %v2217_v38 = vmul.f32 %v7678_v36, %v2216_v26  ;;  %v2224_v50 = vmul.f32 %v8619_v23, %v2223_v42  ;;  %vm2240_vm15 = vmor %vm2238_vm12, %vm2239_vm13 }
 0x189   : > { %v2205_v17 = vmul.f32 0.5, %v2204_v16  ;;  %v2234_v52 = vmul.f32 %v8621_v29, %v2233_v43 }
 0x18a   : > { %v2221_v49 = vsel %vm8627_vm8, %v7678_v36, %v2217_v38  ;;  %v2225_v36 = vmul.f32 0.5, %v2224_v50 }
 0x18b   : > { %v2206_v27 = vsub.f32 1.5, %v2205_v17  ;;  %v2283_v56 = vmul.f32 %v2221_v49, %v8406_v57 }
 0x18c   : > { %v8596_v7 = vpop.f32.mrf.mxu0  ;;  %1496 = vmatmul.bf16.gmra.mxu1 %v6864_v18  ;;  %v2226_v6 = vsub.f32 1.5, %v2225_v36 }
 0x18d   : > { %v2207_v40 = vmul.f32 %v7680_v55, %v2206_v27  ;;  %v2292_v62 = vmul.f32 %v8651_v60, %v2283_v56 }
 0x18e   : > { %v2227_v14 = vmul.f32 %v8619_v23, %v2226_v6 }
 0x18f   : > { %6904 = vmatmul.msk.bf16.gmra.mxu3 %vm1618_vm3, %v1585_v28  ;;  %v2211_v37 = vsel %vm2210_vm9, %v7680_v55, %v2207_v40  ;;  %v2235_v55 = vmul.f32 0.5, %v2234_v52 }
 0x190   : > { %v2176_v24 = vpop.xlane.xlu2 %2175  ;;  %v2282_v47 = vmul.f32 %v2211_v37, %v8452_v45  ;;  %v2231_v26 = vsel %vm2230_vm14, %v8619_v23, %v2227_v14  ;;  %vm1720_vm14 = vcmask 785408  }
 0x191   : > { %v2190_v11 = vmul.f32 %v2176_v24, %v8402_v54  ;;  %v2236_v57 = vsub.f32 1.5, %v2235_v55  ;;  %v2284_v38 = vmul.f32 %v2231_v26, %v8467_v2 }
 0x192   : > { %v2291_v61 = vmul.f32 %v8651_v60, %v2282_v47 }
 0x193   : > { %v8639_v18 = vadd.f32 1e-06, %v2190_v11  ;;  %v2237_v16 = vmul.f32 %v8621_v29, %v2236_v57  ;;  %v2293_v42 = vmul.f32 %v8651_v60, %v2284_v38 }
 0x194   : > { %v8600_v59 = vpop.f32.mrf.mxu0  ;;  %v8665_v1 = vadd.f32 %v8656_v63, %v2291_v61 }
 0x195   : > { %v2241_v27 = vsel %vm2240_vm15, %v8621_v29, %v2237_v16  ;;  %vm2248_vm4 = vweird.f32 %v8639_v18  ;;  %v8687_v2 = vadd.f32 %v8656_v63, %v2293_v42 }
 0x196   : > { %v2285_v35 = vmul.f32 %v2241_v27, %v8470_v5 }
 0x197   : > { %v2179_v22 = vpop.xlane.xlu1 %2178 }
 0x198   : > { %v2191_v20 = vmul.f32 %v2179_v22, %v8402_v54  ;;  %v2294_v43 = vmul.f32 %v8651_v60, %v2285_v35 }
 0x19a   : > { %v8637_v44 = vadd.f32 1e-06, %v2191_v20  ;;  %v8690_v5 = vadd.f32 %v8656_v63, %v2294_v43 }
 0x19c   : > { %v8616_v46 = vpop.f32.mrf.mxu0  ;;  %1501 = vmatmul.bf16.gmra.mxu1 %v6872_v12  ;;  %7685 = vrsqrt.f32 %v8637_v44  ;;  %v8668_v12 = vadd.f32 %v8656_v63, %v2292_v62  ;;  %vm2258_vm1 = vweird.f32 %v8637_v44  ;;  %v2309_v52 = vpack.c.bf16 %v8690_v5, %v8687_v2 }
 0x19d   : > { %7687 = vrsqrt.f32 %v8639_v18 }
 0x19e   : > { %v2308_v17 = vpack.c.bf16 %v8668_v12, %v8665_v1 }
 0x19f   : > { %v2182_v13 = vpop.xlane.xlu2 %2181 }
 0x1a0   : > { %v2192_v22 = vmul.f32 %v2182_v13, %v8402_v54 }
 0x1a2   : > { %v7686_v4 = vpop.eup %7685  ;;  %v2200_v40 = vadd.f32 1e-06, %v2192_v22 }
 0x1a3   : > { %v7688_v28 = vpop.eup %7687  ;;  %v2253_v0 = vmul.f32 %v7686_v4, %v8637_v44  ;;  %vm2259_vm2 = vweird.f32 %v7686_v4 }
 0x1a4   : > { %v8624_v8 = vpop.f32.mrf.mxu0  ;;  %v2243_v9 = vmul.f32 %v7688_v28, %v8639_v18  ;;  %7689 = vrsqrt.f32 %v2200_v40  ;;  %vm2249_vm5 = vweird.f32 %v7688_v28  ;;  %vm2260_vm6 = vmor %vm2258_vm1, %vm2259_vm2  ;;  %vm2268_vm8 = vweird.f32 %v2200_v40 }
 0x1a5   : > { %v2254_v20 = vmul.f32 %v7686_v4, %v2253_v0  ;;  %vm2250_vm7 = vmor %vm2248_vm4, %vm2249_vm5 }
 0x1a6   : > { %v2244_v24 = vmul.f32 %v7688_v28, %v2243_v9 }
 0x1a7   : > { %v2255_v21 = vmul.f32 0.5, %v2254_v20 }
 0x1a8   : > { %v2245_v41 = vmul.f32 0.5, %v2244_v24 }
 0x1aa   : > { %v2246_v23 = vsub.f32 1.5, %v2245_v41  ;;  %v7690_v50 = vpop.eup %7689 }
 0x1ab   : > { %v2263_v56 = vmul.f32 %v7690_v50, %v2200_v40  ;;  %vm2269_vm9 = vweird.f32 %v7690_v50 }
 0x1ac   : > { %v8649_v30 = vpop.f32.mrf.mxu0  ;;  %1506 = vmatmul.bf16.gmra.mxu1 %v6880_v48  ;;  %v2256_v48 = vsub.f32 1.5, %v2255_v21  ;;  %v2247_v49 = vmul.f32 %v7688_v28, %v2246_v23  ;;  %vm8723_vm10 = vmor %vm2268_vm8, %vm2269_vm9 }
 0x1ad   : > { %v2264_v55 = vmul.f32 %v7690_v50, %v2263_v56  ;;  %v1348_v20 = vmul.f32 %v8417_v3, %v8649_v30 }
 0x1ae   : > { %v2257_v37 = vmul.f32 %v7686_v4, %v2256_v48  ;;  %v2251_v44 = vsel %vm2250_vm7, %v7688_v28, %v2247_v49 }
 0x1af   : > { %v2286_v47 = vmul.f32 %v2251_v44, %v8498_v34  ;;  %v2265_v28 = vmul.f32 0.5, %v2264_v55  ;;  %v1381_v49 = vadd.f32 %v8426_v10, %v1348_v20  ;;  %v1345_v44 = vmul.f32 %v8417_v3, %v8600_v59 }
 0x1b0   : > { %v2261_v53 = vsel %vm2260_vm6, %v7686_v4, %v2257_v37  ;;  %v1343_v59 = vmul.f32 %v8417_v3, %v8586_v39 }
 0x1b1   : > { %v2287_v36 = vmul.f32 %v2261_v53, %v8495_v33  ;;  %v2295_v6 = vmul.f32 %v8651_v60, %v2286_v47  ;;  %v2266_v13 = vsub.f32 1.5, %v2265_v28  ;;  %v1413_v55 = vmax.f32 %v1381_v49, 0.0 }
 0x1b3   : > { %v2296_v57 = vmul.f32 %v8651_v60, %v2287_v36  ;;  %v8703_v34 = vadd.f32 %v8656_v63, %v2295_v6  ;;  %v2267_v35 = vmul.f32 %v7690_v50, %v2266_v13  ;;  %v1344_v36 = vmul.f32 %v8417_v3, %v8596_v7  ;;  %v1640_v6 = vpop.f32.mrf.mxu3 }
 0x1b4   : > { %v8662_v45 = vpop.f32.mrf.mxu0 }
 0x1b5   : > { %v8706_v33 = vadd.f32 %v8656_v63, %v2296_v57  ;;  %v1349_v26 = vmul.f32 %v8417_v3, %v8662_v45  ;;  %v1347_v45 = vmul.f32 %v8417_v3, %v8624_v8  ;;  %v2271_v8 = vsel %vm8723_vm10, %v7690_v50, %v2267_v35 }
 0x1b6   : > { %v2288_v47 = vmul.f32 %v2271_v8, %v8511_v51  ;;  %v1378_v51 = vadd.f32 %v8426_v10, %v1345_v44  ;;  %v1377_v39 = vadd.f32 %v8426_v10, %v1344_v36  ;;  %v1340_v35 = vmul.f32 %v8417_v3, %v8563_v15 }
 0x1b7   : > { %v1382_v40 = vadd.f32 %v8426_v10, %v1349_v26  ;;  %v1380_v53 = vadd.f32 %v8426_v10, %v1347_v45 }
 0x1b9   : > { %v1414_v56 = vmax.f32 %v1382_v40, 0.0  ;;  %v1412_v7 = vmax.f32 %v1380_v53, 0.0 }
 0x1bc   : > { %v1310_v11 = vpop.f32.mrf.mxu0  ;;  %6941 = vmatmul.msk.bf16.vlgmr.msrb.gmra.mxu1 %vm1573_vm0, %v2308_v17 }
 0x1bd   : > { %v1350_v0 = vmul.f32 %v8417_v3, %v1310_v11  ;;  %v2310_v11 = vpack.c.bf16 %v8706_v33, %v8703_v34 }
 0x1bf   : > { %v1383_v38 = vadd.f32 %v8426_v10, %v1350_v0  ;;  %v1342_v0 = vmul.f32 %v8417_v3, %v8580_v58 }
 0x1c1   : > { %v1415_v37 = vmax.f32 %v1383_v38, 0.0 }
 0x1c4   : > { %v1312_v29 = vpop.f32.mrf.mxu0 }
 0x1c5   : > { %v1351_v16 = vmul.f32 %v8417_v3, %v1312_v29  ;;  %v1346_v29 = vmul.f32 %v8417_v3, %v8616_v46 }
 0x1c7   : > { %v1384_v27 = vadd.f32 %v8426_v10, %v1351_v16  ;;  %v1379_v50 = vadd.f32 %v8426_v10, %v1346_v29  ;;  %v2297_v16 = vmul.f32 %v8651_v60, %v2288_v47 }
 0x1c9   : > { %v1416_v48 = vmax.f32 %v1384_v27, 0.0  ;;  %v1411_v13 = vmax.f32 %v1379_v50, 0.0  ;;  %v1341_v27 = vmul.f32 %v8417_v3, %v8569_v19  ;;  %v8760_v58 = vadd.f32 %v8656_v63, %v2297_v16 }
 0x1ca   : > { %v1339_v19 = vmul.f32 %v8417_v3, %v8561_v25 }
 0x1cb   : > { %v1441_v46 = vpack.c.bf16 %v1416_v48, %v1415_v37  ;;  %v1439_v20 = vpack.c.bf16 %v1412_v7, %v1411_v13  ;;  %v1374_v45 = vadd.f32 %v8426_v10, %v1341_v27  ;;  %v1373_v48 = vadd.f32 %v8426_v10, %v1340_v35 }
 0x1cc   : > { %v1315_v18 = vpop.f32.mrf.mxu0  ;;  %6942 = vmatmul.msk.bf16.gmra.mxu1 %vm1573_vm0, %v2309_v52  ;;  %v1372_v49 = vadd.f32 %v8426_v10, %v1339_v19 }
 0x1cd   : > { %v1352_v14 = vmul.f32 %v8417_v3, %v1315_v18  ;;  %v1406_v8 = vmax.f32 %v1374_v45, 0.0  ;;  %v1405_v44 = vmax.f32 %v1373_v48, 0.0  ;;  %v6881_v45 = vld [vmem:[%s8122_s25 + $0x38] sm:$0xf0] }
 0x1cf   : > { %v1385_v22 = vadd.f32 %v8426_v10, %v1352_v14 }
 0x1d0   : > { %v2185_v61 = vpop.xlane.xlu1 %2184 }
 0x1d1   : > { %v2193_v62 = vmul.f32 %v2185_v61, %v8402_v54  ;;  %v1417_v41 = vmax.f32 %v1385_v22, 0.0 }
 0x1d3   : > { %v2201_v4 = vadd.f32 1e-06, %v2193_v62  ;;  %v1660_v62 = vld [vmem:[%s10999_s3] sm:$0x3]  ;;  %s10947_s3 = smov 64  }
 0x1d4   : > { %v1317_v9 = vpop.f32.mrf.mxu0  ;;  %v8743_v57 = vperm.slane %v1660_v62, 0  ;;  %v8745_v14 = vperm.slane %v1660_v62, 1 }
 0x1d5   : > { %7691 = vrsqrt.f32 %v2201_v4  ;;  %v1353_v17 = vmul.f32 %v8417_v3, %v1317_v9  ;;  %vm2278_vm11 = vweird.f32 %v2201_v4 }
 0x1d6   : > { %v1662_v9 = vmul.f32 %v8743_v57, %v1640_v6  ;;  %v7358_v6 = vld [vmem:[%s8122_s25 + $0x14] sm:$0xf] }
 0x1d7   : > { %v1386_v24 = vadd.f32 %v8426_v10, %v1353_v17 }
 0x1d8   : > { %v1671_v26 = vadd.f32 %v8745_v14, %v1662_v9 }
 0x1d9   : > { %v1418_v21 = vmax.f32 %v1386_v24, 0.0  ;;  %v1376_v24 = vadd.f32 %v8426_v10, %v1343_v59 }
 0x1da   : > { %1687 = vrot.lane.b32.xlu0 %v1671_v26, %s10943_s18  ;;  %v6873_v26 = vld [vmem:[%s8122_s25 + $0x28] sm:$0xf0] }
 0x1db   : > { %v7692_v42 = vpop.eup %7691  ;;  %v1442_v30 = vpack.c.bf16 %v1418_v21, %v1417_v41  ;;  %v1409_v41 = vmax.f32 %v1377_v39, 0.0  ;;  %v1408_v43 = vmax.f32 %v1376_v24, 0.0 }
 0x1dc   : > { %v2273_v23 = vmul.f32 %v7692_v42, %v2201_v4  ;;  %6943 = vmatmul.msk.bf16.gmra.mxu1 %vm1573_vm0, %v2310_v11  ;;  %vm2279_vm12 = vweird.f32 %v7692_v42  ;;  %v1440_v4 = vpack.c.bf16 %v1414_v56, %v1413_v55  ;;  %v1410_v11 = vmax.f32 %v1378_v51, 0.0  ;;  %v7356_v56 = vld [vmem:[%s8122_s25 + $0x4] sm:$0xf]  ;;  %v6865_v51 = vld [vmem:[%s8122_s25 + $0x18] sm:$0xf0] }
 0x1dd   : > { %1512 = vmatpush.bf16.msra.mxu2 %v1442_v30  ;;  %vm2280_vm13 = vmor %vm2278_vm11, %vm2279_vm12  ;;  %v1338_v30 = vmul.f32 %v8417_v3, %v8549_v31  ;;  %v1436_v3 = vpack.c.bf16 %v1406_v8, %v1405_v44  ;;  %v1404_v31 = vmax.f32 %v1372_v49, 0.0 }
 0x1de   : > { %v2274_v52 = vmul.f32 %v7692_v42, %v2273_v23  ;;  %v1438_v40 = vpack.c.bf16 %v1410_v11, %v1409_v41 }
 0x1e0   : > { %v2275_v18 = vmul.f32 0.5, %v2274_v52  ;;  %v1371_v52 = vadd.f32 %v8426_v10, %v1338_v30 }
 0x1e1   : > { %1513 = vmatpush.bf16.msra.mxu2 %v1441_v46 }
 0x1e2   : > { %v2276_v61 = vsub.f32 1.5, %v2275_v18  ;;  %v1403_v53 = vmax.f32 %v1371_v52, 0.0  ;;  %v6857_v18 = vld [vmem:[%s8122_s25 + $0x8] sm:$0xf0] }
 0x1e3   : > { %v6860_v47 = vor.u32 %v7356_v56, %v6857_v18 }
 0x1e4   : > { %v2277_v28 = vmul.f32 %v7692_v42, %v2276_v61  ;;  %v1435_v46 = vpack.c.bf16 %v1404_v31, %v1403_v53 }
 0x1e5   : > { %1514 = vmatpush.bf16.msra.mxu2 %v1440_v4  ;;  %v6868_v4 = vor.u32 %v7358_v6, %v6865_v51 }
 0x1e6   : > { %v2281_v17 = vsel %vm2280_vm13, %v7692_v42, %v2277_v28  ;;  %v1642_v42 = vpop.f32.mrf.mxu3 }
 0x1e7   : > { %v2289_v22 = vmul.f32 %v2281_v17, %v8536_v32  ;;  %v1375_v32 = vadd.f32 %v8426_v10, %v1342_v0  ;;  %v1663_v23 = vmul.f32 %v8743_v57, %v1642_v42  ;;  %v7362_v42 = vld [vmem:[%s8122_s25 + $0x34] sm:$0xf] }
 0x1e9   : > { %v2298_v38 = vmul.f32 %v8651_v60, %v2289_v22  ;;  %1515 = vmatpush.bf16.msra.mxu2 %v1439_v20  ;;  %v1407_v25 = vmax.f32 %v1375_v32, 0.0  ;;  %v1672_v29 = vadd.f32 %v8745_v14, %v1663_v23  ;;  %v7360_v22 = vld [vmem:[%s8122_s25 + $0x24] sm:$0xf] }
 0x1ea   : > { %v6876_v24 = vor.u32 %v7360_v22, %v6873_v26 }
 0x1eb   : > { %v8769_v21 = vadd.f32 %v8656_v63, %v2298_v38  ;;  %v1437_v37 = vpack.c.bf16 %v1408_v43, %v1407_v25  ;;  %1689 = vrot.lane.b32.xlu2 %v1672_v29, %s10943_s18  ;;  %v6884_v43 = vor.u32 %v7362_v42, %v6881_v45 }
 0x1ed   : > { %v2311_v15 = vpack.c.bf16 %v8769_v21, %v8760_v58  ;;  %1516 = vmatpush.bf16.msra.mxu2 %v1438_v40 }
 0x1ef   : > { %6944 = vmatmul.msk.bf16.gmra.mxu1 %vm1573_vm0, %v2311_v15 }
 0x1f1   : > { %1517 = vmatpush.bf16.msra.mxu2 %v1437_v37 }
 0x1f2   : > { %v1645_v50 = vpop.f32.mrf.mxu3 }
 0x1f3   : > { %v1664_v55 = vmul.f32 %v8743_v57, %v1645_v50 }
 0x1f5   : > { %1518 = vmatpush.bf16.msra.mxu2 %v1436_v3  ;;  %v1673_v10 = vadd.f32 %v8745_v14, %v1664_v55 }
 0x1f7   : > { %1691 = vrot.lane.b32.xlu1 %v1673_v10, %s10943_s18 }
 0x1f9   : > { %v8785_v36 = vpop.f32.mrf.mxu1  ;;  %1519 = vmatpush.bf16.msra.mxu2 %v1435_v46 }
 0x1fa   : > { %v1647_v62 = vpop.f32.mrf.mxu3 }
 0x1fb   : > { %v1665_v59 = vmul.f32 %v8743_v57, %v1647_v62 }
 0x1fc   : > { %1520 = vmatmul.bf16.vlgmr.msra.gmra.mxu2 %v6860_v47 }
 0x1fd   : > { %v1674_v28 = vadd.f32 %v8745_v14, %v1665_v59 }
 0x1ff   : > { %1693 = vrot.lane.b32.xlu0 %v1674_v28, %s10943_s18 }
 0x201   : > { %v8790_v61 = vpop.f32.mrf.mxu1 }
 0x202   : > { %v1650_v16 = vpop.f32.mrf.mxu3 }
 0x203   : > { %v1666_v9 = vmul.f32 %v8743_v57, %v1650_v16 }
 0x205   : > { %v1675_v0 = vadd.f32 %v8745_v14, %v1666_v9 }
 0x207   : > { %1695 = vrot.lane.b32.xlu2 %v1675_v0, %s10943_s18 }
 0x209   : > { %v8797_v7 = vpop.f32.mrf.mxu1 }
 0x20a   : > { %v1652_v13 = vpop.f32.mrf.mxu3 }
 0x20b   : > { %v1667_v17 = vmul.f32 %v8743_v57, %v1652_v13 }
 0x20c   : > { %1525 = vmatmul.bf16.gmra.mxu2 %v6868_v4 }
 0x20d   : > { %v1676_v27 = vadd.f32 %v8745_v14, %v1667_v17 }
 0x20f   : > { %1697 = vrot.lane.b32.xlu0 %v1676_v27, %s10943_s18 }
 0x211   : > { %v8802_v39 = vpop.f32.mrf.mxu1 }
 0x212   : > { %v1655_v11 = vpop.f32.mrf.mxu3 }
 0x213   : > { %v1668_v38 = vmul.f32 %v8743_v57, %v1655_v11 }
 0x215   : > { %v1677_v35 = vadd.f32 %v8745_v14, %v1668_v38 }
 0x217   : > { %1699 = vrot.lane.b32.xlu0 %v1677_v35, %s10943_s18 }
 0x219   : > { %v8809_v20 = vpop.f32.mrf.mxu1 }
 0x21a   : > { %v1657_v41 = vpop.f32.mrf.mxu3 }
 0x21b   : > { %v1669_v19 = vmul.f32 %v8743_v57, %v1657_v41 }
 0x21c   : > { %1530 = vmatmul.bf16.gmra.mxu2 %v6876_v24 }
 0x21d   : > { %v1678_v40 = vadd.f32 %v8745_v14, %v1669_v19 }
 0x21f   : > { %1701 = vrot.lane.b32.xlu0 %v1678_v40, %s10943_s18  ;;  %s11029_s18 = sld [smem:[#allocation19_spill]] }
 0x221   : > { %v8814_v32 = vpop.f32.mrf.mxu1 }
 0x229   : > { %v8821_v23 = vpop.f32.mrf.mxu1 }
 0x22c   : > { %1535 = vmatmul.bf16.gmra.mxu2 %v6884_v43 }
 0x231   : > { %v8823_v15 = vpop.f32.mrf.mxu1 }
 0x239   : > { %v2349_v30 = vpop.f32.mrf.mxu1 }
 0x23a   : > { %v2369_v53 = vsel %vm1618_vm3, %v2349_v30, -inf }
 0x241   : > { %v2351_v48 = vpop.f32.mrf.mxu1 }
 0x242   : > { %v2370_v52 = vsel %vm1618_vm3, %v2351_v48, -inf }
 0x245   : > { %v1690_v40 = vpop.permute.xlu2 %1689 }
 0x249   : > { %v2354_v25 = vpop.f32.mrf.mxu1 }
 0x24a   : > { %v2371_v56 = vsel %vm1618_vm3, %v2354_v25, -inf }
 0x24c   : > { %v1688_v16 = vpop.permute.xlu0 %1687 }
 0x251   : > { %v2356_v29 = vpop.f32.mrf.mxu1 }
 0x252   : > { %v2372_v18 = vsel %vm1618_vm3, %v2356_v29, -inf }
 0x259   : > { %v2359_v49 = vpop.f32.mrf.mxu1 }
 0x25a   : > { %v2373_v14 = vsel %vm1618_vm3, %v2359_v49, -inf }
 0x25b   : > { %v2374_v47 = vmax.f32 %v2369_v53, %v2373_v14 }
 0x261   : > { %v2361_v37 = vpop.f32.mrf.mxu1 }
 0x262   : > { %v2375_v57 = vsel %vm1618_vm3, %v2361_v37, -inf }
 0x263   : > { %v2376_v3 = vmax.f32 %v2370_v52, %v2375_v57 }
 0x265   : > { %v2381_v10 = vmax.f32 %v2374_v47, %v2376_v3 }
 0x269   : > { %v1692_v14 = vpop.permute.xlu1 %1691 }
 0x26c   : > { %v2364_v8 = vpop.f32.mrf.mxu1 }
 0x26d   : > { %v2377_v44 = vsel %vm1618_vm3, %v2364_v8, -inf }
 0x26e   : > { %v2378_v50 = vmax.f32 %v2371_v56, %v2377_v44 }
 0x274   : > { %v2366_v31 = vpop.f32.mrf.mxu1 }
 0x275   : > { %v2379_v46 = vsel %vm1618_vm3, %v2366_v31, -inf }
 0x276   : > { %v2380_v55 = vmax.f32 %v2372_v18, %v2379_v46 }
 0x278   : > { %v2382_v62 = vmax.f32 %v2378_v50, %v2380_v55 }
 0x27a   : > { %v2383_v59 = vmax.f32 %v2381_v10, %v2382_v62 }
 0x27c   : > { %v2384_v6 = vrot.slane %v2383_v59, 4 }
 0x27e   : > { %v2385_v51 = vmax.f32 %v2383_v59, %v2384_v6 }
 0x27f   : > { %v1521_v4 = vpop.f32.mrf.mxu2 }
 0x280   : > { %v2386_v28 = vrot.slane %v2385_v51, 2  ;;  %v8834_v9 = vadd.f32 %v1521_v4, %v8785_v36  ;;  %v8882_v4 = vld [vmem:[%s10988_s4 + $0x30] sm:$0xff] }
 0x282   : > { %11000 = vst [vmem:[#allocation31_spill] sm:$0xff] %v8834_v9  ;;  %v2387_v0 = vmax.f32 %v2385_v51, %v2386_v28  ;;  %v8838_v13 = vsel %vm1573_vm0, %v8834_v9, %v1688_v16  ;;  %v1694_v51 = vpop.permute.xlu0 %1693  ;;  %v8879_v28 = vld [vmem:[%s10988_s4 + $0x38] sm:$0xff] }
 0x283   : > { %v1721_v22 = vsel %vm1720_vm14, %v8838_v13, 0.0  ;;  %2497 = vmatpush.msrb.mxu2 %v8879_v28 }
 0x284   : > { %v2388_v17 = vrot.slane %v2387_v0, 1  ;;  %1722 = vadd.xlane.f32.xlu1 %v1721_v22 }
 0x285   : > { %2498 = vmatpush.msrb.mxu2 %v8882_v4 }
 0x286   : > { %v2389_v26 = vmax.f32 %v2387_v0, %v2388_v17 }
 0x287   : > { %v1523_v35 = vpop.f32.mrf.mxu2 }
 0x288   : > { %v2390_v27 = vsub.f32 %v2349_v30, %v2389_v26  ;;  %v2391_v24 = vsub.f32 %v2351_v48, %v2389_v26  ;;  %v2392_v11 = vsub.f32 %v2354_v25, %v2389_v26  ;;  %v2393_v38 = vsub.f32 %v2356_v29, %v2389_v26 }
 0x289   : > { %v2394_v41 = vsub.f32 %v2359_v49, %v2389_v26  ;;  %v8843_v45 = vadd.f32 %v1523_v35, %v8790_v61  ;;  %v2395_v43 = vsub.f32 %v2361_v37, %v2389_v26  ;;  %v2396_v30 = vsub.f32 %v2364_v8, %v2389_v26  ;;  %v8907_v35 = vld [vmem:[%s10988_s4 + $0x20] sm:$0xff] }
 0x28a   : > { %v2398_v36 = vmul.f32 1.442695, %v2390_v27  ;;  %v2400_v19 = vmul.f32 1.442695, %v2391_v24  ;;  %v2402_v42 = vmul.f32 1.442695, %v2392_v11  ;;  %v2397_v29 = vsub.f32 %v2366_v31, %v2389_v26 }
 0x28b   : > { %11001 = vst [vmem:[#allocation32_spill] sm:$0xff] %v8843_v45  ;;  %v2404_v57 = vmul.f32 1.442695, %v2393_v38  ;;  %v8847_v52 = vsel %vm1573_vm0, %v8843_v45, %v1690_v40  ;;  %v2406_v48 = vmul.f32 1.442695, %v2394_v41  ;;  %v8893_v26 = vld [vmem:[%s10988_s4 + $0x28] sm:$0xff] }
 0x28c   : > { %7693 = vpow2.f32 %v2398_v36  ;;  %v1724_v25 = vsel %vm1720_vm14, %v8847_v52, 0.0  ;;  %v2408_v61 = vmul.f32 1.442695, %v2395_v43  ;;  %v2410_v37 = vmul.f32 1.442695, %v2396_v30  ;;  %2499 = vmatpush.msrb.mxu2 %v8893_v26  ;;  %v1696_v30 = vpop.permute.xlu2 %1695 }
 0x28d   : > { %7695 = vpow2.f32 %v2400_v19  ;;  %1725 = vadd.xlane.f32.xlu2 %v1724_v25  ;;  %v2412_v53 = vmul.f32 1.442695, %v2397_v29 }
 0x28e   : > { %7697 = vpow2.f32 %v2402_v42  ;;  %v8913_v42 = vld [vmem:[%s10988_s4 + $0x18] sm:$0xff]  ;;  %2500 = vmatpush.msrb.mxu2 %v8907_v35 }
 0x28f   : > { %7699 = vpow2.f32 %v2404_v57  ;;  %v1526_v49 = vpop.f32.mrf.mxu2 }
 0x290   : > { %7701 = vpow2.f32 %v2406_v48  ;;  %v8852_v44 = vadd.f32 %v1526_v49, %v8797_v7  ;;  %v8918_v48 = vld [vmem:[%s10988_s4 + $0x10] sm:$0xff]  ;;  %2501 = vmatpush.msrb.mxu2 %v8913_v42 }
 0x291   : > { %7703 = vpow2.f32 %v2408_v61  ;;  %v8925_v61 = vld [vmem:[%s10988_s4 + $0x8] sm:$0xff] }
 0x292   : > { %11002 = vst [vmem:[#allocation33_spill] sm:$0xff] %v8852_v44  ;;  %v8854_v3 = vpop.eup %7693  ;;  %v8862_v31 = vsel %vm1573_vm0, %v8852_v44, %v1692_v14  ;;  %7705 = vpow2.f32 %v2410_v37  ;;  %2502 = vmatpush.msrb.mxu2 %v8918_v48 }
 0x293   : > { %v8856_v8 = vpop.eup %7695  ;;  %v2414_v56 = vsel %vm1618_vm3, %v8854_v3, 0.0  ;;  %v1727_v46 = vsel %vm1720_vm14, %v8862_v31, 0.0  ;;  %7707 = vpow2.f32 %v2412_v53  ;;  %v1698_v53 = vpop.permute.xlu0 %1697 }
 0x294   : > { %v8864_v18 = vpop.eup %7697  ;;  %v2415_v7 = vsel %vm1618_vm3, %v8856_v8, 0.0  ;;  %1728 = vadd.xlane.f32.xlu0 %v1727_v46  ;;  %2503 = vmatpush.msrb.mxu2 %v8925_v61 }
 0x295   : > { %v8870_v47 = vpop.eup %7699  ;;  %v2416_v50 = vadd.f32 %v2415_v7, %v2414_v56  ;;  %v2417_v55 = vsel %vm1618_vm3, %v8864_v18, 0.0  ;;  %v8935_v56 = vld [vmem:[%s10988_s4] sm:$0xff] }
 0x296   : > { %v8874_v10 = vpop.eup %7701  ;;  %v2419_v59 = vsel %vm1618_vm3, %v8870_v47, 0.0  ;;  %2504 = vmatpush.msrb.mxu2 %v8935_v56 }
 0x297   : > { %v2418_v62 = vadd.f32 %v2417_v55, %v2416_v50  ;;  %v1528_v6 = vpop.f32.mrf.mxu2  ;;  %v8884_v16 = vpop.eup %7703  ;;  %v2421_v22 = vsel %vm1618_vm3, %v8874_v10, 0.0 }
 0x298   : > { %v8887_v17 = vadd.f32 %v1528_v6, %v8802_v39  ;;  %v8895_v27 = vpop.eup %7705  ;;  %v2423_v39 = vsel %vm1618_vm3, %v8884_v16, 0.0 }
 0x299   : > { %v2420_v0 = vadd.f32 %v2419_v59, %v2418_v62  ;;  %v7708_v41 = vpop.eup %7707  ;;  %v2425_v19 = vsel %vm1618_vm3, %v8895_v27, 0.0 }
 0x29a   : > { %11003 = vst [vmem:[#allocation34_spill] sm:$0xff] %v8887_v17  ;;  %v8899_v11 = vsel %vm1573_vm0, %v8887_v17, %v1694_v51  ;;  %v2427_v43 = vsel %vm1618_vm3, %v7708_v41, 0.0 }
 0x29b   : > { %v2422_v24 = vadd.f32 %v2421_v22, %v2420_v0  ;;  %v1730_v38 = vsel %vm1720_vm14, %v8899_v11, 0.0  ;;  %v1700_v0 = vpop.permute.xlu0 %1699 }
 0x29c   : > { %1731 = vadd.xlane.f32.xlu1 %v1730_v38 }
 0x29d   : > { %v2424_v36 = vadd.f32 %v2423_v39, %v2422_v24 }
 0x29f   : > { %v2426_v40 = vadd.f32 %v2425_v19, %v2424_v36  ;;  %v1531_v57 = vpop.f32.mrf.mxu2 }
 0x2a0   : > { %v8921_v29 = vadd.f32 %v1531_v57, %v8809_v20 }
 0x2a1   : > { %v2428_v25 = vadd.f32 %v2427_v43, %v2426_v40 }
 0x2a2   : > { %11004 = vst [vmem:[#allocation35_spill] sm:$0xff] %v8921_v29  ;;  %v8929_v14 = vsel %vm1573_vm0, %v8921_v29, %v1696_v30 }
 0x2a3   : > { %v2429_v49 = vrot.slane %v2428_v25, 4  ;;  %v1733_v37 = vsel %vm1720_vm14, %v8929_v14, 0.0  ;;  %v1702_v19 = vpop.permute.xlu0 %1701 }
 0x2a4   : > { %1734 = vadd.xlane.f32.xlu2 %v1733_v37 }
 0x2a5   : > { %v2430_v7 = vadd.f32 %v2429_v49, %v2428_v25 }
 0x2a7   : > { %v2431_v20 = vrot.slane %v2430_v7, 2  ;;  %v1533_v46 = vpop.f32.mrf.mxu2 }
 0x2a8   : > { %v8940_v55 = vadd.f32 %v1533_v46, %v8814_v32 }
 0x2a9   : > { %v2432_v50 = vadd.f32 %v2431_v20, %v2430_v7 }
 0x2aa   : > { %11005 = vst [vmem:[#allocation36_spill] sm:$0xff] %v8940_v55  ;;  %v8944_v59 = vsel %vm1573_vm0, %v8940_v55, %v1698_v53 }
 0x2ab   : > { %v2433_v62 = vrot.slane %v2432_v50, 1  ;;  %v1736_v6 = vsel %vm1720_vm14, %v8944_v59, 0.0 }
 0x2ac   : > { %1737 = vadd.xlane.f32.xlu1 %v1736_v6 }
 0x2ad   : > { %v2434_v51 = vadd.f32 %v2433_v62, %v2432_v50 }
 0x2af   : > { %7709 = vrcp.f32 %v2434_v51  ;;  %v1536_v22 = vpop.f32.mrf.mxu2  ;;  %v2446_v40 = vand.u32 2147483648, %v2434_v51  ;;  %v2444_v57 = vand.u32 2147483647, %v2434_v51  ;;  %vm2440_vm1 = vweird.f32 %v2434_v51 }
 0x2b1   : > { %v2447_v37 = vor.u32 1.1754944e-38, %v2446_v40  ;;  %vm2445_vm4 = vcmp.eq.f32.partialorder %v2444_v57, 8.507059e+37  ;;  %v8998_v40 = vadd.f32 %v1536_v22, %v8821_v23 }
 0x2b3   : > { %11008 = vst [vmem:[#allocation39_spill] sm:$0xff] %v8998_v40 }
 0x2b5   : > { %v7710_v24 = vpop.eup %7709 }
 0x2b6   : > { %v2436_v39 = vmul.f32 %v7710_v24, %v2434_v51  ;;  %vm2441_vm15 = vweird.f32 %v7710_v24 }
 0x2b7   : > { %v1538_v36 = vpop.f32.mrf.mxu2  ;;  %vm2442_vm2 = vmor %vm2440_vm1, %vm2441_vm15 }
 0x2b8   : > { %v2437_v38 = vsub.f32 1.0, %v2436_v39  ;;  %v8949_v32 = vadd.f32 %v1538_v36, %v8823_v15 }
 0x2ba   : > { %11006 = vst [vmem:[#allocation37_spill] sm:$0xff] %v8949_v32  ;;  %v2438_v43 = vmul.f32 %v7710_v24, %v2437_v38  ;;  %v8953_v30 = vsel %vm1573_vm0, %v8949_v32, %v1702_v19 }
 0x2bb   : > { %v1742_v25 = vsel %vm1720_vm14, %v8953_v30, 0.0 }
 0x2bc   : > { %v2439_v49 = vadd.f32 %v7710_v24, %v2438_v43  ;;  %1743 = vadd.xlane.f32.xlu0 %v1742_v25 }
 0x2be   : > { %v2443_v53 = vsel %vm2442_vm2, %v7710_v24, %v2439_v49  ;;  %v1717_v49 = vsel %vm1573_vm0, %v8998_v40, %v1700_v0 }
 0x2bf   : > { %v2448_v15 = vsel %vm2445_vm4, %v2447_v37, %v2443_v53  ;;  %v1739_v37 = vsel %vm1720_vm14, %v1717_v49, 0.0 }
 0x2c0   : > { %v8958_v7 = vmul.f32 %v8854_v3, %v2448_v15  ;;  %v8961_v20 = vmul.f32 %v8874_v10, %v2448_v15  ;;  %v8964_v46 = vmul.f32 %v8884_v16, %v2448_v15  ;;  %v8967_v50 = vmul.f32 %v8895_v27, %v2448_v15 }
 0x2c1   : > { %v8969_v62 = vmul.f32 %v7708_v41, %v2448_v15  ;;  %v8974_v6 = vmul.f32 %v8856_v8, %v2448_v15  ;;  %v8979_v3 = vmul.f32 %v8864_v18, %v2448_v15  ;;  %v8984_v10 = vmul.f32 %v8870_v47, %v2448_v15 }
 0x2c2   : > { %6945 = vmatmul.msk.f32.vlgmr.msrb.gmra.mxu2 %vm1618_vm3, %v8958_v7  ;;  %v8082_v16 = vmov 96.0  }
 0x2c3   : > { %7711 = vrcp.f32 %v8082_v16 }
 0x2c9   : > { %v7712_v27 = vpop.eup %7711 }
 0x2ca   : > { %6946 = vmatmul.msk.f32.gmra.mxu2 %vm1618_vm3, %v8974_v6  ;;  %v1746_v8 = vmul.f32 96.0, %v7712_v27  ;;  %vm1750_vm5 = vweird.f32 %v7712_v27 }
 0x2cc   : > { %v1747_v41 = vsub.f32 1.0, %v1746_v8 }
 0x2ce   : > { %v1748_v51 = vmul.f32 %v7712_v27, %v1747_v41 }
 0x2d0   : > { %v1749_v24 = vadd.f32 %v7712_v27, %v1748_v51 }
 0x2d2   : > { %6947 = vmatmul.msk.f32.gmra.mxu2 %vm1618_vm3, %v8979_v3  ;;  %v8988_v39 = vsel %vm1750_vm5, %v7712_v27, %v1749_v24 }
 0x2d3   : > { %11007 = vst [vmem:[#allocation38_spill] sm:$0xff] %v8988_v39 }
 0x2da   : > { %6948 = vmatmul.msk.f32.gmra.mxu2 %vm1618_vm3, %v8984_v10 }
 0x2f7   : > { %v1723_v18 = vpop.xlane.xlu1 %1722 }
 0x2f8   : > { %v1752_v38 = vmul.f32 %v8988_v39, %v1723_v18 }
 0x2fa   : > { %v8992_v36 = vsub.f32 %v8838_v13, %v1752_v38 }
 0x2fc   : > { %v1768_v47 = vmul.f32 %v8992_v36, %v8992_v36 }
 0x2fe   : > { %v1776_v19 = vsel %vm1720_vm14, %v1768_v47, 0.0 }
 0x2ff   : > { %1777 = vadd.xlane.f32.xlu2 %v1776_v19 }
 0x300   : > { %v1726_v43 = vpop.xlane.xlu2 %1725 }
 0x301   : > { %v1753_v57 = vmul.f32 %v8988_v39, %v1726_v43 }
 0x303   : > { %v9002_v25 = vsub.f32 %v8847_v52, %v1753_v57 }
 0x305   : > { %v1769_v13 = vmul.f32 %v9002_v25, %v9002_v25 }
 0x307   : > { %v1779_v53 = vsel %vm1720_vm14, %v1769_v13, 0.0  ;;  %1740 = vadd.xlane.f32.xlu2 %v1739_v37  ;;  %v1729_v23 = vpop.xlane.xlu0 %1728 }
 0x308   : > { %1780 = vadd.xlane.f32.xlu1 %v1779_v53  ;;  %v1754_v22 = vmul.f32 %v8988_v39, %v1729_v23 }
 0x30a   : > { %v9012_v15 = vsub.f32 %v8862_v31, %v1754_v22  ;;  %v7373_v22 = vld [vmem:[%s8142_s14 + $0x28] sm:$0xff] }
 0x30b   : > { %1988 = vmatpush.bf16.msrb.mxu3 %v7373_v22 }
 0x30c   : > { %v1770_v52 = vmul.f32 %v9012_v15, %v9012_v15 }
 0x30e   : > { %v1782_v0 = vsel %vm1720_vm14, %v1770_v52, 0.0  ;;  %v7372_v52 = vld [vmem:[%s8142_s14 + $0x20] sm:$0xff] }
 0x30f   : > { %v1732_v16 = vpop.xlane.xlu1 %1731  ;;  %1989 = vmatpush.bf16.msrb.mxu3 %v7372_v52 }
 0x310   : > { %v1755_v27 = vmul.f32 %v8988_v39, %v1732_v16  ;;  %1783 = vadd.xlane.f32.xlu1 %v1782_v0  ;;  %v7371_v0 = vld [vmem:[%s8142_s14 + $0x18] sm:$0xff] }
 0x312   : > { %v9019_v8 = vsub.f32 %v8899_v11, %v1755_v27 }
 0x313   : > { %1990 = vmatpush.bf16.msrb.mxu3 %v7371_v0 }
 0x314   : > { %v1771_v41 = vmul.f32 %v9019_v8, %v9019_v8 }
 0x316   : > { %v1785_v51 = vsel %vm1720_vm14, %v1771_v41, 0.0  ;;  %v7370_v41 = vld [vmem:[%s8142_s14 + $0x10] sm:$0xff] }
 0x317   : > { %v1735_v24 = vpop.xlane.xlu2 %1734  ;;  %1786 = vadd.xlane.f32.xlu2 %v1785_v51  ;;  %1991 = vmatpush.bf16.msrb.mxu3 %v7370_v41  ;;  %v7369_v51 = vld [vmem:[%s8142_s14 + $0x8] sm:$0xff] }
 0x318   : > { %v1756_v31 = vmul.f32 %v8988_v39, %v1735_v24 }
 0x31a   : > { %v9026_v18 = vsub.f32 %v8929_v14, %v1756_v31 }
 0x31b   : > { %1992 = vmatpush.bf16.msrb.mxu3 %v7369_v51 }
 0x31c   : > { %v1772_v38 = vmul.f32 %v9026_v18, %v9026_v18 }
 0x31e   : > { %v1788_v47 = vsel %vm1720_vm14, %v1772_v38, 0.0 }
 0x31f   : > { %v1738_v11 = vpop.xlane.xlu1 %1737  ;;  %1789 = vadd.xlane.f32.xlu0 %v1788_v47  ;;  %v7368_v47 = vld [vmem:[%s8142_s14] sm:$0xff] }
 0x320   : > { %v1757_v19 = vmul.f32 %v8988_v39, %v1738_v11  ;;  %1993 = vmatpush.bf16.msrb.mxu3 %v7368_v47 }
 0x322   : > { %v9033_v43 = vsub.f32 %v8944_v59, %v1757_v19 }
 0x324   : > { %v1773_v57 = vmul.f32 %v9033_v43, %v9033_v43  ;;  %7441 = vmatpush.msra.mxu3 %v8879_v28 }
 0x326   : > { %v1791_v14 = vsel %vm1720_vm14, %v1773_v57, 0.0  ;;  %7442 = vmatpush.msra.mxu3 %v8882_v4 }
 0x327   : > { %1792 = vadd.xlane.f32.xlu1 %v1791_v14 }
 0x328   : > { %7443 = vmatpush.msra.mxu3 %v8893_v26 }
 0x32a   : > { %7444 = vmatpush.msra.mxu3 %v8907_v35 }
 0x32c   : > { %7445 = vmatpush.msra.mxu3 %v8913_v42 }
 0x32e   : > { %7446 = vmatpush.msra.mxu3 %v8918_v48 }
 0x32f   : > { %v1744_v13 = vpop.xlane.xlu0 %1743 }
 0x330   : > { %v1759_v37 = vmul.f32 %v8988_v39, %v1744_v13  ;;  %7447 = vmatpush.msra.mxu3 %v8925_v61 }
 0x332   : > { %v9040_v53 = vsub.f32 %v8953_v30, %v1759_v37  ;;  %7448 = vmatpush.msra.mxu3 %v8935_v56 }
 0x334   : > { %v1775_v23 = vmul.f32 %v9040_v53, %v9040_v53 }
 0x336   : > { %v1797_v59 = vsel %vm1720_vm14, %v1775_v23, 0.0 }
 0x337   : > { %1798 = vadd.xlane.f32.xlu0 %v1797_v59 }
 0x372   : > { %v1778_v16 = vpop.xlane.xlu2 %1777 }
 0x373   : > { %v1800_v27 = vmul.f32 %v1778_v16, %v8988_v39 }
 0x375   : > { %v1808_v30 = vadd.f32 1e-06, %v1800_v27 }
 0x377   : > { %7713 = vrsqrt.f32 %v1808_v30  ;;  %vm1822_vm7 = vweird.f32 %v1808_v30 }
 0x37a   : > { %v1741_v24 = vpop.xlane.xlu2 %1740 }
 0x37b   : > { %v1781_v31 = vpop.xlane.xlu1 %1780  ;;  %v1758_v38 = vmul.f32 %v8988_v39, %v1741_v24 }
 0x37c   : > { %v1801_v11 = vmul.f32 %v1781_v31, %v8988_v39  ;;  %v1719_v31 = vld [vmem:[%s11009_s8] sm:$0x3] }
 0x37d   : > { %v7714_v19 = vpop.eup %7713  ;;  %v9054_v57 = vsub.f32 %v1717_v49, %v1758_v38  ;;  %v9071_v48 = vperm.slane %v1719_v31, 0 }
 0x37e   : > { %v1817_v14 = vmul.f32 %v7714_v19, %v1808_v30  ;;  %v1809_v13 = vadd.f32 1e-06, %v1801_v11  ;;  %vm1823_vm6 = vweird.f32 %v7714_v19 }
 0x37f   : > { %v1774_v37 = vmul.f32 %v9054_v57, %v9054_v57  ;;  %vm1824_vm8 = vmor %vm1822_vm7, %vm1823_vm6 }
 0x380   : > { %v1818_v23 = vmul.f32 %v7714_v19, %v1817_v14  ;;  %7715 = vrsqrt.f32 %v1809_v13  ;;  %vm1832_vm10 = vweird.f32 %v1809_v13 }
 0x381   : > { %v1794_v59 = vsel %vm1720_vm14, %v1774_v37, 0.0 }
 0x382   : > { %v1819_v22 = vmul.f32 0.5, %v1818_v23  ;;  %1795 = vadd.xlane.f32.xlu2 %v1794_v59  ;;  %v9075_v59 = vperm.slane %v1719_v31, 1 }
 0x383   : > { %v1784_v49 = vpop.xlane.xlu1 %1783 }
 0x384   : > { %v1820_v52 = vsub.f32 1.5, %v1819_v22  ;;  %v1802_v0 = vmul.f32 %v1784_v49, %v8988_v39 }
 0x386   : > { %v7716_v28 = vpop.eup %7715  ;;  %v1810_v16 = vadd.f32 1e-06, %v1802_v0  ;;  %v1821_v27 = vmul.f32 %v7714_v19, %v1820_v52 }
 0x387   : > { %v1827_v4 = vmul.f32 %v7716_v28, %v1809_v13  ;;  %vm1833_vm9 = vweird.f32 %v7716_v28 }
 0x388   : > { %7717 = vrsqrt.f32 %v1810_v16  ;;  %v1825_v51 = vsel %vm1824_vm8, %v7714_v19, %v1821_v27  ;;  %vm1834_vm11 = vmor %vm1832_vm10, %vm1833_vm9  ;;  %vm1842_vm13 = vweird.f32 %v1810_v16 }
 0x389   : > { %v1828_v41 = vmul.f32 %v7716_v28, %v1827_v4  ;;  %v1896_v11 = vmul.f32 %v1825_v51, %v8992_v36 }
 0x38a   : > { %v1787_v26 = vpop.xlane.xlu2 %1786 }
 0x38b   : > { %v1829_v24 = vmul.f32 0.5, %v1828_v41  ;;  %v1803_v35 = vmul.f32 %v1787_v26, %v8988_v39  ;;  %v1905_v56 = vmul.f32 %v9071_v48, %v1896_v11 }
 0x38d   : > { %v1830_v42 = vsub.f32 1.5, %v1829_v24  ;;  %v1811_v38 = vadd.f32 1e-06, %v1803_v35 }
 0x38e   : > { %v7718_v47 = vpop.eup %7717 }
 0x38f   : > { %v1831_v30 = vmul.f32 %v7716_v28, %v1830_v42  ;;  %v1837_v14 = vmul.f32 %v7718_v47, %v1810_v16  ;;  %7719 = vrsqrt.f32 %v1811_v38  ;;  %vm1843_vm12 = vweird.f32 %v7718_v47 }
 0x390   : > { %vm1844_vm15 = vmor %vm1842_vm13, %vm1843_vm12  ;;  %vm1852_vm2 = vweird.f32 %v1811_v38 }
 0x391   : > { %v1835_v61 = vsel %vm1834_vm11, %v7716_v28, %v1831_v30  ;;  %v1838_v19 = vmul.f32 %v7718_v47, %v1837_v14  ;;  %v1914_v28 = vadd.f32 %v9075_v59, %v1905_v56 }
 0x392   : > { %v1897_v37 = vmul.f32 %v1835_v61, %v9002_v25  ;;  %v1790_v23 = vpop.xlane.xlu0 %1789 }
 0x393   : > { %v1839_v22 = vmul.f32 0.5, %v1838_v19  ;;  %v1804_v49 = vmul.f32 %v1790_v23, %v8988_v39 }
 0x394   : > { %v1906_v36 = vmul.f32 %v9071_v48, %v1897_v37 }
 0x395   : > { %v7720_v52 = vpop.eup %7719  ;;  %v1840_v0 = vsub.f32 1.5, %v1839_v22  ;;  %v1812_v13 = vadd.f32 1e-06, %v1804_v49 }
 0x396   : > { %v1847_v27 = vmul.f32 %v7720_v52, %v1811_v38  ;;  %v1915_v4 = vadd.f32 %v9075_v59, %v1906_v36  ;;  %vm1853_vm1 = vweird.f32 %v7720_v52 }
 0x397   : > { %v1841_v25 = vmul.f32 %v7718_v47, %v1840_v0  ;;  %7721 = vrsqrt.f32 %v1812_v13  ;;  %vm1854_vm4 = vmor %vm1852_vm2, %vm1853_vm1  ;;  %vm1862_vm6 = vweird.f32 %v1812_v13 }
 0x398   : > { %v1848_v41 = vmul.f32 %v7720_v52, %v1847_v27  ;;  %v1922_v26 = vpack.c.bf16 %v1915_v4, %v1914_v28 }
 0x399   : > { %v1845_v51 = vsel %vm1844_vm15, %v7718_v47, %v1841_v25 }
 0x39a   : > { %v1849_v24 = vmul.f32 0.5, %v1848_v41  ;;  %6929 = vmatmul.msk.bf16.vlgmr.msrb.gmra.mxu3 %vm1720_vm14, %v1922_v26  ;;  %v1793_v35 = vpop.xlane.xlu1 %1792  ;;  %v1898_v14 = vmul.f32 %v1845_v51, %v9012_v15 }
 0x39b   : > { %v1805_v31 = vmul.f32 %v1793_v35, %v8988_v39 }
 0x39c   : > { %v1850_v42 = vsub.f32 1.5, %v1849_v24  ;;  %v1907_v23 = vmul.f32 %v9071_v48, %v1898_v14 }
 0x39d   : > { %v7722_v11 = vpop.eup %7721  ;;  %v1813_v30 = vadd.f32 1e-06, %v1805_v31 }
 0x39e   : > { %v1851_v61 = vmul.f32 %v7720_v52, %v1850_v42  ;;  %v1857_v19 = vmul.f32 %v7722_v11, %v1812_v13  ;;  %v1916_v0 = vadd.f32 %v9075_v59, %v1907_v23  ;;  %vm1863_vm5 = vweird.f32 %v7722_v11 }
 0x39f   : > { %7723 = vrsqrt.f32 %v1813_v30  ;;  %vm1864_vm7 = vmor %vm1862_vm6, %vm1863_vm5  ;;  %vm1872_vm9 = vweird.f32 %v1813_v30 }
 0x3a0   : > { %v1855_v16 = vsel %vm1854_vm4, %v7720_v52, %v1851_v61  ;;  %v1858_v37 = vmul.f32 %v7722_v11, %v1857_v19 }
 0x3a1   : > { %v1899_v47 = vmul.f32 %v1855_v16, %v9019_v8 }
 0x3a2   : > { %v1859_v56 = vmul.f32 0.5, %v1858_v37 }
 0x3a3   : > { %v1908_v22 = vmul.f32 %v9071_v48, %v1899_v47 }
 0x3a4   : > { %v1860_v49 = vsub.f32 1.5, %v1859_v56 }
 0x3a5   : > { %v7724_v36 = vpop.eup %7723  ;;  %v1917_v15 = vadd.f32 %v9075_v59, %v1908_v22 }
 0x3a6   : > { %v1861_v27 = vmul.f32 %v7722_v11, %v1860_v49  ;;  %v1867_v38 = vmul.f32 %v7724_v36, %v1813_v30  ;;  %vm1873_vm8 = vweird.f32 %v7724_v36 }
 0x3a7   : > { %v1923_v28 = vpack.c.bf16 %v1917_v15, %v1916_v0  ;;  %vm1874_vm10 = vmor %vm1872_vm9, %vm1873_vm8 }
 0x3a8   : > { %v1868_v52 = vmul.f32 %v7724_v36, %v1867_v38  ;;  %v1865_v4 = vsel %vm1864_vm7, %v7722_v11, %v1861_v27 }
 0x3a9   : > { %v1900_v41 = vmul.f32 %v1865_v4, %v9026_v18  ;;  %v2506_v4 = vpop.f32.mrf.mxu2 }
 0x3aa   : > { %v1869_v8 = vmul.f32 0.5, %v1868_v52  ;;  %6930 = vmatmul.msk.bf16.gmra.mxu3 %vm1720_vm14, %v1923_v28  ;;  %v1799_v14 = vpop.xlane.xlu0 %1798 }
 0x3ab   : > { %v1909_v35 = vmul.f32 %v9071_v48, %v1900_v41  ;;  %v1807_v18 = vmul.f32 %v1799_v14, %v8988_v39  ;;  %v7377_v14 = vld [vmem:[%s10987_s6 + $0x8] sm:$0xff] }
 0x3ac   : > { %v1870_v25 = vsub.f32 1.5, %v1869_v8 }
 0x3ad   : > { %v1918_v31 = vadd.f32 %v9075_v59, %v1909_v35  ;;  %v1815_v61 = vadd.f32 1e-06, %v1807_v18 }
 0x3ae   : > { %v1871_v26 = vmul.f32 %v7724_v36, %v1870_v25 }
 0x3af   : > { %7725 = vrsqrt.f32 %v1815_v61  ;;  %vm1892_vm12 = vweird.f32 %v1815_v61 }
 0x3b0   : > { %v1875_v51 = vsel %vm1874_vm10, %v7724_v36, %v1871_v26 }
 0x3b1   : > { %v1901_v24 = vmul.f32 %v1875_v51, %v9033_v43 }
 0x3b3   : > { %v1910_v13 = vmul.f32 %v9071_v48, %v1901_v24 }
 0x3b5   : > { %v1919_v42 = vadd.f32 %v9075_v59, %v1910_v13  ;;  %v7726_v30 = vpop.eup %7725  ;;  %v7379_v13 = vld [vmem:[%s10987_s6 + $0x18] sm:$0xff] }
 0x3b6   : > { %v1887_v19 = vmul.f32 %v7726_v30, %v1815_v61  ;;  %vm1893_vm11 = vweird.f32 %v7726_v30  ;;  %2702 = vmatpush.bf16.msrb.mxu3 %v7379_v13 }
 0x3b7   : > { %v1924_v11 = vpack.c.bf16 %v1919_v42, %v1918_v31  ;;  %vm1894_vm13 = vmor %vm1892_vm12, %vm1893_vm11  ;;  %v2507_v42 = vadd.f32 1e-09, %v2506_v4 }
 0x3b8   : > { %v1888_v16 = vmul.f32 %v7726_v30, %v1887_v19 }
 0x3b9   : > { %vm2535_vm8 = vweird.f32 %v2507_v42 }
 0x3ba   : > { %6931 = vmatmul.msk.bf16.gmra.mxu3 %vm1720_vm14, %v1924_v11  ;;  %v1889_v23 = vmul.f32 0.5, %v1888_v16 }
 0x3bc   : > { %v1890_v56 = vsub.f32 1.5, %v1889_v23 }
 0x3be   : > { %v1891_v49 = vmul.f32 %v7726_v30, %v1890_v56 }
 0x3c0   : > { %v1895_v15 = vsel %vm1894_vm13, %v7726_v30, %v1891_v49 }
 0x3c1   : > { %v1903_v28 = vmul.f32 %v1895_v15, %v9040_v53  ;;  %v2509_v53 = vpop.f32.mrf.mxu2 }
 0x3c2   : > { %v2510_v31 = vadd.f32 1e-09, %v2509_v53 }
 0x3c3   : > { %v1912_v41 = vmul.f32 %v9071_v48, %v1903_v28  ;;  %v2539_v28 = vand.u32 2147483647, %v2507_v42 }
 0x3c4   : > { %vm2550_vm6 = vweird.f32 %v2510_v31  ;;  %v2554_v15 = vand.u32 2147483647, %v2510_v31 }
 0x3c5   : > { %v1921_v24 = vadd.f32 %v9075_v59, %v1912_v41  ;;  %vm2540_vm11 = vcmp.eq.f32.partialorder %v2539_v28, 8.507059e+37 }
 0x3c6   : > { %vm2555_vm10 = vcmp.eq.f32.partialorder %v2554_v15, 8.507059e+37 }
 0x3c9   : > { %v2512_v11 = vpop.f32.mrf.mxu2 }
 0x3d1   : > { %v2515_v30 = vpop.f32.mrf.mxu2 }
 0x3d2   : > { %v2516_v16 = vadd.f32 1e-09, %v2515_v30 }
 0x3f5   : > { %v1796_v43 = vpop.xlane.xlu2 %1795 }
 0x3f6   : > { %v1806_v37 = vmul.f32 %v1796_v43, %v8988_v39 }
 0x3f8   : > { %v1814_v47 = vadd.f32 1e-06, %v1806_v37  ;;  %v2513_v37 = vadd.f32 1e-09, %v2512_v11 }
 0x3fa   : > { %7727 = vrsqrt.f32 %v1814_v47  ;;  %vm1882_vm1 = vweird.f32 %v1814_v47  ;;  %v2569_v30 = vand.u32 2147483647, %v2513_v37 }
 0x3fb   : > { %7729 = vrcp.f32 %v2510_v31 }
 0x3fc   : > { %7731 = vrcp.f32 %v2507_v42 }
 0x3fd   : > { %7733 = vrcp.f32 %v2516_v16 }
 0x3fe   : > { %7735 = vrcp.f32 %v2513_v37 }
 0x400   : > { %v7728_v22 = vpop.eup %7727 }
 0x401   : > { %v1877_v36 = vmul.f32 %v7728_v22, %v1814_v47  ;;  %vm1883_vm15 = vweird.f32 %v7728_v22 }
 0x402   : > { %vm1884_vm2 = vmor %vm1882_vm1, %vm1883_vm15  ;;  %vm2580_vm15 = vweird.f32 %v2516_v16 }
 0x403   : > { %v1878_v0 = vmul.f32 %v7728_v22, %v1877_v36  ;;  %v2556_v36 = vand.u32 2147483648, %v2510_v31 }
 0x405   : > { %v1879_v27 = vmul.f32 0.5, %v1878_v0 }
 0x407   : > { %v1880_v38 = vsub.f32 1.5, %v1879_v27 }
 0x409   : > { %v1881_v52 = vmul.f32 %v7728_v22, %v1880_v38  ;;  %v2541_v38 = vand.u32 2147483648, %v2507_v42 }
 0x40b   : > { %v1885_v8 = vsel %vm1884_vm2, %v7728_v22, %v1881_v52  ;;  %vm2565_vm2 = vweird.f32 %v2513_v37 }
 0x40c   : > { %v1902_v25 = vmul.f32 %v1885_v8, %v9054_v57  ;;  %v7378_v57 = vld [vmem:[%s10987_s6 + $0x10] sm:$0xff]  ;;  %v2557_v8 = vor.u32 1.1754944e-38, %v2556_v36 }
 0x40d   : > { %2703 = vmatpush.bf16.msrb.mxu3 %v7378_v57 }
 0x40e   : > { %v1911_v26 = vmul.f32 %v9071_v48, %v1902_v25  ;;  %v7730_v48 = vpop.eup %7729 }
 0x40f   : > { %v7732_v18 = vpop.eup %7731  ;;  %v2546_v61 = vmul.f32 %v7730_v48, %v2510_v31  ;;  %vm2551_vm4 = vweird.f32 %v7730_v48 }
 0x410   : > { %v1920_v51 = vadd.f32 %v9075_v59, %v1911_v26  ;;  %v7376_v59 = vld [vmem:[%s10987_s6] sm:$0xff]  ;;  %v2531_v19 = vmul.f32 %v7732_v18, %v2507_v42  ;;  %v7734_v49 = vpop.eup %7733  ;;  %vm2536_vm5 = vweird.f32 %v7732_v18  ;;  %vm2552_vm7 = vmor %vm2550_vm6, %vm2551_vm4  ;;  %v2542_v26 = vor.u32 1.1754944e-38, %v2541_v38  ;;  %s8086_s6 = smov 96  }
 0x411   : > { %2704 = vmatpush.bf16.msrb.mxu3 %v7377_v14  ;;  %v2547_v43 = vsub.f32 1.0, %v2546_v61  ;;  %v7736_v27 = vpop.eup %7735  ;;  %v2576_v52 = vmul.f32 %v7734_v49, %v2516_v16  ;;  %vm2537_vm9 = vmor %vm2535_vm8, %vm2536_vm5  ;;  %vm2581_vm12 = vweird.f32 %v7734_v49  ;;  %v2571_v61 = vand.u32 2147483648, %v2513_v37 }
 0x412   : > { %v1925_v35 = vpack.c.bf16 %v1921_v24, %v1920_v51  ;;  %v2532_v47 = vsub.f32 1.0, %v2531_v19  ;;  %v2561_v41 = vmul.f32 %v7736_v27, %v2513_v37  ;;  %vm2566_vm13 = vweird.f32 %v7736_v27  ;;  %vm2582_vm1 = vmor %vm2580_vm15, %vm2581_vm12 }
 0x413   : > { %v2548_v23 = vmul.f32 %v7730_v48, %v2547_v43  ;;  %v2577_v24 = vsub.f32 1.0, %v2576_v52  ;;  %vm2567_vm4 = vmor %vm2565_vm2, %vm2566_vm13  ;;  %v2572_v43 = vor.u32 1.1754944e-38, %v2571_v61  ;;  %vm2570_vm6 = vcmp.eq.f32.partialorder %v2569_v30, 8.507059e+37 }
 0x414   : > { %6932 = vmatmul.msk.bf16.gmra.mxu3 %vm1720_vm14, %v1925_v35  ;;  %v2533_v56 = vmul.f32 %v7732_v18, %v2532_v47  ;;  %v2562_v53 = vsub.f32 1.0, %v2561_v41 }
 0x415   : > { %2705 = vmatpush.bf16.msrb.mxu3 %v7376_v59  ;;  %v2549_v22 = vadd.f32 %v7730_v48, %v2548_v23  ;;  %v2578_v42 = vmul.f32 %v7734_v49, %v2577_v24 }
 0x416   : > { %v2534_v0 = vadd.f32 %v7732_v18, %v2533_v56  ;;  %v2563_v11 = vmul.f32 %v7736_v27, %v2562_v53 }
 0x417   : > { %v2553_v4 = vsel %vm2552_vm7, %v7730_v48, %v2549_v22  ;;  %v2579_v14 = vadd.f32 %v7734_v49, %v2578_v42  ;;  %v2586_v48 = vand.u32 2147483648, %v2516_v16 }
 0x418   : > { %v2538_v25 = vsel %vm2537_vm9, %v7732_v18, %v2534_v0  ;;  %v2558_v51 = vsel %vm2555_vm10, %v2557_v8, %v2553_v4  ;;  %v2564_v59 = vadd.f32 %v7736_v27, %v2563_v11  ;;  %v2584_v18 = vand.u32 2147483647, %v2516_v16 }
 0x419   : > { %v2543_v35 = vsel %vm2540_vm11, %v2542_v26, %v2538_v25  ;;  %v2559_v13 = vmul.f32 %v2558_v51, %v8974_v6  ;;  %v2583_v19 = vsel %vm2582_vm1, %v7734_v49, %v2579_v14  ;;  %v2587_v6 = vor.u32 1.1754944e-38, %v2586_v48 }
 0x41a   : > { %v2544_v31 = vmul.f32 %v2543_v35, %v8958_v7  ;;  %v2568_v7 = vsel %vm2567_vm4, %v7736_v27, %v2564_v59  ;;  %vm2585_vm5 = vcmp.eq.f32.partialorder %v2584_v18, 8.507059e+37 }
 0x41b   : > { %v2588_v47 = vsel %vm2585_vm5, %v2587_v6, %v2583_v19  ;;  %v2573_v23 = vsel %vm2570_vm6, %v2572_v43, %v2568_v7 }
 0x41c   : > { %v2650_v57 = vpack.c.bf16 %v2559_v13, %v2544_v31  ;;  %v2589_v56 = vmul.f32 %v2588_v47, %v8984_v10  ;;  %v2574_v22 = vmul.f32 %v2573_v23, %v8979_v3 }
 0x41d   : > { %v9124_v16 = vpop.f32.mrf.mxu3 }
 0x41e   : > { %v2651_v36 = vpack.c.bf16 %v2589_v56, %v2574_v22 }
 0x424   : > { %6949 = vmatmul.msk.f32.vlgmr.msra.gmra.mxu3 %vm1618_vm3, %v8961_v20 }
 0x425   : > { %v9126_v0 = vpop.f32.mrf.mxu3 }
 0x42c   : > { %6950 = vmatmul.msk.f32.gmra.mxu3 %vm1618_vm3, %v8964_v46 }
 0x42d   : > { %v9128_v37 = vpop.f32.mrf.mxu3 }
 0x434   : > { %6951 = vmatmul.msk.f32.gmra.mxu3 %vm1618_vm3, %v8967_v50 }
 0x435   : > { %v9130_v49 = vpop.f32.mrf.mxu3 }
 0x43c   : > { %6952 = vmatmul.msk.f32.gmra.mxu3 %vm1618_vm3, %v8969_v62 }
 0x43d   : > { %v9132_v15 = vpop.f32.mrf.mxu3 }
 0x444   : > { %6969 = vmatmul.msk.bf16.vlgmr.msrb.gmra.mxu3 %vm1618_vm3, %v2650_v57 }
 0x445   : > { %v9134_v27 = vpop.f32.mrf.mxu3 }
 0x454   : > { %6970 = vmatmul.msk.bf16.gmra.mxu3 %vm1618_vm3, %v2651_v36 }
 0x497   : > { %v9136_v38 = vpop.f32.mrf.mxu3 }
 0x49f   : > { %v9138_v10 = vpop.f32.mrf.mxu3 }
 0x4a7   : > { %v2518_v3 = vpop.f32.mrf.mxu3 }
 0x4a8   : > { %v2519_v28 = vadd.f32 1e-09, %v2518_v3 }
 0x4aa   : > { %7737 = vrcp.f32 %v2519_v28  ;;  %v2601_v31 = vand.u32 2147483648, %v2519_v28  ;;  %vm2595_vm8 = vweird.f32 %v2519_v28  ;;  %v2599_v42 = vand.u32 2147483647, %v2519_v28 }
 0x4ac   : > { %v2602_v18 = vor.u32 1.1754944e-38, %v2601_v31  ;;  %vm2600_vm12 = vcmp.eq.f32.partialorder %v2599_v42, 8.507059e+37 }
 0x4af   : > { %v2521_v52 = vpop.f32.mrf.mxu3 }
 0x4b0   : > { %v7738_v4 = vpop.eup %7737  ;;  %v2522_v8 = vadd.f32 1e-09, %v2521_v52 }
 0x4b1   : > { %v2591_v25 = vmul.f32 %v7738_v4, %v2519_v28  ;;  %vm2596_vm7 = vweird.f32 %v7738_v4 }
 0x4b2   : > { %7739 = vrcp.f32 %v2522_v8  ;;  %vm2597_vm9 = vmor %vm2595_vm8, %vm2596_vm7  ;;  %v2616_v57 = vand.u32 2147483648, %v2522_v8  ;;  %v2614_v59 = vand.u32 2147483647, %v2522_v8  ;;  %vm2610_vm11 = vweird.f32 %v2522_v8 }
 0x4b3   : > { %v2592_v41 = vsub.f32 1.0, %v2591_v25 }
 0x4b4   : > { %v2617_v6 = vor.u32 1.1754944e-38, %v2616_v57  ;;  %vm2615_vm15 = vcmp.eq.f32.partialorder %v2614_v59, 8.507059e+37 }
 0x4b5   : > { %v2593_v26 = vmul.f32 %v7738_v4, %v2592_v41 }
 0x4b7   : > { %v2524_v51 = vpop.f32.mrf.mxu3  ;;  %v2594_v13 = vadd.f32 %v7738_v4, %v2593_v26 }
 0x4b8   : > { %v7740_v24 = vpop.eup %7739  ;;  %v2525_v35 = vadd.f32 1e-09, %v2524_v51 }
 0x4b9   : > { %v2606_v53 = vmul.f32 %v7740_v24, %v2522_v8  ;;  %v2598_v48 = vsel %vm2597_vm9, %v7738_v4, %v2594_v13  ;;  %vm2611_vm10 = vweird.f32 %v7740_v24 }
 0x4ba   : > { %7741 = vrcp.f32 %v2525_v35  ;;  %v2603_v43 = vsel %vm2600_vm12, %v2602_v18, %v2598_v48  ;;  %vm2612_vm13 = vmor %vm2610_vm11, %vm2611_vm10  ;;  %v2631_v41 = vand.u32 2147483648, %v2525_v35  ;;  %vm2625_vm2 = vweird.f32 %v2525_v35 }
 0x4bb   : > { %v2607_v11 = vsub.f32 1.0, %v2606_v53  ;;  %v2604_v36 = vmul.f32 %v2603_v43, %v8961_v20  ;;  %v2629_v26 = vand.u32 2147483647, %v2525_v35 }
 0x4bc   : > { %v2632_v31 = vor.u32 1.1754944e-38, %v2631_v41 }
 0x4bd   : > { %v2608_v14 = vmul.f32 %v7740_v24, %v2607_v11  ;;  %vm2630_vm7 = vcmp.eq.f32.partialorder %v2629_v26, 8.507059e+37 }
 0x4bf   : > { %v2527_v61 = vpop.f32.mrf.mxu3  ;;  %v2609_v30 = vadd.f32 %v7740_v24, %v2608_v14 }
 0x4c0   : > { %v7742_v19 = vpop.eup %7741  ;;  %v2528_v7 = vadd.f32 1e-09, %v2527_v61 }
 0x4c1   : > { %v2621_v47 = vmul.f32 %v7742_v19, %v2525_v35  ;;  %v2613_v23 = vsel %vm2612_vm13, %v7740_v24, %v2609_v30  ;;  %vm2626_vm1 = vweird.f32 %v7742_v19 }
 0x4c2   : > { %7743 = vrcp.f32 %v2528_v7  ;;  %v2618_v56 = vsel %vm2615_vm15, %v2617_v6, %v2613_v23  ;;  %vm2627_vm4 = vmor %vm2625_vm2, %vm2626_vm1  ;;  %v2646_v24 = vand.u32 2147483648, %v2528_v7  ;;  %v2644_v20 = vand.u32 2147483647, %v2528_v7 }
 0x4c3   : > { %v2622_v22 = vsub.f32 1.0, %v2621_v47  ;;  %v2619_v3 = vmul.f32 %v2618_v56, %v8964_v46  ;;  %vm2640_vm6 = vweird.f32 %v2528_v7 }
 0x4c4   : > { %v2647_v42 = vor.u32 1.1754944e-38, %v2646_v24  ;;  %vm2645_vm9 = vcmp.eq.f32.partialorder %v2644_v20, 8.507059e+37 }
 0x4c5   : > { %v2623_v28 = vmul.f32 %v7742_v19, %v2622_v22  ;;  %v2652_v52 = vpack.c.bf16 %v2619_v3, %v2604_v36 }
 0x4c7   : > { %6971 = vmatmul.msk.bf16.gmra.mxu3 %vm1618_vm3, %v2652_v52  ;;  %v2624_v25 = vadd.f32 %v7742_v19, %v2623_v28  ;;  %v2707_v18 = vpop.f32.mrf.mxu3 }
 0x4c8   : > { %v7744_v4 = vpop.eup %7743 }
 0x4c9   : > { %v2636_v8 = vmul.f32 %v7744_v4, %v2528_v7  ;;  %v2628_v13 = vsel %vm2627_vm4, %v7742_v19, %v2624_v25  ;;  %vm2641_vm5 = vweird.f32 %v7744_v4 }
 0x4ca   : > { %v2633_v11 = vsel %vm2630_vm7, %v2632_v31, %v2628_v13  ;;  %vm2642_vm8 = vmor %vm2640_vm6, %vm2641_vm5 }
 0x4cb   : > { %v2637_v51 = vsub.f32 1.0, %v2636_v8  ;;  %v2634_v48 = vmul.f32 %v2633_v11, %v8967_v50 }
 0x4cd   : > { %v2638_v53 = vmul.f32 %v7744_v4, %v2637_v51 }
 0x4cf   : > { %v2639_v46 = vadd.f32 %v7744_v4, %v2638_v53  ;;  %v2709_v61 = vpop.f32.mrf.mxu3 }
 0x4d1   : > { %v2643_v57 = vsel %vm2642_vm8, %v7744_v4, %v2639_v46 }
 0x4d2   : > { %v2648_v14 = vsel %vm2645_vm9, %v2647_v42, %v2643_v57 }
 0x4d3   : > { %v2649_v35 = vmul.f32 %v2648_v14, %v8969_v62 }
 0x4d5   : > { %v2653_v59 = vpack.c.bf16 %v2649_v35, %v2634_v48 }
 0x4d7   : > { %6972 = vmatmul.msk.bf16.gmra.mxu3 %vm1618_vm3, %v2653_v59  ;;  %v2712_v30 = vpop.f32.mrf.mxu3 }
 0x4d8   : > { %v2729_v4 = vmul.f32 %v2712_v30, %v8687_v2 }
 0x4da   : > { %v2741_v8 = vsel %vm1573_vm0, %v2729_v4, 0.0 }
 0x4df   : > { %v2714_v19 = vpop.f32.mrf.mxu3 }
 0x4e0   : > { %v2730_v47 = vmul.f32 %v2714_v19, %v8690_v5  ;;  %v2727_v5 = vmul.f32 %v2707_v18, %v8665_v1 }
 0x4e2   : > { %v2744_v50 = vsel %vm1573_vm0, %v2730_v47, 0.0 }
 0x54a   : > { %v2717_v6 = vpop.f32.mrf.mxu3 }
 0x54b   : > { %v2731_v7 = vmul.f32 %v2717_v6, %v8703_v34 }
 0x54d   : > { %v2747_v43 = vsel %vm1573_vm0, %v2731_v7, 0.0 }
 0x54e   : > { %2748 = vadd.xlane.f32.xlu0 %v2747_v43 }
 0x552   : > { %v2719_v23 = vpop.f32.mrf.mxu3 }
 0x553   : > { %v2732_v36 = vmul.f32 %v2719_v23, %v8706_v33  ;;  %v2728_v33 = vmul.f32 %v2709_v61, %v8668_v12 }
 0x555   : > { %v2750_v28 = vsel %vm1573_vm0, %v2732_v36, 0.0 }
 0x556   : > { %2745 = vadd.xlane.f32.xlu0 %v2744_v50 }
 0x55a   : > { %v2722_v62 = vpop.f32.mrf.mxu3 }
 0x55b   : > { %v2733_v56 = vmul.f32 %v2722_v62, %v8760_v58  ;;  %v2735_v58 = vsel %vm1573_vm0, %v2727_v5, 0.0 }
 0x55d   : > { %v2753_v22 = vsel %vm1573_vm0, %v2733_v56, 0.0 }
 0x55e   : > { %2754 = vadd.xlane.f32.xlu1 %v2753_v22 }
 0x562   : > { %v2724_v3 = vpop.f32.mrf.mxu3 }
 0x563   : > { %v2734_v34 = vmul.f32 %v2724_v3, %v8769_v21  ;;  %v2738_v21 = vsel %vm1573_vm0, %v2728_v33, 0.0 }
 0x565   : > { %v2756_v52 = vsel %vm1573_vm0, %v2734_v34, 0.0 }
 0x566   : > { %2751 = vadd.xlane.f32.xlu1 %v2750_v28  ;;  %2757 = vadd.xlane.f32.xlu2 %v2756_v52 }
 0x56e   : > { %2736 = vadd.xlane.f32.xlu1 %v2735_v58  ;;  %2742 = vadd.xlane.f32.xlu2 %v2741_v8 }
 0x576   : > { %2739 = vadd.xlane.f32.xlu2 %v2738_v21 }
 0x5c1   : > { %v2749_v25 = vpop.xlane.xlu0 %2748 }
 0x5c2   : > { %v2763_v41 = vmul.f32 %v2749_v25, %v8402_v54 }
 0x5c4   : > { %v9163_v26 = vsub.f32 %v2731_v7, %v2763_v41 }
 0x5c6   : > { %v2779_v1 = vmul.f32 %v9163_v26, %v9163_v26 }
 0x5c8   : > { %v2795_v2 = vsel %vm1573_vm0, %v2779_v1, 0.0 }
 0x5c9   : > { %v2746_v51 = vpop.xlane.xlu0 %2745  ;;  %2796 = vadd.xlane.f32.xlu2 %v2795_v2 }
 0x5ca   : > { %v2762_v24 = vmul.f32 %v2746_v51, %v8402_v54 }
 0x5cc   : > { %v9169_v53 = vsub.f32 %v2730_v47, %v2762_v24 }
 0x5ce   : > { %v2778_v12 = vmul.f32 %v9169_v53, %v9169_v53 }
 0x5d0   : > { %v2792_v13 = vsel %vm1573_vm0, %v2778_v12, 0.0 }
 0x5d1   : > { %v2755_v20 = vpop.xlane.xlu1 %2754  ;;  %2793 = vadd.xlane.f32.xlu2 %v2792_v13 }
 0x5d2   : > { %v2765_v31 = vmul.f32 %v2755_v20, %v8402_v54 }
 0x5d4   : > { %v9175_v46 = vsub.f32 %v2733_v56, %v2765_v31 }
 0x5d6   : > { %v2781_v42 = vmul.f32 %v9175_v46, %v9175_v46 }
 0x5d8   : > { %v2801_v11 = vsel %vm1573_vm0, %v2781_v42, 0.0 }
 0x5d9   : > { %2802 = vadd.xlane.f32.xlu0 %v2801_v11  ;;  %v2752_v57 = vpop.xlane.xlu1 %2751  ;;  %v2758_v14 = vpop.xlane.xlu2 %2757 }
 0x5da   : > { %v2764_v48 = vmul.f32 %v2752_v57, %v8402_v54  ;;  %v2766_v35 = vmul.f32 %v2758_v14, %v8402_v54 }
 0x5dc   : > { %v9182_v59 = vsub.f32 %v2732_v36, %v2764_v48  ;;  %v9184_v18 = vsub.f32 %v2734_v34, %v2766_v35 }
 0x5de   : > { %v2780_v61 = vmul.f32 %v9182_v59, %v9182_v59  ;;  %v2782_v30 = vmul.f32 %v9184_v18, %v9184_v18 }
 0x5e0   : > { %v2798_v19 = vsel %vm1573_vm0, %v2780_v61, 0.0  ;;  %v2804_v6 = vsel %vm1573_vm0, %v2782_v30, 0.0 }
 0x5e1   : > { %2799 = vadd.xlane.f32.xlu0 %v2798_v19  ;;  %v2737_v7 = vpop.xlane.xlu1 %2736  ;;  %2805 = vadd.xlane.f32.xlu1 %v2804_v6  ;;  %v2743_v43 = vpop.xlane.xlu2 %2742 }
 0x5e2   : > { %v2759_v47 = vmul.f32 %v2737_v7, %v8402_v54  ;;  %v2761_v23 = vmul.f32 %v2743_v43, %v8402_v54 }
 0x5e4   : > { %v9194_v50 = vsub.f32 %v2727_v5, %v2759_v47  ;;  %v9196_v62 = vsub.f32 %v2729_v4, %v2761_v23 }
 0x5e6   : > { %v2775_v56 = vmul.f32 %v9194_v50, %v9194_v50  ;;  %v2777_v22 = vmul.f32 %v9196_v62, %v9196_v62 }
 0x5e8   : > { %v2783_v36 = vsel %vm1573_vm0, %v2775_v56, 0.0  ;;  %v2789_v3 = vsel %vm1573_vm0, %v2777_v22, 0.0 }
 0x5e9   : > { %2784 = vadd.xlane.f32.xlu0 %v2783_v36  ;;  %2790 = vadd.xlane.f32.xlu1 %v2789_v3  ;;  %v2740_v34 = vpop.xlane.xlu2 %2739 }
 0x5ea   : > { %v2760_v28 = vmul.f32 %v2740_v34, %v8402_v54 }
 0x5ec   : > { %v9205_v52 = vsub.f32 %v2728_v33, %v2760_v28 }
 0x5ee   : > { %v2776_v5 = vmul.f32 %v9205_v52, %v9205_v52 }
 0x5f0   : > { %v2786_v4 = vsel %vm1573_vm0, %v2776_v5, 0.0 }
 0x5f1   : > { %2787 = vadd.xlane.f32.xlu1 %v2786_v4 }
 0x63c   : > { %v2797_v58 = vpop.xlane.xlu2 %2796 }
 0x63d   : > { %v2811_v21 = vmul.f32 %v2797_v58, %v8402_v54 }
 0x63f   : > { %v2819_v1 = vadd.f32 1e-06, %v2811_v21 }
 0x641   : > { %7745 = vrsqrt.f32 %v2819_v1  ;;  %vm2869_vm10 = vweird.f32 %v2819_v1 }
 0x644   : > { %v2794_v8 = vpop.xlane.xlu2 %2793 }
 0x645   : > { %v2810_v41 = vmul.f32 %v2794_v8, %v8402_v54 }
 0x647   : > { %v9212_v2 = vadd.f32 1e-06, %v2810_v41  ;;  %v9219_v20 = vpop.eup %7745 }
 0x648   : > { %v2864_v48 = vmul.f32 %v9219_v20, %v2819_v1  ;;  %vm2870_vm11 = vweird.f32 %v9219_v20 }
 0x649   : > { %7747 = vrsqrt.f32 %v9212_v2  ;;  %vm9260_vm15 = vmor %vm2869_vm10, %vm2870_vm11  ;;  %vm2859_vm1 = vweird.f32 %v9212_v2 }
 0x64a   : > { %v2865_v43 = vmul.f32 %v9219_v20, %v2864_v48 }
 0x64c   : > { %v2803_v25 = vpop.xlane.xlu0 %2802  ;;  %v2866_v36 = vmul.f32 0.5, %v2865_v43 }
 0x64d   : > { %v2813_v11 = vmul.f32 %v2803_v25, %v8402_v54 }
 0x64e   : > { %v2867_v25 = vsub.f32 1.5, %v2866_v36 }
 0x64f   : > { %v9223_v42 = vpop.eup %7747  ;;  %v9233_v7 = vadd.f32 1e-06, %v2813_v11 }
 0x650   : > { %v2854_v30 = vmul.f32 %v9223_v42, %v9212_v2  ;;  %v2868_v48 = vmul.f32 %v9219_v20, %v2867_v25  ;;  %vm2860_vm12 = vweird.f32 %v9223_v42 }
 0x651   : > { %vm9265_vm4 = vmor %vm2859_vm1, %vm2860_vm12 }
 0x652   : > { %v2855_v47 = vmul.f32 %v9223_v42, %v2854_v30  ;;  %v2872_v2 = vsel %vm9260_vm15, %v9219_v20, %v2868_v48 }
 0x654   : > { %v2800_v51 = vpop.xlane.xlu0 %2799  ;;  %v2806_v33 = vpop.xlane.xlu1 %2805  ;;  %v2856_v34 = vmul.f32 0.5, %v2855_v47 }
 0x655   : > { %v2812_v24 = vmul.f32 %v2800_v51, %v8402_v54  ;;  %v2814_v12 = vmul.f32 %v2806_v33, %v8402_v54 }
 0x656   : > { %v2857_v33 = vsub.f32 1.5, %v2856_v34 }
 0x657   : > { %v9217_v13 = vadd.f32 1e-06, %v2812_v24  ;;  %v9221_v31 = vadd.f32 1e-06, %v2814_v12 }
 0x658   : > { %v2858_v30 = vmul.f32 %v9223_v42, %v2857_v33 }
 0x659   : > { %7749 = vrsqrt.f32 %v9217_v13  ;;  %vm2879_vm11 = vweird.f32 %v9217_v13  ;;  %vm2899_vm1 = vweird.f32 %v9221_v31 }
 0x65a   : > { %7751 = vrsqrt.f32 %v9221_v31 }
 0x65c   : > { %v2785_v57 = vpop.xlane.xlu0 %2784  ;;  %v2791_v14 = vpop.xlane.xlu1 %2790 }
 0x65d   : > { %v2807_v35 = vmul.f32 %v2785_v57, %v8402_v54  ;;  %v2809_v61 = vmul.f32 %v2791_v14, %v8402_v54 }
 0x65f   : > { %v2815_v19 = vadd.f32 1e-06, %v2807_v35  ;;  %v2817_v6 = vadd.f32 1e-06, %v2809_v61  ;;  %v9237_v23 = vpop.eup %7749 }
 0x660   : > { %v9239_v56 = vpop.eup %7751  ;;  %v2874_v28 = vmul.f32 %v9237_v23, %v9217_v13  ;;  %vm2880_vm9 = vweird.f32 %v9237_v23 }
 0x661   : > { %7753 = vrsqrt.f32 %v2815_v19  ;;  %v2894_v4 = vmul.f32 %v9239_v56, %v9221_v31  ;;  %vm2829_vm5 = vweird.f32 %v2815_v19  ;;  %vm2849_vm7 = vweird.f32 %v2817_v6 }
 0x662   : > { %7755 = vrsqrt.f32 %v2817_v6  ;;  %v2875_v24 = vmul.f32 %v9237_v23, %v2874_v28  ;;  %vm2900_vm12 = vweird.f32 %v9239_v56 }
 0x663   : > { %7757 = vrsqrt.f32 %v9233_v7  ;;  %v2895_v11 = vmul.f32 %v9239_v56, %v2894_v4 }
 0x664   : > { %v2788_v22 = vpop.xlane.xlu1 %2787  ;;  %v2876_v43 = vmul.f32 0.5, %v2875_v24 }
 0x665   : > { %v2808_v3 = vmul.f32 %v2788_v22, %v8402_v54  ;;  %v2896_v1 = vmul.f32 0.5, %v2895_v11 }
 0x667   : > { %v7754_v5 = vpop.eup %7753  ;;  %v9247_v58 = vadd.f32 1e-06, %v2808_v3 }
 0x668   : > { %v7756_v8 = vpop.eup %7755  ;;  %v2824_v21 = vmul.f32 %v7754_v5, %v2815_v19  ;;  %vm2830_vm13 = vweird.f32 %v7754_v5  ;;  %v2897_v19 = vsub.f32 1.5, %v2896_v1 }
 0x669   : > { %v2844_v41 = vmul.f32 %v7756_v8, %v2817_v6  ;;  %7759 = vrsqrt.f32 %v9247_v58  ;;  %v9250_v51 = vpop.eup %7757  ;;  %vm2850_vm2 = vweird.f32 %v7756_v8  ;;  %vm2831_vm6 = vmor %vm2829_vm5, %vm2830_vm13  ;;  %v2907_v6 = vmul.f32 %v2872_v2, %v9163_v26 }
 0x66a   : > { %v2825_v12 = vmul.f32 %v7754_v5, %v2824_v21  ;;  %v2884_v35 = vmul.f32 %v9250_v51, %v9233_v7  ;;  %vm2851_vm8 = vmor %vm2849_vm7, %vm2850_vm2  ;;  %vm2839_vm15 = vweird.f32 %v9247_v58  ;;  %vm2890_vm5 = vweird.f32 %v9250_v51 }
 0x66b   : > { %v2845_v57 = vmul.f32 %v7756_v8, %v2844_v41  ;;  %v2877_v41 = vsub.f32 1.5, %v2876_v43  ;;  %vm9291_vm13 = vmor %vm2879_vm11, %vm2880_vm9 }
 0x66c   : > { %v2826_v14 = vmul.f32 0.5, %v2825_v12  ;;  %v2885_v21 = vmul.f32 %v9250_v51, %v2884_v35  ;;  %v2862_v12 = vsel %vm9265_vm4, %v9223_v42, %v2858_v30  ;;  %v2915_v30 = vmul.f32 %v2907_v6, %v8651_v60  ;;  %vm2901_vm4 = vmor %vm2899_vm1, %vm2900_vm12 }
 0x66d   : > { %v2846_v61 = vmul.f32 0.5, %v2845_v57  ;;  %v2878_v48 = vmul.f32 %v9237_v23, %v2877_v41 }
 0x66e   : > { %v2827_v47 = vsub.f32 1.5, %v2826_v14 }
 0x66f   : > { %v7760_v22 = vpop.eup %7759  ;;  %v2847_v3 = vsub.f32 1.5, %v2846_v61  ;;  %v2886_v61 = vmul.f32 0.5, %v2885_v21 }
 0x670   : > { %v2828_v28 = vmul.f32 %v7754_v5, %v2827_v47  ;;  %v2834_v4 = vmul.f32 %v7760_v22, %v9247_v58  ;;  %vm2840_vm10 = vweird.f32 %v7760_v22 }
 0x671   : > { %v2848_v25 = vmul.f32 %v7756_v8, %v2847_v3  ;;  %vm2841_vm2 = vmor %vm2839_vm15, %vm2840_vm10  ;;  %v2887_v36 = vsub.f32 1.5, %v2886_v61  ;;  %v2882_v3 = vsel %vm9291_vm13, %v9237_v23, %v2878_v48  ;;  %v7966_v48 = vld [vmem:[%s8337_s17] sm:$0xff] }
 0x672   : > { %v2835_v33 = vmul.f32 %v7760_v22, %v2834_v4  ;;  %v2832_v24 = vsel %vm2831_vm6, %v7754_v5, %v2828_v28  ;;  %v2906_v5 = vmul.f32 %v2862_v12, %v9169_v53  ;;  %v2908_v21 = vmul.f32 %v2882_v3, %v9182_v59 }
 0x673   : > { %v2852_v11 = vsel %vm2851_vm8, %v7756_v8, %v2848_v25  ;;  %v2903_v57 = vmul.f32 %v2832_v24, %v9194_v50  ;;  %v2898_v50 = vmul.f32 %v9239_v56, %v2897_v19  ;;  %v2888_v25 = vmul.f32 %v9250_v51, %v2887_v36 }
 0x674   : > { %v2836_v14 = vmul.f32 0.5, %v2835_v33  ;;  %v2905_v35 = vmul.f32 %v2852_v11, %v9196_v62  ;;  %v2914_v47 = vmul.f32 %v2906_v5, %v8651_v60  ;;  %vm2889_vm6 = vweird.f32 %v9233_v7 }
 0x675   : > { %v2911_v20 = vmul.f32 %v2903_v57, %v8651_v60  ;;  %v2902_v34 = vsel %vm2901_vm4, %v9239_v56, %v2898_v50  ;;  %vm2891_vm7 = vmor %vm2889_vm6, %vm2890_vm5  ;;  %v2916_v2 = vmul.f32 %v2908_v21, %v8651_v60 }
 0x676   : > { %v2837_v43 = vsub.f32 1.5, %v2836_v14  ;;  %v2913_v42 = vmul.f32 %v2905_v35, %v8651_v60  ;;  %v9313_v4 = vadd.f32 %v2914_v47, %v8656_v63  ;;  %v2910_v23 = vmul.f32 %v2902_v34, %v9184_v18 }
 0x677   : > { %v9289_v26 = vadd.f32 %v2911_v20, %v8656_v63  ;;  %v2892_v33 = vsel %vm2891_vm7, %v9250_v51, %v2888_v25  ;;  %v9336_v7 = vadd.f32 %v2916_v2, %v8656_v63  ;;  %v7965_v20 = vld [vmem:[%s8337_s17 + $0x8] sm:$0xff] }
 0x678   : > { %v2838_v53 = vmul.f32 %v7760_v22, %v2837_v43  ;;  %v9297_v8 = vadd.f32 %v2913_v42, %v8656_v63  ;;  %v2936_v59 = vsel %vm1573_vm0, %v9313_v4, 0.0  ;;  %v2918_v18 = vmul.f32 %v2910_v23, %v8651_v60 }
 0x679   : > { %v2927_v13 = vsel %vm1573_vm0, %v9289_v26, 0.0  ;;  %v2909_v24 = vmul.f32 %v2892_v33, %v9175_v46  ;;  %v2942_v19 = vsel %vm1573_vm0, %v9336_v7, 0.0  ;;  %v2974_v35 = vsel %vm1573_vm0, %v9336_v7, -inf }
 0x67a   : > { %v2933_v1 = vsel %vm1573_vm0, %v9297_v8, 0.0  ;;  %2928 = vadd.xlane.f32.xlu1 %v2927_v13  ;;  %v2842_v58 = vsel %vm2841_vm2, %v7760_v22, %v2838_v53  ;;  %v9319_v22 = vadd.f32 %v2915_v30, %v8656_v63  ;;  %v9340_v12 = vadd.f32 %v2918_v18, %v8656_v63 }
 0x67b   : > { %2934 = vadd.xlane.f32.xlu0 %v2933_v1  ;;  %v2904_v31 = vmul.f32 %v2842_v58, %v9205_v52  ;;  %v2917_v57 = vmul.f32 %v2909_v24, %v8651_v60  ;;  %v2959_v61 = vsel %vm1573_vm0, %v9289_v26, -inf  ;;  %v3503_v5 = vsel %vm1573_vm0, %v7965_v20, 0.0 }
 0x67c   : > { %v2971_v41 = vsel %vm1573_vm0, %v9319_v22, -inf  ;;  %v2939_v11 = vsel %vm1573_vm0, %v9319_v22, 0.0  ;;  %v2948_v51 = vsel %vm1573_vm0, %v9340_v12, 0.0  ;;  %v3500_v43 = vsel %vm1573_vm0, %v7966_v48, 0.0 }
 0x67d   : > { %v2912_v28 = vmul.f32 %v2904_v31, %v8651_v60  ;;  %v9350_v46 = vadd.f32 %v2917_v57, %v8656_v63  ;;  %v2980_v60 = vsel %vm1573_vm0, %v9340_v12, -inf  ;;  %v2965_v42 = vsel %vm1573_vm0, %v9297_v8, -inf }
 0x67f   : > { %v9323_v52 = vadd.f32 %v2912_v28, %v8656_v63  ;;  %v2945_v14 = vsel %vm1573_vm0, %v9350_v46, 0.0  ;;  %v2977_v6 = vsel %vm1573_vm0, %v9350_v46, -inf  ;;  %v2968_v63 = vsel %vm1573_vm0, %v9313_v4, -inf }
 0x681   : > { %v2930_v56 = vsel %vm1573_vm0, %v9323_v52, 0.0  ;;  %v2962_v50 = vsel %vm1573_vm0, %v9323_v52, -inf }
 0x682   : > { %2931 = vadd.xlane.f32.xlu2 %v2930_v56  ;;  %2937 = vadd.xlane.f32.xlu1 %v2936_v59  ;;  %v9377_v59 = vld [vmem:[%s8337_s17 + $0x10] sm:$0xff] }
 0x683   : > { %2972 = vmax.xlane.f32.xlu0 %v2971_v41  ;;  %v3506_v2 = vsel %vm1573_vm0, %v9377_v59, 0.0 }
 0x68a   : > { %2943 = vadd.xlane.f32.xlu2 %v2942_v19  ;;  %2940 = vadd.xlane.f32.xlu1 %v2939_v11 }
 0x68b   : > { %2949 = vadd.xlane.f32.xlu0 %v2948_v51 }
 0x692   : > { %2946 = vadd.xlane.f32.xlu2 %v2945_v14  ;;  %2975 = vmax.xlane.f32.xlu1 %v2974_v35 }
 0x693   : > { %2981 = vmax.xlane.f32.xlu0 %v2980_v60 }
 0x69a   : > { %2978 = vmax.xlane.f32.xlu2 %v2977_v6  ;;  %2960 = vmax.xlane.f32.xlu1 %v2959_v61  ;;  %v9386_v6 = vld [vmem:[%s8337_s17 + $0x28] sm:$0xff] }
 0x69b   : > { %2969 = vmax.xlane.f32.xlu0 %v2968_v63  ;;  %v3515_v61 = vsel %vm1573_vm0, %v9386_v6, 0.0  ;;  %v9391_v63 = vld [vmem:[%s8337_s17 + $0x20] sm:$0xff] }
 0x6a2   : > { %2966 = vmax.xlane.f32.xlu2 %v2965_v42  ;;  %3504 = vadd.xlane.f32.xlu1 %v3503_v5  ;;  %v3512_v5 = vsel %vm1573_vm0, %v9391_v63, 0.0 }
 0x6a3   : > { %3501 = vadd.xlane.f32.xlu0 %v3500_v43 }
 0x6aa   : > { %2963 = vmax.xlane.f32.xlu2 %v2962_v50  ;;  %v7380_v50 = vld [vmem:[%s11016_s11] sm:$0xff]  ;;  %3513 = vadd.xlane.f32.xlu1 %v3512_v5 }
 0x6b2   : > { %3507 = vadd.xlane.f32.xlu2 %v3506_v2  ;;  %v7383_v2 = vld [vmem:[%s11016_s11 + $0x18] sm:$0xff] }
 0x6ba   : > { %3516 = vadd.xlane.f32.xlu2 %v3515_v61 }
 0x6ed   : > { %v2929_v62 = vpop.xlane.xlu1 %2928 }
 0x6ee   : > { %v2935_v53 = vpop.xlane.xlu0 %2934  ;;  %v2951_v35 = vmul.f32 %v2929_v62, %v8402_v54 }
 0x6ef   : > { %v2953_v19 = vmul.f32 %v2935_v53, %v8402_v54 }
 0x6f5   : > { %v2938_v13 = vpop.xlane.xlu1 %2937  ;;  %v2932_v30 = vpop.xlane.xlu2 %2931 }
 0x6f6   : > { %v2973_v47 = vpop.xlane.xlu0 %2972  ;;  %v2954_v41 = vmul.f32 %v2938_v13, %v8402_v54  ;;  %v2952_v14 = vmul.f32 %v2932_v30, %v8402_v54 }
 0x6f8   : > { %v2992_v51 = vpack.c.bf16 %v2954_v41, %v2953_v19  ;;  %v2991_v43 = vpack.c.bf16 %v2952_v14, %v2951_v35  ;;  %v7387_v41 = vld [vmem:[%s11017_s1 + $0x18] sm:$0xff]  ;;  %v8083_v14 = vmov 0  }
 0x6f9   : > { %7552 = vset.pattern.permute.xlu0 %v8083_v14  ;;  %7553 = vset.pattern.permute.xlu1 %v8083_v14 }
 0x6fa   : > { %7554 = vset.pattern.permute.xlu2 %v8083_v14 }
 0x6fd   : > { %v2941_v36 = vpop.xlane.xlu1 %2940  ;;  %v2944_v1 = vpop.xlane.xlu2 %2943 }
 0x6fe   : > { %v2950_v58 = vpop.xlane.xlu0 %2949  ;;  %v2955_v25 = vmul.f32 %v2941_v36, %v8402_v54  ;;  %v2956_v23 = vmul.f32 %v2944_v1, %v8402_v54 }
 0x6ff   : > { %v2958_v34 = vmul.f32 %v2950_v58, %v8402_v54 }
 0x700   : > { %v2993_v18 = vpack.c.bf16 %v2956_v23, %v2955_v25  ;;  %v7385_v25 = vld [vmem:[%s11017_s1 + $0x8] sm:$0xff]  ;;  %v7382_v23 = vld [vmem:[%s11016_s11 + $0x10] sm:$0xff] }
 0x705   : > { %v2976_v3 = vpop.xlane.xlu1 %2975  ;;  %v2947_v31 = vpop.xlane.xlu2 %2946 }
 0x706   : > { %v2982_v28 = vpop.xlane.xlu0 %2981  ;;  %v2957_v21 = vmul.f32 %v2947_v31, %v8402_v54  ;;  %v3005_v60 = vpack.c.bf16 %v2976_v3, %v2973_v47 }
 0x708   : > { %v2994_v56 = vpack.c.bf16 %v2958_v34, %v2957_v21  ;;  %v7381_v21 = vld [vmem:[%s11016_s11 + $0x8] sm:$0xff] }
 0x70a   : > { %3104 = vmatpush.bf16.msra.mxu2 %v2994_v56  ;;  %v7386_v56 = vld [vmem:[%s11017_s1 + $0x10] sm:$0xff] }
 0x70d   : > { %v2961_v33 = vpop.xlane.xlu1 %2960  ;;  %v2979_v24 = vpop.xlane.xlu2 %2978 }
 0x70e   : > { %v2970_v11 = vpop.xlane.xlu0 %2969  ;;  %v3006_v57 = vpack.c.bf16 %v2982_v28, %v2979_v24  ;;  %3105 = vmatpush.bf16.msra.mxu2 %v2993_v18  ;;  %v9424_v18 = vld [vmem:[%s8337_s17 + $0x18] sm:$0xff] }
 0x710   : > { %3043 = vmatpush.bf16.msra.mxu1 %v3006_v57 }
 0x712   : > { %3106 = vmatpush.bf16.msra.mxu2 %v2992_v51 }
 0x714   : > { %3044 = vmatpush.bf16.msra.mxu1 %v3005_v60 }
 0x715   : > { %v2967_v42 = vpop.xlane.xlu2 %2966  ;;  %v3505_v53 = vpop.xlane.xlu1 %3504 }
 0x716   : > { %v3004_v62 = vpack.c.bf16 %v2970_v11, %v2967_v42  ;;  %3107 = vmatpush.bf16.msra.mxu2 %v2991_v43  ;;  %v3502_v13 = vpop.xlane.xlu0 %3501  ;;  %v3525_v30 = vmul.f32 %v3505_v53, %v8402_v54 }
 0x717   : > { %v3524_v47 = vmul.f32 %v3502_v13, %v8402_v54 }
 0x718   : > { %3045 = vmatpush.bf16.msra.mxu1 %v3004_v62  ;;  %v9398_v36 = vsub.f32 %v7965_v20, %v3525_v30 }
 0x719   : > { %7009 = vmatmul.msk.bf16.vlgmr.msra.gmra.mxu2 %vm1618_vm3, %v7380_v50  ;;  %v9401_v1 = vsub.f32 %v7966_v48, %v3524_v47  ;;  %v7384_v48 = vld [vmem:[%s11017_s1] sm:$0xff]  ;;  %s11030_s1 = sld [smem:[#allocation20_spill]] }
 0x71a   : > { %v3541_v58 = vmul.f32 %v9398_v36, %v9398_v36 }
 0x71b   : > { %v3540_v3 = vmul.f32 %v9401_v1, %v9401_v1 }
 0x71c   : > { %v3551_v31 = vsel %vm1573_vm0, %v3541_v58, 0.0 }
 0x71d   : > { %v2964_v34 = vpop.xlane.xlu2 %2963  ;;  %v3548_v20 = vsel %vm1573_vm0, %v3540_v3, 0.0  ;;  %3552 = vadd.xlane.f32.xlu2 %v3551_v31 }
 0x71e   : > { %v3003_v28 = vpack.c.bf16 %v2964_v34, %v2961_v33  ;;  %3549 = vadd.xlane.f32.xlu1 %v3548_v20  ;;  %v3509_v33 = vsel %vm1573_vm0, %v9424_v18, 0.0 }
 0x71f   : > { %3510 = vadd.xlane.f32.xlu0 %v3509_v33 }
 0x720   : > { %3046 = vmatpush.bf16.msra.mxu1 %v3003_v28 }
 0x723   : > { %6989 = vmatmul.msk.bf16.vlgmr.msra.gmra.mxu1 %vm1618_vm3, %v7384_v48 }
 0x729   : > { %7010 = vmatmul.msk.bf16.gmra.mxu2 %vm1618_vm3, %v7381_v21 }
 0x733   : > { %6990 = vmatmul.msk.bf16.gmra.mxu1 %vm1618_vm3, %v7385_v25 }
 0x739   : > { %7011 = vmatmul.msk.bf16.gmra.mxu2 %vm1618_vm3, %v7382_v23 }
 0x743   : > { %6991 = vmatmul.msk.bf16.gmra.mxu1 %vm1618_vm3, %v7386_v56 }
 0x749   : > { %7012 = vmatmul.msk.bf16.gmra.mxu2 %vm1618_vm3, %v7383_v2 }
 0x753   : > { %6992 = vmatmul.msk.bf16.gmra.mxu1 %vm1618_vm3, %v7387_v41 }
 0x79c   : > { %v3109_v24 = vpop.f32.mrf.mxu2 }
 0x7a0   : > { %v3048_v19 = vpop.f32.mrf.mxu1 }
 0x7a1   : > { %v3110_v11 = vadd.f32 %v3109_v24, %v3048_v19 }
 0x7a3   : > { %v7013_v57 = vmul.f32 -1.442695, %v3110_v11 }
 0x7a4   : > { %v3111_v51 = vpop.f32.mrf.mxu2 }
 0x7a5   : > { %7761 = vpow2.f32 %v7013_v57 }
 0x7a8   : > { %v3050_v35 = vpop.f32.mrf.mxu1 }
 0x7a9   : > { %v3112_v60 = vadd.f32 %v3111_v51, %v3050_v35 }
 0x7ab   : > { %v7762_v61 = vpop.eup %7761  ;;  %v7014_v5 = vmul.f32 -1.442695, %v3112_v60 }
 0x7ac   : > { %v3153_v43 = vadd.f32 1.0, %v7762_v61  ;;  %v3114_v42 = vpop.f32.mrf.mxu2 }
 0x7ad   : > { %7763 = vpow2.f32 %v7014_v5 }
 0x7ae   : > { %7765 = vrcp.f32 %v3153_v43  ;;  %v3172_v20 = vand.u32 2147483648, %v3153_v43  ;;  %v3170_v21 = vand.u32 2147483647, %v3153_v43  ;;  %vm3166_vm9 = vweird.f32 %v3153_v43 }
 0x7b0   : > { %v3053_v50 = vpop.f32.mrf.mxu1  ;;  %v3173_v24 = vor.u32 1.1754944e-38, %v3172_v20  ;;  %vm3171_vm11 = vcmp.eq.f32.partialorder %v3170_v21, 8.507059e+37 }
 0x7b1   : > { %v3115_v53 = vadd.f32 %v3114_v42, %v3053_v50 }
 0x7b3   : > { %v7764_v62 = vpop.eup %7763  ;;  %v7015_v13 = vmul.f32 -1.442695, %v3115_v53 }
 0x7b4   : > { %v7766_v30 = vpop.eup %7765  ;;  %v3154_v47 = vadd.f32 1.0, %v7764_v62  ;;  %v3116_v58 = vpop.f32.mrf.mxu2 }
 0x7b5   : > { %7767 = vpow2.f32 %v7015_v13  ;;  %v3162_v3 = vmul.f32 %v7766_v30, %v3153_v43  ;;  %vm3167_vm8 = vweird.f32 %v7766_v30 }
 0x7b6   : > { %7769 = vrcp.f32 %v3154_v47  ;;  %vm3168_vm10 = vmor %vm3166_vm9, %vm3167_vm8  ;;  %v3187_v35 = vand.u32 2147483648, %v3154_v47  ;;  %v3185_v5 = vand.u32 2147483647, %v3154_v47  ;;  %vm3181_vm13 = vweird.f32 %v3154_v47 }
 0x7b7   : > { %v3163_v31 = vsub.f32 1.0, %v3162_v3 }
 0x7b8   : > { %v3055_v34 = vpop.f32.mrf.mxu1  ;;  %vm3186_vm1 = vcmp.eq.f32.partialorder %v3185_v5, 8.507059e+37 }
 0x7b9   : > { %v3117_v28 = vadd.f32 %v3116_v58, %v3055_v34  ;;  %v3164_v48 = vmul.f32 %v7766_v30, %v3163_v31 }
 0x7bb   : > { %v7768_v25 = vpop.eup %7767  ;;  %v7016_v23 = vmul.f32 -1.442695, %v3117_v28  ;;  %v3165_v56 = vadd.f32 %v7766_v30, %v3164_v48 }
 0x7bc   : > { %v7770_v2 = vpop.eup %7769  ;;  %v3155_v41 = vadd.f32 1.0, %v7768_v25  ;;  %v3119_v33 = vpop.f32.mrf.mxu2 }
 0x7bd   : > { %7771 = vpow2.f32 %v7016_v23  ;;  %v3169_v19 = vsel %vm3168_vm10, %v7766_v30, %v3165_v56  ;;  %v3177_v11 = vmul.f32 %v7770_v2, %v3154_v47  ;;  %vm3182_vm12 = vweird.f32 %v7770_v2 }
 0x7be   : > { %7773 = vrcp.f32 %v3155_v41  ;;  %v3174_v57 = vsel %vm3171_vm11, %v3173_v24, %v3169_v19  ;;  %vm3183_vm15 = vmor %vm3181_vm13, %vm3182_vm12  ;;  %v3188_v30 = vor.u32 1.1754944e-38, %v3187_v35  ;;  %v3202_v28 = vand.u32 2147483648, %v3155_v41 }
 0x7bf   : > { %3283 = vperm.xlu0 %7552, %v3174_v57   ;;  %v3178_v51 = vsub.f32 1.0, %v3177_v11  ;;  %v3200_v25 = vand.u32 2147483647, %v3155_v41  ;;  %vm3196_vm4 = vweird.f32 %v3155_v41 }
 0x7c0   : > { %v3058_v14 = vpop.f32.mrf.mxu1 }
 0x7c1   : > { %v3120_v60 = vadd.f32 %v3119_v33, %v3058_v14  ;;  %v3179_v61 = vmul.f32 %v7770_v2, %v3178_v51  ;;  %vm3201_vm6 = vcmp.eq.f32.partialorder %v3200_v25, 8.507059e+37 }
 0x7c3   : > { %v7772_v43 = vpop.eup %7771  ;;  %v7017_v42 = vmul.f32 -1.442695, %v3120_v60  ;;  %v3180_v50 = vadd.f32 %v7770_v2, %v3179_v61 }
 0x7c4   : > { %v7774_v53 = vpop.eup %7773  ;;  %v3156_v62 = vadd.f32 1.0, %v7772_v43  ;;  %v3121_v13 = vpop.f32.mrf.mxu2 }
 0x7c5   : > { %7775 = vpow2.f32 %v7017_v42  ;;  %v3184_v58 = vsel %vm3183_vm15, %v7770_v2, %v3180_v50  ;;  %v3192_v3 = vmul.f32 %v7774_v53, %v3155_v41  ;;  %vm3197_vm2 = vweird.f32 %v7774_v53 }
 0x7c6   : > { %7777 = vrcp.f32 %v3156_v62  ;;  %v3189_v31 = vsel %vm3186_vm1, %v3188_v30, %v3184_v58  ;;  %vm3198_vm5 = vmor %vm3196_vm4, %vm3197_vm2  ;;  %v3203_v2 = vor.u32 1.1754944e-38, %v3202_v28  ;;  %v3217_v60 = vand.u32 2147483648, %v3156_v62 }
 0x7c7   : > { %3288 = vperm.xlu1 %7553, %v3189_v31   ;;  %v3193_v34 = vsub.f32 1.0, %v3192_v3  ;;  %v3215_v43 = vand.u32 2147483647, %v3156_v62  ;;  %vm3211_vm8 = vweird.f32 %v3156_v62 }
 0x7c8   : > { %v3060_v20 = vpop.f32.mrf.mxu1 }
 0x7c9   : > { %v3122_v48 = vadd.f32 %v3121_v13, %v3060_v20  ;;  %v3194_v21 = vmul.f32 %v7774_v53, %v3193_v34  ;;  %vm3216_vm10 = vcmp.eq.f32.partialorder %v3215_v43, 8.507059e+37 }
 0x7cb   : > { %v7776_v47 = vpop.eup %7775  ;;  %v7018_v23 = vmul.f32 -1.442695, %v3122_v48  ;;  %v3195_v56 = vadd.f32 %v7774_v53, %v3194_v21 }
 0x7cc   : > { %v7778_v33 = vpop.eup %7777  ;;  %v3157_v24 = vadd.f32 1.0, %v7776_v47  ;;  %v3124_v57 = vpop.f32.mrf.mxu2 }
 0x7cd   : > { %7779 = vpow2.f32 %v7018_v23  ;;  %v3199_v19 = vsel %vm3198_vm5, %v7774_v53, %v3195_v56  ;;  %v3207_v11 = vmul.f32 %v7778_v33, %v3156_v62  ;;  %vm3212_vm7 = vweird.f32 %v7778_v33 }
 0x7ce   : > { %7781 = vrcp.f32 %v3157_v24  ;;  %v3204_v51 = vsel %vm3201_vm6, %v3203_v2, %v3199_v19  ;;  %vm3213_vm9 = vmor %vm3211_vm8, %vm3212_vm7  ;;  %v3218_v53 = vor.u32 1.1754944e-38, %v3217_v60  ;;  %v3232_v48 = vand.u32 2147483648, %v3157_v24 }
 0x7cf   : > { %3293 = vperm.xlu2 %7554, %v3204_v51   ;;  %v3208_v14 = vsub.f32 1.0, %v3207_v11  ;;  %v3230_v47 = vand.u32 2147483647, %v3157_v24  ;;  %vm3226_vm12 = vweird.f32 %v3157_v24 }
 0x7d0   : > { %v3063_v35 = vpop.f32.mrf.mxu1 }
 0x7d1   : > { %v3125_v61 = vadd.f32 %v3124_v57, %v3063_v35  ;;  %v3209_v5 = vmul.f32 %v7778_v33, %v3208_v14  ;;  %vm3231_vm15 = vcmp.eq.f32.partialorder %v3230_v47, 8.507059e+37 }
 0x7d3   : > { %v7780_v41 = vpop.eup %7779  ;;  %v7019_v42 = vmul.f32 -1.442695, %v3125_v61  ;;  %v3210_v50 = vadd.f32 %v7778_v33, %v3209_v5 }
 0x7d4   : > { %v7782_v13 = vpop.eup %7781  ;;  %v3158_v30 = vadd.f32 1.0, %v7780_v41  ;;  %v3126_v20 = vpop.f32.mrf.mxu2 }
 0x7d5   : > { %7783 = vpow2.f32 %v7019_v42  ;;  %v3214_v58 = vsel %vm3213_vm9, %v7778_v33, %v3210_v50  ;;  %v3222_v3 = vmul.f32 %v7782_v13, %v3157_v24  ;;  %vm3227_vm11 = vweird.f32 %v7782_v13 }
 0x7d6   : > { %7785 = vrcp.f32 %v3158_v30  ;;  %v3219_v31 = vsel %vm3216_vm10, %v3218_v53, %v3214_v58  ;;  %vm3228_vm13 = vmor %vm3226_vm12, %vm3227_vm11  ;;  %v3233_v33 = vor.u32 1.1754944e-38, %v3232_v48  ;;  %v3247_v35 = vand.u32 2147483648, %v3158_v30 }
 0x7d7   : > { %3298 = vperm.xlu1 %7553, %v3219_v31   ;;  %v3223_v34 = vsub.f32 1.0, %v3222_v3  ;;  %v3245_v61 = vand.u32 2147483647, %v3158_v30  ;;  %vm3241_vm2 = vweird.f32 %v3158_v30 }
 0x7d8   : > { %v3065_v28 = vpop.f32.mrf.mxu1  ;;  %v3248_v42 = vor.u32 1.1754944e-38, %v3247_v35 }
 0x7d9   : > { %v3127_v21 = vadd.f32 %v3126_v20, %v3065_v28  ;;  %v3224_v25 = vmul.f32 %v7782_v13, %v3223_v34  ;;  %vm3246_vm5 = vcmp.eq.f32.partialorder %v3245_v61, 8.507059e+37 }
 0x7db   : > { %v7784_v62 = vpop.eup %7783  ;;  %v7020_v23 = vmul.f32 -1.442695, %v3127_v21  ;;  %v3225_v56 = vadd.f32 %v7782_v13, %v3224_v25 }
 0x7dc   : > { %v7786_v2 = vpop.eup %7785  ;;  %v3159_v19 = vadd.f32 1.0, %v7784_v62 }
 0x7dd   : > { %7787 = vpow2.f32 %v7020_v23  ;;  %v3229_v11 = vsel %vm3228_vm13, %v7782_v13, %v3225_v56  ;;  %v3237_v57 = vmul.f32 %v7786_v2, %v3158_v30  ;;  %vm3242_vm1 = vweird.f32 %v7786_v2 }
 0x7de   : > { %7789 = vrcp.f32 %v3159_v19  ;;  %v3234_v51 = vsel %vm3231_vm15, %v3233_v33, %v3229_v11  ;;  %vm3243_vm4 = vmor %vm3241_vm2, %vm3242_vm1  ;;  %v3262_v3 = vand.u32 2147483648, %v3159_v19  ;;  %v3260_v34 = vand.u32 2147483647, %v3159_v19 }
 0x7df   : > { %3303 = vperm.xlu2 %7554, %v3234_v51   ;;  %v3238_v14 = vsub.f32 1.0, %v3237_v57  ;;  %vm3256_vm7 = vweird.f32 %v3159_v19  ;;  %v3508_v57 = vpop.xlane.xlu2 %3507 }
 0x7e0   : > { %v3263_v30 = vor.u32 1.1754944e-38, %v3262_v3  ;;  %vm3261_vm9 = vcmp.eq.f32.partialorder %v3260_v34, 8.507059e+37  ;;  %v3526_v51 = vmul.f32 %v3508_v57, %v8402_v54 }
 0x7e1   : > { %v3239_v60 = vmul.f32 %v7786_v2, %v3238_v14  ;;  %v3514_v14 = vpop.xlane.xlu1 %3513 }
 0x7e2   : > { %v3528_v35 = vmul.f32 %v3514_v14, %v8402_v54 }
 0x7e3   : > { %v7788_v5 = vpop.eup %7787  ;;  %v3240_v43 = vadd.f32 %v7786_v2, %v3239_v60  ;;  %v9431_v60 = vsub.f32 %v9377_v59, %v3526_v51 }
 0x7e4   : > { %v7790_v24 = vpop.eup %7789  ;;  %v3160_v41 = vadd.f32 1.0, %v7788_v5  ;;  %v9434_v61 = vsub.f32 %v9391_v63, %v3528_v35  ;;  %v9437_v5 = vld [vmem:[%s8337_s17 + $0x38] sm:$0xff] }
 0x7e5   : > { %v3244_v50 = vsel %vm3243_vm4, %v7786_v2, %v3240_v43  ;;  %v3252_v13 = vmul.f32 %v7790_v24, %v3159_v19  ;;  %vm3257_vm6 = vweird.f32 %v7790_v24  ;;  %v3521_v43 = vsel %vm1573_vm0, %v9437_v5, 0.0 }
 0x7e6   : > { %7791 = vrcp.f32 %v3160_v41  ;;  %v3249_v53 = vsel %vm3246_vm5, %v3248_v42, %v3244_v50  ;;  %vm3258_vm8 = vmor %vm3256_vm7, %vm3257_vm6  ;;  %v3277_v62 = vand.u32 2147483648, %v3160_v41  ;;  %v3275_v56 = vand.u32 2147483647, %v3160_v41 }
 0x7e7   : > { %3308 = vperm.xlu1 %7553, %v3249_v53   ;;  %v3253_v58 = vsub.f32 1.0, %v3252_v13  ;;  %vm3271_vm11 = vweird.f32 %v3160_v41  ;;  %v3542_v42 = vmul.f32 %v9431_v60, %v9431_v60  ;;  %v3544_v59 = vmul.f32 %v9434_v61, %v9434_v61  ;;  %v3511_v53 = vpop.xlane.xlu0 %3510 }
 0x7e8   : > { %v3278_v33 = vor.u32 1.1754944e-38, %v3277_v62  ;;  %vm3276_vm13 = vcmp.eq.f32.partialorder %v3275_v56, 8.507059e+37  ;;  %v3527_v3 = vmul.f32 %v3511_v53, %v8402_v54 }
 0x7e9   : > { %v3254_v31 = vmul.f32 %v7790_v24, %v3253_v58  ;;  %v3554_v63 = vsel %vm1573_vm0, %v3542_v42, 0.0  ;;  %v3560_v13 = vsel %vm1573_vm0, %v3544_v59, 0.0  ;;  %v8084_v59 = vmov 64.0  }
 0x7ea   : > { %v9456_v34 = vsub.f32 %v9424_v18, %v3527_v3 }
 0x7eb   : > { %v3255_v20 = vadd.f32 %v7790_v24, %v3254_v31 }
 0x7ec   : > { %v7792_v28 = vpop.eup %7791 }
 0x7ed   : > { %v3259_v48 = vsel %vm3258_vm8, %v7790_v24, %v3255_v20  ;;  %v3267_v21 = vmul.f32 %v7792_v28, %v3160_v41  ;;  %vm3272_vm10 = vweird.f32 %v7792_v28  ;;  %v3517_v24 = vpop.xlane.xlu2 %3516  ;;  %v9459_v20 = vld [vmem:[%s8337_s17 + $0x30] sm:$0xff]  ;;  %s11019_s17 = sld [smem:[#allocation17_spill]] }
 0x7ee   : > { %v3264_v25 = vsel %vm3261_vm9, %v3263_v30, %v3259_v48  ;;  %vm3273_vm12 = vmor %vm3271_vm11, %vm3272_vm10  ;;  %v3529_v41 = vmul.f32 %v3517_v24, %v8402_v54  ;;  %v3550_v48 = vpop.xlane.xlu1 %3549  ;;  %v7389_v24 = vld [vmem:[%s11018_s7 + $0x8] sm:$0xff] }
 0x7ef   : > { %3313 = vperm.xlu2 %7554, %v3264_v25   ;;  %v3268_v47 = vsub.f32 1.0, %v3267_v21  ;;  %v3572_v56 = vmul.f32 %v3550_v48, %v8402_v54  ;;  %3384 = vmatpush.bf16.msra.mxu3 %v7389_v24 }
 0x7f0   : > { %v9447_v50 = vsub.f32 %v9386_v6, %v3529_v41  ;;  %v3518_v6 = vsel %vm1573_vm0, %v9459_v20, 0.0  ;;  %3425 = vmatpush.bf16.msrb.mxu1 %v7389_v24 }
 0x7f1   : > { %v3269_v23 = vmul.f32 %v7792_v28, %v3268_v47 }
 0x7f2   : > { %v3545_v58 = vmul.f32 %v9447_v50, %v9447_v50 }
 0x7f3   : > { %v3270_v2 = vadd.f32 %v7792_v28, %v3269_v23  ;;  %v7390_v40 = vld [vmem:[%s11019_s17] sm:$0xff] }
 0x7f4   : > { %v3563_v31 = vsel %vm1573_vm0, %v3545_v58, 0.0 }
 0x7f5   : > { %v3274_v11 = vsel %vm3273_vm12, %v7792_v28, %v3270_v2  ;;  %v3543_v28 = vmul.f32 %v9456_v34, %v9456_v34  ;;  %v3553_v21 = vpop.xlane.xlu2 %3552 }
 0x7f6   : > { %v3279_v19 = vsel %vm3276_vm13, %v3278_v33, %v3274_v11  ;;  %v3573_v33 = vmul.f32 %v3553_v21, %v8402_v54  ;;  %v7391_v21 = vld [vmem:[%s11019_s17 + $0x8] sm:$0xff] }
 0x7f7   : > { %3318 = vperm.xlu0 %7552, %v3279_v19   ;;  %v3557_v30 = vsel %vm1573_vm0, %v3543_v28, 0.0  ;;  %v9476_v19 = vadd.f32 1e-06, %v3572_v56 }
 0x7f8   : > { %v9486_v35 = vadd.f32 1e-06, %v3573_v33 }
 0x7f9   : > { %7793 = vrsqrt.f32 %v9476_v19  ;;  %vm3594_vm1 = vweird.f32 %v9476_v19 }
 0x7fa   : > { %7795 = vrcp.f32 %v8084_v59  ;;  %vm3604_vm4 = vweird.f32 %v9486_v35 }
 0x7fb   : > { %7797 = vrsqrt.f32 %v9486_v35 }
 0x7ff   : > { %v9502_v3 = vpop.eup %7793 }
 0x800   : > { %v7796_v28 = vpop.eup %7795  ;;  %vm3595_vm2 = vweird.f32 %v9502_v3 }
 0x801   : > { %v9508_v48 = vpop.eup %7797  ;;  %vm3355_vm15 = vweird.f32 %v7796_v28  ;;  %vm3596_vm6 = vmor %vm3594_vm1, %vm3595_vm2 }
 0x802   : > { %vm3605_vm5 = vweird.f32 %v9508_v48 }
 0x803   : > { %vm3606_vm7 = vmor %vm3604_vm4, %vm3605_vm5 }
 0x811   : > { %3522 = vadd.xlane.f32.xlu1 %v3521_v43 }
 0x818   : > { %3555 = vadd.xlane.f32.xlu2 %v3554_v63 }
 0x819   : > { %3561 = vadd.xlane.f32.xlu1 %v3560_v13 }
 0x820   : > { %3564 = vadd.xlane.f32.xlu2 %v3563_v31 }
 0x821   : > { %3519 = vadd.xlane.f32.xlu0 %v3518_v6 }
 0x829   : > { %3558 = vadd.xlane.f32.xlu0 %v3557_v30  ;;  %v3294_v47 = vpop.permute.xlu2 %3293 }
 0x82a   : > { %v9479_v57 = vmul.f32 %v3294_v47, %v9297_v8  ;;  %v3351_v47 = vmul.f32 64.0, %v7796_v28 }
 0x82c   : > { %v3332_v41 = vsel %vm1573_vm0, %v9479_v57, 0.0 }
 0x831   : > { %v3284_v18 = vpop.permute.xlu0 %3283 }
 0x832   : > { %v9471_v2 = vmul.f32 %v3284_v18, %v9289_v26  ;;  %v3589_v18 = vmul.f32 %v9502_v3, %v9476_v19 }
 0x839   : > { %v3289_v25 = vpop.permute.xlu1 %3288  ;;  %v3304_v26 = vpop.permute.xlu2 %3303 }
 0x83a   : > { %v9467_v62 = vmul.f32 %v3289_v25, %v9323_v52  ;;  %v3329_v52 = vsel %vm1573_vm0, %v9471_v2, 0.0  ;;  %v9497_v63 = vmul.f32 %v3304_v26, %v9319_v22  ;;  %v3396_v26 = vsel %vm1573_vm0, %v9479_v57, -inf }
 0x83c   : > { %v3330_v11 = vsel %vm1573_vm0, %v9467_v62, 0.0  ;;  %v3336_v31 = vsel %vm1573_vm0, %v9497_v63, 0.0  ;;  %v3395_v56 = vsel %vm1573_vm0, %v9467_v62, -inf }
 0x83d   : > { %v3331_v14 = vadd.f32 %v3330_v11, %v3329_v52 }
 0x83f   : > { %v3333_v42 = vadd.f32 %v3332_v41, %v3331_v14 }
 0x849   : > { %v3299_v23 = vpop.permute.xlu1 %3298  ;;  %v3314_v58 = vpop.permute.xlu2 %3313 }
 0x84a   : > { %v9484_v51 = vmul.f32 %v3299_v23, %v9313_v4  ;;  %v7388_v4 = vld [vmem:[%s11018_s7] sm:$0xff]  ;;  %v9511_v22 = vmul.f32 %v3314_v58, %v9350_v46  ;;  %v3599_v23 = vmul.f32 %v9508_v48, %v9486_v35  ;;  %v3398_v46 = vsel %vm1573_vm0, %v9497_v63, -inf }
 0x84b   : > { %3385 = vmatpush.bf16.msra.mxu3 %v7388_v4  ;;  %3426 = vmatpush.bf16.msrb.mxu1 %v7388_v4 }
 0x84c   : > { %v3334_v8 = vsel %vm1573_vm0, %v9484_v51, 0.0  ;;  %v3340_v11 = vsel %vm1573_vm0, %v9511_v22, 0.0  ;;  %v3402_v52 = vsel %vm1573_vm0, %v9511_v22, -inf }
 0x84d   : > { %v3335_v53 = vadd.f32 %v3334_v8, %v3333_v42  ;;  %v3397_v8 = vsel %vm1573_vm0, %v9484_v51, -inf  ;;  %v3352_v42 = vsub.f32 1.0, %v3351_v47 }
 0x84f   : > { %v3337_v30 = vadd.f32 %v3336_v31, %v3335_v53  ;;  %3732 = vmatpush.bf16.msra.mxu1 %v7391_v21  ;;  %v3403_v53 = vmax.f32 %v3396_v26, %v3402_v52 }
 0x853   : > { %3733 = vmatpush.bf16.msra.mxu1 %v7390_v40 }
 0x859   : > { %v3309_v43 = vpop.permute.xlu1 %3308 }
 0x85a   : > { %v9500_v13 = vmul.f32 %v3309_v43, %v9336_v7  ;;  %v3394_v43 = vsel %vm1573_vm0, %v9471_v2, -inf }
 0x85b   : > { %v3399_v4 = vmax.f32 %v3394_v43, %v3398_v46 }
 0x85c   : > { %v3338_v6 = vsel %vm1573_vm0, %v9500_v13, 0.0  ;;  %v3400_v25 = vsel %vm1573_vm0, %v9500_v13, -inf }
 0x85d   : > { %v3339_v7 = vadd.f32 %v3338_v6, %v3337_v30  ;;  %v3401_v24 = vmax.f32 %v3395_v56, %v3400_v25  ;;  %v3600_v25 = vmul.f32 %v9508_v48, %v3599_v23  ;;  %v3353_v56 = vmul.f32 %v7796_v28, %v3352_v42 }
 0x85f   : > { %v3341_v41 = vadd.f32 %v3340_v11, %v3339_v7  ;;  %v3406_v6 = vmax.f32 %v3399_v4, %v3401_v24  ;;  %v3590_v7 = vmul.f32 %v9502_v3, %v3589_v18  ;;  %v3601_v29 = vmul.f32 0.5, %v3600_v25 }
 0x860   : > { %v3354_v17 = vadd.f32 %v7796_v28, %v3353_v56 }
 0x861   : > { %v3591_v55 = vmul.f32 0.5, %v3590_v7 }
 0x862   : > { %v9544_v18 = vsel %vm3355_vm15, %v7796_v28, %v3354_v17  ;;  %v3499_v28 = vld [vmem:[%s11020_s10] sm:$0x3]  ;;  %s11021_s10 = sld [smem:[#allocation15_spill]] }
 0x863   : > { %v3592_v24 = vsub.f32 1.5, %v3591_v55 }
 0x865   : > { %v3593_v42 = vmul.f32 %v9502_v3, %v3592_v24 }
 0x869   : > { %v3319_v33 = vpop.permute.xlu0 %3318 }
 0x86a   : > { %v9529_v14 = vmul.f32 %v3319_v33, %v9340_v12 }
 0x86c   : > { %v3342_v59 = vsel %vm1573_vm0, %v9529_v14, 0.0  ;;  %v3404_v12 = vsel %vm1573_vm0, %v9529_v14, -inf }
 0x86d   : > { %v3343_v58 = vadd.f32 %v3342_v59, %v3341_v41  ;;  %v3405_v31 = vmax.f32 %v3397_v8, %v3404_v12  ;;  %v3602_v41 = vsub.f32 1.5, %v3601_v29  ;;  %v3597_v59 = vsel %vm3596_vm6, %v9502_v3, %v3593_v42 }
 0x86e   : > { %v9558_v12 = vperm.slane %v3499_v28, 0  ;;  %v3668_v4 = vmul.f32 %v3597_v59, %v9401_v1 }
 0x86f   : > { %v3344_v30 = vrot.slane %v3343_v58, 4  ;;  %v3407_v21 = vmax.f32 %v3403_v53, %v3405_v31  ;;  %v3603_v17 = vmul.f32 %v9508_v48, %v3602_v41 }
 0x871   : > { %v3345_v47 = vadd.f32 %v3344_v30, %v3343_v58  ;;  %v3408_v33 = vmax.f32 %v3406_v6, %v3407_v21  ;;  %v3607_v35 = vsel %vm3606_vm7, %v9508_v48, %v3603_v17  ;;  %v9563_v6 = vperm.slane %v3499_v28, 1 }
 0x872   : > { %v3669_v53 = vmul.f32 %v3607_v35, %v9398_v36  ;;  %v3677_v30 = vmul.f32 %v9558_v12, %v3668_v4  ;;  %vm3438_vm7 = vcmask 1040384  }
 0x873   : > { %v3346_v11 = vrot.slane %v3345_v47, 2  ;;  %v3409_v32 = vrot.slane %v3408_v33, 4 }
 0x874   : > { %v3678_v21 = vmul.f32 %v9558_v12, %v3669_v53  ;;  %v9573_v7 = vadd.f32 %v9563_v6, %v3677_v30 }
 0x875   : > { %v3347_v46 = vadd.f32 %v3346_v11, %v3345_v47  ;;  %v3410_v52 = vmax.f32 %v3408_v33, %v3409_v32 }
 0x876   : > { %v9576_v36 = vadd.f32 %v9563_v6, %v3678_v21 }
 0x877   : > { %v3348_v26 = vrot.slane %v3347_v46, 1  ;;  %v3411_v43 = vrot.slane %v3410_v52, 2 }
 0x879   : > { %v3349_v23 = vadd.f32 %v3348_v26, %v3347_v46  ;;  %v3412_v8 = vmax.f32 %v3410_v52, %v3411_v43 }
 0x87b   : > { %v3357_v32 = vmul.f32 %v9544_v18, %v3349_v23  ;;  %v3413_v40 = vrot.slane %v3412_v8, 1 }
 0x87d   : > { %v3358_v29 = vpack.c.bf16 %v3357_v32, %v3357_v32  ;;  %v3414_v55 = vmax.f32 %v3412_v8, %v3413_v40 }
 0x87f   : > { %7029 = vmatmul.msk.bf16.vlgmr.msra.gmra.mxu3 %vm1573_vm0, %v3358_v29  ;;  %v3415_v19 = vpack.c.bf16 %v3414_v55, %v3414_v55 }
 0x881   : > { %7030 = vmatmul.msk.bf16.vlgmr.msrb.gmra.mxu1 %vm1573_vm0, %v3415_v19 }
 0x884   : > { %v3523_v58 = vpop.xlane.xlu1 %3522 }
 0x885   : > { %v3531_v31 = vmul.f32 %v3523_v58, %v8402_v54 }
 0x887   : > { %v9568_v3 = vsub.f32 %v9437_v5, %v3531_v31  ;;  %v3694_v5 = vpack.c.bf16 %v9576_v36, %v9573_v7 }
 0x889   : > { %v3547_v48 = vmul.f32 %v9568_v3, %v9568_v3 }
 0x88b   : > { %v3556_v1 = vpop.xlane.xlu2 %3555  ;;  %v3569_v25 = vsel %vm1573_vm0, %v3547_v48, 0.0 }
 0x88c   : > { %v3574_v56 = vmul.f32 %v3556_v1, %v8402_v54  ;;  %3570 = vadd.xlane.f32.xlu1 %v3569_v25  ;;  %v3562_v33 = vpop.xlane.xlu1 %3561 }
 0x88d   : > { %v3576_v24 = vmul.f32 %v3562_v33, %v8402_v54 }
 0x88e   : > { %v3582_v47 = vadd.f32 1e-06, %v3574_v56 }
 0x88f   : > { %v3584_v40 = vadd.f32 1e-06, %v3576_v24 }
 0x890   : > { %7799 = vrsqrt.f32 %v3582_v47  ;;  %vm3614_vm8 = vweird.f32 %v3582_v47 }
 0x891   : > { %7042 = vmatmul.msk.bf16.vlgmr.msra.gmra.mxu1 %vm1573_vm0, %v3694_v5  ;;  %vm3634_vm2 = vweird.f32 %v3584_v40 }
 0x893   : > { %v3565_v11 = vpop.xlane.xlu2 %3564 }
 0x894   : > { %v3520_v46 = vpop.xlane.xlu0 %3519  ;;  %v3577_v52 = vmul.f32 %v3565_v11, %v8402_v54 }
 0x895   : > { %v3530_v26 = vmul.f32 %v3520_v46, %v8402_v54 }
 0x896   : > { %v7800_v43 = vpop.eup %7799  ;;  %v3585_v8 = vadd.f32 1e-06, %v3577_v52 }
 0x897   : > { %v9587_v41 = vsub.f32 %v9459_v20, %v3530_v26  ;;  %v3609_v23 = vmul.f32 %v7800_v43, %v3582_v47  ;;  %vm3615_vm9 = vweird.f32 %v7800_v43 }
 0x898   : > { %7801 = vrsqrt.f32 %v3585_v8  ;;  %vm3616_vm10 = vmor %vm3614_vm8, %vm3615_vm9  ;;  %vm3644_vm15 = vweird.f32 %v3585_v8  ;;  %vm3434_vm8 = vcmask 15360  }
 0x899   : > { %v3546_v32 = vmul.f32 %v9587_v41, %v9587_v41  ;;  %v3610_v17 = vmul.f32 %v7800_v43, %v3609_v23  ;;  %7803 = vrsqrt.f32 %v3584_v40 }
 0x89b   : > { %v3566_v42 = vsel %vm1573_vm0, %v3546_v32, 0.0  ;;  %v3611_v28 = vmul.f32 0.5, %v3610_v17 }
 0x89c   : > { %3567 = vadd.xlane.f32.xlu0 %v3566_v42  ;;  %v3559_v29 = vpop.xlane.xlu0 %3558 }
 0x89d   : > { %v3575_v55 = vmul.f32 %v3559_v29, %v8402_v54  ;;  %v3612_v35 = vsub.f32 1.5, %v3611_v28 }
 0x89e   : > { %v7802_v20 = vpop.eup %7801 }
 0x89f   : > { %v3583_v19 = vadd.f32 1e-06, %v3575_v55  ;;  %v7804_v59 = vpop.eup %7803  ;;  %v3639_v4 = vmul.f32 %v7802_v20, %v3585_v8  ;;  %v3613_v31 = vmul.f32 %v7800_v43, %v3612_v35  ;;  %vm3645_vm1 = vweird.f32 %v7802_v20 }
 0x8a0   : > { %v3629_v58 = vmul.f32 %v7804_v59, %v3584_v40  ;;  %vm3635_vm4 = vweird.f32 %v7804_v59  ;;  %vm3646_vm5 = vmor %vm3644_vm15, %vm3645_vm1 }
 0x8a1   : > { %7805 = vrsqrt.f32 %v3583_v19  ;;  %v3640_v21 = vmul.f32 %v7802_v20, %v3639_v4  ;;  %v3617_v25 = vsel %vm3616_vm10, %v7800_v43, %v3613_v31  ;;  %vm3624_vm11 = vweird.f32 %v3583_v19  ;;  %vm3636_vm6 = vmor %vm3634_vm2, %vm3635_vm4  ;;  %v7975_v31 = vld [vmem:[%s10988_s4 + $0x28] sm:$0xff] }
 0x8a2   : > { %v3630_v1 = vmul.f32 %v7804_v59, %v3629_v58  ;;  %v3670_v11 = vmul.f32 %v3617_v25, %v9431_v60  ;;  %v7974_v58 = vld [vmem:[%s10988_s4 + $0x30] sm:$0xff]  ;;  %v7980_v25 = vld [vmem:[%s10988_s4] sm:$0xff] }
 0x8a3   : > { %v3641_v5 = vmul.f32 0.5, %v3640_v21  ;;  %v7977_v21 = vld [vmem:[%s10988_s4 + $0x18] sm:$0xff] }
 0x8a4   : > { %v3631_v47 = vmul.f32 0.5, %v3630_v1  ;;  %v3679_v23 = vmul.f32 %v9558_v12, %v3670_v11  ;;  %v7979_v1 = vld [vmem:[%s10988_s4 + $0x8] sm:$0xff] }
 0x8a5   : > { %v3642_v52 = vsub.f32 1.5, %v3641_v5 }
 0x8a6   : > { %v3632_v32 = vsub.f32 1.5, %v3631_v47  ;;  %v9598_v60 = vadd.f32 %v9563_v6, %v3679_v23 }
 0x8a7   : > { %v7806_v53 = vpop.eup %7805  ;;  %v3643_v42 = vmul.f32 %v7802_v20, %v3642_v52 }
 0x8a8   : > { %v3619_v30 = vmul.f32 %v7806_v53, %v3583_v19  ;;  %vm3625_vm12 = vweird.f32 %v7806_v53  ;;  %v3633_v29 = vmul.f32 %v7804_v59, %v3632_v32 }
 0x8a9   : > { %vm3626_vm13 = vmor %vm3624_vm11, %vm3625_vm12  ;;  %v3647_v8 = vsel %vm3646_vm5, %v7802_v20, %v3643_v42 }
 0x8aa   : > { %v3620_v48 = vmul.f32 %v7806_v53, %v3619_v30  ;;  %v3637_v40 = vsel %vm3636_vm6, %v7804_v59, %v3633_v29  ;;  %v3673_v55 = vmul.f32 %v3647_v8, %v9447_v50  ;;  %v7976_v30 = vld [vmem:[%s10988_s4 + $0x20] sm:$0xff] }
 0x8ab   : > { %v3672_v19 = vmul.f32 %v3637_v40, %v9434_v61  ;;  %v3393_v61 = vld [vmem:[%s11021_s10] sm:$0x1]  ;;  %s11022_s10 = sld [smem:[#allocation18_spill]] }
 0x8ac   : > { %v3621_v56 = vmul.f32 0.5, %v3620_v48  ;;  %v3682_v28 = vmul.f32 %v9558_v12, %v3673_v55  ;;  %v3440_v50 = vsel %vm3438_vm7, %v3393_v61, 0  ;;  %v7978_v48 = vld [vmem:[%s10988_s4 + $0x10] sm:$0xff] }
 0x8ad   : > { %v3681_v35 = vmul.f32 %v9558_v12, %v3672_v19  ;;  %3449 = vmatpush.bf16.msrb.mxu2 %v3440_v50  ;;  %3465 = vmatpush.bf16.msrb.mxu3 %v3440_v50 }
 0x8ae   : > { %v3622_v33 = vsub.f32 1.5, %v3621_v56  ;;  %v9611_v4 = vadd.f32 %v9563_v6, %v3682_v28 }
 0x8af   : > { %v9614_v20 = vadd.f32 %v9563_v6, %v3681_v35 }
 0x8b0   : > { %v3623_v46 = vmul.f32 %v7806_v53, %v3622_v33 }
 0x8b1   : > { %v3696_v59 = vpack.c.bf16 %v9611_v4, %v9614_v20 }
 0x8b2   : > { %v3627_v26 = vsel %vm3626_vm13, %v7806_v53, %v3623_v46  ;;  %v7973_v53 = vld [vmem:[%s10988_s4 + $0x38] sm:$0xff]  ;;  %s11036_s4 = smov 64  }
 0x8b3   : > { %v3671_v24 = vmul.f32 %v3627_v26, %v9456_v34  ;;  %3875 = vmatpush.msra.mxu2 %v7973_v53 }
 0x8b5   : > { %v3680_v43 = vmul.f32 %v9558_v12, %v3671_v24  ;;  %3876 = vmatpush.msra.mxu2 %v7974_v58 }
 0x8b7   : > { %v9601_v17 = vadd.f32 %v9563_v6, %v3680_v43  ;;  %3877 = vmatpush.msra.mxu2 %v7975_v31 }
 0x8b9   : > { %v3695_v34 = vpack.c.bf16 %v9601_v17, %v9598_v60  ;;  %3878 = vmatpush.msra.mxu2 %v7976_v30 }
 0x8bb   : > { %7043 = vmatmul.msk.bf16.gmra.mxu1 %vm1573_vm0, %v3695_v34  ;;  %3879 = vmatpush.msra.mxu2 %v7977_v21 }
 0x8bd   : > { %3880 = vmatpush.msra.mxu2 %v7978_v48 }
 0x8bf   : > { %3881 = vmatpush.msra.mxu2 %v7979_v1 }
 0x8c1   : > { %3882 = vmatpush.msra.mxu2 %v7980_v25 }
 0x8cb   : > { %7044 = vmatmul.msk.bf16.gmra.mxu1 %vm1573_vm0, %v3696_v59 }
 0x8fe   : > { %v3428_v56 = vpop.f32.mrf.mxu1 }
 0x8ff   : > { %v3432_v5 = vmax.f32 %v3428_v56, 0.0  ;;  %v3571_v33 = vpop.xlane.xlu1 %3570 }
 0x900   : > { %v3579_v11 = vmul.f32 %v3571_v33, %v8402_v54 }
 0x901   : > { %v3433_v47 = vpack.c.bf16 %v3432_v5, %v3432_v5 }
 0x902   : > { %v3587_v46 = vadd.f32 1e-06, %v3579_v11  ;;  %v3387_v52 = vpop.f32.mrf.mxu3 }
 0x903   : > { %v3391_v26 = vmax.f32 %v3387_v52, 0.0  ;;  %7031 = vmatmul.msk.bf16.vlgmr.msrb.gmra.mxu2 %vm3434_vm8, %v3433_v47 }
 0x904   : > { %7807 = vrsqrt.f32 %v3587_v46  ;;  %vm3664_vm9 = vweird.f32 %v3587_v46 }
 0x905   : > { %v3392_v24 = vpack.c.bf16 %v3391_v26, %v3391_v26 }
 0x906   : > { %v3430_v23 = vpop.f32.mrf.mxu1 }
 0x907   : > { %7032 = vmatmul.msk.bf16.vlgmr.msrb.gmra.mxu3 %vm3434_vm8, %v3392_v24 }
 0x90a   : > { %v7808_v32 = vpop.eup %7807  ;;  %v3389_v43 = vpop.f32.mrf.mxu3 }
 0x90b   : > { %v3659_v42 = vmul.f32 %v7808_v32, %v3587_v46  ;;  %vm3665_vm10 = vweird.f32 %v7808_v32 }
 0x90c   : > { %vm3666_vm11 = vmor %vm3664_vm9, %vm3665_vm10 }
 0x90d   : > { %v3660_v29 = vmul.f32 %v7808_v32, %v3659_v42 }
 0x90f   : > { %v3568_v34 = vpop.xlane.xlu0 %3567  ;;  %v3661_v55 = vmul.f32 0.5, %v3660_v29 }
 0x910   : > { %v3578_v8 = vmul.f32 %v3568_v34, %v8402_v54 }
 0x911   : > { %v3662_v19 = vsub.f32 1.5, %v3661_v55 }
 0x912   : > { %v3586_v40 = vadd.f32 1e-06, %v3578_v8 }
 0x913   : > { %v3663_v35 = vmul.f32 %v7808_v32, %v3662_v19 }
 0x914   : > { %7809 = vrsqrt.f32 %v3586_v40  ;;  %vm3654_vm13 = vweird.f32 %v3586_v40 }
 0x915   : > { %v3667_v50 = vsel %vm3666_vm11, %v7808_v32, %v3663_v35 }
 0x916   : > { %v3675_v31 = vmul.f32 %v3667_v50, %v9568_v3  ;;  %v3735_v3 = vpop.f32.mrf.mxu1 }
 0x918   : > { %v3684_v1 = vmul.f32 %v9558_v12, %v3675_v31 }
 0x91a   : > { %v7810_v28 = vpop.eup %7809  ;;  %v9641_v5 = vadd.f32 %v9563_v6, %v3684_v1 }
 0x91b   : > { %v3649_v59 = vmul.f32 %v7810_v28, %v3586_v40  ;;  %vm3655_vm12 = vweird.f32 %v7810_v28 }
 0x91c   : > { %vm3656_vm15 = vmor %vm3654_vm13, %vm3655_vm12 }
 0x91d   : > { %v3650_v61 = vmul.f32 %v7810_v28, %v3649_v59 }
 0x91e   : > { %v3737_v11 = vpop.f32.mrf.mxu1 }
 0x91f   : > { %v3651_v53 = vmul.f32 0.5, %v3650_v61  ;;  %v3756_v34 = vsel %vm1618_vm3, %v3737_v11, -inf }
 0x921   : > { %v3652_v58 = vsub.f32 1.5, %v3651_v53 }
 0x923   : > { %v3653_v30 = vmul.f32 %v7810_v28, %v3652_v58 }
 0x925   : > { %v3657_v21 = vsel %vm3656_vm15, %v7810_v28, %v3653_v30  ;;  %v3755_v28 = vsel %vm1618_vm3, %v3735_v3, -inf }
 0x926   : > { %v3674_v48 = vmul.f32 %v3657_v21, %v9587_v41 }
 0x928   : > { %v3683_v25 = vmul.f32 %v9558_v12, %v3674_v48 }
 0x92a   : > { %v9638_v56 = vadd.f32 %v9563_v6, %v3683_v25 }
 0x92c   : > { %v3697_v33 = vpack.c.bf16 %v9641_v5, %v9638_v56 }
 0x92e   : > { %7045 = vmatmul.msk.bf16.gmra.mxu1 %vm1573_vm0, %v3697_v33 }
 0x938   : > { %v3740_v47 = vpop.f32.mrf.mxu1 }
 0x939   : > { %v3757_v35 = vsel %vm1618_vm3, %v3740_v47, -inf }
 0x940   : > { %v3742_v24 = vpop.f32.mrf.mxu1 }
 0x941   : > { %v3758_v59 = vsel %vm1618_vm3, %v3742_v24, -inf }
 0x948   : > { %v3745_v32 = vpop.f32.mrf.mxu1 }
 0x949   : > { %v3759_v8 = vsel %vm1618_vm3, %v3745_v32, -inf }
 0x94a   : > { %v3760_v50 = vmax.f32 %v3755_v28, %v3759_v8 }
 0x950   : > { %v3747_v43 = vpop.f32.mrf.mxu1 }
 0x951   : > { %v3761_v29 = vsel %vm1618_vm3, %v3747_v43, -inf }
 0x952   : > { %v3762_v55 = vmax.f32 %v3756_v34, %v3761_v29 }
 0x954   : > { %v3767_v31 = vmax.f32 %v3760_v50, %v3762_v55 }
 0x986   : > { %v3451_v46 = vpop.f32.mrf.mxu2 }
 0x98a   : > { %v3467_v41 = vpop.f32.mrf.mxu3 }
 0x98b   : > { %v9646_v52 = vadd.f32 %v3467_v41, %v3451_v46 }
 0x98e   : > { %v3453_v26 = vpop.f32.mrf.mxu2 }
 0x992   : > { %v3469_v23 = vpop.f32.mrf.mxu3 }
 0x9ab   : > { %v3750_v42 = vpop.f32.mrf.mxu1 }
 0x9ac   : > { %v3763_v40 = vsel %vm1618_vm3, %v3750_v42, -inf }
 0x9ad   : > { %v3764_v53 = vmax.f32 %v3757_v35, %v3763_v40 }
 0x9b3   : > { %v3752_v19 = vpop.f32.mrf.mxu1 }
 0x9b4   : > { %v3765_v61 = vsel %vm1618_vm3, %v3752_v19, -inf }
 0x9b5   : > { %v3766_v58 = vmax.f32 %v3758_v59, %v3765_v61 }
 0x9b7   : > { %v3768_v30 = vmax.f32 %v3764_v53, %v3766_v58 }
 0x9b9   : > { %v3769_v21 = vmax.f32 %v3767_v31, %v3768_v30 }
 0x9bb   : > { %v3770_v48 = vrot.slane %v3769_v21, 4 }
 0x9bd   : > { %v3771_v1 = vmax.f32 %v3769_v21, %v3770_v48 }
 0x9bf   : > { %v3772_v25 = vrot.slane %v3771_v1, 2 }
 0x9c1   : > { %v3773_v33 = vmax.f32 %v3771_v1, %v3772_v25 }
 0x9c3   : > { %v3774_v46 = vrot.slane %v3773_v33, 1 }
 0x9c5   : > { %v3775_v41 = vmax.f32 %v3773_v33, %v3774_v46 }
 0x9c7   : > { %v3776_v26 = vsub.f32 %v3735_v3, %v3775_v41  ;;  %v3777_v23 = vsub.f32 %v3737_v11, %v3775_v41  ;;  %v3778_v29 = vsub.f32 %v3740_v47, %v3775_v41  ;;  %v3779_v34 = vsub.f32 %v3742_v24, %v3775_v41 }
 0x9c8   : > { %v3780_v44 = vsub.f32 %v3745_v32, %v3775_v41  ;;  %v3781_v8 = vsub.f32 %v3747_v43, %v3775_v41  ;;  %v3782_v55 = vsub.f32 %v3750_v42, %v3775_v41  ;;  %v3783_v35 = vsub.f32 %v3752_v19, %v3775_v41 }
 0x9c9   : > { %v3784_v45 = vmul.f32 1.442695, %v3776_v26  ;;  %v3786_v9 = vmul.f32 1.442695, %v3777_v23  ;;  %v3788_v39 = vmul.f32 1.442695, %v3778_v29 }
 0x9ca   : > { %v3790_v40 = vmul.f32 1.442695, %v3779_v34  ;;  %v3792_v28 = vmul.f32 1.442695, %v3780_v44  ;;  %v3794_v59 = vmul.f32 1.442695, %v3781_v8 }
 0x9cb   : > { %7811 = vpow2.f32 %v3784_v45  ;;  %v3796_v61 = vmul.f32 1.442695, %v3782_v55  ;;  %v3798_v47 = vmul.f32 1.442695, %v3783_v35 }
 0x9cc   : > { %7813 = vpow2.f32 %v3786_v9 }
 0x9cd   : > { %7815 = vpow2.f32 %v3788_v39 }
 0x9ce   : > { %7817 = vpow2.f32 %v3790_v40 }
 0x9cf   : > { %7819 = vpow2.f32 %v3792_v28 }
 0x9d0   : > { %7821 = vpow2.f32 %v3794_v59 }
 0x9d1   : > { %v7812_v3 = vpop.eup %7811  ;;  %7823 = vpow2.f32 %v3796_v61 }
 0x9d2   : > { %v7814_v11 = vpop.eup %7813  ;;  %v3800_v24 = vsel %vm1618_vm3, %v7812_v3, 0.0  ;;  %7825 = vpow2.f32 %v3798_v47 }
 0x9d3   : > { %v7816_v32 = vpop.eup %7815  ;;  %v3801_v43 = vsel %vm1618_vm3, %v7814_v11, 0.0 }
 0x9d4   : > { %v7818_v50 = vpop.eup %7817  ;;  %v3802_v45 = vadd.f32 %v3801_v43, %v3800_v24  ;;  %v3803_v9 = vsel %vm1618_vm3, %v7816_v32, 0.0 }
 0x9d5   : > { %v7820_v44 = vpop.eup %7819  ;;  %v3805_v42 = vsel %vm1618_vm3, %v7818_v50, 0.0 }
 0x9d6   : > { %v3804_v39 = vadd.f32 %v3803_v9, %v3802_v45  ;;  %v7822_v19 = vpop.eup %7821  ;;  %v3807_v58 = vsel %vm1618_vm3, %v7820_v44, 0.0 }
 0x9d7   : > { %v7824_v31 = vpop.eup %7823  ;;  %v3809_v21 = vsel %vm1618_vm3, %v7822_v19, 0.0 }
 0x9d8   : > { %v3806_v53 = vadd.f32 %v3805_v42, %v3804_v39  ;;  %v7826_v48 = vpop.eup %7825  ;;  %v3811_v25 = vsel %vm1618_vm3, %v7824_v31, 0.0 }
 0x9d9   : > { %v3813_v46 = vsel %vm1618_vm3, %v7826_v48, 0.0 }
 0x9da   : > { %v3808_v30 = vadd.f32 %v3807_v58, %v3806_v53 }
 0x9dc   : > { %v3810_v1 = vadd.f32 %v3809_v21, %v3808_v30 }
 0x9de   : > { %v3812_v33 = vadd.f32 %v3811_v25, %v3810_v1 }
 0x9e0   : > { %v3814_v41 = vadd.f32 %v3813_v46, %v3812_v33 }
 0x9e2   : > { %v3815_v26 = vrot.slane %v3814_v41, 4 }
 0x9e4   : > { %v3816_v23 = vadd.f32 %v3815_v26, %v3814_v41 }
 0x9e6   : > { %v3817_v29 = vrot.slane %v3816_v23, 2 }
 0x9e8   : > { %v3818_v34 = vadd.f32 %v3817_v29, %v3816_v23 }
 0x9ea   : > { %v3819_v8 = vrot.slane %v3818_v34, 1 }
 0x9ec   : > { %v3820_v40 = vadd.f32 %v3819_v8, %v3818_v34 }
 0x9ee   : > { %7827 = vrcp.f32 %v3820_v40  ;;  %v3832_v59 = vand.u32 2147483648, %v3820_v40  ;;  %v3830_v47 = vand.u32 2147483647, %v3820_v40  ;;  %vm3826_vm2 = vweird.f32 %v3820_v40 }
 0x9f0   : > { %v3833_v43 = vor.u32 1.1754944e-38, %v3832_v59  ;;  %vm3831_vm5 = vcmp.eq.f32.partialorder %v3830_v47, 8.507059e+37 }
 0x9f4   : > { %v7828_v55 = vpop.eup %7827 }
 0x9f5   : > { %v3822_v28 = vmul.f32 %v7828_v55, %v3820_v40  ;;  %vm3827_vm1 = vweird.f32 %v7828_v55 }
 0x9f6   : > { %vm3828_vm4 = vmor %vm3826_vm2, %vm3827_vm1 }
 0x9f7   : > { %v3823_v35 = vsub.f32 1.0, %v3822_v28 }
 0x9f9   : > { %v3824_v61 = vmul.f32 %v7828_v55, %v3823_v35 }
 0x9fb   : > { %v3825_v24 = vadd.f32 %v7828_v55, %v3824_v61 }
 0x9fd   : > { %v3829_v45 = vsel %vm3828_vm4, %v7828_v55, %v3825_v24 }
 0x9fe   : > { %v3834_v9 = vsel %vm3831_vm5, %v3833_v43, %v3829_v45 }
 0x9ff   : > { %v9664_v39 = vmul.f32 %v7812_v3, %v3834_v9  ;;  %v9666_v42 = vmul.f32 %v7816_v32, %v3834_v9  ;;  %v9668_v53 = vmul.f32 %v7818_v50, %v3834_v9  ;;  %v9670_v58 = vmul.f32 %v7820_v44, %v3834_v9  ;;  %v7394_v32 = vld [vmem:[%s11022_s10 + $0x10] sm:$0xff]  ;;  %v7393_v50 = vld [vmem:[%s11022_s10 + $0x8] sm:$0xff] }
 0xa00   : > { %v9672_v30 = vmul.f32 %v7822_v19, %v3834_v9  ;;  %v9674_v21 = vmul.f32 %v7824_v31, %v3834_v9  ;;  %v9676_v1 = vmul.f32 %v7826_v48, %v3834_v9  ;;  %v3836_v3 = vmul.f32 %v7814_v11, %v3834_v9  ;;  %v7395_v11 = vld [vmem:[%s11022_s10 + $0x18] sm:$0xff]  ;;  %v7392_v31 = vld [vmem:[%s11022_s10] sm:$0xff] }
 0xa01   : > { %7046 = vmatmul.msk.f32.vlgmr.msra.gmra.mxu2 %vm1618_vm3, %v9664_v39  ;;  %4080 = vmatpush.bf16.msra.mxu3 %v7395_v11 }
 0xa05   : > { %4081 = vmatpush.bf16.msra.mxu3 %v7394_v32 }
 0xa09   : > { %7047 = vmatmul.msk.f32.gmra.mxu2 %vm1618_vm3, %v3836_v3  ;;  %4082 = vmatpush.bf16.msra.mxu3 %v7393_v50 }
 0xa0d   : > { %4083 = vmatpush.bf16.msra.mxu3 %v7392_v31 }
 0xa11   : > { %7048 = vmatmul.msk.f32.gmra.mxu2 %vm1618_vm3, %v9666_v42 }
 0xa19   : > { %7049 = vmatmul.msk.f32.gmra.mxu2 %vm1618_vm3, %v9668_v53 }
 0xa21   : > { %7050 = vmatmul.msk.f32.gmra.mxu2 %vm1618_vm3, %v9670_v58 }
 0xa29   : > { %7051 = vmatmul.msk.f32.gmra.mxu2 %vm1618_vm3, %v9672_v30 }
 0xa31   : > { %7052 = vmatmul.msk.f32.gmra.mxu2 %vm1618_vm3, %v9674_v21 }
 0xa39   : > { %7053 = vmatmul.msk.f32.gmra.mxu2 %vm1618_vm3, %v9676_v1 }
 0xa84   : > { %v3884_v44 = vpop.f32.mrf.mxu2 }
 0xa85   : > { %v3885_v19 = vadd.f32 1e-09, %v3884_v44 }
 0xa87   : > { %7829 = vrcp.f32 %v3885_v19  ;;  %v3919_v55 = vand.u32 2147483648, %v3885_v19  ;;  %vm3913_vm9 = vweird.f32 %v3885_v19  ;;  %v3917_v28 = vand.u32 2147483647, %v3885_v19 }
 0xa89   : > { %v3920_v43 = vor.u32 1.1754944e-38, %v3919_v55  ;;  %vm3918_vm12 = vcmp.eq.f32.partialorder %v3917_v28, 8.507059e+37 }
 0xa8c   : > { %v3887_v48 = vpop.f32.mrf.mxu2 }
 0xa8d   : > { %v7830_v25 = vpop.eup %7829  ;;  %v3888_v33 = vadd.f32 1e-09, %v3887_v48 }
 0xa8e   : > { %v3909_v46 = vmul.f32 %v7830_v25, %v3885_v19  ;;  %vm3914_vm6 = vweird.f32 %v7830_v25 }
 0xa8f   : > { %7831 = vrcp.f32 %v3888_v33  ;;  %vm3915_vm10 = vmor %vm3913_vm9, %vm3914_vm6  ;;  %v3934_v59 = vand.u32 2147483648, %v3888_v33  ;;  %v3932_v24 = vand.u32 2147483647, %v3888_v33  ;;  %vm3928_vm13 = vweird.f32 %v3888_v33 }
 0xa90   : > { %v3910_v41 = vsub.f32 1.0, %v3909_v46 }
 0xa91   : > { %v3935_v50 = vor.u32 1.1754944e-38, %v3934_v59  ;;  %vm3933_vm1 = vcmp.eq.f32.partialorder %v3932_v24, 8.507059e+37 }
 0xa92   : > { %v3911_v26 = vmul.f32 %v7830_v25, %v3910_v41 }
 0xa94   : > { %v3890_v23 = vpop.f32.mrf.mxu2  ;;  %v3912_v8 = vadd.f32 %v7830_v25, %v3911_v26 }
 0xa95   : > { %v7832_v29 = vpop.eup %7831  ;;  %v3891_v34 = vadd.f32 1e-09, %v3890_v23 }
 0xa96   : > { %v3924_v40 = vmul.f32 %v7832_v29, %v3888_v33  ;;  %v3916_v61 = vsel %vm3915_vm10, %v7830_v25, %v3912_v8  ;;  %vm3929_vm11 = vweird.f32 %v7832_v29 }
 0xa97   : > { %7833 = vrcp.f32 %v3891_v34  ;;  %v3921_v32 = vsel %vm3918_vm12, %v3920_v43, %v3916_v61  ;;  %vm3930_vm15 = vmor %vm3928_vm13, %vm3929_vm11  ;;  %vm3943_vm4 = vweird.f32 %v3891_v34  ;;  %v3947_v59 = vand.u32 2147483647, %v3891_v34 }
 0xa98   : > { %v3925_v35 = vsub.f32 1.0, %v3924_v40  ;;  %v3922_v25 = vmul.f32 %v3921_v32, %v9664_v39 }
 0xa99   : > { %vm3948_vm10 = vcmp.eq.f32.partialorder %v3947_v59, 8.507059e+37 }
 0xa9a   : > { %v3926_v47 = vmul.f32 %v7832_v29, %v3925_v35 }
 0xa9c   : > { %v3927_v45 = vadd.f32 %v7832_v29, %v3926_v47  ;;  %v3893_v9 = vpop.f32.mrf.mxu2 }
 0xa9d   : > { %v7834_v11 = vpop.eup %7833  ;;  %v3894_v44 = vadd.f32 1e-09, %v3893_v9 }
 0xa9e   : > { %v3931_v31 = vsel %vm3930_vm15, %v7832_v29, %v3927_v45  ;;  %v3939_v19 = vmul.f32 %v7834_v11, %v3891_v34  ;;  %vm3944_vm2 = vweird.f32 %v7834_v11  ;;  %v3949_v29 = vand.u32 2147483648, %v3891_v34 }
 0xa9f   : > { %v3936_v48 = vsel %vm3933_vm1, %v3935_v50, %v3931_v31  ;;  %7835 = vrcp.f32 %v3894_v44  ;;  %vm9699_vm5 = vmor %vm3943_vm4, %vm3944_vm2  ;;  %v3962_v24 = vand.u32 2147483647, %v3894_v44  ;;  %vm3958_vm9 = vweird.f32 %v3894_v44 }
 0xaa0   : > { %v3937_v46 = vmul.f32 %v3936_v48, %v3836_v3  ;;  %v3940_v41 = vsub.f32 1.0, %v3939_v19  ;;  %v3964_v3 = vand.u32 2147483648, %v3894_v44  ;;  %v3950_v43 = vor.u32 1.1754944e-38, %v3949_v29 }
 0xaa1   : > { %vm3963_vm12 = vcmp.eq.f32.partialorder %v3962_v24, 8.507059e+37 }
 0xaa2   : > { %v4028_v26 = vpack.c.bf16 %v3937_v46, %v3922_v25  ;;  %v3941_v23 = vmul.f32 %v7834_v11, %v3940_v41  ;;  %v3965_v34 = vor.u32 1.1754944e-38, %v3964_v3 }
 0xaa4   : > { %v3896_v8 = vpop.f32.mrf.mxu2  ;;  %7070 = vmatmul.msk.bf16.vlgmr.msra.gmra.mxu3 %vm1618_vm3, %v4028_v26  ;;  %v3942_v28 = vadd.f32 %v7834_v11, %v3941_v23 }
 0xaa5   : > { %v7836_v33 = vpop.eup %7835  ;;  %v3897_v40 = vadd.f32 1e-09, %v3896_v8 }
 0xaa6   : > { %v3954_v55 = vmul.f32 %v7836_v33, %v3894_v44  ;;  %vm3959_vm6 = vweird.f32 %v7836_v33  ;;  %v3946_v47 = vsel %vm9699_vm5, %v7834_v11, %v3942_v28 }
 0xaa7   : > { %7837 = vrcp.f32 %v3897_v40  ;;  %vm3960_vm11 = vmor %vm3958_vm9, %vm3959_vm6  ;;  %v3951_v19 = vsel %vm3948_vm10, %v3950_v43, %v3946_v47  ;;  %vm3973_vm15 = vweird.f32 %v3897_v40  ;;  %v3977_v59 = vand.u32 2147483647, %v3897_v40 }
 0xaa8   : > { %v3955_v35 = vsub.f32 1.0, %v3954_v55  ;;  %v3952_v41 = vmul.f32 %v3951_v19, %v9666_v42 }
 0xaa9   : > { %vm3978_vm6 = vcmp.eq.f32.partialorder %v3977_v59, 8.507059e+37 }
 0xaaa   : > { %v3956_v39 = vmul.f32 %v7836_v33, %v3955_v35 }
 0xaac   : > { %v3899_v45 = vpop.f32.mrf.mxu2  ;;  %v3957_v9 = vadd.f32 %v7836_v33, %v3956_v39 }
 0xaad   : > { %v7838_v32 = vpop.eup %7837  ;;  %v3900_v50 = vadd.f32 1e-09, %v3899_v45 }
 0xaae   : > { %v3969_v31 = vmul.f32 %v7838_v32, %v3897_v40  ;;  %v3961_v48 = vsel %vm3960_vm11, %v7836_v33, %v3957_v9  ;;  %vm3974_vm13 = vweird.f32 %v7838_v32  ;;  %v3979_v33 = vand.u32 2147483648, %v3897_v40 }
 0xaaf   : > { %7839 = vrcp.f32 %v3900_v50  ;;  %v3966_v46 = vsel %vm3963_vm12, %v3965_v34, %v3961_v48  ;;  %vm9708_vm1 = vmor %vm3973_vm15, %vm3974_vm13  ;;  %v3992_v39 = vand.u32 2147483647, %v3900_v50  ;;  %vm3988_vm4 = vweird.f32 %v3900_v50 }
 0xab0   : > { %v3970_v25 = vsub.f32 1.0, %v3969_v31  ;;  %v3967_v11 = vmul.f32 %v3966_v46, %v9668_v53  ;;  %v3994_v53 = vand.u32 2147483648, %v3900_v50  ;;  %v3980_v47 = vor.u32 1.1754944e-38, %v3979_v33 }
 0xab1   : > { %vm3993_vm9 = vcmp.eq.f32.partialorder %v3992_v39, 8.507059e+37 }
 0xab2   : > { %v3971_v26 = vmul.f32 %v7838_v32, %v3970_v25  ;;  %v4029_v44 = vpack.c.bf16 %v3967_v11, %v3952_v41  ;;  %v3995_v40 = vor.u32 1.1754944e-38, %v3994_v53 }
 0xab4   : > { %v3902_v23 = vpop.f32.mrf.mxu2  ;;  %7071 = vmatmul.msk.bf16.gmra.mxu3 %vm1618_vm3, %v4029_v44  ;;  %v3972_v29 = vadd.f32 %v7838_v32, %v3971_v26 }
 0xab5   : > { %v7840_v8 = vpop.eup %7839  ;;  %v3903_v55 = vadd.f32 1e-09, %v3902_v23 }
 0xab6   : > { %v3984_v28 = vmul.f32 %v7840_v8, %v3900_v50  ;;  %vm3989_vm2 = vweird.f32 %v7840_v8  ;;  %v3976_v3 = vsel %vm9708_vm1, %v7838_v32, %v3972_v29 }
 0xab7   : > { %7841 = vrcp.f32 %v3903_v55  ;;  %vm3990_vm5 = vmor %vm3988_vm4, %vm3989_vm2  ;;  %v3981_v31 = vsel %vm3978_vm6, %v3980_v47, %v3976_v3  ;;  %v4009_v23 = vand.u32 2147483648, %v3903_v55  ;;  %vm4003_vm11 = vweird.f32 %v3903_v55 }
 0xab8   : > { %v3985_v35 = vsub.f32 1.0, %v3984_v28  ;;  %v3982_v46 = vmul.f32 %v3981_v31, %v9670_v58  ;;  %v4007_v28 = vand.u32 2147483647, %v3903_v55 }
 0xab9   : > { %v4010_v59 = vor.u32 1.1754944e-38, %v4009_v23 }
 0xaba   : > { %v3986_v42 = vmul.f32 %v7840_v8, %v3985_v35  ;;  %vm4008_vm1 = vcmp.eq.f32.partialorder %v4007_v28, 8.507059e+37 }
 0xabc   : > { %v3905_v24 = vpop.f32.mrf.mxu2  ;;  %v3987_v43 = vadd.f32 %v7840_v8, %v3986_v42 }
 0xabd   : > { %v7842_v45 = vpop.eup %7841  ;;  %v3906_v9 = vadd.f32 1e-09, %v3905_v24 }
 0xabe   : > { %v3999_v34 = vmul.f32 %v7842_v45, %v3903_v55  ;;  %v3991_v19 = vsel %vm3990_vm5, %v7840_v8, %v3987_v43  ;;  %vm4004_vm10 = vweird.f32 %v7842_v45 }
 0xabf   : > { %7843 = vrcp.f32 %v3906_v9  ;;  %v3996_v25 = vsel %vm3993_vm9, %v3995_v40, %v3991_v19  ;;  %vm4005_vm12 = vmor %vm4003_vm11, %vm4004_vm10  ;;  %v4024_v29 = vand.u32 2147483648, %v3906_v9  ;;  %v4022_v35 = vand.u32 2147483647, %v3906_v9 }
 0xac0   : > { %v4000_v48 = vsub.f32 1.0, %v3999_v34  ;;  %v3997_v32 = vmul.f32 %v3996_v25, %v9672_v30  ;;  %vm4018_vm15 = vweird.f32 %v3906_v9 }
 0xac1   : > { %v4025_v61 = vor.u32 1.1754944e-38, %v4024_v29  ;;  %vm4023_vm4 = vcmp.eq.f32.partialorder %v4022_v35, 8.507059e+37 }
 0xac2   : > { %v4001_v41 = vmul.f32 %v7842_v45, %v4000_v48  ;;  %v4030_v50 = vpack.c.bf16 %v3997_v32, %v3982_v46 }
 0xac4   : > { %7072 = vmatmul.msk.bf16.gmra.mxu3 %vm1618_vm3, %v4030_v50  ;;  %v4002_v44 = vadd.f32 %v7842_v45, %v4001_v41 }
 0xac5   : > { %v7844_v11 = vpop.eup %7843 }
 0xac6   : > { %v4014_v26 = vmul.f32 %v7844_v11, %v3906_v9  ;;  %vm4019_vm13 = vweird.f32 %v7844_v11  ;;  %v4006_v58 = vsel %vm4005_vm12, %v7842_v45, %v4002_v44 }
 0xac7   : > { %vm4020_vm2 = vmor %vm4018_vm15, %vm4019_vm13  ;;  %v4011_v42 = vsel %vm4008_vm1, %v4010_v59, %v4006_v58 }
 0xac8   : > { %v4015_v8 = vsub.f32 1.0, %v4014_v26  ;;  %v4012_v3 = vmul.f32 %v4011_v42, %v9674_v21 }
 0xaca   : > { %v4016_v33 = vmul.f32 %v7844_v11, %v4015_v8 }
 0xacc   : > { %v4017_v30 = vadd.f32 %v7844_v11, %v4016_v33 }
 0xace   : > { %v4021_v53 = vsel %vm4020_vm2, %v7844_v11, %v4017_v30 }
 0xacf   : > { %v4026_v39 = vsel %vm4023_vm4, %v4025_v61, %v4021_v53 }
 0xad0   : > { %v4027_v55 = vmul.f32 %v4026_v39, %v9676_v1 }
 0xad2   : > { %v4031_v47 = vpack.c.bf16 %v4027_v55, %v4012_v3 }
 0xad4   : > { %7073 = vmatmul.msk.bf16.gmra.mxu3 %vm1618_vm3, %v4031_v47 }
 0xb27   : > { %v4085_v24 = vpop.f32.mrf.mxu3 }
 0xb2f   : > { %v4087_v43 = vpop.f32.mrf.mxu3 }
 0xb37   : > { %v4090_v45 = vpop.f32.mrf.mxu3 }
 0xb38   : > { %v4107_v26 = vmul.f32 %v4090_v45, %v9598_v60 }
 0xb3a   : > { %v4119_v44 = vsel %vm1573_vm0, %v4107_v26, 0.0 }
 0xb3f   : > { %v4092_v40 = vpop.f32.mrf.mxu3 }
 0xb40   : > { %v4108_v19 = vmul.f32 %v4092_v40, %v9601_v17  ;;  %v4105_v17 = vmul.f32 %v4085_v24, %v9573_v7 }
 0xb42   : > { %v4122_v21 = vsel %vm1573_vm0, %v4108_v19, 0.0 }
 0xb47   : > { %v4095_v9 = vpop.f32.mrf.mxu3 }
 0xb48   : > { %v4109_v34 = vmul.f32 %v4095_v9, %v9614_v20 }
 0xb4a   : > { %v4125_v31 = vsel %vm1573_vm0, %v4109_v34, 0.0 }
 0xb4b   : > { %4126 = vadd.xlane.f32.xlu1 %v4125_v31 }
 0xb4f   : > { %v4097_v48 = vpop.f32.mrf.mxu3 }
 0xb50   : > { %v4110_v32 = vmul.f32 %v4097_v48, %v9611_v4  ;;  %v4106_v4 = vmul.f32 %v4087_v43, %v9576_v36 }
 0xb52   : > { %v4128_v50 = vsel %vm1573_vm0, %v4110_v32, 0.0 }
 0xb53   : > { %4123 = vadd.xlane.f32.xlu1 %v4122_v21 }
 0xb57   : > { %v4100_v1 = vpop.f32.mrf.mxu3 }
 0xb58   : > { %v4111_v25 = vmul.f32 %v4100_v1, %v9638_v56  ;;  %v4113_v56 = vsel %vm1573_vm0, %v4105_v17, 0.0 }
 0xb5a   : > { %v4131_v46 = vsel %vm1573_vm0, %v4111_v25, 0.0 }
 0xb5b   : > { %4132 = vadd.xlane.f32.xlu2 %v4131_v46 }
 0xb5f   : > { %v4102_v41 = vpop.f32.mrf.mxu3 }
 0xb60   : > { %v4112_v20 = vmul.f32 %v4102_v41, %v9641_v5  ;;  %v4116_v5 = vsel %vm1573_vm0, %v4106_v4, 0.0 }
 0xb62   : > { %v4134_v11 = vsel %vm1573_vm0, %v4112_v20, 0.0 }
 0xb63   : > { %4129 = vadd.xlane.f32.xlu2 %v4128_v50  ;;  %4135 = vadd.xlane.f32.xlu0 %v4134_v11 }
 0xb6b   : > { %4114 = vadd.xlane.f32.xlu2 %v4113_v56  ;;  %4120 = vadd.xlane.f32.xlu0 %v4119_v44 }
 0xb73   : > { %4117 = vadd.xlane.f32.xlu0 %v4116_v5 }
 0xbbe   : > { %v4127_v23 = vpop.xlane.xlu1 %4126 }
 0xbbf   : > { %v4141_v28 = vmul.f32 %v4127_v23, %v8402_v54 }
 0xbc1   : > { %v9737_v8 = vsub.f32 %v4109_v34, %v4141_v28 }
 0xbc3   : > { %v4157_v7 = vmul.f32 %v9737_v8, %v9737_v8 }
 0xbc5   : > { %v4173_v60 = vsel %vm1573_vm0, %v4157_v7, 0.0 }
 0xbc6   : > { %v4124_v29 = vpop.xlane.xlu1 %4123  ;;  %4174 = vadd.xlane.f32.xlu0 %v4173_v60 }
 0xbc7   : > { %v4140_v33 = vmul.f32 %v4124_v29, %v8402_v54 }
 0xbc9   : > { %v9743_v35 = vsub.f32 %v4108_v19, %v4140_v33 }
 0xbcb   : > { %v4156_v36 = vmul.f32 %v9743_v35, %v9743_v35 }
 0xbcd   : > { %v4170_v58 = vsel %vm1573_vm0, %v4156_v36, 0.0 }
 0xbce   : > { %v4133_v59 = vpop.xlane.xlu2 %4132  ;;  %4171 = vadd.xlane.f32.xlu0 %v4170_v58 }
 0xbcf   : > { %v4143_v30 = vmul.f32 %v4133_v59, %v8402_v54 }
 0xbd1   : > { %v9749_v61 = vsub.f32 %v4111_v25, %v4143_v30 }
 0xbd3   : > { %v4159_v42 = vmul.f32 %v9749_v61, %v9749_v61 }
 0xbd5   : > { %v4179_v53 = vsel %vm1573_vm0, %v4159_v42, 0.0 }
 0xbd6   : > { %4180 = vadd.xlane.f32.xlu1 %v4179_v53  ;;  %v4130_v39 = vpop.xlane.xlu2 %4129  ;;  %v4136_v3 = vpop.xlane.xlu0 %4135 }
 0xbd7   : > { %v4142_v55 = vmul.f32 %v4130_v39, %v8402_v54  ;;  %v4144_v47 = vmul.f32 %v4136_v3, %v8402_v54 }
 0xbd9   : > { %v9756_v24 = vsub.f32 %v4110_v32, %v4142_v55  ;;  %v9758_v43 = vsub.f32 %v4112_v20, %v4144_v47 }
 0xbdb   : > { %v4158_v45 = vmul.f32 %v9756_v24, %v9756_v24  ;;  %v4160_v40 = vmul.f32 %v9758_v43, %v9758_v43 }
 0xbdd   : > { %v4176_v9 = vsel %vm1573_vm0, %v4158_v45, 0.0  ;;  %v4182_v34 = vsel %vm1573_vm0, %v4160_v40, 0.0 }
 0xbde   : > { %4177 = vadd.xlane.f32.xlu1 %v4176_v9  ;;  %v4115_v31 = vpop.xlane.xlu2 %4114  ;;  %4183 = vadd.xlane.f32.xlu2 %v4182_v34  ;;  %v4121_v19 = vpop.xlane.xlu0 %4120 }
 0xbdf   : > { %v4137_v48 = vmul.f32 %v4115_v31, %v8402_v54  ;;  %v4139_v21 = vmul.f32 %v4121_v19, %v8402_v54 }
 0xbe1   : > { %v9768_v1 = vsub.f32 %v4105_v17, %v4137_v48  ;;  %v9770_v25 = vsub.f32 %v4107_v26, %v4139_v21 }
 0xbe3   : > { %v4153_v46 = vmul.f32 %v9768_v1, %v9768_v1  ;;  %v4155_v32 = vmul.f32 %v9770_v25, %v9770_v25 }
 0xbe5   : > { %v4161_v41 = vsel %vm1573_vm0, %v4153_v46, 0.0  ;;  %v4167_v20 = vsel %vm1573_vm0, %v4155_v32, 0.0 }
 0xbe6   : > { %4162 = vadd.xlane.f32.xlu1 %v4161_v41  ;;  %4168 = vadd.xlane.f32.xlu2 %v4167_v20  ;;  %v4118_v50 = vpop.xlane.xlu0 %4117 }
 0xbe7   : > { %v4138_v11 = vmul.f32 %v4118_v50, %v8402_v54 }
 0xbe9   : > { %v9779_v56 = vsub.f32 %v4106_v4, %v4138_v11 }
 0xbeb   : > { %v4154_v17 = vmul.f32 %v9779_v56, %v9779_v56 }
 0xbed   : > { %v4164_v26 = vsel %vm1573_vm0, %v4154_v17, 0.0 }
 0xbee   : > { %4165 = vadd.xlane.f32.xlu2 %v4164_v26 }
 0xc39   : > { %v4175_v44 = vpop.xlane.xlu0 %4174 }
 0xc3a   : > { %v4189_v5 = vmul.f32 %v4175_v44, %v8402_v54 }
 0xc3c   : > { %v4197_v23 = vadd.f32 1e-06, %v4189_v5 }
 0xc3e   : > { %7845 = vrsqrt.f32 %v4197_v23  ;;  %vm4247_vm6 = vweird.f32 %v4197_v23 }
 0xc41   : > { %v4172_v28 = vpop.xlane.xlu0 %4171 }
 0xc42   : > { %v4188_v7 = vmul.f32 %v4172_v28, %v8402_v54 }
 0xc44   : > { %v7846_v60 = vpop.eup %7845  ;;  %v4196_v29 = vadd.f32 1e-06, %v4188_v7 }
 0xc45   : > { %v4242_v33 = vmul.f32 %v7846_v60, %v4197_v23  ;;  %vm4248_vm5 = vweird.f32 %v7846_v60 }
 0xc46   : > { %7847 = vrsqrt.f32 %v4196_v29  ;;  %vm4249_vm9 = vmor %vm4247_vm6, %vm4248_vm5  ;;  %vm4237_vm11 = vweird.f32 %v4196_v29 }
 0xc47   : > { %v4243_v4 = vmul.f32 %v7846_v60, %v4242_v33 }
 0xc49   : > { %v4244_v36 = vmul.f32 0.5, %v4243_v4  ;;  %v4181_v58 = vpop.xlane.xlu1 %4180 }
 0xc4a   : > { %v4191_v59 = vmul.f32 %v4181_v58, %v8402_v54 }
 0xc4b   : > { %v4245_v30 = vsub.f32 1.5, %v4244_v36 }
 0xc4c   : > { %v7848_v42 = vpop.eup %7847  ;;  %v4199_v53 = vadd.f32 1e-06, %v4191_v59 }
 0xc4d   : > { %v4246_v39 = vmul.f32 %v7846_v60, %v4245_v30  ;;  %v4232_v3 = vmul.f32 %v7848_v42, %v4196_v29  ;;  %vm4238_vm10 = vweird.f32 %v7848_v42 }
 0xc4e   : > { %7849 = vrsqrt.f32 %v4199_v53  ;;  %vm4239_vm12 = vmor %vm4237_vm11, %vm4238_vm10  ;;  %vm4267_vm15 = vweird.f32 %v4199_v53 }
 0xc4f   : > { %v4233_v55 = vmul.f32 %v7848_v42, %v4232_v3  ;;  %v4250_v47 = vsel %vm4249_vm9, %v7846_v60, %v4246_v39 }
 0xc50   : > { %v4285_v45 = vmul.f32 %v4250_v47, %v9737_v8 }
 0xc51   : > { %v4234_v40 = vmul.f32 0.5, %v4233_v55  ;;  %v4178_v9 = vpop.xlane.xlu1 %4177  ;;  %v4184_v34 = vpop.xlane.xlu2 %4183 }
 0xc52   : > { %v4190_v31 = vmul.f32 %v4178_v9, %v8402_v54  ;;  %v4192_v19 = vmul.f32 %v4184_v34, %v8402_v54  ;;  %v4293_v48 = vmul.f32 %v4285_v45, %v9558_v12 }
 0xc53   : > { %v4235_v21 = vsub.f32 1.5, %v4234_v40 }
 0xc54   : > { %v7850_v46 = vpop.eup %7849  ;;  %v4198_v32 = vadd.f32 1e-06, %v4190_v31  ;;  %v4200_v41 = vadd.f32 1e-06, %v4192_v19  ;;  %v9792_v20 = vadd.f32 %v4293_v48, %v9563_v6 }
 0xc55   : > { %v4236_v50 = vmul.f32 %v7848_v42, %v4235_v21  ;;  %v4262_v8 = vmul.f32 %v7850_v46, %v4199_v53  ;;  %vm4268_vm13 = vweird.f32 %v7850_v46 }
 0xc56   : > { %7851 = vrsqrt.f32 %v4198_v32  ;;  %v4317_v11 = vsel %vm1573_vm0, %v9792_v20, 0.0  ;;  %vm4269_vm1 = vmor %vm4267_vm15, %vm4268_vm13  ;;  %vm4257_vm5 = vweird.f32 %v4198_v32  ;;  %vm4277_vm9 = vweird.f32 %v4200_v41 }
 0xc57   : > { %v4263_v17 = vmul.f32 %v7850_v46, %v4262_v8  ;;  %7853 = vrsqrt.f32 %v4200_v41  ;;  %4318 = vadd.xlane.f32.xlu1 %v4317_v11  ;;  %v4240_v26 = vsel %vm4239_vm12, %v7848_v42, %v4236_v50 }
 0xc58   : > { %v4284_v44 = vmul.f32 %v4240_v26, %v9743_v35 }
 0xc59   : > { %v4264_v5 = vmul.f32 0.5, %v4263_v17  ;;  %v4163_v23 = vpop.xlane.xlu1 %4162  ;;  %v4169_v28 = vpop.xlane.xlu2 %4168 }
 0xc5a   : > { %v4185_v7 = vmul.f32 %v4163_v23, %v8402_v54  ;;  %v4187_v60 = vmul.f32 %v4169_v28, %v8402_v54  ;;  %v4292_v29 = vmul.f32 %v4284_v44, %v9558_v12 }
 0xc5b   : > { %v4265_v33 = vsub.f32 1.5, %v4264_v5  ;;  %v4349_v5 = vsel %vm1573_vm0, %v9792_v20, -inf }
 0xc5c   : > { %v7852_v4 = vpop.eup %7851  ;;  %v4193_v36 = vadd.f32 1e-06, %v4185_v7  ;;  %v9800_v58 = vadd.f32 1e-06, %v4187_v60  ;;  %v9803_v59 = vadd.f32 %v4292_v29, %v9563_v6 }
 0xc5d   : > { %v7854_v30 = vpop.eup %7853  ;;  %v4266_v35 = vmul.f32 %v7850_v46, %v4265_v33  ;;  %v4252_v42 = vmul.f32 %v7852_v4, %v4198_v32  ;;  %vm4258_vm2 = vweird.f32 %v7852_v4 }
 0xc5e   : > { %v4272_v39 = vmul.f32 %v7854_v30, %v4200_v41  ;;  %7855 = vrsqrt.f32 %v4193_v36  ;;  %v4314_v55 = vsel %vm1573_vm0, %v9803_v59, 0.0  ;;  %vm4278_vm4 = vweird.f32 %v7854_v30  ;;  %vm4259_vm6 = vmor %vm4257_vm5, %vm4258_vm2 }
 0xc5f   : > { %v4253_v3 = vmul.f32 %v7852_v4, %v4252_v42  ;;  %7857 = vrsqrt.f32 %v9800_v58  ;;  %4315 = vadd.xlane.f32.xlu0 %v4314_v55  ;;  %v4270_v45 = vsel %vm4269_vm1, %v7850_v46, %v4266_v35  ;;  %vm4279_vm10 = vmor %vm4277_vm9, %vm4278_vm4  ;;  %vm4207_vm13 = vweird.f32 %v4193_v36 }
 0xc60   : > { %v4273_v47 = vmul.f32 %v7854_v30, %v4272_v39  ;;  %v4287_v53 = vmul.f32 %v4270_v45, %v9749_v61  ;;  %vm4227_vm1 = vweird.f32 %v9800_v58 }
 0xc61   : > { %v4254_v40 = vmul.f32 0.5, %v4253_v3  ;;  %v4166_v9 = vpop.xlane.xlu2 %4165 }
 0xc62   : > { %v4274_v34 = vmul.f32 0.5, %v4273_v47  ;;  %v4186_v31 = vmul.f32 %v4166_v9, %v8402_v54  ;;  %v4295_v23 = vmul.f32 %v4287_v53, %v9558_v12 }
 0xc63   : > { %v4255_v19 = vsub.f32 1.5, %v4254_v40 }
 0xc64   : > { %v7856_v48 = vpop.eup %7855  ;;  %v4275_v21 = vsub.f32 1.5, %v4274_v34  ;;  %v4194_v50 = vadd.f32 1e-06, %v4186_v31  ;;  %v9818_v42 = vadd.f32 %v4295_v23, %v9563_v6 }
 0xc65   : > { %v7858_v8 = vpop.eup %7857  ;;  %v4256_v11 = vmul.f32 %v7852_v4, %v4255_v19  ;;  %v4202_v17 = vmul.f32 %v7856_v48, %v4193_v36  ;;  %vm4208_vm11 = vweird.f32 %v7856_v48 }
 0xc66   : > { %v4276_v26 = vmul.f32 %v7854_v30, %v4275_v21  ;;  %v4222_v46 = vmul.f32 %v7858_v8, %v9800_v58  ;;  %7859 = vrsqrt.f32 %v4194_v50  ;;  %vm4228_vm12 = vweird.f32 %v7858_v8  ;;  %vm9823_vm15 = vmor %vm4207_vm13, %vm4208_vm11 }
 0xc67   : > { %v4203_v44 = vmul.f32 %v7856_v48, %v4202_v17  ;;  %v4260_v61 = vsel %vm4259_vm6, %v7852_v4, %v4256_v11  ;;  %4350 = vmax.xlane.f32.xlu0 %v4349_v5  ;;  %vm4229_vm2 = vmor %vm4227_vm1, %vm4228_vm12  ;;  %v4323_v9 = vsel %vm1573_vm0, %v9818_v42, 0.0  ;;  %vm4217_vm5 = vweird.f32 %v4194_v50 }
 0xc68   : > { %v4223_v28 = vmul.f32 %v7858_v8, %v4222_v46  ;;  %v4286_v7 = vmul.f32 %v4260_v61, %v9756_v24  ;;  %v4280_v32 = vsel %vm4279_vm10, %v7854_v30, %v4276_v26 }
 0xc69   : > { %v4204_v60 = vmul.f32 0.5, %v4203_v44  ;;  %v4288_v33 = vmul.f32 %v4280_v32, %v9758_v43  ;;  %v4355_v32 = vsel %vm1573_vm0, %v9818_v42, -inf }
 0xc6a   : > { %v4224_v29 = vmul.f32 0.5, %v4223_v28  ;;  %v4294_v41 = vmul.f32 %v4286_v7, %v9558_v12 }
 0xc6b   : > { %v4205_v35 = vsub.f32 1.5, %v4204_v60  ;;  %v4296_v45 = vmul.f32 %v4288_v33, %v9558_v12  ;;  %v4346_v60 = vsel %vm1573_vm0, %v9803_v59, -inf }
 0xc6c   : > { %v7860_v39 = vpop.eup %7859  ;;  %v4225_v4 = vsub.f32 1.5, %v4224_v29  ;;  %v9821_v3 = vadd.f32 %v4294_v41, %v9563_v6 }
 0xc6d   : > { %v4206_v55 = vmul.f32 %v7856_v48, %v4205_v35  ;;  %v4212_v24 = vmul.f32 %v7860_v39, %v4194_v50  ;;  %v9837_v58 = vadd.f32 %v4296_v45, %v9563_v6  ;;  %vm4218_vm4 = vweird.f32 %v7860_v39 }
 0xc6e   : > { %v4226_v47 = vmul.f32 %v7858_v8, %v4225_v4  ;;  %v4352_v43 = vsel %vm1573_vm0, %v9821_v3, -inf  ;;  %vm4219_vm6 = vmor %vm4217_vm5, %vm4218_vm4  ;;  %v4320_v23 = vsel %vm1573_vm0, %v9821_v3, 0.0 }
 0xc6f   : > { %v4213_v40 = vmul.f32 %v7860_v39, %v4212_v24  ;;  %4353 = vmax.xlane.f32.xlu1 %v4352_v43  ;;  %4324 = vadd.xlane.f32.xlu0 %v4323_v9  ;;  %v4210_v34 = vsel %vm9823_vm15, %v7856_v48, %v4206_v55  ;;  %v4326_v48 = vsel %vm1573_vm0, %v9837_v58, 0.0 }
 0xc70   : > { %v4230_v36 = vsel %vm4229_vm2, %v7858_v8, %v4226_v47  ;;  %v4281_v11 = vmul.f32 %v4210_v34, %v9768_v1  ;;  %v4358_v8 = vsel %vm1573_vm0, %v9837_v58, -inf }
 0xc71   : > { %v4214_v31 = vmul.f32 0.5, %v4213_v40  ;;  %v4283_v19 = vmul.f32 %v4230_v36, %v9770_v25 }
 0xc72   : > { %v4289_v46 = vmul.f32 %v4281_v11, %v9558_v12 }
 0xc73   : > { %v4215_v53 = vsub.f32 1.5, %v4214_v31  ;;  %v4291_v21 = vmul.f32 %v4283_v19, %v9558_v12 }
 0xc74   : > { %v9853_v50 = vadd.f32 %v4289_v46, %v9563_v6 }
 0xc75   : > { %v4216_v17 = vmul.f32 %v7860_v39, %v4215_v53  ;;  %v9842_v26 = vadd.f32 %v4291_v21, %v9563_v6 }
 0xc76   : > { %v4305_v28 = vsel %vm1573_vm0, %v9853_v50, 0.0 }
 0xc77   : > { %v4311_v25 = vsel %vm1573_vm0, %v9842_v26, 0.0  ;;  %4327 = vadd.xlane.f32.xlu1 %v4326_v48  ;;  %v4220_v44 = vsel %vm4219_vm6, %v7860_v39, %v4216_v17  ;;  %4359 = vmax.xlane.f32.xlu0 %v4358_v8  ;;  %v4343_v5 = vsel %vm1573_vm0, %v9842_v26, -inf }
 0xc78   : > { %4312 = vadd.xlane.f32.xlu2 %v4311_v25  ;;  %v4282_v1 = vmul.f32 %v4220_v44, %v9779_v56  ;;  %v7396_v44 = vld [vmem:[%s11029_s18] sm:$0xff] }
 0xc7a   : > { %v4290_v61 = vmul.f32 %v4282_v1, %v9558_v12 }
 0xc7c   : > { %v9863_v7 = vadd.f32 %v4290_v61, %v9563_v6  ;;  %v4337_v6 = vsel %vm1573_vm0, %v9853_v50, -inf }
 0xc7e   : > { %v4308_v56 = vsel %vm1573_vm0, %v9863_v7, 0.0  ;;  %v4340_v12 = vsel %vm1573_vm0, %v9863_v7, -inf }
 0xc7f   : > { %4344 = vmax.xlane.f32.xlu1 %v4343_v5  ;;  %4306 = vadd.xlane.f32.xlu0 %v4305_v28 }
 0xc80   : > { %4321 = vadd.xlane.f32.xlu2 %v4320_v23 }
 0xc87   : > { %4309 = vadd.xlane.f32.xlu1 %v4308_v56  ;;  %4341 = vmax.xlane.f32.xlu0 %v4340_v12  ;;  %v7400_v56 = vld [vmem:[%s11030_s1] sm:$0xff]  ;;  %v7401_v12 = vld [vmem:[%s11030_s1 + $0x8] sm:$0xff] }
 0xc88   : > { %4356 = vmax.xlane.f32.xlu2 %v4355_v32  ;;  %v7397_v32 = vld [vmem:[%s11029_s18 + $0x8] sm:$0xff] }
 0xc90   : > { %4347 = vmax.xlane.f32.xlu2 %v4346_v60  ;;  %v7398_v60 = vld [vmem:[%s11029_s18 + $0x10] sm:$0xff] }
 0xc98   : > { %4338 = vmax.xlane.f32.xlu2 %v4337_v6  ;;  %v7402_v6 = vld [vmem:[%s11030_s1 + $0x10] sm:$0xff] }
 0xcca   : > { %v4319_v41 = vpop.xlane.xlu1 %4318 }
 0xccb   : > { %v4333_v9 = vmul.f32 %v4319_v41, %v8402_v54  ;;  %v7403_v41 = vld [vmem:[%s11030_s1 + $0x18] sm:$0xff]  ;;  %s11031_s1 = sld [smem:[#allocation10_spill]] }
 0xcd2   : > { %v4316_v29 = vpop.xlane.xlu0 %4315 }
 0xcd3   : > { %v4332_v19 = vmul.f32 %v4316_v29, %v8402_v54  ;;  %v7399_v29 = vld [vmem:[%s11029_s18 + $0x18] sm:$0xff] }
 0xcda   : > { %v4351_v33 = vpop.xlane.xlu0 %4350 }
 0xce2   : > { %v4354_v35 = vpop.xlane.xlu1 %4353  ;;  %v4325_v39 = vpop.xlane.xlu0 %4324 }
 0xce3   : > { %v4335_v55 = vmul.f32 %v4325_v39, %v8402_v54  ;;  %v4383_v1 = vpack.c.bf16 %v4354_v35, %v4351_v33 }
 0xcea   : > { %v4328_v4 = vpop.xlane.xlu1 %4327  ;;  %v4360_v43 = vpop.xlane.xlu0 %4359 }
 0xceb   : > { %v4313_v24 = vpop.xlane.xlu2 %4312  ;;  %v4336_v30 = vmul.f32 %v4328_v4, %v8402_v54 }
 0xcec   : > { %v4331_v34 = vmul.f32 %v4313_v24, %v8402_v54 }
 0xced   : > { %v4372_v47 = vpack.c.bf16 %v4336_v30, %v4335_v55 }
 0xcee   : > { %v4370_v21 = vpack.c.bf16 %v4332_v19, %v4331_v34 }
 0xcef   : > { %4482 = vmatpush.bf16.msrb.mxu1 %v4372_v47 }
 0xcf2   : > { %v4345_v45 = vpop.xlane.xlu1 %4344  ;;  %v4307_v53 = vpop.xlane.xlu0 %4306 }
 0xcf3   : > { %v4322_v40 = vpop.xlane.xlu2 %4321  ;;  %v4329_v17 = vmul.f32 %v4307_v53, %v8402_v54 }
 0xcf4   : > { %v4334_v36 = vmul.f32 %v4322_v40, %v8402_v54 }
 0xcf6   : > { %v4371_v31 = vpack.c.bf16 %v4334_v36, %v4333_v9 }
 0xcf8   : > { %4483 = vmatpush.bf16.msrb.mxu1 %v4371_v31 }
 0xcfa   : > { %v4310_v11 = vpop.xlane.xlu1 %4309 }
 0xcfb   : > { %v4357_v48 = vpop.xlane.xlu2 %4356  ;;  %v4330_v25 = vmul.f32 %v4310_v11, %v8402_v54  ;;  %v4342_v54 = vpop.xlane.xlu0 %4341 }
 0xcfc   : > { %v4384_v8 = vpack.c.bf16 %v4360_v43, %v4357_v48  ;;  %4484 = vmatpush.bf16.msrb.mxu1 %v4370_v21  ;;  %v7033_v48 = vmul.f32 -1.442695, %v9646_v52 }
 0xcfd   : > { %v4369_v46 = vpack.c.bf16 %v4330_v25, %v4329_v17 }
 0xcfe   : > { %4421 = vmatpush.bf16.msrb.mxu0 %v4384_v8 }
 0xd00   : > { %4485 = vmatpush.bf16.msrb.mxu1 %v4369_v46 }
 0xd02   : > { %4422 = vmatpush.bf16.msrb.mxu0 %v4383_v1 }
 0xd03   : > { %v4348_v5 = vpop.xlane.xlu2 %4347  ;;  %7110 = vmatmul.msk.bf16.vlgmr.msrb.gmra.mxu1 %vm1618_vm3, %v7396_v44 }
 0xd04   : > { %v4382_v61 = vpack.c.bf16 %v4348_v5, %v4345_v45 }
 0xd06   : > { %4423 = vmatpush.bf16.msrb.mxu0 %v4382_v61 }
 0xd0b   : > { %v4339_v23 = vpop.xlane.xlu2 %4338 }
 0xd0c   : > { %v4381_v28 = vpack.c.bf16 %v4342_v54, %v4339_v23 }
 0xd0e   : > { %4424 = vmatpush.bf16.msrb.mxu0 %v4381_v28 }
 0xd11   : > { %7090 = vmatmul.msk.bf16.vlgmr.msrb.gmra.mxu0 %vm1618_vm3, %v7400_v56 }
 0xd13   : > { %7111 = vmatmul.msk.bf16.gmra.mxu1 %vm1618_vm3, %v7397_v32 }
 0xd21   : > { %7091 = vmatmul.msk.bf16.gmra.mxu0 %vm1618_vm3, %v7401_v12 }
 0xd23   : > { %7112 = vmatmul.msk.bf16.gmra.mxu1 %vm1618_vm3, %v7398_v60 }
 0xd31   : > { %7092 = vmatmul.msk.bf16.gmra.mxu0 %vm1618_vm3, %v7402_v6  ;;  %v2015_v6 = vld [vmem:[%s11031_s1] sm:$0x3]  ;;  %s11034_s1 = smov 32  }
 0xd33   : > { %7113 = vmatmul.msk.bf16.gmra.mxu1 %vm1618_vm3, %v7399_v29 }
 0xd41   : > { %7093 = vmatmul.msk.bf16.gmra.mxu0 %vm1618_vm3, %v7403_v41 }
 0xd80   : > { %v4487_v33 = vpop.f32.mrf.mxu1 }
 0xd88   : > { %v4489_v35 = vpop.f32.mrf.mxu1 }
 0xd8e   : > { %v4426_v39 = vpop.f32.mrf.mxu0 }
 0xd8f   : > { %v4488_v4 = vadd.f32 %v4487_v33, %v4426_v39 }
 0xd90   : > { %v4492_v24 = vpop.f32.mrf.mxu1 }
 0xd91   : > { %v7114_v55 = vmul.f32 -1.442695, %v4488_v4 }
 0xd93   : > { %7861 = vpow2.f32 %v7114_v55 }
 0xd96   : > { %v4428_v30 = vpop.f32.mrf.mxu0 }
 0xd97   : > { %v4490_v47 = vadd.f32 %v4489_v35, %v4428_v30 }
 0xd98   : > { %v4494_v36 = vpop.f32.mrf.mxu1 }
 0xd99   : > { %v7862_v43 = vpop.eup %7861  ;;  %v7115_v45 = vmul.f32 -1.442695, %v4490_v47 }
 0xd9a   : > { %v4531_v40 = vadd.f32 1.0, %v7862_v43 }
 0xd9b   : > { %7863 = vpow2.f32 %v7115_v45 }
 0xd9c   : > { %7865 = vrcp.f32 %v4531_v40  ;;  %v4550_v8 = vand.u32 2147483648, %v4531_v40  ;;  %v4548_v1 = vand.u32 2147483647, %v4531_v40  ;;  %vm4544_vm10 = vweird.f32 %v4531_v40 }
 0xd9e   : > { %v4431_v9 = vpop.f32.mrf.mxu0  ;;  %v4551_v32 = vor.u32 1.1754944e-38, %v4550_v8  ;;  %vm4549_vm12 = vcmp.eq.f32.partialorder %v4548_v1, 8.507059e+37 }
 0xd9f   : > { %v4493_v34 = vadd.f32 %v4492_v24, %v4431_v9  ;;  %v9901_v24 = vperm.slane %v2015_v6, 0 }
 0xda0   : > { %v4497_v5 = vpop.f32.mrf.mxu1 }
 0xda1   : > { %v7864_v31 = vpop.eup %7863  ;;  %v7116_v19 = vmul.f32 -1.442695, %v4493_v34 }
 0xda2   : > { %v7866_v53 = vpop.eup %7865  ;;  %v4532_v21 = vadd.f32 1.0, %v7864_v31 }
 0xda3   : > { %7867 = vpow2.f32 %v7116_v19  ;;  %v4540_v11 = vmul.f32 %v7866_v53, %v4531_v40  ;;  %vm4545_vm9 = vweird.f32 %v7866_v53  ;;  %v2018_v40 = vmul.f32 %v9901_v24, %v9126_v0 }
 0xda4   : > { %7869 = vrcp.f32 %v4532_v21  ;;  %vm4546_vm11 = vmor %vm4544_vm10, %vm4545_vm9  ;;  %v4565_v33 = vand.u32 2147483648, %v4532_v21  ;;  %v4563_v4 = vand.u32 2147483647, %v4532_v21  ;;  %vm4559_vm15 = vweird.f32 %v4532_v21 }
 0xda5   : > { %v4541_v17 = vsub.f32 1.0, %v4540_v11  ;;  %7871 = vpow2.f32 %v7033_v48 }
 0xda6   : > { %v4433_v25 = vpop.f32.mrf.mxu0  ;;  %vm4564_vm2 = vcmp.eq.f32.partialorder %v4563_v4, 8.507059e+37 }
 0xda7   : > { %v4495_v46 = vadd.f32 %v4494_v36, %v4433_v25  ;;  %v4542_v44 = vmul.f32 %v7866_v53, %v4541_v17  ;;  %v4566_v36 = vor.u32 1.1754944e-38, %v4565_v33 }
 0xda8   : > { %v4499_v34 = vpop.f32.mrf.mxu1 }
 0xda9   : > { %v7868_v61 = vpop.eup %7867  ;;  %v7117_v54 = vmul.f32 -1.442695, %v4495_v46  ;;  %v4543_v23 = vadd.f32 %v7866_v53, %v4542_v44 }
 0xdaa   : > { %v7870_v28 = vpop.eup %7869  ;;  %v4533_v56 = vadd.f32 1.0, %v7868_v61 }
 0xdab   : > { %7873 = vpow2.f32 %v7117_v54  ;;  %v4547_v12 = vsel %vm4546_vm11, %v7866_v53, %v4543_v23  ;;  %v4555_v52 = vmul.f32 %v7870_v28, %v4532_v21  ;;  %vm4560_vm13 = vweird.f32 %v7870_v28  ;;  %v7872_v55 = vpop.eup %7871 }
 0xdac   : > { %7875 = vrcp.f32 %v4533_v56  ;;  %v4552_v60 = vsel %vm4549_vm12, %v4551_v32, %v4547_v12  ;;  %vm4561_vm1 = vmor %vm4559_vm15, %vm4560_vm13  ;;  %v9907_v53 = vperm.slane %v2015_v6, 1  ;;  %v9909_v11 = vadd.f32 1.0, %v7872_v55 }
 0xdad   : > { %4661 = vperm.xlu1 %7553, %v4552_v60   ;;  %v4556_v29 = vsub.f32 1.0, %v4555_v52  ;;  %v4580_v25 = vand.u32 2147483648, %v4533_v56  ;;  %v4578_v44 = vand.u32 2147483647, %v4533_v56  ;;  %vm4574_vm5 = vweird.f32 %v4533_v56 }
 0xdae   : > { %v4436_v41 = vpop.f32.mrf.mxu0  ;;  %v9913_v0 = vadd.f32 %v9907_v53, %v2018_v40  ;;  %v2017_v23 = vmul.f32 %v9901_v24, %v9124_v16  ;;  %v2019_v6 = vmul.f32 %v9901_v24, %v9128_v37 }
 0xdaf   : > { %v4498_v35 = vadd.f32 %v4497_v5, %v4436_v41  ;;  %v4557_v39 = vmul.f32 %v7870_v28, %v4556_v29  ;;  %v4581_v12 = vor.u32 1.1754944e-38, %v4580_v25  ;;  %vm4579_vm9 = vcmp.eq.f32.partialorder %v4578_v44, 8.507059e+37 }
 0xdb0   : > { %v4502_v29 = vpop.f32.mrf.mxu1  ;;  %v9929_v33 = vadd.f32 %v9907_v53, %v2017_v23 }
 0xdb1   : > { %v7874_v30 = vpop.eup %7873  ;;  %v7118_v47 = vmul.f32 -1.442695, %v4498_v35  ;;  %v4558_v43 = vadd.f32 %v7870_v28, %v4557_v39 }
 0xdb2   : > { %v7876_v45 = vpop.eup %7875  ;;  %v9905_v9 = vadd.f32 1.0, %v7874_v30 }
 0xdb3   : > { %7877 = vpow2.f32 %v7118_v47  ;;  %v4562_v31 = vsel %vm4561_vm1, %v7870_v28, %v4558_v43  ;;  %v4570_v19 = vmul.f32 %v7876_v45, %v4533_v56  ;;  %vm4575_vm4 = vweird.f32 %v7876_v45 }
 0xdb4   : > { %7879 = vrcp.f32 %v9905_v9  ;;  %v4567_v21 = vsel %vm4564_vm2, %v4566_v36, %v4562_v31  ;;  %v2035_v28 = vmul.f32 %v9913_v0, %v9913_v0  ;;  %vm4576_vm6 = vmor %vm4574_vm5, %vm4575_vm4  ;;  %v4595_v39 = vand.u32 2147483648, %v9905_v9 }
 0xdb5   : > { %4666 = vperm.xlu2 %7554, %v4567_v21   ;;  %v4571_v17 = vsub.f32 1.0, %v4570_v19  ;;  %7881 = vrcp.f32 %v9909_v11  ;;  %v4593_v37 = vand.u32 2147483647, %v9905_v9  ;;  %v9935_v47 = vadd.f32 %v9907_v53, %v2019_v6 }
 0xdb6   : > { %v4438_v48 = vpop.f32.mrf.mxu0  ;;  %v2043_v4 = vmul.f32 %v2035_v28, %v9913_v0  ;;  %vm4589_vm11 = vweird.f32 %v9905_v9  ;;  %v2034_v31 = vmul.f32 %v9929_v33, %v9929_v33  ;;  %v4596_v21 = vor.u32 1.1754944e-38, %v4595_v39 }
 0xdb7   : > { %v4500_v8 = vadd.f32 %v4499_v34, %v4438_v48  ;;  %v4572_v46 = vmul.f32 %v7876_v45, %v4571_v17  ;;  %vm4594_vm13 = vcmp.eq.f32.partialorder %v4593_v37, 8.507059e+37 }
 0xdb8   : > { %v2051_v17 = vmul.f32 0.044715, %v2043_v4  ;;  %v4504_v23 = vpop.f32.mrf.mxu1 }
 0xdb9   : > { %v7878_v1 = vpop.eup %7877  ;;  %v7119_v5 = vmul.f32 -1.442695, %v4500_v8  ;;  %v4573_v61 = vadd.f32 %v7876_v45, %v4572_v46  ;;  %v2036_v8 = vmul.f32 %v9935_v47, %v9935_v47 }
 0xdba   : > { %v7880_v54 = vpop.eup %7879  ;;  %v9920_v32 = vadd.f32 1.0, %v7878_v1  ;;  %v2059_v6 = vadd.f32 %v2051_v17, %v9913_v0  ;;  %v3486_v17 = vand.u32 2147483648, %v9909_v11 }
 0xdbb   : > { %7883 = vpow2.f32 %v7119_v5  ;;  %v4577_v52 = vsel %vm4576_vm6, %v7876_v45, %v4573_v61  ;;  %v4585_v60 = vmul.f32 %v7880_v54, %v9905_v9  ;;  %v9926_v41 = vpop.eup %7881  ;;  %vm4590_vm10 = vweird.f32 %v7880_v54 }
 0xdbc   : > { %7885 = vrcp.f32 %v9920_v32  ;;  %v4582_v56 = vsel %vm4579_vm9, %v4581_v12, %v4577_v52  ;;  %v3476_v45 = vmul.f32 %v9926_v41, %v9909_v11  ;;  %vm4591_vm12 = vmor %vm4589_vm11, %vm4590_vm10  ;;  %v2020_v9 = vmul.f32 %v9901_v24, %v9130_v49 }
 0xdbd   : > { %4671 = vperm.xlu0 %7552, %v4582_v56   ;;  %v4586_v16 = vsub.f32 1.0, %v4585_v60  ;;  %v2042_v5 = vmul.f32 %v2034_v31, %v9929_v33  ;;  %v4608_v52 = vand.u32 2147483647, %v9920_v32  ;;  %v2044_v60 = vmul.f32 %v2036_v8, %v9935_v47 }
 0xdbe   : > { %v4441_v35 = vpop.f32.mrf.mxu0  ;;  %v3477_v44 = vsub.f32 1.0, %v3476_v45  ;;  %v9955_v49 = vadd.f32 %v9907_v53, %v2020_v9  ;;  %vm4604_vm1 = vweird.f32 %v9920_v32  ;;  %vm3481_vm5 = vweird.f32 %v9926_v41 }
 0xdbf   : > { %v4503_v55 = vadd.f32 %v4502_v29, %v4441_v35  ;;  %v4587_v30 = vmul.f32 %v7880_v54, %v4586_v16  ;;  %v2050_v4 = vmul.f32 0.044715, %v2042_v5  ;;  %vm4609_vm4 = vcmp.eq.f32.partialorder %v4608_v52, 8.507059e+37 }
 0xdc0   : > { %v3478_v29 = vmul.f32 %v9926_v41, %v3477_v44  ;;  %v2052_v45 = vmul.f32 0.044715, %v2044_v60  ;;  %v2037_v31 = vmul.f32 %v9955_v49, %v9955_v49  ;;  %vm3480_vm6 = vweird.f32 %v9909_v11 }
 0xdc1   : > { %v7884_v43 = vpop.eup %7883  ;;  %v7120_v40 = vmul.f32 -1.442695, %v4503_v55  ;;  %v4588_v36 = vadd.f32 %v7880_v54, %v4587_v30  ;;  %vm9976_vm10 = vmor %vm3480_vm6, %vm3481_vm5 }
 0xdc2   : > { %v7886_v34 = vpop.eup %7885  ;;  %v9942_v19 = vadd.f32 1.0, %v7884_v43  ;;  %v2045_v5 = vmul.f32 %v2037_v31, %v9955_v49 }
 0xdc3   : > { %7887 = vpow2.f32 %v7120_v40  ;;  %v4592_v48 = vsel %vm4591_vm12, %v7880_v54, %v4588_v36  ;;  %v4600_v25 = vmul.f32 %v7886_v34, %v9920_v32  ;;  %v4610_v54 = vand.u32 2147483648, %v9920_v32 }
 0xdc4   : > { %7889 = vrcp.f32 %v9942_v19  ;;  %v4597_v46 = vsel %vm4594_vm13, %v4596_v21, %v4592_v48  ;;  %vm4605_vm15 = vweird.f32 %v7886_v34  ;;  %v2067_v36 = vmul.f32 0.7978846, %v2059_v6 }
 0xdc5   : > { %4676 = vperm.xlu1 %7553, %v4597_v46   ;;  %v4601_v1 = vsub.f32 1.0, %v4600_v25  ;;  %vm4606_vm2 = vmor %vm4604_vm1, %vm4605_vm15  ;;  %v4611_v30 = vor.u32 1.1754944e-38, %v4610_v54  ;;  %v3479_v32 = vadd.f32 %v9926_v41, %v3478_v29  ;;  %v4625_v48 = vand.u32 2147483648, %v9942_v19 }
 0xdc6   : > { %v4443_v61 = vpop.f32.mrf.mxu0  ;;  %v3484_v25 = vand.u32 2147483647, %v9909_v11  ;;  %v4623_v9 = vand.u32 2147483647, %v9942_v19  ;;  %v2058_v46 = vadd.f32 %v2050_v4, %v9929_v33  ;;  %vm4619_vm11 = vweird.f32 %v9942_v19 }
 0xdc7   : > { %v4505_v28 = vadd.f32 %v4504_v23, %v4443_v61  ;;  %v4602_v12 = vmul.f32 %v7886_v34, %v4601_v1  ;;  %v3483_v11 = vsel %vm9976_vm10, %v9926_v41, %v3479_v32  ;;  %v4626_v52 = vor.u32 1.1754944e-38, %v4625_v48 }
 0xdc8   : > { %vm3485_vm13 = vcmp.eq.f32.partialorder %v3484_v25, 8.507059e+37  ;;  %vm4624_vm15 = vcmp.eq.f32.partialorder %v4623_v9, 8.507059e+37  ;;  %v2053_v29 = vmul.f32 0.044715, %v2045_v5 }
 0xdc9   : > { %v7888_v56 = vpop.eup %7887  ;;  %v7121_v16 = vmul.f32 -1.442695, %v4505_v28  ;;  %v4603_v35 = vadd.f32 %v7886_v34, %v4602_v12  ;;  %v3487_v28 = vor.u32 1.1754944e-38, %v3486_v17 }
 0xdca   : > { %v7890_v39 = vpop.eup %7889  ;;  %v9960_v55 = vadd.f32 1.0, %v7888_v56  ;;  %v2066_v56 = vmul.f32 0.7978846, %v2058_v46 }
 0xdcb   : > { %7891 = vpow2.f32 %v7121_v16  ;;  %v4607_v37 = vsel %vm4606_vm2, %v7886_v34, %v4603_v35  ;;  %v4615_v43 = vmul.f32 %v7890_v39, %v9942_v19  ;;  %v2021_v34 = vmul.f32 %v9901_v24, %v9132_v15 }
 0xdcc   : > { %7893 = vrcp.f32 %v9960_v55  ;;  %v4612_v40 = vsel %vm4609_vm4, %v4611_v30, %v4607_v37  ;;  %vm4620_vm9 = vweird.f32 %v7890_v39  ;;  %v2060_v15 = vadd.f32 %v2052_v45, %v9935_v47 }
 0xdcd   : > { %4681 = vperm.xlu2 %7554, %v4612_v40   ;;  %v4616_v21 = vsub.f32 1.0, %v4615_v43  ;;  %7895 = vtanh.f32 %v2067_v36  ;;  %v9987_v54 = vadd.f32 %v9907_v53, %v2021_v34  ;;  %vm4621_vm12 = vmor %vm4619_vm11, %vm4620_vm9  ;;  %v3488_v41 = vsel %vm3485_vm13, %v3487_v28, %v3483_v11 }
 0xdce   : > { %v2068_v35 = vmul.f32 0.7978846, %v2060_v15  ;;  %v2022_v37 = vmul.f32 %v9901_v24, %v9134_v27  ;;  %v9999_v43 = vperm.slane %v3488_v41, 0  ;;  %v4638_v40 = vand.u32 2147483647, %v9960_v55 }
 0xdcf   : > { %v4617_v8 = vmul.f32 %v7890_v39, %v4616_v21  ;;  %v2038_v30 = vmul.f32 %v9987_v54, %v9987_v54  ;;  %v2061_v36 = vadd.f32 %v2053_v29, %v9955_v49  ;;  %vm4634_vm2 = vweird.f32 %v9960_v55 }
 0xdd0   : > { %v10006_v27 = vadd.f32 %v9907_v53, %v2022_v37  ;;  %v3491_v48 = vmul.f32 %v9999_v43, %v9471_v2  ;;  %vm4639_vm5 = vcmp.eq.f32.partialorder %v4638_v40, 8.507059e+37  ;;  %v3493_v40 = vmul.f32 %v9999_v43, %v9479_v57 }
 0xdd1   : > { %v7892_v1 = vpop.eup %7891  ;;  %v4618_v61 = vadd.f32 %v7890_v39, %v4617_v8  ;;  %v2046_v21 = vmul.f32 %v2038_v30, %v9987_v54  ;;  %v2069_v46 = vmul.f32 0.7978846, %v2061_v36  ;;  %v3496_v57 = vmul.f32 %v9999_v43, %v9500_v13 }
 0xdd2   : > { %v7894_v23 = vpop.eup %7893  ;;  %v9989_v12 = vadd.f32 1.0, %v7892_v1 }
 0xdd3   : > { %v4622_v60 = vsel %vm4621_vm12, %v7890_v39, %v4618_v61  ;;  %v4630_v6 = vmul.f32 %v7894_v23, %v9960_v55  ;;  %v7896_v4 = vpop.eup %7895  ;;  %v4640_v39 = vand.u32 2147483648, %v9960_v55  ;;  %vm4635_vm1 = vweird.f32 %v7894_v23 }
 0xdd4   : > { %7897 = vrcp.f32 %v9989_v12  ;;  %v4627_v19 = vsel %vm4624_vm15, %v4626_v52, %v4622_v60  ;;  %vm4636_vm4 = vmor %vm4634_vm2, %vm4635_vm1  ;;  %v2083_v17 = vadd.f32 1.0, %v7896_v4  ;;  %v2054_v15 = vmul.f32 0.044715, %v2046_v21 }
 0xdd5   : > { %4686 = vperm.xlu0 %7552, %v4627_v19   ;;  %v4631_v16 = vsub.f32 1.0, %v4630_v6  ;;  %7899 = vtanh.f32 %v2066_v56  ;;  %v4641_v34 = vor.u32 1.1754944e-38, %v4640_v39  ;;  %v4655_v5 = vand.u32 2147483648, %v9989_v12 }
 0xdd6   : > { %7901 = vtanh.f32 %v2068_v35  ;;  %v2091_v1 = vmul.f32 0.5, %v2083_v17  ;;  %v2039_v61 = vmul.f32 %v10006_v27, %v10006_v27  ;;  %vm4649_vm9 = vweird.f32 %v9989_v12 }
 0xdd7   : > { %v4632_v45 = vmul.f32 %v7894_v23, %v4631_v16  ;;  %7903 = vtanh.f32 %v2069_v46  ;;  %v2062_v52 = vadd.f32 %v2054_v15, %v9987_v54  ;;  %v4656_v6 = vor.u32 1.1754944e-38, %v4655_v5 }
 0xdd8   : > { %v2099_v60 = vmul.f32 %v2091_v1, %v9913_v0  ;;  %v2047_v41 = vmul.f32 %v2039_v61, %v10006_v27  ;;  %v3492_v19 = vmul.f32 %v9999_v43, %v9467_v62 }
 0xdd9   : > { %v4633_v31 = vadd.f32 %v7894_v23, %v4632_v45 }
 0xdda   : > { %v7898_v32 = vpop.eup %7897  ;;  %v2055_v4 = vmul.f32 0.044715, %v2047_v41 }
 0xddb   : > { %v4637_v25 = vsel %vm4636_vm4, %v7894_v23, %v4633_v31  ;;  %v4645_v8 = vmul.f32 %v7898_v32, %v9989_v12  ;;  %v7900_v44 = vpop.eup %7899  ;;  %vm4650_vm6 = vweird.f32 %v7898_v32  ;;  %v4653_v23 = vand.u32 2147483647, %v9989_v12 }
 0xddc   : > { %v4642_v9 = vsel %vm4639_vm5, %v4641_v34, %v4637_v25  ;;  %v7902_v11 = vpop.eup %7901  ;;  %vm4651_vm10 = vmor %vm4649_vm9, %vm4650_vm6  ;;  %v2082_v35 = vadd.f32 1.0, %v7900_v44  ;;  %v2070_v12 = vmul.f32 0.7978846, %v2062_v52  ;;  %v2063_v45 = vadd.f32 %v2055_v4, %v10006_v27 }
 0xddd   : > { %4876 = vrot.lane.b32.xlu0 %v3491_v48, %s11034_s1  ;;  %4691 = vperm.xlu1 %7553, %v4642_v9   ;;  %v4646_v55 = vsub.f32 1.0, %v4645_v8  ;;  %v2084_v56 = vadd.f32 1.0, %v7902_v11  ;;  %vm4654_vm11 = vcmp.eq.f32.partialorder %v4653_v23, 8.507059e+37  ;;  %v7904_v0 = vpop.eup %7903  ;;  %v3494_v48 = vmul.f32 %v9999_v43, %v9484_v51 }
 0xdde   : > { %v2090_v37 = vmul.f32 0.5, %v2082_v35  ;;  %7905 = vtanh.f32 %v2070_v12  ;;  %v2085_v39 = vadd.f32 1.0, %v7904_v0  ;;  %v2071_v21 = vmul.f32 0.7978846, %v2063_v45 }
 0xddf   : > { %v4647_v2 = vmul.f32 %v7898_v32, %v4646_v55  ;;  %v2092_v30 = vmul.f32 0.5, %v2084_v56  ;;  %v3495_v51 = vmul.f32 %v9999_v43, %v9497_v63  ;;  %v3497_v63 = vmul.f32 %v9999_v43, %v9511_v22 }
 0xde0   : > { %v2098_v36 = vmul.f32 %v2090_v37, %v9929_v33  ;;  %v2093_v31 = vmul.f32 0.5, %v2085_v39  ;;  %7907 = vtanh.f32 %v2071_v21  ;;  %v3498_v23 = vmul.f32 %v9999_v43, %v9529_v14 }
 0xde1   : > { %v4648_v28 = vadd.f32 %v7898_v32, %v4647_v2  ;;  %v2100_v62 = vmul.f32 %v2092_v30, %v9935_v47 }
 0xde2   : > { %v2101_v17 = vmul.f32 %v2093_v31, %v9955_v49  ;;  %v2024_v49 = vmul.f32 %v9901_v24, %v9138_v10 }
 0xde3   : > { %v4652_v29 = vsel %vm4651_vm10, %v7898_v32, %v4648_v28  ;;  %v2023_v32 = vmul.f32 %v9901_v24, %v9136_v38 }
 0xde4   : > { %v4657_v16 = vsel %vm4654_vm11, %v4656_v6, %v4652_v29  ;;  %v7906_v34 = vpop.eup %7905  ;;  %v2033_v13 = vadd.f32 %v9907_v53, %v2024_v49 }
 0xde5   : > { %4910 = vrot.lane.b32.xlu0 %v2099_v60, %s10947_s3  ;;  %4878 = vrot.lane.b32.xlu1 %v3492_v19, %s11034_s1  ;;  %v2032_v47 = vadd.f32 %v9907_v53, %v2023_v32  ;;  %v2086_v33 = vadd.f32 1.0, %v7906_v34 }
 0xde6   : > { %4696 = vperm.xlu2 %7554, %v4657_v16   ;;  %v7908_v8 = vpop.eup %7907  ;;  %v2041_v15 = vmul.f32 %v2033_v13, %v2033_v13 }
 0xde7   : > { %v2040_v38 = vmul.f32 %v2032_v47, %v2032_v47  ;;  %v2094_v25 = vmul.f32 0.5, %v2086_v33  ;;  %v2087_v46 = vadd.f32 1.0, %v7908_v8 }
 0xde8   : > { %v2049_v10 = vmul.f32 %v2041_v15, %v2033_v13 }
 0xde9   : > { %v2048_v9 = vmul.f32 %v2040_v38, %v2032_v47  ;;  %v2102_v55 = vmul.f32 %v2094_v25, %v9987_v54  ;;  %v2095_v1 = vmul.f32 0.5, %v2087_v46 }
 0xdea   : > { %v2057_v11 = vmul.f32 0.044715, %v2049_v10 }
 0xdeb   : > { %v2056_v44 = vmul.f32 0.044715, %v2048_v9  ;;  %v2103_v24 = vmul.f32 %v2095_v1, %v10006_v27 }
 0xdec   : > { %v2065_v54 = vadd.f32 %v2057_v11, %v2033_v13 }
 0xded   : > { %4912 = vrot.lane.b32.xlu0 %v2100_v62, %s10947_s3  ;;  %4880 = vrot.lane.b32.xlu1 %v3493_v40, %s11034_s1  ;;  %v2064_v5 = vadd.f32 %v2056_v44, %v2032_v47 }
 0xdee   : > { %4908 = vrot.lane.b32.xlu2 %v2098_v36, %s10947_s3  ;;  %v2073_v61 = vmul.f32 0.7978846, %v2065_v54 }
 0xdef   : > { %v2072_v53 = vmul.f32 0.7978846, %v2064_v5 }
 0xdf1   : > { %7909 = vtanh.f32 %v2072_v53 }
 0xdf2   : > { %7911 = vtanh.f32 %v2073_v61 }
 0xdf5   : > { %4886 = vrot.lane.b32.xlu0 %v3496_v57, %s11034_s1  ;;  %4914 = vrot.lane.b32.xlu1 %v2101_v17, %s10947_s3 }
 0xdf6   : > { %4882 = vrot.lane.b32.xlu2 %v3494_v48, %s11034_s1 }
 0xdf7   : > { %v7910_v2 = vpop.eup %7909 }
 0xdf8   : > { %v2088_v28 = vadd.f32 1.0, %v7910_v2  ;;  %v7912_v52 = vpop.eup %7911 }
 0xdf9   : > { %v2089_v6 = vadd.f32 1.0, %v7912_v52 }
 0xdfa   : > { %v2096_v27 = vmul.f32 0.5, %v2088_v28 }
 0xdfb   : > { %v2097_v56 = vmul.f32 0.5, %v2089_v6 }
 0xdfc   : > { %v2104_v60 = vmul.f32 %v2096_v27, %v2032_v47 }
 0xdfd   : > { %4916 = vrot.lane.b32.xlu1 %v2102_v55, %s10947_s3  ;;  %v2105_v22 = vmul.f32 %v2097_v56, %v2033_v13 }
 0xdfe   : > { %4884 = vrot.lane.b32.xlu2 %v3495_v51, %s11034_s1 }
 0xe06   : > { %4918 = vrot.lane.b32.xlu2 %v2103_v24, %s10947_s3  ;;  %s11035_s3 = sld [smem:[#allocation21_spill]] }
 0xe0c   : > { %v7405_v0 = vld [vmem:[%s11035_s3 + $0x8] sm:$0xff]  ;;  %v7404_v37 = vld [vmem:[%s11035_s3] sm:$0xff]  ;;  %s11037_s3 = sld [smem:[#allocation22_spill]] }
 0xe0d   : > { %4755 = vmatpush.bf16.msrb.mxu2 %v7405_v0  ;;  %4796 = vmatpush.bf16.msrb.mxu3 %v7405_v0 }
 0xe0e   : > { %4888 = vrot.lane.b32.xlu2 %v3497_v63, %s11034_s1 }
 0xe0f   : > { %v4667_v41 = vpop.permute.xlu2 %4666 }
 0xe10   : > { %v10065_v35 = vmul.f32 %v4667_v41, %v9863_v7 }
 0xe11   : > { %4756 = vmatpush.bf16.msrb.mxu2 %v7404_v37  ;;  %4797 = vmatpush.bf16.msrb.mxu3 %v7404_v37 }
 0xe12   : > { %v4764_v41 = vld [vmem:[%s11037_s3] sm:$0x1]  ;;  %s11038_s3 = sld [smem:[#allocation29_spill]] }
 0xe16   : > { %4890 = vrot.lane.b32.xlu2 %v3498_v23, %s11034_s1 }
 0xe1e   : > { %4920 = vrot.lane.b32.xlu2 %v2104_v60, %s11036_s4 }
 0xe1f   : > { %v4662_v19 = vpop.permute.xlu1 %4661 }
 0xe20   : > { %v10062_v14 = vmul.f32 %v4662_v19, %v9853_v50  ;;  %v4708_v50 = vsel %vm1573_vm0, %v10065_v35, 0.0  ;;  %v4809_v19 = vsel %vm3438_vm7, %v4764_v41, 0 }
 0xe21   : > { %4818 = vmatpush.bf16.msra.mxu2 %v4809_v19  ;;  %4834 = vmatpush.bf16.msra.mxu3 %v4809_v19 }
 0xe22   : > { %v4707_v4 = vsel %vm1573_vm0, %v10062_v14, 0.0  ;;  %v4765_v48 = vsel %vm1573_vm0, %v10062_v14, -inf }
 0xe23   : > { %v4709_v39 = vadd.f32 %v4708_v50, %v4707_v4 }
 0xe26   : > { %4922 = vrot.lane.b32.xlu2 %v2105_v22, %s11036_s4 }
 0xe27   : > { %v4682_v43 = vpop.permute.xlu2 %4681 }
 0xe2f   : > { %v4672_v29 = vpop.permute.xlu0 %4671 }
 0xe30   : > { %v10068_v12 = vmul.f32 %v4672_v29, %v9842_v26 }
 0xe32   : > { %v4710_v7 = vsel %vm1573_vm0, %v10068_v12, 0.0  ;;  %v4767_v25 = vsel %vm1573_vm0, %v10068_v12, -inf }
 0xe33   : > { %v4711_v62 = vadd.f32 %v4710_v7, %v4709_v39 }
 0xe37   : > { %v4677_v16 = vpop.permute.xlu1 %4676 }
 0xe38   : > { %v10074_v30 = vmul.f32 %v4677_v16, %v9803_v59  ;;  %v10084_v59 = vmul.f32 %v4682_v43, %v9792_v20  ;;  %v4766_v20 = vsel %vm1573_vm0, %v10065_v35, -inf }
 0xe3a   : > { %v4712_v26 = vsel %vm1573_vm0, %v10074_v30, 0.0  ;;  %v4714_v21 = vsel %vm1573_vm0, %v10084_v59, 0.0  ;;  %v4768_v8 = vsel %vm1573_vm0, %v10074_v30, -inf }
 0xe3b   : > { %v4713_v31 = vadd.f32 %v4712_v26, %v4711_v62 }
 0xe3d   : > { %v4715_v47 = vadd.f32 %v4714_v21, %v4713_v31 }
 0xe40   : > { %v4697_v40 = vpop.permute.xlu2 %4696 }
 0xe41   : > { %v10090_v32 = vmul.f32 %v4697_v40, %v9837_v58 }
 0xe43   : > { %v4775_v58 = vsel %vm1573_vm0, %v10090_v32, -inf  ;;  %v4720_v44 = vsel %vm1573_vm0, %v10090_v32, 0.0 }
 0xe47   : > { %v4687_v45 = vpop.permute.xlu0 %4686 }
 0xe48   : > { %v10087_v36 = vmul.f32 %v4687_v45, %v9821_v3  ;;  %v4769_v3 = vsel %vm1573_vm0, %v10084_v59, -inf  ;;  %v4909_v7 = vpop.permute.xlu2 %4908 }
 0xe49   : > { %v4770_v55 = vmax.f32 %v4765_v48, %v4769_v3 }
 0xe4a   : > { %v4716_v34 = vsel %vm1573_vm0, %v10087_v36, 0.0  ;;  %v4771_v17 = vsel %vm1573_vm0, %v10087_v36, -inf }
 0xe4b   : > { %v4717_v38 = vadd.f32 %v4716_v34, %v4715_v47  ;;  %v4772_v49 = vmax.f32 %v4766_v20, %v4771_v17 }
 0xe4d   : > { %v4777_v15 = vmax.f32 %v4770_v55, %v4772_v49 }
 0xe4f   : > { %v4692_v57 = vpop.permute.xlu1 %4691  ;;  %v4877_v20 = vpop.permute.xlu0 %4876 }
 0xe50   : > { %v10105_v33 = vmul.f32 %v4692_v57, %v9818_v42  ;;  %v4776_v42 = vmax.f32 %v4768_v8, %v4775_v58  ;;  %v10126_v39 = vpop.permute.xlu2 %4882 }
 0xe52   : > { %v4718_v9 = vsel %vm1573_vm0, %v10105_v33, 0.0  ;;  %v4773_v13 = vsel %vm1573_vm0, %v10105_v33, -inf }
 0xe53   : > { %v4719_v51 = vadd.f32 %v4718_v9, %v4717_v38  ;;  %v4774_v46 = vmax.f32 %v4767_v25, %v4773_v13 }
 0xe55   : > { %v4721_v1 = vadd.f32 %v4720_v44, %v4719_v51  ;;  %v4778_v5 = vmax.f32 %v4774_v46, %v4776_v42 }
 0xe57   : > { %v4722_v10 = vrot.slane %v4721_v1, 4  ;;  %v4779_v24 = vmax.f32 %v4777_v15, %v4778_v5  ;;  %v4879_v47 = vpop.permute.xlu1 %4878  ;;  %v4911_v8 = vpop.permute.xlu0 %4910 }
 0xe58   : > { %v4885_v31 = vpop.permute.xlu2 %4884 }
 0xe59   : > { %v4723_v53 = vadd.f32 %v4722_v10, %v4721_v1  ;;  %v4780_v11 = vrot.slane %v4779_v24, 4 }
 0xe5b   : > { %v4724_v54 = vrot.slane %v4723_v53, 2  ;;  %v4781_v63 = vmax.f32 %v4779_v24, %v4780_v11 }
 0xe5d   : > { %v4725_v61 = vadd.f32 %v4724_v54, %v4723_v53  ;;  %v4782_v2 = vrot.slane %v4781_v63, 2 }
 0xe5f   : > { %v4726_v23 = vrot.slane %v4725_v61, 1  ;;  %v4783_v28 = vmax.f32 %v4781_v63, %v4782_v2  ;;  %v4881_v48 = vpop.permute.xlu1 %4880  ;;  %v4913_v11 = vpop.permute.xlu0 %4912 }
 0xe60   : > { %v10128_v3 = vpop.permute.xlu2 %4918 }
 0xe61   : > { %v4727_v27 = vadd.f32 %v4726_v23, %v4725_v61  ;;  %v4784_v52 = vrot.slane %v4783_v28, 1 }
 0xe63   : > { %v4728_v60 = vmul.f32 %v4727_v27, %v9544_v18  ;;  %v4785_v6 = vmax.f32 %v4783_v28, %v4784_v52 }
 0xe65   : > { %v4729_v56 = vpack.c.bf16 %v4728_v60, %v4728_v60  ;;  %v4786_v22 = vpack.c.bf16 %v4785_v6, %v4785_v6 }
 0xe67   : > { %7130 = vmatmul.msk.bf16.vlgmr.msrb.gmra.mxu2 %vm1573_vm0, %v4729_v56  ;;  %7131 = vmatmul.msk.bf16.vlgmr.msrb.gmra.mxu3 %vm1573_vm0, %v4786_v22  ;;  %v4915_v15 = vpop.permute.xlu1 %4914 }
 0xe68   : > { %v4889_v42 = vpop.permute.xlu2 %4888 }
 0xe6f   : > { %v4917_v60 = vpop.permute.xlu1 %4916 }
 0xe70   : > { %v4891_v27 = vpop.permute.xlu2 %4890 }
 0xe78   : > { %v4921_v19 = vpop.permute.xlu2 %4920 }
 0xeea   : > { %v4758_v29 = vpop.f32.mrf.mxu2  ;;  %v4799_v43 = vpop.f32.mrf.mxu3 }
 0xeeb   : > { %v4762_v16 = vmax.f32 %v4758_v29, 0.0  ;;  %v4803_v0 = vmax.f32 %v4799_v43, 0.0 }
 0xeed   : > { %v4763_v4 = vpack.c.bf16 %v4762_v16, %v4762_v16  ;;  %v4804_v37 = vpack.c.bf16 %v4803_v0, %v4803_v0  ;;  %v7164_v16 = vld [vmem:[%s11038_s3 + $0x48] sm:$0xff]  ;;  %v7163_v0 = vld [vmem:[%s11038_s3 + $0x40] sm:$0xff] }
 0xeef   : > { %7132 = vmatmul.msk.bf16.vlgmr.msra.gmra.mxu2 %vm3434_vm8, %v4804_v37  ;;  %7133 = vmatmul.msk.bf16.vlgmr.msra.gmra.mxu3 %vm3434_vm8, %v4763_v4 }
 0xef2   : > { %v4760_v18 = vpop.f32.mrf.mxu2  ;;  %v4801_v50 = vpop.f32.mrf.mxu3 }
 0xf72   : > { %v4820_v45 = vpop.f32.mrf.mxu2  ;;  %v4836_v26 = vpop.f32.mrf.mxu3 }
 0xf73   : > { %v4837_v62 = vadd.f32 %v4836_v26, %v4820_v45 }
 0xf75   : > { %v7134_v40 = vmul.f32 -1.442695, %v4837_v62 }
 0xf77   : > { %7913 = vpow2.f32 %v7134_v40 }
 0xf7a   : > { %v4822_v21 = vpop.f32.mrf.mxu2  ;;  %v4838_v34 = vpop.f32.mrf.mxu3 }
 0xf7b   : > { %v11039_v21 = vld [vmem:[#allocation38_spill] sm:$0xff] }
 0xf7d   : > { %v7914_v17 = vpop.eup %7913 }
 0xf7e   : > { %v4843_v57 = vadd.f32 1.0, %v7914_v17 }
 0xf80   : > { %7915 = vrcp.f32 %v4843_v57  ;;  %v4855_v25 = vand.u32 2147483648, %v4843_v57  ;;  %v4853_v13 = vand.u32 2147483647, %v4843_v57  ;;  %vm4849_vm12 = vweird.f32 %v4843_v57 }
 0xf82   : > { %v4856_v51 = vor.u32 1.1754944e-38, %v4855_v25  ;;  %vm4854_vm15 = vcmp.eq.f32.partialorder %v4853_v13, 8.507059e+37 }
 0xf86   : > { %v7916_v58 = vpop.eup %7915 }
 0xf87   : > { %v4845_v38 = vmul.f32 %v7916_v58, %v4843_v57  ;;  %vm4850_vm8 = vweird.f32 %v7916_v58 }
 0xf88   : > { %vm4851_vm13 = vmor %vm4849_vm12, %vm4850_vm8 }
 0xf89   : > { %v4846_v49 = vsub.f32 1.0, %v4845_v38 }
 0xf8b   : > { %v4847_v9 = vmul.f32 %v7916_v58, %v4846_v49 }
 0xf8d   : > { %v4848_v55 = vadd.f32 %v7916_v58, %v4847_v9 }
 0xf8f   : > { %v4852_v46 = vsel %vm4851_vm13, %v7916_v58, %v4848_v55 }
 0xf90   : > { %v4857_v44 = vsel %vm4854_vm15, %v4856_v51, %v4852_v46 }
 0xf91   : > { %v4859_v1 = vperm.slane %v4857_v44, 0  ;;  %v7195_v44 = vld [vmem:[%s11038_s3 + $0x140] sm:$0xff] }
 0xf93   : > { %v4861_v5 = vmul.f32 %v4859_v1, %v10065_v35  ;;  %v4860_v10 = vmul.f32 %v4859_v1, %v10062_v14  ;;  %v4862_v24 = vmul.f32 %v4859_v1, %v10068_v12  ;;  %v4864_v53 = vmul.f32 %v4859_v1, %v10084_v59 }
 0xf94   : > { %v4867_v2 = vmul.f32 %v4859_v1, %v10090_v32  ;;  %v4866_v56 = vmul.f32 %v4859_v1, %v10105_v33  ;;  %v4863_v4 = vmul.f32 %v4859_v1, %v10074_v30  ;;  %v4865_v18 = vmul.f32 %v4859_v1, %v10087_v36  ;;  %v4923_v30 = vpop.permute.xlu2 %4922 }
 0xf95   : > { %v4933_v54 = vsel %vm1573_vm0, %v4861_v5, %v4879_v47  ;;  %v4932_v63 = vsel %vm1573_vm0, %v4860_v10, %v4877_v20  ;;  %v4934_v61 = vsel %vm1573_vm0, %v4862_v24, %v4881_v48  ;;  %v4936_v32 = vsel %vm1573_vm0, %v4864_v53, %v4885_v31 }
 0xf96   : > { %v4941_v23 = vsel %vm1618_vm3, %v4933_v54, %v4911_v8  ;;  %v4940_v28 = vsel %vm1618_vm3, %v4932_v63, %v4909_v7  ;;  %v4942_v35 = vsel %vm1618_vm3, %v4934_v61, %v4913_v11  ;;  %v4939_v52 = vsel %vm1573_vm0, %v4867_v2, %v4891_v27  ;;  %v4887_v7 = vpop.permute.xlu0 %4886  ;;  %v7172_v27 = vld [vmem:[%s11038_s3 + $0x88] sm:$0xff] }
 0xf97   : > { %v4952_v14 = vsel %vm1720_vm14, %v4941_v23, 0.0  ;;  %v4949_v12 = vsel %vm1720_vm14, %v4940_v28, 0.0  ;;  %v4955_v59 = vsel %vm1720_vm14, %v4942_v35, 0.0  ;;  %v4944_v6 = vsel %vm1618_vm3, %v4936_v32, %v4917_v60  ;;  %v7171_v32 = vld [vmem:[%s11038_s3 + $0x80] sm:$0xff] }
 0xf98   : > { %4953 = vadd.xlane.f32.xlu1 %v4952_v14  ;;  %4950 = vadd.xlane.f32.xlu0 %v4949_v12  ;;  %v4961_v22 = vsel %vm1720_vm14, %v4944_v6, 0.0  ;;  %v4938_v41 = vsel %vm1573_vm0, %v4866_v56, %v4889_v42  ;;  %v4935_v33 = vsel %vm1573_vm0, %v4863_v4, %v10126_v39  ;;  %v4937_v45 = vsel %vm1573_vm0, %v4865_v18, %v4887_v7  ;;  %v7196_v12 = vld [vmem:[%s11038_s3 + $0x148] sm:$0xff]  ;;  %v7410_v60 = vld [vmem:[%s11040_s5 + $0x20] sm:$0xff]  ;;  %v7409_v56 = vld [vmem:[%s11040_s5 + $0x18] sm:$0xff] }
 0xf99   : > { %4956 = vadd.xlane.f32.xlu2 %v4955_v59  ;;  %v10151_v29 = vsel %vm1618_vm3, %v4938_v41, %v4921_v19  ;;  %v4943_v37 = vsel %vm1618_vm3, %v4935_v33, %v4915_v15  ;;  %v4945_v26 = vsel %vm1618_vm3, %v4937_v45, %v10128_v3  ;;  %v4947_v40 = vsel %vm1618_vm3, %v4939_v52, %v4923_v30  ;;  %v7411_v52 = vld [vmem:[%s11040_s5 + $0x28] sm:$0xff]  ;;  %v7408_v41 = vld [vmem:[%s11040_s5 + $0x10] sm:$0xff]  ;;  %v7406_v4 = vld [vmem:[%s11040_s5] sm:$0xff] }
 0xf9a   : > { %v4967_v43 = vsel %vm1720_vm14, %v10151_v29, 0.0  ;;  %v4958_v50 = vsel %vm1720_vm14, %v4943_v37, 0.0  ;;  %v4964_v62 = vsel %vm1720_vm14, %v4945_v26, 0.0  ;;  %v4970_v39 = vsel %vm1720_vm14, %v4947_v40, 0.0  ;;  %5209 = vmatpush.bf16.msra.mxu0 %v7411_v52  ;;  %v7165_v18 = vld [vmem:[%s11038_s3 + $0x50] sm:$0xff]  ;;  %v7166_v30 = vld [vmem:[%s11038_s3 + $0x58] sm:$0xff] }
 0xf9b   : > { %v7200_v52 = vld [vmem:[%s11038_s3 + $0x168] sm:$0xff] }
 0xf9e   : > { %5210 = vmatpush.bf16.msra.mxu0 %v7410_v60 }
 0xfa0   : > { %4962 = vadd.xlane.f32.xlu1 %v4961_v22  ;;  %v7204_v22 = vld [vmem:[%s11038_s3 + $0x188] sm:$0xff] }
 0xfa2   : > { %5211 = vmatpush.bf16.msra.mxu0 %v7409_v56 }
 0xfa6   : > { %5212 = vmatpush.bf16.msra.mxu0 %v7408_v41  ;;  %v7207_v41 = vld [vmem:[%s11038_s3 + $0x1a0] sm:$0xff] }
 0xfa8   : > { %4968 = vadd.xlane.f32.xlu1 %v4967_v43  ;;  %v7180_v43 = vld [vmem:[%s11038_s3 + $0xc8] sm:$0xff] }
 0xfac   : > { %5360 = vperm.xlu0 %7552, %v7164_v16   ;;  %v7407_v16 = vld [vmem:[%s11040_s5 + $0x8] sm:$0xff]  ;;  %s11041_s5 = sld [smem:[#allocation24_spill]] }
 0xfad   : > { %5213 = vmatpush.bf16.msra.mxu0 %v7407_v16  ;;  %v7208_v16 = vld [vmem:[%s11038_s3 + $0x1a8] sm:$0xff] }
 0xfb1   : > { %5355 = vperm.xlu2 %7554, %v7163_v0   ;;  %v7211_v0 = vld [vmem:[%s11038_s3 + $0x1c0] sm:$0xff]  ;;  %5214 = vmatpush.bf16.msra.mxu0 %v7406_v4  ;;  %v7184_v4 = vld [vmem:[%s11038_s3 + $0xe8] sm:$0xff] }
 0xfd6   : > { %4959 = vadd.xlane.f32.xlu0 %v4958_v50 }
 0xfde   : > { %4965 = vadd.xlane.f32.xlu0 %v4964_v62 }
 0xfe6   : > { %4971 = vadd.xlane.f32.xlu0 %v4970_v39  ;;  %v7198_v39 = vld [vmem:[%s11038_s3 + $0x158] sm:$0xff] }
0x100b   : > { %v4954_v31 = vpop.xlane.xlu1 %4953  ;;  %v4951_v36 = vpop.xlane.xlu0 %4950 }
0x100c   : > { %v4974_v34 = vmul.f32 %v4954_v31, %v11039_v21  ;;  %v4973_v17 = vmul.f32 %v4951_v36, %v11039_v21  ;;  %v4957_v47 = vpop.xlane.xlu2 %4956 }
0x100d   : > { %v4975_v3 = vmul.f32 %v4957_v47, %v11039_v21 }
0x100e   : > { %v10171_v57 = vsub.f32 %v4941_v23, %v4974_v34  ;;  %v10173_v20 = vsub.f32 %v4940_v28, %v4973_v17 }
0x100f   : > { %v10180_v38 = vsub.f32 %v4942_v35, %v4975_v3 }
0x1010   : > { %v4989_v58 = vmul.f32 %v10173_v20, %v10173_v20  ;;  %v4990_v48 = vmul.f32 %v10171_v57, %v10171_v57 }
0x1011   : > { %v4991_v13 = vmul.f32 %v10180_v38, %v10180_v38 }
0x1012   : > { %v4997_v49 = vsel %vm1720_vm14, %v4989_v58, 0.0  ;;  %v5000_v25 = vsel %vm1720_vm14, %v4990_v48, 0.0  ;;  %v7173_v58 = vld [vmem:[%s11038_s3 + $0x90] sm:$0xff] }
0x1013   : > { %v4963_v8 = vpop.xlane.xlu1 %4962  ;;  %4998 = vadd.xlane.f32.xlu1 %v4997_v49  ;;  %5001 = vadd.xlane.f32.xlu0 %v5000_v25  ;;  %v5003_v42 = vsel %vm1720_vm14, %v4991_v13, 0.0 }
0x1014   : > { %v4977_v9 = vmul.f32 %v4963_v8, %v11039_v21  ;;  %v7205_v8 = vld [vmem:[%s11038_s3 + $0x190] sm:$0xff] }
0x1016   : > { %v10187_v55 = vsub.f32 %v4944_v6, %v4977_v9  ;;  %v7203_v6 = vld [vmem:[%s11038_s3 + $0x180] sm:$0xff] }
0x1017   : > { %v4948_v9 = vld [vmem:[%s11041_s5] sm:$0x3]  ;;  %s11042_s5 = sld [smem:[#allocation26_spill]] }
0x1018   : > { %v4993_v51 = vmul.f32 %v10187_v55, %v10187_v55 }
0x101a   : > { %v5009_v46 = vsel %vm1720_vm14, %v4993_v51, 0.0 }
0x101b   : > { %5004 = vadd.xlane.f32.xlu1 %v5003_v42  ;;  %v4969_v19 = vpop.xlane.xlu1 %4968 }
0x101c   : > { %v4979_v62 = vmul.f32 %v4969_v19, %v11039_v21  ;;  %v7197_v19 = vld [vmem:[%s11038_s3 + $0x150] sm:$0xff] }
0x101e   : > { %v10194_v15 = vpop.permute.xlu0 %5360 }
0x1023   : > { %5010 = vadd.xlane.f32.xlu1 %v5009_v46  ;;  %v10242_v46 = vperm.slane %v4948_v9, 0 }
0x103c   : > { %5609 = vperm.xlu1 %7553, %v7195_v44  }
0x1049   : > { %v4960_v1 = vpop.xlane.xlu0 %4959 }
0x104a   : > { %v4976_v5 = vmul.f32 %v4960_v1, %v11039_v21 }
0x104c   : > { %v10197_v10 = vsub.f32 %v4943_v37, %v4976_v5  ;;  %v7206_v5 = vld [vmem:[%s11038_s3 + $0x198] sm:$0xff] }
0x104e   : > { %v4992_v24 = vmul.f32 %v10197_v10, %v10197_v10 }
0x1050   : > { %v5006_v53 = vsel %vm1720_vm14, %v4992_v24, 0.0  ;;  %v10245_v24 = vperm.slane %v4948_v9, 1 }
0x1051   : > { %v4966_v11 = vpop.xlane.xlu0 %4965  ;;  %5007 = vadd.xlane.f32.xlu0 %v5006_v53 }
0x1052   : > { %v4978_v54 = vmul.f32 %v4966_v11, %v11039_v21 }
0x1054   : > { %v10203_v63 = vsub.f32 %v4945_v26, %v4978_v54 }
0x1056   : > { %v4994_v61 = vmul.f32 %v10203_v63, %v10203_v63 }
0x1058   : > { %v5012_v2 = vsel %vm1720_vm14, %v4994_v61, 0.0  ;;  %v7182_v61 = vld [vmem:[%s11038_s3 + $0xd8] sm:$0xff] }
0x1059   : > { %5013 = vadd.xlane.f32.xlu2 %v5012_v2  ;;  %v4972_v23 = vpop.xlane.xlu0 %4971 }
0x105a   : > { %v4980_v28 = vmul.f32 %v4972_v23, %v11039_v21 }
0x105c   : > { %v10209_v35 = vsub.f32 %v4947_v40, %v4980_v28  ;;  %v10233_v40 = vsub.f32 %v10151_v29, %v4979_v62  ;;  %v7215_v62 = vld [vmem:[%s11038_s3 + $0x1e0] sm:$0xff] }
0x105e   : > { %v4996_v14 = vmul.f32 %v10209_v35, %v10209_v35  ;;  %v4995_v17 = vmul.f32 %v10233_v40, %v10233_v40 }
0x1060   : > { %v5018_v59 = vsel %vm1720_vm14, %v4996_v14, 0.0  ;;  %v5015_v25 = vsel %vm1720_vm14, %v4995_v17, 0.0 }
0x1065   : > { %5614 = vperm.xlu0 %7552, %v7196_v12  }
0x1066   : > { %5019 = vadd.xlane.f32.xlu1 %v5018_v59  ;;  %v7213_v59 = vld [vmem:[%s11038_s3 + $0x1d0] sm:$0xff] }
0x106d   : > { %5443 = vperm.xlu0 %7552, %v7172_v27  }
0x1071   : > { %5438 = vperm.xlu2 %7554, %v7171_v32   ;;  %v7168_v32 = vld [vmem:[%s11038_s3 + $0x68] sm:$0xff] }
0x1079   : > { %5666 = vperm.xlu2 %7554, %v7203_v6   ;;  %v7212_v6 = vld [vmem:[%s11038_s3 + $0x1c8] sm:$0xff] }
0x107f   : > { %5671 = vperm.xlu1 %7553, %v7204_v22   ;;  %v7175_v22 = vld [vmem:[%s11038_s3 + $0xa0] sm:$0xff] }
0x1081   : > { %5500 = vperm.xlu2 %7554, %v7180_v43  }
0x1086   : > { %v4999_v33 = vpop.xlane.xlu1 %4998  ;;  %v5002_v37 = vpop.xlane.xlu0 %5001 }
0x1087   : > { %v5021_v50 = vmul.f32 %v4999_v33, %v11039_v21  ;;  %v5022_v7 = vmul.f32 %v5002_v37, %v11039_v21  ;;  %5723 = vperm.xlu1 %7553, %v7211_v0  }
0x1089   : > { %v5029_v45 = vadd.f32 1e-06, %v5021_v50  ;;  %v5030_v26 = vadd.f32 1e-06, %v5022_v7  ;;  %5365 = vperm.xlu2 %7554, %v7165_v18   ;;  %v7174_v18 = vld [vmem:[%s11038_s3 + $0x98] sm:$0xff]  ;;  %v10271_v7 = vpop.permute.xlu2 %5355 }
0x108b   : > { %7917 = vrsqrt.f32 %v5029_v45  ;;  %vm5043_vm4 = vweird.f32 %v5029_v45  ;;  %vm5053_vm6 = vweird.f32 %v5030_v26 }
0x108c   : > { %7919 = vrsqrt.f32 %v5030_v26 }
0x108e   : > { %v5005_v27 = vpop.xlane.xlu1 %5004 }
0x108f   : > { %5370 = vperm.xlu1 %7553, %v7166_v30   ;;  %v5023_v60 = vmul.f32 %v5005_v27, %v11039_v21 }
0x1091   : > { %v7918_v31 = vpop.eup %7917  ;;  %5624 = vperm.xlu2 %7554, %v7198_v39   ;;  %v5031_v56 = vadd.f32 1e-06, %v5023_v60  ;;  %v5288_v39 = vld [vmem:[%s11038_s3] sm:$0xff] }
0x1092   : > { %v7920_v36 = vpop.eup %7919  ;;  %v5038_v34 = vmul.f32 %v7918_v31, %v5029_v45  ;;  %vm5044_vm1 = vweird.f32 %v7918_v31 }
0x1093   : > { %v5048_v47 = vmul.f32 %v7920_v36, %v5030_v26  ;;  %vm5054_vm2 = vweird.f32 %v7920_v36  ;;  %vm5045_vm5 = vmor %vm5043_vm4, %vm5044_vm1  ;;  %7921 = vrsqrt.f32 %v5031_v56  ;;  %vm5063_vm11 = vweird.f32 %v5031_v56 }
0x1094   : > { %v5039_v3 = vmul.f32 %v7918_v31, %v5038_v34  ;;  %vm5055_vm9 = vmor %vm5053_vm6, %vm5054_vm2  ;;  %v7181_v34 = vld [vmem:[%s11038_s3 + $0xd0] sm:$0xff] }
0x1095   : > { %v5049_v48 = vmul.f32 %v7920_v36, %v5048_v47 }
0x1096   : > { %v5040_v49 = vmul.f32 0.5, %v5039_v3  ;;  %v5011_v43 = vpop.xlane.xlu1 %5010  ;;  %v5289_v3 = vld [vmem:[%s11038_s3 + $0x8] sm:$0xff] }
0x1097   : > { %v5050_v29 = vmul.f32 0.5, %v5049_v48  ;;  %5016 = vadd.xlane.f32.xlu0 %v5015_v25  ;;  %5448 = vperm.xlu1 %7553, %v7173_v58   ;;  %v5025_v33 = vmul.f32 %v5011_v43, %v11039_v21 }
0x1098   : > { %v5041_v13 = vsub.f32 1.5, %v5040_v49  ;;  %v7188_v49 = vld [vmem:[%s11038_s3 + $0x108] sm:$0xff] }
0x1099   : > { %v5051_v42 = vsub.f32 1.5, %v5050_v29  ;;  %5676 = vperm.xlu2 %7554, %v7205_v8   ;;  %v7922_v0 = vpop.eup %7921  ;;  %v10269_v50 = vadd.f32 1e-06, %v5025_v33 }
0x109a   : > { %v5042_v51 = vmul.f32 %v7918_v31, %v5041_v13  ;;  %v5058_v37 = vmul.f32 %v7922_v0, %v5031_v56  ;;  %vm5064_vm10 = vweird.f32 %v7922_v0 }
0x109b   : > { %v5052_v44 = vmul.f32 %v7920_v36, %v5051_v42  ;;  %7923 = vrsqrt.f32 %v10269_v50  ;;  %v7214_v42 = vld [vmem:[%s11038_s3 + $0x1d8] sm:$0xff]  ;;  %vm5065_vm8 = vmor %vm5063_vm11, %vm5064_vm10  ;;  %vm5083_vm6 = vweird.f32 %v10269_v50 }
0x109c   : > { %v5046_v1 = vsel %vm5045_vm5, %v7918_v31, %v5042_v51  ;;  %v5059_v45 = vmul.f32 %v7922_v0, %v5058_v37 }
0x109d   : > { %v5117_v53 = vmul.f32 %v5046_v1, %v10173_v20  ;;  %v5056_v11 = vsel %vm5055_vm9, %v7920_v36, %v5052_v44  ;;  %v7179_v20 = vld [vmem:[%s11038_s3 + $0xc0] sm:$0xff] }
0x109e   : > { %v5118_v54 = vmul.f32 %v5056_v11, %v10171_v57  ;;  %v7167_v57 = vld [vmem:[%s11038_s3 + $0x60] sm:$0xff]  ;;  %v5060_v36 = vmul.f32 0.5, %v5059_v45  ;;  %v7169_v11 = vld [vmem:[%s11038_s3 + $0x70] sm:$0xff] }
0x109f   : > { %v5126_v2 = vmul.f32 %v10242_v46, %v5117_v53  ;;  %5681 = vperm.xlu1 %7553, %v7206_v5  }
0x10a0   : > { %v5127_v23 = vmul.f32 %v10242_v46, %v5118_v54  ;;  %v5061_v17 = vsub.f32 1.5, %v5060_v36 }
0x10a1   : > { %v5135_v28 = vadd.f32 %v10245_v24, %v5126_v2  ;;  %5510 = vperm.xlu2 %7554, %v7182_v61   ;;  %v10279_v58 = vpop.eup %7923  ;;  %v7201_v61 = vld [vmem:[%s11038_s3 + $0x170] sm:$0xff] }
0x10a2   : > { %v5136_v14 = vadd.f32 %v10245_v24, %v5127_v23  ;;  %v5062_v29 = vmul.f32 %v7922_v0, %v5061_v17  ;;  %v5078_v9 = vmul.f32 %v10279_v58, %v10269_v50  ;;  %vm5084_vm2 = vweird.f32 %v10279_v58  ;;  %v7183_v50 = vld [vmem:[%s11038_s3 + $0xe0] sm:$0xff] }
0x10a3   : > { %vm5085_vm9 = vmor %vm5083_vm6, %vm5084_vm2 }
0x10a4   : > { %v5143_v12 = vpack.c.bf16 %v5136_v14, %v5135_v28  ;;  %v5066_v44 = vsel %vm5065_vm8, %v7922_v0, %v5062_v29  ;;  %v5079_v1 = vmul.f32 %v10279_v58, %v5078_v9  ;;  %v7176_v0 = vld [vmem:[%s11038_s3 + $0xa8] sm:$0xff]  ;;  %v5290_v9 = vld [vmem:[%s11038_s3 + $0x10] sm:$0xff] }
0x10a5   : > { %v5119_v23 = vmul.f32 %v5066_v44, %v10180_v38 }
0x10a6   : > { %7159 = vmatmul.msk.bf16.vlgmr.msra.gmra.mxu0 %vm1720_vm14, %v5143_v12  ;;  %v5080_v28 = vmul.f32 0.5, %v5079_v1 }
0x10a7   : > { %5733 = vperm.xlu1 %7553, %v7213_v59   ;;  %v7199_v59 = vld [vmem:[%s11038_s3 + $0x160] sm:$0xff] }
0x10a9   : > { %5375 = vperm.xlu2 %7554, %v7167_v57  }
0x10ab   : > { %5495 = vperm.xlu0 %7552, %v7179_v20  }
0x10af   : > { %5380 = vperm.xlu1 %7553, %v7168_v32   ;;  %v5128_v32 = vmul.f32 %v10242_v46, %v5119_v23 }
0x10b1   : > { %5634 = vperm.xlu2 %7554, %v7200_v52   ;;  %v5081_v52 = vsub.f32 1.5, %v5080_v28 }
0x10b3   : > { %5728 = vperm.xlu0 %7552, %v7212_v6   ;;  %v7202_v6 = vld [vmem:[%s11038_s3 + $0x178] sm:$0xff] }
0x10b7   : > { %5458 = vperm.xlu1 %7553, %v7175_v22  }
0x10b9   : > { %5686 = vperm.xlu2 %7554, %v7207_v41   ;;  %v7178_v41 = vld [vmem:[%s11038_s3 + $0xb8] sm:$0xff] }
0x10bb   : > { %5619 = vperm.xlu0 %7552, %v7197_v19   ;;  %v5137_v19 = vadd.f32 %v10245_v24, %v5128_v32 }
0x10bf   : > { %5691 = vperm.xlu1 %7553, %v7208_v16  }
0x10c1   : > { %5520 = vperm.xlu2 %7554, %v7184_v4   ;;  %v10305_v4 = vpop.permute.xlu1 %5609 }
0x10c3   : > { %5453 = vperm.xlu0 %7552, %v7174_v18  }
0x10c4   : > { %v5008_v26 = vpop.xlane.xlu0 %5007 }
0x10c5   : > { %v5024_v30 = vmul.f32 %v5008_v26, %v11039_v21  ;;  %v7209_v26 = vld [vmem:[%s11038_s3 + $0x1b0] sm:$0xff] }
0x10c7   : > { %v5032_v31 = vadd.f32 1e-06, %v5024_v30  ;;  %5743 = vperm.xlu1 %7553, %v7215_v62   ;;  %v7185_v30 = vld [vmem:[%s11038_s3 + $0xf0] sm:$0xff] }
0x10c9   : > { %7925 = vrsqrt.f32 %v5032_v31  ;;  %5298 = vperm.xlu2 %7554, %v5288_v39   ;;  %vm5073_vm13 = vweird.f32 %v5032_v31 }
0x10cb   : > { %5505 = vperm.xlu0 %7552, %v7181_v34  }
0x10cc   : > { %v5014_v47 = vpop.xlane.xlu2 %5013 }
0x10cd   : > { %v5026_v48 = vmul.f32 %v5014_v47, %v11039_v21  ;;  %v7186_v47 = vld [vmem:[%s11038_s3 + $0xf8] sm:$0xff] }
0x10cf   : > { %v7926_v25 = vpop.eup %7925  ;;  %v5034_v8 = vadd.f32 1e-06, %v5026_v48  ;;  %5303 = vperm.xlu1 %7553, %v5289_v3   ;;  %v7218_v3 = vld [vmem:[%s11038_s3 + $0x1f8] sm:$0xff] }
0x10d0   : > { %v5068_v13 = vmul.f32 %v7926_v25, %v5032_v31  ;;  %vm5074_vm12 = vweird.f32 %v7926_v25 }
0x10d1   : > { %7927 = vrsqrt.f32 %v5034_v8  ;;  %5557 = vperm.xlu2 %7554, %v7188_v49   ;;  %vm5075_vm15 = vmor %vm5073_vm13, %vm5074_vm12  ;;  %vm5093_vm4 = vweird.f32 %v5034_v8 }
0x10d2   : > { %v5069_v51 = vmul.f32 %v7926_v25, %v5068_v13 }
0x10d3   : > { %5738 = vperm.xlu0 %7552, %v7214_v42   ;;  %v7187_v42 = vld [vmem:[%s11038_s3 + $0x100] sm:$0xff] }
0x10d4   : > { %v5070_v5 = vmul.f32 0.5, %v5069_v51  ;;  %v10287_v53 = vpop.permute.xlu2 %5438 }
0x10d6   : > { %v5071_v54 = vsub.f32 1.5, %v5070_v5  ;;  %v5291_v5 = vld [vmem:[%s11038_s3 + $0x18] sm:$0xff] }
0x10d7   : > { %v7928_v2 = vpop.eup %7927  ;;  %5385 = vperm.xlu1 %7553, %v7169_v11   ;;  %v10334_v13 = vpop.permute.xlu0 %5614  ;;  %v7190_v11 = vld [vmem:[%s11038_s3 + $0x118] sm:$0xff] }
0x10d8   : > { %v5072_v14 = vmul.f32 %v7926_v25, %v5071_v54  ;;  %v5088_v12 = vmul.f32 %v7928_v2, %v5034_v8  ;;  %vm5094_vm1 = vweird.f32 %v7928_v2  ;;  %v7219_v8 = vld [vmem:[%s11038_s3 + $0x200] sm:$0xff]  ;;  %v7170_v54 = vld [vmem:[%s11038_s3 + $0x78] sm:$0xff] }
0x10d9   : > { %5639 = vperm.xlu2 %7554, %v7201_v61   ;;  %vm5095_vm5 = vmor %vm5093_vm4, %vm5094_vm1  ;;  %v5020_v31 = vpop.xlane.xlu1 %5019  ;;  %vm5403_vm1 = vcmask 1046528  }
0x10da   : > { %v5076_v57 = vsel %vm5075_vm15, %v7926_v25, %v5072_v14  ;;  %v5089_v20 = vmul.f32 %v7928_v2, %v5088_v12  ;;  %v5028_v29 = vmul.f32 %v5020_v31, %v11039_v21  ;;  %v7221_v14 = vld [vmem:[%s11038_s3 + $0x210] sm:$0xff] }
0x10db   : > { %v5120_v27 = vmul.f32 %v5076_v57, %v10197_v10  ;;  %5629 = vperm.xlu0 %7552, %v7199_v59   ;;  %v5082_v10 = vmul.f32 %v10279_v58, %v5081_v52  ;;  %v5292_v59 = vld [vmem:[%s11038_s3 + $0x20] sm:$0xff]  ;;  %v7177_v57 = vld [vmem:[%s11038_s3 + $0xb0] sm:$0xff] }
0x10dc   : > { %v5090_v38 = vmul.f32 0.5, %v5089_v20  ;;  %v10295_v60 = vpop.permute.xlu2 %5666  ;;  %v5036_v51 = vadd.f32 1e-06, %v5028_v29 }
0x10dd   : > { %v5129_v56 = vmul.f32 %v10242_v46, %v5120_v27  ;;  %v5086_v18 = vsel %vm5085_vm9, %v10279_v58, %v5082_v10  ;;  %v7216_v58 = vld [vmem:[%s11038_s3 + $0x1e8] sm:$0xff] }
0x10de   : > { %v5091_v22 = vsub.f32 1.5, %v5090_v38  ;;  %v5121_v39 = vmul.f32 %v5086_v18, %v10187_v55  ;;  %7929 = vrsqrt.f32 %v5036_v51  ;;  %vm5113_vm11 = vweird.f32 %v5036_v51 }
0x10df   : > { %5644 = vperm.xlu1 %7553, %v7202_v6   ;;  %v5138_v43 = vadd.f32 %v10245_v24, %v5129_v56 }
0x10e0   : > { %v5092_v16 = vmul.f32 %v7928_v2, %v5091_v22  ;;  %v5130_v34 = vmul.f32 %v10242_v46, %v5121_v39  ;;  %v7210_v22 = vld [vmem:[%s11038_s3 + $0x1b8] sm:$0xff] }
0x10e1   : > { %5473 = vperm.xlu2 %7554, %v7178_v41   ;;  %v5144_v33 = vpack.c.bf16 %v5138_v43, %v5137_v19 }
0x10e2   : > { %v5096_v37 = vsel %vm5095_vm5, %v7928_v2, %v5092_v16  ;;  %v5139_v55 = vadd.f32 %v10245_v24, %v5130_v34  ;;  %v10346_v2 = vpop.permute.xlu0 %5443  ;;  %v7220_v34 = vld [vmem:[%s11038_s3 + $0x208] sm:$0xff] }
0x10e3   : > { %5463 = vperm.xlu0 %7552, %v7176_v0   ;;  %7160 = vmatmul.msk.bf16.gmra.mxu0 %vm1720_vm14, %v5144_v33  ;;  %v5122_v62 = vmul.f32 %v5096_v37, %v10203_v63  ;;  %v7217_v33 = vld [vmem:[%s11038_s3 + $0x1f0] sm:$0xff] }
0x10e4   : > { %v10310_v45 = vpop.permute.xlu2 %5500  ;;  %v7930_v23 = vpop.eup %7929 }
0x10e5   : > { %v5131_v36 = vmul.f32 %v10242_v46, %v5122_v62  ;;  %v5108_v12 = vmul.f32 %v7930_v23, %v5036_v51  ;;  %vm5114_vm10 = vweird.f32 %v7930_v23 }
0x10e6   : > { %vm5115_vm8 = vmor %vm5113_vm11, %vm5114_vm10 }
0x10e7   : > { %5696 = vperm.xlu1 %7553, %v7209_v26   ;;  %v5140_v63 = vadd.f32 %v10245_v24, %v5131_v36  ;;  %v5109_v27 = vmul.f32 %v7930_v23, %v5108_v12 }
0x10e9   : > { %5525 = vperm.xlu2 %7554, %v7185_v30   ;;  %v5145_v49 = vpack.c.bf16 %v5140_v63, %v5139_v55  ;;  %v5110_v56 = vmul.f32 0.5, %v5109_v27 }
0x10eb   : > { %5515 = vperm.xlu0 %7552, %v7183_v50   ;;  %v5111_v19 = vsub.f32 1.5, %v5110_v56 }
0x10ec   : > { %v10319_v17 = vpop.permute.xlu2 %5365 }
0x10ed   : > { %v5112_v16 = vmul.f32 %v7930_v23, %v5111_v19 }
0x10ef   : > { %5530 = vperm.xlu1 %7553, %v7186_v47   ;;  %v5116_v18 = vsel %vm5115_vm8, %v7930_v23, %v5112_v16 }
0x10f0   : > { %v5124_v39 = vmul.f32 %v5116_v18, %v10209_v35 }
0x10f1   : > { %5758 = vperm.xlu2 %7554, %v7218_v3   ;;  %v10326_v48 = vpop.permute.xlu1 %5671 }
0x10f2   : > { %v5133_v3 = vmul.f32 %v10242_v46, %v5124_v39 }
0x10f3   : > { %5748 = vperm.xlu0 %7552, %v7216_v58   ;;  %7161 = vmatmul.msk.bf16.gmra.mxu0 %vm1720_vm14, %v5145_v49 }
0x10f4   : > { %v10329_v25 = vpop.permute.xlu2 %5624 }
0x10f7   : > { %5780 = vperm.xlu1 %7553, %v7219_v8   ;;  %v5142_v8 = vadd.f32 %v10245_v24, %v5133_v3 }
0x10f9   : > { %5308 = vperm.xlu2 %7554, %v5290_v9   ;;  %v10337_v44 = vpop.permute.xlu1 %5723  ;;  %v7189_v9 = vld [vmem:[%s11038_s3 + $0x110] sm:$0xff] }
0x10fb   : > { %5552 = vperm.xlu0 %7552, %v7187_v42  }
0x10fc   : > { %v10339_v1 = vpop.permute.xlu2 %5676 }
0x10ff   : > { %5313 = vperm.xlu1 %7553, %v5291_v5  }
0x1101   : > { %5567 = vperm.xlu2 %7554, %v7190_v11   ;;  %v10344_v61 = vpop.permute.xlu1 %5370 }
0x1103   : > { %5390 = vperm.xlu0 %7552, %v7170_v54  }
0x1104   : > { %v10348_v28 = vpop.permute.xlu2 %5510 }
0x1107   : > { %5790 = vperm.xlu1 %7553, %v7221_v14  }
0x1109   : > { %5318 = vperm.xlu2 %7554, %v5292_v59   ;;  %v10353_v20 = vpop.permute.xlu1 %5448 }
0x110a   : > { %v5017_v32 = vpop.xlane.xlu0 %5016 }
0x110b   : > { %v5027_v52 = vmul.f32 %v5017_v32, %v11039_v21  ;;  %5468 = vperm.xlu0 %7552, %v7177_v57  }
0x110c   : > { %v10356_v38 = vpop.permute.xlu2 %5375 }
0x110d   : > { %v5035_v6 = vadd.f32 1e-06, %v5027_v52  ;;  %v5236_v52 = vld [vmem:[%s11042_s5] sm:$0x3]  ;;  %s11048_s5 = sld [smem:[#allocation27_spill]] }
0x110e   : > { %v10415_v19 = vperm.slane %v5236_v52, 0 }
0x110f   : > { %7931 = vrsqrt.f32 %v5035_v6  ;;  %vm5103_vm13 = vweird.f32 %v5035_v6 }
0x1111   : > { %v10359_v41 = vpop.permute.xlu1 %5681 }
0x1113   : > { %5701 = vperm.xlu0 %7552, %v7210_v22  }
0x1114   : > { %v10361_v43 = vpop.permute.xlu2 %5634 }
0x1115   : > { %v7932_v10 = vpop.eup %7931 }
0x1116   : > { %v5098_v0 = vmul.f32 %v7932_v10, %v5035_v6  ;;  %vm5104_vm12 = vweird.f32 %v7932_v10 }
0x1117   : > { %vm5105_vm15 = vmor %vm5103_vm13, %vm5104_vm12 }
0x1118   : > { %v5099_v21 = vmul.f32 %v7932_v10, %v5098_v0 }
0x1119   : > { %v10364_v37 = vpop.permute.xlu1 %5733 }
0x111a   : > { %v5100_v26 = vmul.f32 0.5, %v5099_v21  ;;  %v10421_v21 = vperm.slane %v5236_v52, 1 }
0x111b   : > { %5753 = vperm.xlu0 %7552, %v7217_v33  }
0x111c   : > { %v5101_v62 = vsub.f32 1.5, %v5100_v26  ;;  %v10366_v30 = vpop.permute.xlu2 %5686 }
0x111d   : > { %v10369_v50 = vpop.permute.xlu0 %5495 }
0x111e   : > { %v5102_v31 = vmul.f32 %v7932_v10, %v5101_v62 }
0x1120   : > { %v5106_v36 = vsel %vm5105_vm15, %v7932_v10, %v5102_v31 }
0x1121   : > { %v5123_v47 = vmul.f32 %v5106_v36, %v10233_v40  ;;  %v10373_v63 = vpop.permute.xlu1 %5380 }
0x1123   : > { %5785 = vperm.xlu0 %7552, %v7220_v34   ;;  %v5132_v55 = vmul.f32 %v10242_v46, %v5123_v47  ;;  %v7222_v46 = vld [vmem:[%s11038_s3 + $0x218] sm:$0xff]  ;;  %v5216_v59 = vpop.f32.mrf.mxu0 }
0x1124   : > { %v10377_v58 = vpop.permute.xlu2 %5520  ;;  %v5238_v0 = vmul.f32 %v10415_v19, %v5216_v59 }
0x1125   : > { %v5729_v35 = vpop.permute.xlu0 %5728  ;;  %v5141_v49 = vadd.f32 %v10245_v24, %v5132_v55 }
0x1126   : > { %v10431_v62 = vadd.f32 %v10421_v21, %v5238_v0 }
0x1127   : > { %v5146_v29 = vpack.c.bf16 %v5142_v8, %v5141_v49 }
0x1128   : > { %v10952_v36 = vrot.slane %v10431_v62, 7 }
0x1129   : > { %v10382_v42 = vpop.permute.xlu1 %5458  ;;  %7162 = vmatmul.msk.bf16.gmra.mxu0 %vm1720_vm14, %v5146_v29 }
0x112b   : > { %5562 = vperm.xlu0 %7552, %v7189_v9   ;;  %v5218_v56 = vpop.f32.mrf.mxu0 }
0x112c   : > { %v10385_v40 = vpop.permute.xlu2 %5298  ;;  %v5239_v10 = vmul.f32 %v10415_v19, %v5218_v56 }
0x112d   : > { %11043 = vst [vmem:[#allocation38_spill] sm:$0xff] %v10385_v40  ;;  %v10387_v51 = vpop.permute.xlu0 %5619 }
0x112e   : > { %v10424_v33 = vadd.f32 %v10421_v21, %v5239_v10 }
0x1130   : > { %v5269_v39 = vrot.slane %v10424_v33, 7  ;;  %v5405_v8 = vrot.slane %v10424_v33, 1  ;;  %v5761_v52 = vmul.f32 %v10337_v44, %v10424_v33  ;;  %v5395_v10 = vmul.f32 %v10319_v17, %v10424_v33 }
0x1131   : > { %v10390_v5 = vpop.permute.xlu1 %5691 }
0x1132   : > { %v10440_v34 = vsel %vm3438_vm7, %v10952_v36, %v5269_v39 }
0x1133   : > { %5795 = vperm.xlu0 %7552, %v7222_v46   ;;  %v10953_v46 = vrot.slane %v10431_v62, 1 }
0x1134   : > { %v10392_v11 = vpop.permute.xlu2 %5557 }
0x1135   : > { %v10394_v54 = vpop.permute.xlu0 %5453  ;;  %v10460_v56 = vsel %vm5403_vm1, %v10953_v46, %v5405_v8 }
0x1136   : > { %v5647_v17 = vmul.f32 %v10305_v4, %v10460_v56 }
0x1139   : > { %v10396_v24 = vpop.permute.xlu1 %5743 }
0x113c   : > { %v10398_v23 = vpop.permute.xlu2 %5639 }
0x113d   : > { %v10400_v14 = vpop.permute.xlu0 %5505 }
0x1141   : > { %v10402_v12 = vpop.permute.xlu1 %5303 }
0x1142   : > { %11044 = vst [vmem:[#allocation40_spill] sm:$0xff] %v10402_v12 }
0x1144   : > { %v10404_v57 = vpop.permute.xlu2 %5473 }
0x1145   : > { %v10406_v27 = vpop.permute.xlu0 %5738 }
0x1149   : > { %v10408_v32 = vpop.permute.xlu1 %5385 }
0x114c   : > { %v10411_v6 = vpop.permute.xlu2 %5525 }
0x114d   : > { %v10413_v22 = vpop.permute.xlu0 %5629 }
0x1151   : > { %v10418_v16 = vpop.permute.xlu1 %5644 }
0x1154   : > { %v10426_v18 = vpop.permute.xlu2 %5758 }
0x1155   : > { %11045 = vst [vmem:[#allocation41_spill] sm:$0xff] %v10426_v18  ;;  %v10428_v26 = vpop.permute.xlu0 %5463 }
0x1159   : > { %v10434_v31 = vpop.permute.xlu1 %5696 }
0x115a   : > { %11046 = vst [vmem:[#allocation42_spill] sm:$0xff] %v10434_v31 }
0x115c   : > { %v5309_v47 = vpop.permute.xlu2 %5308 }
0x115d   : > { %v10443_v3 = vmul.f32 %v5309_v47, %v10440_v34  ;;  %v10445_v55 = vpop.permute.xlu0 %5515 }
0x1160   : > { %v5221_v49 = vpop.f32.mrf.mxu0 }
0x1161   : > { %v5240_v29 = vmul.f32 %v10415_v19, %v5221_v49  ;;  %v10449_v9 = vpop.permute.xlu1 %5530 }
0x1163   : > { %v10453_v59 = vadd.f32 %v10421_v21, %v5240_v29 }
0x1165   : > { %11047 = vst [vmem:[#allocation43_spill] sm:$0xff] %v10453_v59  ;;  %v10464_v0 = vpop.permute.xlu0 %5748  ;;  %v5762_v47 = vmul.f32 %v5729_v35, %v10453_v59  ;;  %v5407_v49 = vrot.slane %v10453_v59, 1  ;;  %v5396_v29 = vmul.f32 %v10344_v61, %v10453_v59  ;;  %v5271_v36 = vrot.slane %v10453_v59, 7 }
0x1167   : > { %v7555_v44 = vpack.i.bf16 %v5762_v47, %v5761_v52  ;;  %v10472_v40 = vsel %vm5403_vm1, %v5405_v8, %v5407_v49  ;;  %v7560_v46 = vpack.i.bf16 %v5396_v29, %v5395_v10  ;;  %v5272_v18 = vsel %vm3438_vm7, %v5269_v39, %v5271_v36  ;;  %v7429_v47 = vld [vmem:[%s11048_s5 + $0x88] sm:$0xff] }
0x1168   : > { %v5223_v12 = vpop.f32.mrf.mxu0  ;;  %v5648_v35 = vmul.f32 %v10334_v13, %v10472_v40  ;;  %v5705_v4 = vmul.f32 %v10326_v48, %v5272_v18  ;;  %v5704_v13 = vmul.f32 %v10295_v60, %v10440_v34  ;;  %6298 = vmatpush.bf16.msra.mxu1 %v7429_v47 }
0x1169   : > { %v5241_v31 = vmul.f32 %v10415_v19, %v5223_v12  ;;  %7556 = vrot.lane.b32.xlu2 %v7555_v44, %s8086_s6  ;;  %v5781_v61 = vpop.permute.xlu1 %5780  ;;  %7561 = vrot.lane.b32.xlu1 %v7560_v46, %s11034_s1  ;;  %v5478_v44 = vmul.f32 %v10353_v20, %v10472_v40 }
0x116a   : > { %v7565_v8 = vpack.i.bf16 %v5648_v35, %v5647_v17  ;;  %v5535_v35 = vmul.f32 %v10400_v14, %v5272_v18 }
0x116b   : > { %v10483_v52 = vadd.f32 %v10421_v21, %v5241_v31  ;;  %v7570_v31 = vpack.i.bf16 %v5705_v4, %v5704_v13 }
0x116c   : > { %7566 = vrot.lane.b32.xlu0 %v7565_v8, %s11034_s1 }
0x116d   : > { %v5409_v39 = vrot.slane %v10483_v52, 1  ;;  %v5273_v12 = vrot.slane %v10483_v52, 7  ;;  %v10491_v10 = vpop.permute.xlu0 %5552 }
0x116f   : > { %v5410_v46 = vsel %vm5403_vm1, %v5407_v49, %v5409_v39  ;;  %v10496_v29 = vsel %vm3438_vm7, %v5271_v36, %v5273_v12 }
0x1170   : > { %v5479_v48 = vmul.f32 %v10394_v54, %v5410_v46  ;;  %v5536_v60 = vmul.f32 %v10348_v28, %v10496_v29  ;;  %v5226_v17 = vpop.f32.mrf.mxu0 }
0x1171   : > { %v5242_v8 = vmul.f32 %v10415_v19, %v5226_v17  ;;  %v5314_v59 = vpop.permute.xlu1 %5313  ;;  %7571 = vrot.lane.b32.xlu1 %v7570_v31, %s11036_s4  ;;  %v5706_v31 = vmul.f32 %v10339_v1, %v10496_v29 }
0x1172   : > { %v7575_v36 = vpack.i.bf16 %v5479_v48, %v5478_v44  ;;  %v10506_v49 = vmul.f32 %v5314_v59, %v5272_v18  ;;  %v7580_v4 = vpack.i.bf16 %v5536_v60, %v5535_v35  ;;  %v5763_v59 = vmul.f32 %v10364_v37, %v10483_v52 }
0x1173   : > { %v10509_v54 = vadd.f32 %v10421_v21, %v5242_v8  ;;  %v5649_v44 = vmul.f32 %v10387_v51, %v5410_v46 }
0x1174   : > { %7576 = vrot.lane.b32.xlu2 %v7575_v36, %s11036_s4  ;;  %7581 = vrot.lane.b32.xlu0 %v7580_v4, %s8086_s6  ;;  %v7191_v4 = vld [vmem:[%s11038_s3 + $0x120] sm:$0xff] }
0x1175   : > { %v5391_v28 = vpop.permute.xlu0 %5390  ;;  %v5411_v20 = vrot.slane %v10509_v54, 1  ;;  %v5275_v14 = vrot.slane %v10509_v54, 7  ;;  %v5764_v13 = vmul.f32 %v10406_v27, %v10509_v54 }
0x1177   : > { %v5412_v18 = vsel %vm5403_vm1, %v5409_v39, %v5411_v20  ;;  %v10523_v47 = vsel %vm3438_vm7, %v5273_v12, %v5275_v14  ;;  %v7428_v39 = vld [vmem:[%s11048_s5 + $0x80] sm:$0xff]  ;;  %v7585_v35 = vpack.i.bf16 %v5764_v13, %v5763_v59 }
0x1178   : > { %v5228_v48 = vpop.f32.mrf.mxu0  ;;  %v5650_v60 = vmul.f32 %v10329_v25, %v5412_v18  ;;  %v5707_v27 = vmul.f32 %v10359_v41, %v10523_v47  ;;  %6299 = vmatpush.bf16.msra.mxu1 %v7428_v39  ;;  %v10546_v51 = vmul.f32 %v10382_v42, %v5412_v18 }
0x1179   : > { %v5243_v37 = vmul.f32 %v10415_v19, %v5228_v48 }
0x117a   : > { %v7590_v17 = vpack.i.bf16 %v5650_v60, %v5649_v44  ;;  %v7595_v8 = vpack.i.bf16 %v5707_v27, %v5706_v31 }
0x117b   : > { %v10534_v12 = vadd.f32 %v10421_v21, %v5243_v37 }
0x117c   : > { %7586 = vrot.lane.b32.xlu2 %v7585_v35, %s8086_s6  ;;  %7596 = vrot.lane.b32.xlu1 %v7595_v8, %s11036_s4 }
0x117d   : > { %7591 = vrot.lane.b32.xlu0 %v7590_v17, %s11034_s1  ;;  %v10539_v25 = vpop.permute.xlu0 %5468  ;;  %v5413_v1 = vrot.slane %v10534_v12, 1 }
0x117f   : > { %v10543_v41 = vsel %vm5403_vm1, %v5411_v20, %v5413_v1  ;;  %v5818_v20 = vmul.f32 %v5781_v61, %v10472_v40  ;;  %v7427_v40 = vld [vmem:[%s11048_s5 + $0x78] sm:$0xff]  ;;  %v10572_v61 = vmul.f32 %v10396_v24, %v10534_v12 }
0x1180   : > { %v10550_v36 = vmul.f32 %v10428_v26, %v10543_v41  ;;  %v5791_v26 = vpop.permute.xlu1 %5790  ;;  %6263 = vmatpush.bf16.msrb.mxu3 %v7427_v40 }
0x1181   : > { %v5820_v39 = vmul.f32 %v5791_v26, %v5412_v18  ;;  %v10580_v18 = vmul.f32 %v10408_v32, %v10534_v12  ;;  %v7426_v26 = vld [vmem:[%s11048_s5 + $0x70] sm:$0xff]  ;;  %v7425_v32 = vld [vmem:[%s11048_s5 + $0x68] sm:$0xff] }
0x1182   : > { %v7625_v13 = vpack.i.bf16 %v10550_v36, %v10546_v51  ;;  %v7223_v51 = vld [vmem:[%s11038_s3 + $0x220] sm:$0xff]  ;;  %v5294_v36 = vld [vmem:[%s11038_s3 + $0x30] sm:$0xff] }
0x1184   : > { %6264 = vmatpush.bf16.msrb.mxu3 %v7426_v26  ;;  %v7424_v26 = vld [vmem:[%s11048_s5 + $0x60] sm:$0xff] }
0x1185   : > { %5572 = vperm.xlu0 %7552, %v7191_v4   ;;  %v10555_v59 = vpop.permute.xlu0 %5701 }
0x1188   : > { %6265 = vmatpush.bf16.msrb.mxu3 %v7425_v32 }
0x118c   : > { %6266 = vmatpush.bf16.msrb.mxu3 %v7424_v26 }
0x118d   : > { %v10557_v31 = vpop.permute.xlu0 %5753 }
0x1195   : > { %v5786_v48 = vpop.permute.xlu0 %5785 }
0x1196   : > { %v5819_v44 = vmul.f32 %v5786_v48, %v5410_v46 }
0x1198   : > { %v6068_v42 = vpack.c.bf16 %v5819_v44, %v5818_v20 }
0x119a   : > { %7299 = vmatmul.msk.bf16.vlgmr.msra.gmra.mxu1 %vm1573_vm0, %v6068_v42 }
0x119d   : > { %v10561_v60 = vpop.permute.xlu0 %5562 }
0x11a5   : > { %v5796_v27 = vpop.permute.xlu0 %5795 }
0x11a6   : > { %v5821_v37 = vmul.f32 %v5796_v27, %v10543_v41  ;;  %v5231_v17 = vpop.f32.mrf.mxu0  ;;  %v5394_v27 = vmul.f32 %v10194_v15, %v10431_v62 }
0x11a7   : > { %v5244_v35 = vmul.f32 %v10415_v19, %v5231_v17 }
0x11a8   : > { %v6071_v8 = vpack.c.bf16 %v5821_v37, %v5820_v39 }
0x11a9   : > { %v10566_v4 = vadd.f32 %v10421_v21, %v5244_v35  ;;  %v11050_v35 = vrot.slane %v10431_v62, 7 }
0x11aa   : > { %7300 = vmatmul.msk.bf16.gmra.mxu1 %vm1573_vm0, %v6071_v8  ;;  %v5534_v8 = vmul.f32 %v10310_v45, %v10440_v34  ;;  %v5293_v45 = vld [vmem:[%s11038_s3 + $0x28] sm:$0xff]  ;;  %v5651_v34 = vmul.f32 %v10413_v22, %v10543_v41  ;;  %v5397_v41 = vmul.f32 %v10356_v38, %v10483_v52  ;;  %v7420_v38 = vld [vmem:[%s11048_s5 + $0x40] sm:$0xff] }
0x11ab   : > { %v10576_v46 = vmul.f32 %v10464_v0, %v10566_v4  ;;  %v10583_v48 = vmul.f32 %v5391_v28, %v10566_v4  ;;  %v5415_v15 = vrot.slane %v10566_v4, 1  ;;  %v5257_v22 = vrot.slane %v10566_v4, 7 }
0x11ad   : > { %v7640_v20 = vpack.i.bf16 %v10576_v46, %v10572_v61  ;;  %v7645_v44 = vpack.i.bf16 %v10583_v48, %v10580_v18  ;;  %v10627_v32 = vsel %vm5403_vm1, %v5413_v1, %v5415_v15  ;;  %v7192_v1 = vld [vmem:[%s11038_s3 + $0x128] sm:$0xff]  ;;  %v5295_v61 = vld [vmem:[%s11038_s3 + $0x38] sm:$0xff] }
0x11ae   : > { %v5233_v24 = vpop.f32.mrf.mxu0 }
0x11af   : > { %v5245_v42 = vmul.f32 %v10415_v19, %v5233_v24  ;;  %v11049_v19 = vrot.slane %v10431_v62, 1  ;;  %v5477_v24 = vmul.f32 %v10346_v2, %v10460_v56  ;;  %v5652_v2 = vmul.f32 %v10361_v43, %v10627_v32 }
0x11b1   : > { %v10592_v0 = vadd.f32 %v10421_v21, %v5245_v42 }
0x11b3   : > { %v5393_v28 = vmul.f32 %v10271_v7, %v10592_v0  ;;  %v5401_v39 = vrot.slane %v10592_v0, 1  ;;  %v5258_v37 = vrot.slane %v10592_v0, 7  ;;  %v5767_v48 = vmul.f32 %v10557_v31, %v10592_v0 }
0x11b5   : > { %v7600_v17 = vpack.i.bf16 %v5394_v27, %v5393_v28  ;;  %v10606_v21 = vsel %vm5403_vm1, %v5401_v39, %v11049_v19  ;;  %v10613_v7 = vsel %vm3438_vm7, %v5258_v37, %v11050_v35  ;;  %v7620_v19 = vpack.i.bf16 %v5652_v2, %v5651_v34 }
0x11b6   : > { %v5476_v40 = vmul.f32 %v10287_v53, %v10606_v21  ;;  %v5533_v42 = vmul.f32 %v10369_v50, %v10613_v7  ;;  %v7423_v53 = vld [vmem:[%s11048_s5 + $0x58] sm:$0xff]  ;;  %v5277_v50 = vrot.slane %v10534_v12, 7  ;;  %v5398_v35 = vmul.f32 %v10373_v63, %v10509_v54 }
0x11b7   : > { %7601 = vrot.lane.b32.xlu1 %v7600_v17, %s11034_s1  ;;  %6267 = vmatpush.bf16.msrb.mxu3 %v7423_v53  ;;  %v10639_v17 = vpop.permute.xlu2 %5567  ;;  %v7224_v53 = vld [vmem:[%s11038_s3 + $0x228] sm:$0xff] }
0x11b8   : > { %v7605_v28 = vpack.i.bf16 %v5477_v24, %v5476_v40  ;;  %v7615_v27 = vpack.i.bf16 %v5534_v8, %v5533_v42  ;;  %v10646_v43 = vsel %vm3438_vm7, %v5275_v14, %v5277_v50  ;;  %v7422_v8 = vld [vmem:[%s11048_s5 + $0x50] sm:$0xff]  ;;  %v7421_v40 = vld [vmem:[%s11048_s5 + $0x48] sm:$0xff]  ;;  %v7610_v24 = vpack.i.bf16 %v5398_v35, %v5397_v41  ;;  %v7194_v41 = vld [vmem:[%s11038_s3 + $0x138] sm:$0xff] }
0x11b9   : > { %v5538_v63 = vmul.f32 %v10377_v58, %v10646_v43  ;;  %v5537_v14 = vmul.f32 %v10445_v55, %v10523_v47  ;;  %v10659_v42 = vsel %vm3438_vm7, %v5277_v50, %v5257_v22  ;;  %v5708_v55 = vmul.f32 %v10366_v30, %v10646_v43  ;;  %v7419_v50 = vld [vmem:[%s11048_s5 + $0x38] sm:$0xff] }
0x11ba   : > { %7606 = vrot.lane.b32.xlu2 %v7605_v28, %s11036_s4  ;;  %7616 = vrot.lane.b32.xlu0 %v7615_v27, %s8086_s6  ;;  %v5709_v28 = vmul.f32 %v10390_v5, %v10659_v42  ;;  %v10686_v30 = vsel %vm5403_vm1, %v5415_v15, %v5401_v39 }
0x11bb   : > { %6268 = vmatpush.bf16.msrb.mxu3 %v7422_v8  ;;  %v7635_v26 = vpack.i.bf16 %v5538_v63, %v5537_v14  ;;  %v5653_v46 = vmul.f32 %v10398_v23, %v10686_v30  ;;  %6234 = vmatpush.bf16.msrb.mxu2 %v7419_v50 }
0x11bc   : > { %v7630_v27 = vpack.i.bf16 %v5709_v28, %v5708_v55  ;;  %v5483_v55 = vmul.f32 %v10404_v57, %v10686_v30  ;;  %v5539_v57 = vmul.f32 %v10411_v6, %v10659_v42  ;;  %v5711_v6 = vmul.f32 %v10555_v59, %v10613_v7  ;;  %v11052_v59 = vld [vmem:[#allocation41_spill] sm:$0xff] }
0x11bf   : > { %5323 = vperm.xlu1 %7553, %v5293_v45   ;;  %6269 = vmatpush.bf16.msrb.mxu3 %v7421_v40  ;;  %v10665_v58 = vpop.permute.xlu2 %5318 }
0x11c2   : > { %5577 = vperm.xlu2 %7554, %v7192_v1   ;;  %7621 = vrot.lane.b32.xlu0 %v7620_v19, %s11034_s1 }
0x11c3   : > { %6270 = vmatpush.bf16.msrb.mxu3 %v7420_v38 }
0x11c7   : > { %7611 = vrot.lane.b32.xlu1 %v7610_v24, %s11034_s1  ;;  %v7557_v5 = vpop.permute.xlu2 %7556 }
0x11ca   : > { %7626 = vrot.lane.b32.xlu2 %v7625_v13, %s11036_s4  ;;  %7636 = vrot.lane.b32.xlu0 %v7635_v26, %s8086_s6  ;;  %v7193_v13 = vld [vmem:[%s11038_s3 + $0x130] sm:$0xff] }
0x11cf   : > { %7631 = vrot.lane.b32.xlu1 %v7630_v27, %s11036_s4  ;;  %v7577_v45 = vpop.permute.xlu2 %7576 }
0x11d0   : > { %v7579_v19 = vunpack.i.h.bf16 %v7577_v45  ;;  %v7578_v35 = vunpack.i.l.bf16 %v7577_v45 }
0x11d2   : > { %7641 = vrot.lane.b32.xlu2 %v7640_v20, %s8086_s6  ;;  %5805 = vperm.xlu0 %7552, %v7224_v53   ;;  %v5654_v20 = vmul.f32 %v10418_v16, %v10606_v21  ;;  %v10704_v16 = vsel %vm3438_vm7, %v5257_v22, %v5258_v37  ;;  %v7559_v37 = vunpack.i.h.bf16 %v7557_v5  ;;  %v7558_v22 = vunpack.i.l.bf16 %v7557_v5 }
0x11d3   : > { %v5540_v27 = vmul.f32 %v10449_v9, %v10704_v16 }
0x11d4   : > { %v7650_v23 = vpack.i.bf16 %v5654_v20, %v5653_v46 }
0x11d7   : > { %5800 = vperm.xlu1 %7553, %v7223_v51  }
0x11da   : > { %5328 = vperm.xlu2 %7554, %v5294_v36   ;;  %5582 = vperm.xlu0 %7552, %v7193_v13   ;;  %v5482_v13 = vmul.f32 %v10539_v25, %v10627_v32 }
0x11db   : > { %v7562_v2 = vpop.permute.xlu1 %7561 }
0x11dc   : > { %v7564_v34 = vunpack.i.h.bf16 %v7562_v2  ;;  %v7563_v1 = vunpack.i.l.bf16 %v7562_v2 }
0x11de   : > { %v6021_v39 = vsel %vm1573_vm0, %v10506_v49, %v7564_v34  ;;  %v6020_v15 = vsel %vm1573_vm0, %v10443_v3, %v7563_v1  ;;  %v7567_v8 = vpop.permute.xlu0 %7566  ;;  %v5591_v3 = vmul.f32 %v10392_v11, %v10424_v33  ;;  %v5590_v49 = vmul.f32 %v10491_v10, %v10431_v62 }
0x11df   : > { %5333 = vperm.xlu1 %7553, %v5295_v61   ;;  %v6028_v40 = vsel %vm1618_vm3, %v6020_v15, %v7578_v35  ;;  %v6029_v63 = vsel %vm1618_vm3, %v6021_v39, %v7579_v19  ;;  %v7569_v24 = vunpack.i.h.bf16 %v7567_v8  ;;  %v7568_v14 = vunpack.i.l.bf16 %v7567_v8  ;;  %v11051_v61 = vld [vmem:[#allocation42_spill] sm:$0xff] }
0x11e0   : > { %v7655_v34 = vpack.i.bf16 %v5483_v55, %v5482_v13  ;;  %v7665_v1 = vpack.i.bf16 %v5540_v27, %v5539_v57  ;;  %v5710_v25 = vmul.f32 %v11051_v61, %v10704_v16  ;;  %v5768_v19 = vmul.f32 %v11052_v59, %v10431_v62  ;;  %v7225_v55 = vld [vmem:[%s11038_s3 + $0x230] sm:$0xff]  ;;  %v7413_v13 = vld [vmem:[%s11048_s5 + $0x8] sm:$0xff]  ;;  %v7412_v57 = vld [vmem:[%s11048_s5] sm:$0xff] }
0x11e1   : > { %v6042_v53 = vsel %vm1573_vm0, %v5590_v49, %v7568_v14  ;;  %v6043_v51 = vsel %vm1573_vm0, %v5591_v3, %v7569_v24  ;;  %v7587_v3 = vpop.permute.xlu2 %7586  ;;  %v7418_v27 = vld [vmem:[%s11048_s5 + $0x30] sm:$0xff] }
0x11e2   : > { %5587 = vperm.xlu2 %7554, %v7194_v41   ;;  %7651 = vrot.lane.b32.xlu0 %v7650_v23, %s11034_s1  ;;  %v5593_v41 = vmul.f32 %v10639_v17, %v10483_v52  ;;  %v7670_v14 = vpack.i.bf16 %v5768_v19, %v5767_v48 }
0x11e3   : > { %v7572_v26 = vpop.permute.xlu1 %7571  ;;  %6235 = vmatpush.bf16.msrb.mxu2 %v7418_v27 }
0x11e4   : > { %v7574_v38 = vunpack.i.h.bf16 %v7572_v26  ;;  %v7573_v28 = vunpack.i.l.bf16 %v7572_v26 }
0x11e6   : > { %v6050_v11 = vsel %vm1618_vm3, %v6042_v53, %v7573_v28  ;;  %v6051_v36 = vsel %vm1618_vm3, %v6043_v51, %v7574_v38  ;;  %v7582_v10 = vpop.permute.xlu0 %7581  ;;  %v7589_v28 = vunpack.i.h.bf16 %v7587_v3  ;;  %v7417_v53 = vld [vmem:[%s11048_s5 + $0x28] sm:$0xff] }
0x11e7   : > { %v6058_v45 = vsel %vm1720_vm14, %v6050_v11, %v7558_v22  ;;  %v6059_v9 = vsel %vm1720_vm14, %v6051_v36, %v7559_v37  ;;  %v7584_v5 = vunpack.i.h.bf16 %v7582_v10  ;;  %v7583_v2 = vunpack.i.l.bf16 %v7582_v10  ;;  %7646 = vrot.lane.b32.xlu1 %v7645_v44, %s11034_s1  ;;  %6236 = vmatpush.bf16.msrb.mxu2 %v7417_v53  ;;  %v7416_v11 = vld [vmem:[%s11048_s5 + $0x20] sm:$0xff]  ;;  %v7415_v36 = vld [vmem:[%s11048_s5 + $0x18] sm:$0xff]  ;;  %v7414_v10 = vld [vmem:[%s11048_s5 + $0x10] sm:$0xff] }
0x11e8   : > { %v6067_v50 = vpack.c.bf16 %v6059_v9, %v6058_v45  ;;  %v7660_v44 = vpack.i.bf16 %v5711_v6, %v5710_v25  ;;  %v11055_v25 = vld [vmem:[#allocation38_spill] sm:$0xff] }
0x11e9   : > { %v10734_v46 = vsel %vm1720_vm14, %v6028_v40, %v7583_v2  ;;  %v10737_v20 = vsel %vm1720_vm14, %v6029_v63, %v7584_v5  ;;  %v7226_v40 = vld [vmem:[%s11038_s3 + $0x238] sm:$0xff]  ;;  %v11053_v63 = vld [vmem:[#allocation43_spill] sm:$0xff]  ;;  %v5336_v6 = vmul.f32 %v11055_v25, %v10704_v16 }
0x11ea   : > { %7656 = vrot.lane.b32.xlu2 %v7655_v34, %s11036_s4  ;;  %7666 = vrot.lane.b32.xlu0 %v7665_v1, %s8086_s6  ;;  %v6069_v18 = vpack.c.bf16 %v10737_v20, %v10734_v46  ;;  %v5592_v23 = vmul.f32 %v10561_v60, %v11053_v63  ;;  %v7588_v60 = vunpack.i.l.bf16 %v7587_v3 }
0x11eb   : > { %6271 = vmatmul.bf16.vlgmr.msrb.gmra.mxu3 %v6067_v50  ;;  %6237 = vmatpush.bf16.msrb.mxu2 %v7416_v11  ;;  %v11054_v50 = vld [vmem:[#allocation40_spill] sm:$0xff] }
0x11ec   : > { %v5337_v34 = vmul.f32 %v11054_v50, %v10613_v7 }
0x11ee   : > { %v7597_v35 = vpop.permute.xlu1 %7596 }
0x11ef   : > { %v7599_v39 = vunpack.i.h.bf16 %v7597_v35  ;;  %v7598_v15 = vunpack.i.l.bf16 %v7597_v35  ;;  %v7592_v8 = vpop.permute.xlu0 %7591  ;;  %7661 = vrot.lane.b32.xlu1 %v7660_v44, %s11036_s4  ;;  %6238 = vmatpush.bf16.msrb.mxu2 %v7415_v36  ;;  %s10957_s4 = sand.u32 1, %s8035_s23  }
0x11f0   : > { %v7594_v31 = vunpack.i.h.bf16 %v7592_v8  ;;  %v7593_v24 = vunpack.i.l.bf16 %v7592_v8  ;;  %s6826_s1 = sshll.u32 %s10957_s4, 6 }
0x11f2   : > { %v6044_v49 = vsel %vm1573_vm0, %v5592_v23, %v7593_v24  ;;  %v6045_v26 = vsel %vm1573_vm0, %v5593_v41, %v7594_v31  ;;  %5815 = vperm.xlu0 %7552, %v7226_v40   ;;  %7671 = vrot.lane.b32.xlu2 %v7670_v14, %s8086_s6  ;;  %s11056_s6 = sld [smem:[#allocation28_spill]] }
0x11f3   : > { %v6052_v17 = vsel %vm1618_vm3, %v6044_v49, %v7598_v15  ;;  %v6053_v38 = vsel %vm1618_vm3, %v6045_v26, %v7599_v39  ;;  %6239 = vmatpush.bf16.msrb.mxu2 %v7414_v10 }
0x11f4   : > { %v6060_v37 = vsel %vm1720_vm14, %v6052_v17, %v7588_v60  ;;  %v6061_v22 = vsel %vm1720_vm14, %v6053_v38, %v7589_v28 }
0x11f5   : > { %v6070_v51 = vpack.c.bf16 %v6061_v22, %v6060_v37 }
0x11f7   : > { %5810 = vperm.xlu1 %7553, %v7225_v55   ;;  %6240 = vmatpush.bf16.msrb.mxu2 %v7413_v13  ;;  %v5573_v9 = vpop.permute.xlu0 %5572 }
0x11f8   : > { %v5594_v38 = vmul.f32 %v5573_v9, %v10509_v54  ;;  %v5340_v9 = vmul.f32 %v10665_v58, %v10496_v29 }
0x11fb   : > { %6276 = vmatmul.bf16.gmra.mxu3 %v6070_v51  ;;  %6241 = vmatpush.bf16.msrb.mxu2 %v7412_v57 }
0x1214   : > { %v7607_v45 = vpop.permute.xlu2 %7606 }
0x1215   : > { %v7609_v48 = vunpack.i.h.bf16 %v7607_v45  ;;  %v7608_v44 = vunpack.i.l.bf16 %v7607_v45 }
0x121c   : > { %v5578_v5 = vpop.permute.xlu2 %5577 }
0x121d   : > { %v5595_v28 = vmul.f32 %v5578_v5, %v10534_v12 }
0x1224   : > { %v7627_v40 = vpop.permute.xlu2 %7626 }
0x1229   : > { %v7602_v2 = vpop.permute.xlu1 %7601 }
0x122a   : > { %v7604_v1 = vunpack.i.h.bf16 %v7602_v2  ;;  %v7603_v61 = vunpack.i.l.bf16 %v7602_v2 }
0x122c   : > { %v6019_v59 = vsel %vm1573_vm0, %v5337_v34, %v7604_v1  ;;  %v6018_v19 = vsel %vm1573_vm0, %v5336_v6, %v7603_v61  ;;  %v7617_v35 = vpop.permute.xlu0 %7616  ;;  %v7642_v14 = vpop.permute.xlu2 %7641  ;;  %v7629_v34 = vunpack.i.h.bf16 %v7627_v40  ;;  %v7628_v1 = vunpack.i.l.bf16 %v7627_v40 }
0x122d   : > { %v7619_v39 = vunpack.i.h.bf16 %v7617_v35  ;;  %v7618_v15 = vunpack.i.l.bf16 %v7617_v35  ;;  %v6026_v8 = vsel %vm1618_vm3, %v6018_v19, %v7608_v44  ;;  %v6027_v41 = vsel %vm1618_vm3, %v6019_v59, %v7609_v48 }
0x122e   : > { %v7643_v55 = vunpack.i.l.bf16 %v7642_v14  ;;  %v7644_v10 = vunpack.i.h.bf16 %v7642_v14 }
0x122f   : > { %v6034_v7 = vsel %vm1720_vm14, %v6026_v8, %v7618_v15  ;;  %v6035_v23 = vsel %vm1720_vm14, %v6027_v41, %v7619_v39 }
0x1230   : > { %v6066_v31 = vpack.c.bf16 %v6035_v23, %v6034_v7 }
0x1231   : > { %v5324_v16 = vpop.permute.xlu1 %5323 }
0x1232   : > { %6242 = vmatmul.bf16.vlgmr.msrb.gmra.mxu2 %v6066_v31  ;;  %v5341_v5 = vmul.f32 %v5324_v16, %v10523_v47 }
0x1234   : > { %v7622_v24 = vpop.permute.xlu0 %7621  ;;  %v5329_v27 = vpop.permute.xlu2 %5328 }
0x1235   : > { %v7624_v26 = vunpack.i.h.bf16 %v7622_v24  ;;  %v7623_v17 = vunpack.i.l.bf16 %v7622_v24 }
0x1237   : > { %v6046_v53 = vsel %vm1573_vm0, %v5594_v38, %v7623_v17  ;;  %v6047_v51 = vsel %vm1573_vm0, %v5595_v28, %v7624_v26 }
0x1239   : > { %v7612_v3 = vpop.permute.xlu1 %7611 }
0x123a   : > { %v7614_v11 = vunpack.i.h.bf16 %v7612_v3  ;;  %v7613_v36 = vunpack.i.l.bf16 %v7612_v3 }
0x123c   : > { %v7637_v49 = vpop.permute.xlu0 %7636  ;;  %v6022_v2 = vsel %vm1573_vm0, %v5340_v9, %v7613_v36  ;;  %v5588_v44 = vpop.permute.xlu2 %5587 }
0x123d   : > { %v7639_v61 = vunpack.i.h.bf16 %v7637_v49  ;;  %v7638_v25 = vunpack.i.l.bf16 %v7637_v49  ;;  %v6030_v47 = vsel %vm1618_vm3, %v6022_v2, %v7628_v1 }
0x123f   : > { %v6038_v35 = vsel %vm1720_vm14, %v6030_v47, %v7638_v25 }
0x1241   : > { %v7632_v60 = vpop.permute.xlu1 %7631 }
0x1242   : > { %v7634_v37 = vunpack.i.h.bf16 %v7632_v60  ;;  %v7633_v22 = vunpack.i.l.bf16 %v7632_v60  ;;  %6247 = vmatmul.bf16.gmra.mxu2 %v6069_v18  ;;  %v6023_v18 = vsel %vm1573_vm0, %v5341_v5, %v7614_v11 }
0x1243   : > { %v6031_v58 = vsel %vm1618_vm3, %v6023_v18, %v7629_v34 }
0x1244   : > { %v6054_v13 = vsel %vm1618_vm3, %v6046_v53, %v7633_v22  ;;  %v6055_v57 = vsel %vm1618_vm3, %v6047_v51, %v7634_v37  ;;  %v5806_v45 = vpop.permute.xlu0 %5805  ;;  %v6039_v39 = vsel %vm1720_vm14, %v6031_v58, %v7639_v61  ;;  %v5597_v22 = vmul.f32 %v5588_v44, %v10592_v0 }
0x1245   : > { %v6062_v46 = vsel %vm1720_vm14, %v6054_v13, %v7643_v55  ;;  %v6063_v20 = vsel %vm1720_vm14, %v6055_v57, %v7644_v10  ;;  %v5823_v48 = vmul.f32 %v5806_v45, %v10686_v30  ;;  %v6072_v15 = vpack.c.bf16 %v6039_v39, %v6038_v35  ;;  %v7657_v30 = vpop.permute.xlu2 %7656  ;;  %v7431_v35 = vld [vmem:[%s8257_s27 + $0x8] sm:$0xff] }
0x1246   : > { %v6073_v50 = vpack.c.bf16 %v6063_v20, %v6062_v46  ;;  %v7659_v16 = vunpack.i.h.bf16 %v7657_v30  ;;  %v7658_v24 = vunpack.i.l.bf16 %v7657_v30  ;;  %6458 = vmatpush.bf16.msrb.mxu0 %v7431_v35 }
0x1248   : > { %6281 = vmatmul.bf16.gmra.mxu3 %v6073_v50 }
0x1249   : > { %v5801_v6 = vpop.permute.xlu1 %5800 }
0x124a   : > { %v5822_v29 = vmul.f32 %v5801_v6, %v10627_v32  ;;  %v5342_v32 = vmul.f32 %v5329_v27, %v10646_v43  ;;  %v6301_v6 = vpop.f32.mrf.mxu1 }
0x124c   : > { %v6074_v59 = vpack.c.bf16 %v5823_v48, %v5822_v29  ;;  %v5583_v19 = vpop.permute.xlu0 %5582 }
0x124d   : > { %v7672_v27 = vpop.permute.xlu2 %7671  ;;  %v5596_v53 = vmul.f32 %v5583_v19, %v10566_v4 }
0x124e   : > { %7301 = vmatmul.msk.bf16.gmra.mxu1 %vm1573_vm0, %v6074_v59  ;;  %v7674_v10 = vunpack.i.h.bf16 %v7672_v27  ;;  %v7673_v13 = vunpack.i.l.bf16 %v7672_v27 }
0x1251   : > { %v5334_v8 = vpop.permute.xlu1 %5333 }
0x1252   : > { %6252 = vmatmul.bf16.gmra.mxu2 %v6072_v15  ;;  %v5343_v7 = vmul.f32 %v5334_v8, %v10659_v42  ;;  %v6303_v44 = vpop.f32.mrf.mxu1 }
0x1254   : > { %v7652_v41 = vpop.permute.xlu0 %7651 }
0x1255   : > { %v7654_v60 = vunpack.i.h.bf16 %v7652_v41  ;;  %v7653_v55 = vunpack.i.l.bf16 %v7652_v41  ;;  %v7430_v41 = vld [vmem:[%s8257_s27] sm:$0xff] }
0x1256   : > { %6459 = vmatpush.bf16.msrb.mxu0 %v7430_v41 }
0x1257   : > { %v6048_v57 = vsel %vm1573_vm0, %v5596_v53, %v7653_v55  ;;  %v6049_v45 = vsel %vm1573_vm0, %v5597_v22, %v7654_v60 }
0x1259   : > { %v7647_v40 = vpop.permute.xlu1 %7646 }
0x125a   : > { %v7649_v23 = vunpack.i.h.bf16 %v7647_v40  ;;  %v7648_v31 = vunpack.i.l.bf16 %v7647_v40 }
0x125c   : > { %v6025_v14 = vsel %vm1573_vm0, %v5343_v7, %v7649_v23  ;;  %v6024_v3 = vsel %vm1573_vm0, %v5342_v32, %v7648_v31  ;;  %v7667_v49 = vpop.permute.xlu0 %7666  ;;  %v6306_v7 = vpop.f32.mrf.mxu1 }
0x125d   : > { %v7669_v26 = vunpack.i.h.bf16 %v7667_v49  ;;  %v7668_v17 = vunpack.i.l.bf16 %v7667_v49  ;;  %v6032_v38 = vsel %vm1618_vm3, %v6024_v3, %v7658_v24  ;;  %v6033_v28 = vsel %vm1618_vm3, %v6025_v14, %v7659_v16 }
0x125f   : > { %v6040_v43 = vsel %vm1720_vm14, %v6032_v38, %v7668_v17  ;;  %v6041_v42 = vsel %vm1720_vm14, %v6033_v28, %v7669_v26 }
0x1260   : > { %v6075_v37 = vpack.c.bf16 %v6041_v42, %v6040_v43 }
0x1261   : > { %v7662_v51 = vpop.permute.xlu1 %7661 }
0x1262   : > { %v7664_v11 = vunpack.i.h.bf16 %v7662_v51  ;;  %v7663_v36 = vunpack.i.l.bf16 %v7662_v51  ;;  %6257 = vmatmul.bf16.gmra.mxu2 %v6075_v37 }
0x1264   : > { %v6056_v9 = vsel %vm1618_vm3, %v6048_v57, %v7663_v36  ;;  %v6057_v5 = vsel %vm1618_vm3, %v6049_v45, %v7664_v11  ;;  %v5816_v2 = vpop.permute.xlu0 %5815  ;;  %v6308_v55 = vpop.f32.mrf.mxu1  ;;  %v6401_v36 = vld [vmem:[%s11056_s6] sm:$0x3]  ;;  %s10868_s6 = scalar_lea.vmem [#allocation2], %s6826_s1  ;;  %s7440_s1 = sshll.u32 %s8295_s0, 6 }
0x1265   : > { %v6064_v46 = vsel %vm1720_vm14, %v6056_v9, %v7673_v13  ;;  %v6065_v20 = vsel %vm1720_vm14, %v6057_v5, %v7674_v10  ;;  %v5825_v34 = vmul.f32 %v5816_v2, %v10460_v56  ;;  %s6697_s4 = scalar_lea.hbm %s8272_s20, %s7440_s1  ;;  %s6698_s3 = sshll.u32 %s10868_s6, 4  ;;  %s6699_s3 = int_to_ptr.vmem [resolvable:$true] %s6698_s3 }
0x1266   : > { %v6076_v18 = vpack.c.bf16 %v6065_v20, %v6064_v46  ;;  %v10824_v46 = vperm.slane %v6401_v36, 0  ;;  %s6700_s5 = sshll.u32 %s6697_s4, 4  ;;  %s11065_s0 = sand.u32 1, %s8035_s23   ;;  %s6701_s5 = int_to_ptr.hbm [resolvable:$true] %s6700_s5 }
0x1267   : > { %s6686_s7 = scalar_lea.sflag [#allocation3], %s11065_s0  ;;  %s7995_s8 = sshra.s32 %s6701_s5, 4  ;;  %s7996_s8 = int_to_ptr.hbm [resolvable:$true] %s7995_s8 }
0x1268   : > { %6286 = vmatmul.bf16.gmra.mxu3 %v6076_v18  ;;  %s7997_s9 = scalar_lea.hbm %s7996_s8, 64  ;;  %s8001_s1 = scalar_lea.hbm %s8272_s20, 128 }
0x1269   : > { %v5811_v50 = vpop.permute.xlu1 %5810  ;;  %p7998_p11 = scmp.ne.s32.totalorder %s7996_s8, %s7997_s9  ;;  %p8002_p0 = scmp.lt.s32.totalorder %s7996_s8, %s8272_s20 }
0x126a   : > { %v5824_v1 = vmul.f32 %v5811_v50, %v10606_v21  ;;  %p8003_p1 = scmp.lt.s32.totalorder %s8001_s1, %s7997_s9 }
0x126b   : > { %p7999_p12 = pnand %p7998_p11, %p8312_p5 }
0x126c   : > { %v6077_v61 = vpack.c.bf16 %v5825_v34, %v5824_v1  ;;  %p8004_p2 = por %p8003_p1, %p8002_p0 }
0x126d   : > { %p8000_p13 = pneg %p7999_p12 }
0x126e   : > { %7302 = vmatmul.msk.bf16.gmra.mxu1 %vm1573_vm0, %v6077_v61  ;;  %v6272_v25 = vpop.f32.mrf.mxu3 }
0x126f   : > { %p8005_p3 = pnand %p8004_p2, %p8000_p13 }
0x1276   : > { %v6274_v47 = vpop.f32.mrf.mxu3 }
0x127e   : > { %v6277_v30 = vpop.f32.mrf.mxu3 }
0x1286   : > { %v6279_v38 = vpop.f32.mrf.mxu3 }
0x12b5   : > { %v6243_v48 = vpop.f32.mrf.mxu2 }
0x12b6   : > { %v6273_v29 = vadd.f32 %v6272_v25, %v6243_v48  ;;  %v10827_v48 = vperm.slane %v6401_v36, 1 }
0x12b8   : > { %v6302_v58 = vadd.f32 %v6301_v6, %v6273_v29 }
0x12ba   : > { %v6321_v59 = vmul.f32 %v6302_v58, %v6302_v58 }
0x12bc   : > { %v6329_v19 = vmul.f32 %v6321_v59, %v6302_v58 }
0x12bd   : > { %v6245_v39 = vpop.f32.mrf.mxu2 }
0x12be   : > { %v6337_v15 = vmul.f32 0.044715, %v6329_v19  ;;  %v6275_v8 = vadd.f32 %v6274_v47, %v6245_v39 }
0x12c0   : > { %v6345_v56 = vadd.f32 %v6337_v15, %v6302_v58  ;;  %v6304_v21 = vadd.f32 %v6303_v44, %v6275_v8 }
0x12c2   : > { %v6353_v40 = vmul.f32 0.7978846, %v6345_v56  ;;  %v6322_v32 = vmul.f32 %v6304_v21, %v6304_v21 }
0x12c4   : > { %7933 = vtanh.f32 %v6353_v40  ;;  %v6330_v23 = vmul.f32 %v6322_v32, %v6304_v21 }
0x12c5   : > { %v6248_v31 = vpop.f32.mrf.mxu2 }
0x12c6   : > { %v6338_v16 = vmul.f32 0.044715, %v6330_v23  ;;  %v6278_v24 = vadd.f32 %v6277_v30, %v6248_v31 }
0x12c8   : > { %v6346_v14 = vadd.f32 %v6338_v16, %v6304_v21  ;;  %v6307_v3 = vadd.f32 %v6306_v7, %v6278_v24 }
0x12ca   : > { %v7934_v49 = vpop.eup %7933  ;;  %v6354_v26 = vmul.f32 0.7978846, %v6346_v14  ;;  %v6323_v17 = vmul.f32 %v6307_v3, %v6307_v3 }
0x12cb   : > { %v6369_v28 = vadd.f32 1.0, %v7934_v49  ;;  %v6282_v45 = vpop.f32.mrf.mxu3  ;;  %v6311_v18 = vpop.f32.mrf.mxu1 }
0x12cc   : > { %7935 = vtanh.f32 %v6354_v26  ;;  %v6331_v60 = vmul.f32 %v6323_v17, %v6307_v3 }
0x12cd   : > { %v6377_v43 = vmul.f32 0.5, %v6369_v28  ;;  %v6250_v42 = vpop.f32.mrf.mxu2 }
0x12ce   : > { %v6339_v27 = vmul.f32 0.044715, %v6331_v60  ;;  %v6280_v37 = vadd.f32 %v6279_v38, %v6250_v42 }
0x12cf   : > { %v6385_v51 = vmul.f32 %v6377_v43, %v6302_v58 }
0x12d0   : > { %v6347_v22 = vadd.f32 %v6339_v27, %v6307_v3  ;;  %v6309_v53 = vadd.f32 %v6308_v55, %v6280_v37 }
0x12d1   : > { %v6393_v5 = vadd.f32 %v6385_v51, %v10431_v62 }
0x12d2   : > { %v7936_v11 = vpop.eup %7935  ;;  %v6355_v10 = vmul.f32 0.7978846, %v6347_v22  ;;  %v6324_v13 = vmul.f32 %v6309_v53, %v6309_v53 }
0x12d3   : > { %v6370_v57 = vadd.f32 1.0, %v7936_v11  ;;  %v6403_v6 = vmul.f32 %v10824_v46, %v6393_v5  ;;  %v6284_v8 = vpop.f32.mrf.mxu3  ;;  %v6313_v30 = vpop.f32.mrf.mxu1 }
0x12d4   : > { %7937 = vtanh.f32 %v6355_v10  ;;  %v6332_v9 = vmul.f32 %v6324_v13, %v6309_v53 }
0x12d5   : > { %v6378_v20 = vmul.f32 0.5, %v6370_v57  ;;  %v6253_v2 = vpop.f32.mrf.mxu2  ;;  %v6412_v35 = vadd.f32 %v10827_v48, %v6403_v6 }
0x12d6   : > { %v6340_v50 = vmul.f32 0.044715, %v6332_v9  ;;  %v6283_v34 = vadd.f32 %v6282_v45, %v6253_v2 }
0x12d7   : > { %v6386_v1 = vmul.f32 %v6378_v20, %v6304_v21 }
0x12d8   : > { %v6348_v61 = vadd.f32 %v6340_v50, %v6309_v53  ;;  %v6312_v25 = vadd.f32 %v6311_v18, %v6283_v34 }
0x12d9   : > { %v6394_v29 = vadd.f32 %v6386_v1, %v10424_v33 }
0x12da   : > { %v7938_v47 = vpop.eup %7937  ;;  %v6356_v58 = vmul.f32 0.7978846, %v6348_v61  ;;  %v6325_v44 = vmul.f32 %v6312_v25, %v6312_v25 }
0x12db   : > { %v6404_v62 = vmul.f32 %v10824_v46, %v6394_v29  ;;  %v6371_v59 = vadd.f32 1.0, %v7938_v47 }
0x12dc   : > { %7939 = vtanh.f32 %v6356_v58  ;;  %v6333_v19 = vmul.f32 %v6325_v44, %v6312_v25 }
0x12dd   : > { %v6413_v39 = vadd.f32 %v10827_v48, %v6404_v62  ;;  %v6379_v15 = vmul.f32 0.5, %v6371_v59  ;;  %v6255_v56 = vpop.f32.mrf.mxu2 }
0x12de   : > { %v6341_v21 = vmul.f32 0.044715, %v6333_v19  ;;  %v6285_v41 = vadd.f32 %v6284_v8, %v6255_v56 }
0x12df   : > { %v6420_v40 = vpack.c.bf16 %v6413_v39, %v6412_v35  ;;  %v6387_v7 = vmul.f32 %v6379_v15, %v6307_v3 }
0x12e0   : > { %v6349_v33 = vadd.f32 %v6341_v21, %v6312_v25  ;;  %v6314_v32 = vadd.f32 %v6313_v30, %v6285_v41 }
0x12e1   : > { %7311 = vmatmul.msk.bf16.vlgmr.msrb.gmra.mxu0 %vm1573_vm0, %v6420_v40  ;;  %v6395_v49 = vadd.f32 %v6387_v7, %v11053_v63 }
0x12e2   : > { %v7940_v23 = vpop.eup %7939  ;;  %v6357_v31 = vmul.f32 0.7978846, %v6349_v33  ;;  %v6326_v16 = vmul.f32 %v6314_v32, %v6314_v32 }
0x12e3   : > { %v6372_v24 = vadd.f32 1.0, %v7940_v23  ;;  %v6405_v43 = vmul.f32 %v10824_v46, %v6395_v49 }
0x12e4   : > { %7941 = vtanh.f32 %v6357_v31  ;;  %v6334_v14 = vmul.f32 %v6326_v16, %v6314_v32 }
0x12e5   : > { %v6380_v26 = vmul.f32 0.5, %v6372_v24  ;;  %v6258_v55 = vpop.f32.mrf.mxu2  ;;  %v6414_v63 = vadd.f32 %v10827_v48, %v6405_v43  ;;  %v7432_v43 = vld [vmem:[%s8262_s12] sm:$0xff] }
0x12e6   : > { %v6342_v17 = vmul.f32 0.044715, %v6334_v14 }
0x12e7   : > { %v6388_v38 = vmul.f32 %v6380_v26, %v6309_v53 }
0x12e8   : > { %v6350_v28 = vadd.f32 %v6342_v17, %v6314_v32  ;;  %v7438_v17 = vld [vmem:[%s8262_s12 + $0x30] sm:$0xff] }
0x12e9   : > { %v6396_v60 = vadd.f32 %v6388_v38, %v10483_v52  ;;  %v7437_v38 = vld [vmem:[%s8262_s12 + $0x28] sm:$0xff] }
0x12ea   : > { %v7942_v3 = vpop.eup %7941  ;;  %v6358_v42 = vmul.f32 0.7978846, %v6350_v28  ;;  %v7435_v28 = vld [vmem:[%s8262_s12 + $0x18] sm:$0xff] }
0x12eb   : > { %v6373_v27 = vadd.f32 1.0, %v7942_v3  ;;  %v6287_v37 = vpop.f32.mrf.mxu3  ;;  %v6316_v22 = vpop.f32.mrf.mxu1  ;;  %v6406_v51 = vmul.f32 %v10824_v46, %v6396_v60  ;;  %v7433_v60 = vld [vmem:[%s8262_s12 + $0x8] sm:$0xff] }
0x12ec   : > { %7943 = vtanh.f32 %v6358_v42  ;;  %v6288_v11 = vadd.f32 %v6287_v37, %v6258_v55 }
0x12ed   : > { %v6381_v36 = vmul.f32 0.5, %v6373_v27  ;;  %v6415_v53 = vadd.f32 %v10827_v48, %v6406_v51  ;;  %v6260_v20 = vpop.f32.mrf.mxu2 }
0x12ee   : > { %v6317_v10 = vadd.f32 %v6316_v22, %v6288_v11 }
0x12ef   : > { %v6421_v13 = vpack.c.bf16 %v6415_v53, %v6414_v63  ;;  %v6389_v57 = vmul.f32 %v6381_v36, %v6312_v25 }
0x12f0   : > { %v6327_v52 = vmul.f32 %v6317_v10, %v6317_v10 }
0x12f1   : > { %7312 = vmatmul.msk.bf16.gmra.mxu0 %vm1573_vm0, %v6421_v13  ;;  %v6397_v34 = vadd.f32 %v6389_v57, %v10509_v54 }
0x12f2   : > { %v7944_v45 = vpop.eup %7943  ;;  %v6335_v9 = vmul.f32 %v6327_v52, %v6317_v10 }
0x12f3   : > { %v6374_v5 = vadd.f32 1.0, %v7944_v45  ;;  %v6289_v18 = vpop.f32.mrf.mxu3  ;;  %v6318_v61 = vpop.f32.mrf.mxu1  ;;  %v6407_v62 = vmul.f32 %v10824_v46, %v6397_v34 }
0x12f4   : > { %v6343_v2 = vmul.f32 0.044715, %v6335_v9  ;;  %v6290_v50 = vadd.f32 %v6289_v18, %v6260_v20 }
0x12f5   : > { %v6382_v1 = vmul.f32 0.5, %v6374_v5  ;;  %v6416_v39 = vadd.f32 %v10827_v48, %v6407_v62 }
0x12f6   : > { %v6351_v6 = vadd.f32 %v6343_v2, %v6317_v10  ;;  %v6319_v29 = vadd.f32 %v6318_v61, %v6290_v50 }
0x12f7   : > { %v6390_v47 = vmul.f32 %v6382_v1, %v6314_v32 }
0x12f8   : > { %v6359_v58 = vmul.f32 0.7978846, %v6351_v6  ;;  %v6328_v44 = vmul.f32 %v6319_v29, %v6319_v29 }
0x12f9   : > { %v6398_v25 = vadd.f32 %v6390_v47, %v10534_v12 }
0x12fa   : > { %7945 = vtanh.f32 %v6359_v58  ;;  %v6336_v59 = vmul.f32 %v6328_v44, %v6319_v29 }
0x12fb   : > { %v6408_v19 = vmul.f32 %v10824_v46, %v6398_v25 }
0x12fc   : > { %v6344_v35 = vmul.f32 0.044715, %v6336_v59 }
0x12fd   : > { %v6417_v54 = vadd.f32 %v10827_v48, %v6408_v19 }
0x12fe   : > { %v6352_v15 = vadd.f32 %v6344_v35, %v6319_v29 }
0x12ff   : > { %v6422_v8 = vpack.c.bf16 %v6417_v54, %v6416_v39 }
0x1300   : > { %v7946_v56 = vpop.eup %7945  ;;  %v6360_v21 = vmul.f32 0.7978846, %v6352_v15 }
0x1301   : > { %v6375_v41 = vadd.f32 1.0, %v7946_v56  ;;  %7313 = vmatmul.msk.bf16.gmra.mxu0 %vm1573_vm0, %v6422_v8 }
0x1302   : > { %7947 = vtanh.f32 %v6360_v21 }
0x1303   : > { %v6383_v12 = vmul.f32 0.5, %v6375_v41 }
0x1305   : > { %v6391_v30 = vmul.f32 %v6383_v12, %v6317_v10 }
0x1307   : > { %v6399_v32 = vadd.f32 %v6391_v30, %v10566_v4  ;;  %v7439_v4 = vld [vmem:[%s8262_s12 + $0x38] sm:$0xff] }
0x1308   : > { %v7948_v40 = vpop.eup %7947  ;;  %6621 = vmatpush.bf16.msra.mxu2 %v7439_v4 }
0x1309   : > { %v6376_v33 = vadd.f32 1.0, %v7948_v40  ;;  %v6409_v16 = vmul.f32 %v10824_v46, %v6399_v32 }
0x130b   : > { %v6384_v7 = vmul.f32 0.5, %v6376_v33  ;;  %v6418_v14 = vadd.f32 %v10827_v48, %v6409_v16 }
0x130c   : > { %6622 = vmatpush.bf16.msra.mxu2 %v7438_v17 }
0x130d   : > { %v6392_v23 = vmul.f32 %v6384_v7, %v6319_v29 }
0x130f   : > { %v6400_v31 = vadd.f32 %v6392_v23, %v10592_v0  ;;  %v7436_v0 = vld [vmem:[%s8262_s12 + $0x20] sm:$0xff] }
0x1310   : > { %6623 = vmatpush.bf16.msra.mxu2 %v7437_v38 }
0x1311   : > { %v6410_v24 = vmul.f32 %v10824_v46, %v6400_v31  ;;  %v7434_v46 = vld [vmem:[%s8262_s12 + $0x10] sm:$0xff] }
0x1313   : > { %v6419_v49 = vadd.f32 %v10827_v48, %v6410_v24 }
0x1314   : > { %6624 = vmatpush.bf16.msra.mxu2 %v7436_v0 }
0x1315   : > { %v6423_v26 = vpack.c.bf16 %v6419_v49, %v6418_v14 }
0x1317   : > { %7314 = vmatmul.msk.bf16.gmra.mxu0 %vm1573_vm0, %v6423_v26 }
0x1318   : > { %6625 = vmatpush.bf16.msra.mxu2 %v7435_v28 }
0x131c   : > { %6626 = vmatpush.bf16.msra.mxu2 %v7434_v46 }
0x1320   : > { %6627 = vmatpush.bf16.msra.mxu2 %v7433_v60 }
0x1324   : > { %6628 = vmatpush.bf16.msra.mxu2 %v7432_v43 }
0x135e   : > { %v6461_v55 = vpop.f32.mrf.mxu0 }
0x135f   : > { %v6481_v48 = vmul.f32 %v6461_v55, %v6461_v55 }
0x1361   : > { %v6489_v3 = vmul.f32 %v6481_v48, %v6461_v55 }
0x1363   : > { %v6497_v42 = vmul.f32 0.044715, %v6489_v3 }
0x1365   : > { %v6505_v27 = vadd.f32 %v6497_v42, %v6461_v55 }
0x1366   : > { %v6463_v37 = vpop.f32.mrf.mxu0 }
0x1367   : > { %v6513_v22 = vmul.f32 0.7978846, %v6505_v27  ;;  %v6482_v51 = vmul.f32 %v6463_v37, %v6463_v37 }
0x1369   : > { %v6490_v11 = vmul.f32 %v6482_v51, %v6463_v37  ;;  %7949 = vtanh.f32 %v6513_v22 }
0x136b   : > { %v6498_v36 = vmul.f32 0.044715, %v6490_v11 }
0x136d   : > { %v6506_v63 = vadd.f32 %v6498_v36, %v6463_v37 }
0x136e   : > { %v6466_v53 = vpop.f32.mrf.mxu0 }
0x136f   : > { %v6514_v10 = vmul.f32 0.7978846, %v6506_v63  ;;  %v6483_v13 = vmul.f32 %v6466_v53, %v6466_v53  ;;  %v7950_v52 = vpop.eup %7949 }
0x1370   : > { %v6529_v9 = vadd.f32 1.0, %v7950_v52 }
0x1371   : > { %7951 = vtanh.f32 %v6514_v10  ;;  %v6491_v57 = vmul.f32 %v6483_v13, %v6466_v53 }
0x1372   : > { %v6537_v34 = vmul.f32 0.5, %v6529_v9 }
0x1373   : > { %v6499_v45 = vmul.f32 0.044715, %v6491_v57 }
0x1374   : > { %v6545_v47 = vmul.f32 %v6537_v34, %v6461_v55 }
0x1375   : > { %v6507_v5 = vadd.f32 %v6499_v45, %v6466_v53 }
0x1376   : > { %v6468_v20 = vpop.f32.mrf.mxu0 }
0x1377   : > { %v7952_v18 = vpop.eup %7951  ;;  %v6515_v2 = vmul.f32 0.7978846, %v6507_v5  ;;  %v6484_v50 = vmul.f32 %v6468_v20, %v6468_v20 }
0x1378   : > { %v6530_v1 = vadd.f32 1.0, %v7952_v18  ;;  %v6650_v18 = vld [vmem:[%s8267_s19] sm:$0x3] }
0x1379   : > { %v6492_v61 = vmul.f32 %v6484_v50, %v6468_v20  ;;  %7953 = vtanh.f32 %v6515_v2  ;;  %v6651_v2 = vperm.slane %v6650_v18, 0  ;;  %v6660_v50 = vperm.slane %v6650_v18, 1 }
0x137a   : > { %v6538_v6 = vmul.f32 0.5, %v6530_v1 }
0x137b   : > { %v6500_v29 = vmul.f32 0.044715, %v6492_v61 }
0x137c   : > { %v6546_v58 = vmul.f32 %v6538_v6, %v6463_v37  ;;  %v11057_v6 = vld [vmem:[#allocation31_spill] sm:$0xff] }
0x137d   : > { %v6508_v44 = vadd.f32 %v6500_v29, %v6468_v20 }
0x137e   : > { %v6553_v25 = vpack.c.bf16 %v6546_v58, %v6545_v47  ;;  %v6471_v62 = vpop.f32.mrf.mxu0 }
0x137f   : > { %v6516_v59 = vmul.f32 0.7978846, %v6508_v44  ;;  %v6485_v19 = vmul.f32 %v6471_v62, %v6471_v62  ;;  %v7954_v35 = vpop.eup %7953 }
0x1380   : > { %6629 = vmatmul.bf16.vlgmr.msra.gmra.mxu2 %v6553_v25  ;;  %v6531_v15 = vadd.f32 1.0, %v7954_v35  ;;  %v11058_v25 = vld [vmem:[#allocation32_spill] sm:$0xff] }
0x1381   : > { %7955 = vtanh.f32 %v6516_v59  ;;  %v6493_v39 = vmul.f32 %v6485_v19, %v6471_v62 }
0x1382   : > { %v6539_v30 = vmul.f32 0.5, %v6531_v15 }
0x1383   : > { %v6501_v54 = vmul.f32 0.044715, %v6493_v39  ;;  %v11059_v39 = vld [vmem:[#allocation33_spill] sm:$0xff] }
0x1384   : > { %v6547_v23 = vmul.f32 %v6539_v30, %v6466_v53 }
0x1385   : > { %v6509_v8 = vadd.f32 %v6501_v54, %v6471_v62 }
0x1386   : > { %v6473_v56 = vpop.f32.mrf.mxu0 }
0x1387   : > { %v7956_v21 = vpop.eup %7955  ;;  %v6517_v41 = vmul.f32 0.7978846, %v6509_v8  ;;  %v6486_v12 = vmul.f32 %v6473_v56, %v6473_v56 }
0x1388   : > { %v6532_v40 = vadd.f32 1.0, %v7956_v21  ;;  %v11060_v21 = vld [vmem:[#allocation34_spill] sm:$0xff] }
0x1389   : > { %v6494_v33 = vmul.f32 %v6486_v12, %v6473_v56  ;;  %7957 = vtanh.f32 %v6517_v41 }
0x138a   : > { %v6540_v32 = vmul.f32 0.5, %v6532_v40 }
0x138b   : > { %v6502_v7 = vmul.f32 0.044715, %v6494_v33  ;;  %v11061_v33 = vld [vmem:[#allocation35_spill] sm:$0xff] }
0x138c   : > { %v6548_v31 = vmul.f32 %v6540_v32, %v6468_v20 }
0x138d   : > { %v6510_v16 = vadd.f32 %v6502_v7, %v6473_v56 }
0x138e   : > { %v6554_v24 = vpack.c.bf16 %v6548_v31, %v6547_v23 }
0x138f   : > { %v6518_v14 = vmul.f32 0.7978846, %v6510_v16  ;;  %v7958_v49 = vpop.eup %7957  ;;  %v11062_v16 = vld [vmem:[#allocation36_spill] sm:$0xff] }
0x1390   : > { %6634 = vmatmul.bf16.gmra.mxu2 %v6554_v24  ;;  %v6533_v26 = vadd.f32 1.0, %v7958_v49 }
0x1391   : > { %7959 = vtanh.f32 %v6518_v14 }
0x1392   : > { %v6541_v28 = vmul.f32 0.5, %v6533_v26 }
0x1394   : > { %v6476_v4 = vpop.f32.mrf.mxu0  ;;  %v6549_v43 = vmul.f32 %v6541_v28, %v6471_v62 }
0x1395   : > { %v6487_v17 = vmul.f32 %v6476_v4, %v6476_v4 }
0x1397   : > { %v7960_v38 = vpop.eup %7959  ;;  %v6495_v0 = vmul.f32 %v6487_v17, %v6476_v4 }
0x1398   : > { %v6534_v46 = vadd.f32 1.0, %v7960_v38 }
0x1399   : > { %v6503_v60 = vmul.f32 0.044715, %v6495_v0 }
0x139a   : > { %v6542_v55 = vmul.f32 0.5, %v6534_v46  ;;  %v11064_v46 = vld [vmem:[#allocation37_spill] sm:$0xff] }
0x139b   : > { %v6511_v48 = vadd.f32 %v6503_v60, %v6476_v4 }
0x139c   : > { %v6550_v3 = vmul.f32 %v6542_v55, %v6473_v56  ;;  %v6478_v42 = vpop.f32.mrf.mxu0 }
0x139d   : > { %v6519_v27 = vmul.f32 0.7978846, %v6511_v48  ;;  %v6488_v37 = vmul.f32 %v6478_v42, %v6478_v42 }
0x139e   : > { %v6555_v22 = vpack.c.bf16 %v6550_v3, %v6549_v43 }
0x139f   : > { %v6496_v51 = vmul.f32 %v6488_v37, %v6478_v42  ;;  %7961 = vtanh.f32 %v6519_v27 }
0x13a0   : > { %6639 = vmatmul.bf16.gmra.mxu2 %v6555_v22 }
0x13a1   : > { %v6504_v11 = vmul.f32 0.044715, %v6496_v51 }
0x13a3   : > { %v6512_v36 = vadd.f32 %v6504_v11, %v6478_v42 }
0x13a5   : > { %v6520_v63 = vmul.f32 0.7978846, %v6512_v36  ;;  %v7962_v53 = vpop.eup %7961 }
0x13a6   : > { %v6535_v10 = vadd.f32 1.0, %v7962_v53 }
0x13a7   : > { %7963 = vtanh.f32 %v6520_v63 }
0x13a8   : > { %v6543_v52 = vmul.f32 0.5, %v6535_v10 }
0x13aa   : > { %v6551_v9 = vmul.f32 %v6543_v52, %v6476_v4  ;;  %v11063_v4 = vld [vmem:[#allocation39_spill] sm:$0xff] }
0x13ad   : > { %v7964_v13 = vpop.eup %7963 }
0x13ae   : > { %v6536_v57 = vadd.f32 1.0, %v7964_v13 }
0x13b0   : > { %v6544_v45 = vmul.f32 0.5, %v6536_v57 }
0x13b2   : > { %v6552_v5 = vmul.f32 %v6544_v45, %v6478_v42 }
0x13b4   : > { %v6556_v20 = vpack.c.bf16 %v6552_v5, %v6551_v9 }
0x13b6   : > { %6644 = vmatmul.bf16.gmra.mxu2 %v6556_v20 }
0x1403   : > { %v6630_v34 = vpop.f32.mrf.mxu2 }
0x1404   : > { %v6652_v1 = vmul.f32 %v6651_v2, %v6630_v34 }
0x1406   : > { %v6661_v61 = vadd.f32 %v6660_v50, %v6652_v1 }
0x1408   : > { %v6669_v29 = vadd.f32 %v6661_v61, %v11057_v6 }
0x140a   : > { %6677 = vst.msk [vmem:[%s10868_s6] sm:$0xff] %vm1573_vm0, %v6669_v29 }
0x140b   : > { %v6632_v47 = vpop.f32.mrf.mxu2 }
0x140c   : > { %v6653_v58 = vmul.f32 %v6651_v2, %v6632_v47 }
0x140e   : > { %v6662_v44 = vadd.f32 %v6660_v50, %v6653_v58 }
0x1410   : > { %v6670_v62 = vadd.f32 %v6662_v44, %v11058_v25 }
0x1412   : > { %6678 = vst.msk [vmem:[%s10868_s6 + $0x8] sm:$0xff] %vm1573_vm0, %v6670_v62 }
0x1413   : > { %v6635_v59 = vpop.f32.mrf.mxu2 }
0x1414   : > { %v6654_v19 = vmul.f32 %v6651_v2, %v6635_v59 }
0x1416   : > { %v6663_v35 = vadd.f32 %v6660_v50, %v6654_v19 }
0x1418   : > { %v6671_v54 = vadd.f32 %v6663_v35, %v11059_v39 }
0x141a   : > { %6679 = vst.msk [vmem:[%s10868_s6 + $0x10] sm:$0xff] %vm1573_vm0, %v6671_v54 }
0x141b   : > { %v6637_v15 = vpop.f32.mrf.mxu2 }
0x141c   : > { %v6655_v8 = vmul.f32 %v6651_v2, %v6637_v15 }
0x141e   : > { %v6664_v56 = vadd.f32 %v6660_v50, %v6655_v8 }
0x1420   : > { %v6672_v41 = vadd.f32 %v6664_v56, %v11060_v21 }
0x1422   : > { %6680 = vst.msk [vmem:[%s10868_s6 + $0x18] sm:$0xff] %vm1573_vm0, %v6672_v41 }
0x1423   : > { %v6640_v12 = vpop.f32.mrf.mxu2 }
0x1424   : > { %v6656_v30 = vmul.f32 %v6651_v2, %v6640_v12 }
0x1426   : > { %v6665_v40 = vadd.f32 %v6660_v50, %v6656_v30 }
0x1428   : > { %v6673_v32 = vadd.f32 %v6665_v40, %v11061_v33 }
0x142a   : > { %6681 = vst.msk [vmem:[%s10868_s6 + $0x20] sm:$0xff] %vm1573_vm0, %v6673_v32 }
0x142b   : > { %v6642_v7 = vpop.f32.mrf.mxu2 }
0x142c   : > { %v6657_v23 = vmul.f32 %v6651_v2, %v6642_v7 }
0x142e   : > { %v6666_v31 = vadd.f32 %v6660_v50, %v6657_v23 }
0x1430   : > { %v6674_v24 = vadd.f32 %v6666_v31, %v11062_v16 }
0x1432   : > { %6682 = vst.msk [vmem:[%s10868_s6 + $0x28] sm:$0xff] %vm1573_vm0, %v6674_v24 }
0x1439   : > { %v6645_v14 = vpop.f32.mrf.mxu2 }
0x143a   : > { %v6658_v49 = vmul.f32 %v6651_v2, %v6645_v14 }
0x143c   : > { %v6667_v26 = vadd.f32 %v6660_v50, %v6658_v49 }
0x143e   : > { %v6675_v17 = vadd.f32 %v6667_v26, %v11063_v4 }
0x1440   : > { %6683 = vst.msk [vmem:[%s10868_s6 + $0x30] sm:$0xff] %vm1573_vm0, %v6675_v17 }
0x1441   : > { %v6647_v38 = vpop.f32.mrf.mxu2 }
0x1442   : > { %v6659_v0 = vmul.f32 %v6651_v2, %v6647_v38 }
0x1444   : > { %v6668_v28 = vadd.f32 %v6660_v50, %v6659_v0 }
0x1446   : > { %v6676_v60 = vadd.f32 %v6668_v28, %v11064_v46 }
0x1448   : > { %6684 = vst.msk [vmem:[%s10868_s6 + $0x38] sm:$0xff] %vm1573_vm0, %v6676_v60 }
0x1449   : > { %8008 = shalt.err (!%p8005_p3)
}
0x144a   : > { %s8087_s4 = smov 128   ;;  %s8088_s10 = smov 8  }
0x144b   : > { %7449 = dma.vmem_to_hbm [thread:$0]  (%p8312_p5), %s6699_s3, 1024, %s6701_s5, %s6686_s7, %s8087_s4, %s8087_s4, %s8088_s10  }
0x144c PF: > { %p7455_p4 = scmp.ge.s32.totalorder %s8043_s28, 2  ;;  %s6715_s6 = sand.u32 1, %s8031_s22  }
0x144d   : > { %s6716_s0 = scalar_lea.sflag [#allocation3], %s6715_s6 }
0x144e   : > { %p7452_p7 = pnand %p7455_p4, %p8316_p6 }
0x1450   : > { %p7453_p8 = pneg %p7452_p7 }
0x1452   : > { %8026 = dma.done.wait (%p7453_p8), %s6716_s0, 1024  }
0x1453   : > { %8028 = vsyncadd (%p7453_p8), %s6716_s0, 4294966272  ;;  %s11066_s9 = sld [smem:[#allocation30_spill]]  ;;  %p81_p9 = scmp.ge.s32.totalorder %s8299_s2, 4  }
0x1454   : > { %s11067_s22 = smov %s8035_s23  ;;  %s11068_s23 = smov %s8039_s26 }
0x1455   : > { %s11070_s28 = smov %s8299_s2  ;;  %83 = sbr.rel (!%p81_p9) target bundleno = 67 (0x43), region = 244 }
0x1459   : > { %s11069_s26 = smov %s11066_s9 }
0x145a   :  { %6722 = vsyncpa [#allocation3], 1 }
0x145b   :  { %6724 = vsyncpa [#allocation3 + $0x1], 1 }

</bundles_post_ra>
